<compile_context>
chip_gen: v7x
topology: tpu7x:2x2x1
jax: 0.10.0
libtpu: 0.0.40
codegen_flags: <defaults>
</compile_context>

<pallas_src>
import functools

import jax
import jax.numpy as jnp
import numpy as np
from jax import lax
from jax.experimental import pallas as pl
from jax.experimental.pallas import tpu as pltpu

NEG_SLOPE = 0.01   # torch.nn.functional.leaky_relu default
BN_EPS = 1e-5      # torch.nn.BatchNorm1d default


def _leaky(t):
    return jnp.where(t >= 0, t, NEG_SLOPE * t)


# ----------------------------- kernels --------------------------------------


def _conv3(x, w_ref, b_ref, seg_len):
    """K=3, pad=1 Conv1d over the row axis of a (T, C) tile as ONE MXU matmul.

    The tile holds whole length-`seg_len` segments, so neighbour taps come from
    inside the tile via a roll and are zeroed at segment boundaries with a
    (T, 1) position mask (= Conv1d zero padding).  Taps are packed lane-wise
    into (T, 3C) bf16 and contracted against the (3C, C) bf16 weight with f32
    accumulation (fills the 256-wide MXU on v6e/v7x, bf16-native on v5e).
    """
    T = x.shape[0]
    pos = lax.broadcasted_iota(jnp.int32, (T, 1), 0) % seg_len
    prev = jnp.where(pos == 0, 0.0, pltpu.roll(x, shift=1, axis=0))
    nxt = jnp.where(pos == seg_len - 1, 0.0, pltpu.roll(x, shift=T - 1, axis=0))
    taps = jnp.concatenate([prev, x, nxt], axis=1).astype(jnp.bfloat16)
    return jnp.dot(taps, w_ref[...],
                   preferred_element_type=jnp.float32) + b_ref[...]


def _store_partial_stats(stats_ref, h):
    # Per-tile (sum, sum_of_squares) over rows; reduced across tiles in the
    # wrapper -> keeps the row-tile grid axis fully "parallel".
    s = jnp.sum(h, axis=0, keepdims=True)
    ss = jnp.sum(h * h, axis=0, keepdims=True)
    stats_ref[...] = jnp.concatenate([s, ss], axis=0)


def conv_stats_kernel(x_ref, w_ref, b_ref, h_ref, stats_ref, *, seg_len):
    """Pass 1: h1 = conv1(x); also emit BN1 partial statistics."""
    h = _conv3(x_ref[...], w_ref, b_ref, seg_len)
    h_ref[...] = h
    _store_partial_stats(stats_ref, h)


def bn_act_conv_stats_kernel(h1_ref, scale_ref, shift_ref, w_ref, b_ref,
                             h2_ref, stats_ref, *, seg_len):
    """Pass 2: bn1 (as scale/shift) -> leaky_relu -> conv2; emit BN2 stats."""
    a = _leaky(h1_ref[...] * scale_ref[...] + shift_ref[...])
    h2 = _conv3(a, w_ref, b_ref, seg_len)
    h2_ref[...] = h2
    _store_partial_stats(stats_ref, h2)


def bn_res_act_upconv_kernel(h2_ref, x_ref, scale_ref, shift_ref,
                             wup_ref, bup_ref, out_ref):
    """Pass 3: bn2 -> +x residual -> leaky_relu -> fused ConvTranspose1d(2,2).

    Output row r holds [even-phase C channels | odd-phase C channels]: a single
    lane-dense (T, 2C) store; the wrapper interleaves with a free reshape.
    """
    y = _leaky(h2_ref[...] * scale_ref[...] + shift_ref[...] + x_ref[...])
    out_ref[...] = (jnp.dot(y.astype(jnp.bfloat16), wup_ref[...],
                            preferred_element_type=jnp.float32) + bup_ref[...])


# ----------------------------- wrapper ---------------------------------------


def _rows_per_tile(num_segs, seg_len, target_rows):
    """Largest whole-segment row tile not exceeding target_rows (>= 1 segment)."""
    s_best = 1
    for s in range(1, num_segs + 1):
        if num_segs % s == 0 and s * seg_len <= max(target_rows, seg_len):
            s_best = s
    return s_best * seg_len


def _affine_from_stats(stats, gamma, beta, count):
    """Fold per-tile (sum, sum_sq) partials into BN scale/shift rows (f32)."""
    tot = jnp.sum(stats.astype(jnp.float32), axis=0)          # (2, C)
    mean = tot[0] / count
    var = jnp.maximum(tot[1] / count - mean * mean, 0.0)
    scale = gamma.astype(jnp.float32) * lax.rsqrt(var + BN_EPS)
    shift = beta.astype(jnp.float32) - mean * scale
    return scale.reshape(1, -1), shift.reshape(1, -1)


def upblock_forward_nlc(x_nlc, params, *, target_rows=512):
    """UpBlock forward in channels-last layout: (N, L, C) -> (N, 2L, C)."""
    N, L, C = x_nlc.shape
    K = params["w1"].shape[2]
    assert K == 3, "residual UpBlock needs kernel_size == 3 (length preserving)"

    R = N * L
    T = _rows_per_tile(N, L, target_rows)
    num_tiles = R // T
    grid = (num_tiles,)

    xs = x_nlc.reshape(R, C).astype(jnp.float32)

    # conv weight (O, Cin, K) -> (K*Cin, O) matching the [prev|centre|next] packing
    def conv_w(w):
        return jnp.transpose(w, (2, 1, 0)).reshape(3 * C, C).astype(jnp.bfloat16)

    w1 = conv_w(params["w1"])
    w2 = conv_w(params["w2"])
    b1 = params["b1"].reshape(1, C).astype(jnp.float32)
    b2 = params["b2"].reshape(1, C).astype(jnp.float32)
    # ConvTranspose1d weight (Cin, Cout, 2) -> (Cin, 2*Cout): [even | odd]
    wup = jnp.concatenate([params["wup"][:, :, 0], params["wup"][:, :, 1]],
                          axis=1).astype(jnp.bfloat16)
    bup = jnp.concatenate([params["bup"], params["bup"]]).reshape(1, 2 * C)
    bup = bup.astype(jnp.float32)

    act_spec = pl.BlockSpec((T, C), lambda i: (i, 0))
    row_spec = pl.BlockSpec((1, C), lambda i: (0, 0))
    wconv_spec = pl.BlockSpec((3 * C, C), lambda i: (0, 0))
    wup_spec = pl.BlockSpec((C, 2 * C), lambda i: (0, 0))
    row2_spec = pl.BlockSpec((1, 2 * C), lambda i: (0, 0))
    stats_spec = pl.BlockSpec((None, 2, C), lambda i: (i, 0, 0))
    out2_spec = pl.BlockSpec((T, 2 * C), lambda i: (i, 0))

    act_shape = jax.ShapeDtypeStruct((R, C), jnp.float32)
    stats_shape = jax.ShapeDtypeStruct((num_tiles, 2, C), jnp.float32)

    cparams = pltpu.CompilerParams(
        dimension_semantics=("parallel",),     # megacore-shardable (v7x: 2 TCs)
        vmem_limit_bytes=32 * 1024 * 1024,     # explicit budget; safe on v7x's 64 MiB
    )

    # pass 1: conv1 + BN1 partial stats
    h1, st1 = pl.pallas_call(
        functools.partial(conv_stats_kernel, seg_len=L),
        grid=grid,
        in_specs=[act_spec, wconv_spec, row_spec],
        out_specs=(act_spec, stats_spec),
        out_shape=(act_shape, stats_shape),
        compiler_params=cparams,
    )(xs, w1, b1)
    scale1, shift1 = _affine_from_stats(st1, params["g1"], params["beta1"], float(R))

    # pass 2: bn1 -> leaky -> conv2 + BN2 partial stats
    h2, st2 = pl.pallas_call(
        functools.partial(bn_act_conv_stats_kernel, seg_len=L),
        grid=grid,
        in_specs=[act_spec, row_spec, row_spec, wconv_spec, row_spec],
        out_specs=(act_spec, stats_spec),
        out_shape=(act_shape, stats_shape),
        compiler_params=cparams,
    )(h1, scale1, shift1, w2, b2)
    scale2, shift2 = _affine_from_stats(st2, params["g2"], params["beta2"], float(R))

    # pass 3: bn2 -> +x -> leaky -> fused stride-2 transposed conv (lane-dense 2C)
    out2 = pl.pallas_call(
        bn_res_act_upconv_kernel,
        grid=grid,
        in_specs=[act_spec, act_spec, row_spec, row_spec, wup_spec, row2_spec],
        out_specs=out2_spec,
        out_shape=jax.ShapeDtypeStruct((R, 2 * C), jnp.float32),
        compiler_params=cparams,
    )(h2, xs, scale2, shift2, wup, bup)

    # rows are [even | odd] phases -> interleaving is a free contiguous reshape
    return out2.reshape(N, 2 * L, C)


def upblock_forward(x_ncl, params, *, target_rows=512):
    """PyTorch-layout entry: (N, C, L) -> (N, C, 2L).  (The NLC entry point
    above lets channels-last callers skip these two transposes entirely.)"""
    x_nlc = jnp.transpose(x_ncl, (0, 2, 1))
    out_nlc = upblock_forward_nlc(x_nlc, params, target_rows=target_rows)
    return jnp.transpose(out_nlc, (0, 2, 1))


# ----------------------------- reference -------------------------------------


def _q_bf16(t):
    """Round to bf16 and back: mirrors the kernel's bf16 MXU operands."""
    return t.astype(jnp.bfloat16).astype(jnp.float32)


def ref_upblock(x, p):
    """Pure-JAX NCL reference mirroring the PyTorch forward (training-mode BN),
    with matmul operands rounded to bf16 and f32 accumulation like the kernel."""
    _HI = lax.Precision.HIGHEST   # exact on bf16-valued f32 operands

    def conv1d(inp, w, b):
        n, _, L = inp.shape
        xq = _q_bf16(inp)
        wq = _q_bf16(w)
        xp = jnp.pad(xq, ((0, 0), (0, 0), (1, 1)))
        y = jnp.zeros((n, w.shape[0], L), jnp.float32)
        for k in range(w.shape[2]):
            y = y + jnp.einsum("oc,ncl->nol", wq[:, :, k], xp[:, :, k:k + L],
                               precision=_HI)
        return y + b[None, :, None]

    def bn(t, g, bt):
        m = jnp.mean(t, axis=(0, 2), keepdims=True)
        v = jnp.mean((t - m) ** 2, axis=(0, 2), keepdims=True)
        return (t - m) * lax.rsqrt(v + BN_EPS) * g[None, :, None] + bt[None, :, None]

    y = _leaky(bn(conv1d(x, p["w1"], p["b1"]), p["g1"], p["beta1"]))
    y = bn(conv1d(y, p["w2"], p["b2"]), p["g2"], p["beta2"])
    y = _leaky(y + x)
    yq = _q_bf16(y)
    wupq = _q_bf16(p["wup"])
    even = jnp.einsum("co,ncl->nol", wupq[:, :, 0], yq, precision=_HI) \
        + p["bup"][None, :, None]
    odd = jnp.einsum("co,ncl->nol", wupq[:, :, 1], yq, precision=_HI) \
        + p["bup"][None, :, None]
    N, C, L = x.shape
    return jnp.stack([even, odd], axis=-1).reshape(N, C, 2 * L)


if __name__ == "__main__":
    N, C, L, K = 8, 128, 256, 3
    key = jax.random.PRNGKey(0)
    ks = jax.random.split(key, 11)
    s_conv = 0.6 / float(np.sqrt(3 * C))
    s_up = 1.0 / float(np.sqrt(C))
    params = dict(
        w1=s_conv * jax.random.normal(ks[0], (C, C, K), jnp.float32),
        b1=0.1 * jax.random.normal(ks[1], (C,), jnp.float32),
        g1=1.0 + 0.1 * jax.random.normal(ks[2], (C,), jnp.float32),
        beta1=0.1 * jax.random.normal(ks[3], (C,), jnp.float32),
        w2=s_conv * jax.random.normal(ks[4], (C, C, K), jnp.float32),
        b2=0.1 * jax.random.normal(ks[5], (C,), jnp.float32),
        g2=1.0 + 0.1 * jax.random.normal(ks[6], (C,), jnp.float32),
        beta2=0.1 * jax.random.normal(ks[7], (C,), jnp.float32),
        wup=s_up * jax.random.normal(ks[8], (C, C, 2), jnp.float32),  # ConvTranspose1d (Cin, Cout, 2)
        bup=0.1 * jax.random.normal(ks[9], (C,), jnp.float32),
    )
    x = jax.random.normal(ks[10], (N, C, L), jnp.float32)

    fwd = jax.jit(upblock_forward)
    out = jax.block_until_ready(fwd(x, params))
    assert out.shape == (N, C, 2 * L), out.shape

    ref = jax.block_until_ready(jax.jit(ref_upblock)(x, params))
    np.testing.assert_allclose(np.asarray(out), np.asarray(ref),
                               rtol=5e-3, atol=5e-3)

    print("KERNEL_OK")
</pallas_src>

<mosaic_0001>
module attributes {stable_mosaic.version = 11 : i64} {
  func.func @bn_act_conv_stats_kernel(%arg0: i32, %arg1: memref<512x128xf32, #tpu.memory_space<vmem>>, %arg2: memref<1x128xf32, #tpu.memory_space<vmem>>, %arg3: memref<1x128xf32, #tpu.memory_space<vmem>>, %arg4: memref<384x128xbf16, #tpu.memory_space<vmem>>, %arg5: memref<1x128xf32, #tpu.memory_space<vmem>>, %arg6: memref<512x128xf32, #tpu.memory_space<vmem>>, %arg7: memref<1x2x128xf32, #tpu.memory_space<vmem>>) attributes {dimension_semantics = [#tpu.dimension_semantics<parallel>], iteration_bounds = array<i64: 4>, scalar_prefetch = 0 : i64, scratch_operands = 0 : i64, tpu.core_type = #tpu.core_type<tc>, window_params = [{transform_indices = @transform_0, window_bounds = array<i64: 512, 128>}, {pipeline_mode = #tpu.pipeline_mode<synchronous>, transform_indices = @transform_1, window_bounds = array<i64: 1, 128>}, {pipeline_mode = #tpu.pipeline_mode<synchronous>, transform_indices = @transform_2, window_bounds = array<i64: 1, 128>}, {pipeline_mode = #tpu.pipeline_mode<synchronous>, transform_indices = @transform_3, window_bounds = array<i64: 384, 128>}, {pipeline_mode = #tpu.pipeline_mode<synchronous>, transform_indices = @transform_4, window_bounds = array<i64: 1, 128>}, {transform_indices = @transform_5, window_bounds = array<i64: 512, 128>}, {transform_indices = @transform_6, window_bounds = array<i64: 1, 2, 128>}]} {
    %c0 = arith.constant 0 : index
    %c0_0 = arith.constant 0 : index
    %0 = vector.load %arg1[%c0, %c0_0] : memref<512x128xf32, #tpu.memory_space<vmem>>, vector<512x128xf32>
    %c0_1 = arith.constant 0 : index
    %c0_2 = arith.constant 0 : index
    %1 = vector.load %arg2[%c0_1, %c0_2] : memref<1x128xf32, #tpu.memory_space<vmem>>, vector<1x128xf32>
    %2 = vector.broadcast %1 : vector<1x128xf32> to vector<512x128xf32>
    %3 = arith.mulf %0, %2 : vector<512x128xf32>
    %c0_3 = arith.constant 0 : index
    %c0_4 = arith.constant 0 : index
    %4 = vector.load %arg3[%c0_3, %c0_4] : memref<1x128xf32, #tpu.memory_space<vmem>>, vector<1x128xf32>
    %5 = vector.broadcast %4 : vector<1x128xf32> to vector<512x128xf32>
    %6 = arith.addf %3, %5 : vector<512x128xf32>
    %cst = arith.constant 0.000000e+00 : f32
    %7 = vector.broadcast %cst : f32 to vector<512x128xf32>
    %8 = arith.cmpf oge, %6, %7 : vector<512x128xf32>
    %cst_5 = arith.constant 0.00999999977 : f32
    %9 = vector.broadcast %cst_5 : f32 to vector<512x128xf32>
    %10 = arith.mulf %9, %6 : vector<512x128xf32>
    %11 = arith.select %8, %6, %10 : vector<512x128xi1>, vector<512x128xf32>
    %12 = tpu.iota {dimensions = array<i32: 0>} : vector<512x1xi32>
    %c256_i32 = arith.constant 256 : i32
    %c0_i32 = arith.constant 0 : i32
    %13 = arith.cmpi eq, %c256_i32, %c0_i32 : i32
    %c1_i32 = arith.constant 1 : i32
    %14 = arith.select %13, %c1_i32, %c256_i32 : i32
    %15 = vector.broadcast %14 : i32 to vector<512x1xi32>
    %16 = arith.remsi %12, %15 : vector<512x1xi32>
    %c0_i32_6 = arith.constant 0 : i32
    %17 = vector.broadcast %c0_i32_6 : i32 to vector<512x1xi32>
    %18 = arith.cmpi ne, %16, %17 : vector<512x1xi32>
    %c0_i32_7 = arith.constant 0 : i32
    %19 = vector.broadcast %c0_i32_7 : i32 to vector<512x1xi32>
    %20 = arith.cmpi slt, %16, %19 : vector<512x1xi32>
    %c0_i32_8 = arith.constant 0 : i32
    %21 = arith.cmpi slt, %14, %c0_i32_8 : i32
    %22 = vector.broadcast %21 : i1 to vector<512x1xi1>
    %23 = vector.broadcast %22 : vector<512x1xi1> to vector<512x1xi1>
    %24 = arith.xori %20, %23 : vector<512x1xi1>
    %25 = arith.andi %24, %18 : vector<512x1xi1>
    %26 = vector.broadcast %14 : i32 to vector<512x1xi32>
    %27 = arith.addi %16, %26 : vector<512x1xi32>
    %28 = arith.select %25, %27, %16 : vector<512x1xi1>, vector<512x1xi32>
    %c0_i32_9 = arith.constant 0 : i32
    %29 = vector.broadcast %c0_i32_9 : i32 to vector<512x1xi32>
    %30 = arith.cmpi eq, %28, %29 : vector<512x1xi32>
    %c1_i32_10 = arith.constant 1 : i32
    %31 = tpu.dynamic_rotate %11 by %c1_i32_10 dim 0 : vector<512x128xf32>, i32 -> vector<512x128xf32>
    %cst_11 = arith.constant 0.000000e+00 : f32
    %32 = vector.shape_cast %30 : vector<512x1xi1> to vector<512x1xi1>
    %33 = vector.broadcast %32 : vector<512x1xi1> to vector<512x128xi1>
    %34 = vector.broadcast %cst_11 : f32 to vector<512x128xf32>
    %35 = arith.select %33, %34, %31 : vector<512x128xi1>, vector<512x128xf32>
    %c255_i32 = arith.constant 255 : i32
    %36 = vector.broadcast %c255_i32 : i32 to vector<512x1xi32>
    %37 = arith.cmpi eq, %28, %36 : vector<512x1xi32>
    %c511_i32 = arith.constant 511 : i32
    %38 = tpu.dynamic_rotate %11 by %c511_i32 dim 0 : vector<512x128xf32>, i32 -> vector<512x128xf32>
    %cst_12 = arith.constant 0.000000e+00 : f32
    %39 = vector.shape_cast %37 : vector<512x1xi1> to vector<512x1xi1>
    %40 = vector.broadcast %39 : vector<512x1xi1> to vector<512x128xi1>
    %41 = vector.broadcast %cst_12 : f32 to vector<512x128xf32>
    %42 = arith.select %40, %41, %38 : vector<512x128xi1>, vector<512x128xf32>
    %43 = tpu.concatenate %35, %11, %42 in 1 : vector<512x128xf32>, vector<512x128xf32>, vector<512x128xf32> -> vector<512x384xf32>
    %44 = arith.truncf %43 : vector<512x384xf32> to vector<512x384xbf16>
    %c0_13 = arith.constant 0 : index
    %c0_14 = arith.constant 0 : index
    %45 = vector.load %arg4[%c0_13, %c0_14] : memref<384x128xbf16, #tpu.memory_space<vmem>>, vector<384x128xbf16>
    %cst_15 = arith.constant dense<0.000000e+00> : vector<512x128xf32>
    %46 = tpu.matmul %44, %45, %cst_15 {dimension_numbers = #tpu.dot_dimension_numbers<[1], [0], [0], [1], [0, 0, 1, 1], [], []>} : vector<512x384xbf16>, vector<384x128xbf16>, vector<512x128xf32> -> vector<512x128xf32>
    %c0_16 = arith.constant 0 : index
    %c0_17 = arith.constant 0 : index
    %47 = vector.load %arg5[%c0_16, %c0_17] : memref<1x128xf32, #tpu.memory_space<vmem>>, vector<1x128xf32>
    %48 = vector.broadcast %47 : vector<1x128xf32> to vector<512x128xf32>
    %49 = arith.addf %46, %48 : vector<512x128xf32>
    %c0_18 = arith.constant 0 : index
    %c0_19 = arith.constant 0 : index
    %50 = vector.load %arg6[%c0_18, %c0_19] : memref<512x128xf32, #tpu.memory_space<vmem>>, vector<512x128xf32>
    tpu.vector_store %arg6[%c0_18, %c0_19], %49 {strides = array<i32>} : memref<512x128xf32, #tpu.memory_space<vmem>>, vector<512x128xf32>,
    %cst_20 = arith.constant dense<0.000000e+00> : vector<128xf32>
    %51 = vector.multi_reduction <add>, %49, %cst_20 [0] : vector<512x128xf32> to vector<128xf32>
    %52 = vector.shape_cast %51 : vector<128xf32> to vector<1x128xf32>
    %53 = arith.mulf %49, %49 : vector<512x128xf32>
    %cst_21 = arith.constant dense<0.000000e+00> : vector<128xf32>
    %54 = vector.multi_reduction <add>, %53, %cst_21 [0] : vector<512x128xf32> to vector<128xf32>
    %55 = vector.shape_cast %54 : vector<128xf32> to vector<1x128xf32>
    %56 = tpu.concatenate %52, %55 in 0 : vector<1x128xf32>, vector<1x128xf32> -> vector<2x128xf32>
    %c0_22 = arith.constant 0 : index
    %c0_23 = arith.constant 0 : index
    %c0_24 = arith.constant 0 : index
    %57 = vector.load %arg7[%c0_22, %c0_23, %c0_24] : memref<1x2x128xf32, #tpu.memory_space<vmem>>, vector<1x2x128xf32>
    %58 = vector.shape_cast %57 : vector<1x2x128xf32> to vector<2x128xf32>
    %59 = vector.shape_cast %56 : vector<2x128xf32> to vector<1x2x128xf32>
    tpu.vector_store %arg7[%c0_22, %c0_23, %c0_24], %59 {strides = array<i32>} : memref<1x2x128xf32, #tpu.memory_space<vmem>>, vector<1x2x128xf32>,
    return
  }
  func.func @transform_0(%arg0: i32) -> (i32, i32) {
    %c0_i32 = arith.constant 0 : i32
    %c0_i32_0 = arith.constant 0 : i32
    return %arg0, %c0_i32 : i32, i32
  }
  func.func @transform_1(%arg0: i32) -> (i32, i32) {
    %c0_i32 = arith.constant 0 : i32
    %c0_i32_0 = arith.constant 0 : i32
    %c0_i32_1 = arith.constant 0 : i32
    return %c0_i32, %c0_i32_0 : i32, i32
  }
  func.func @transform_2(%arg0: i32) -> (i32, i32) {
    %c0_i32 = arith.constant 0 : i32
    %c0_i32_0 = arith.constant 0 : i32
    %c0_i32_1 = arith.constant 0 : i32
    return %c0_i32, %c0_i32_0 : i32, i32
  }
  func.func @transform_3(%arg0: i32) -> (i32, i32) {
    %c0_i32 = arith.constant 0 : i32
    %c0_i32_0 = arith.constant 0 : i32
    %c0_i32_1 = arith.constant 0 : i32
    return %c0_i32, %c0_i32_0 : i32, i32
  }
  func.func @transform_4(%arg0: i32) -> (i32, i32) {
    %c0_i32 = arith.constant 0 : i32
    %c0_i32_0 = arith.constant 0 : i32
    %c0_i32_1 = arith.constant 0 : i32
    return %c0_i32, %c0_i32_0 : i32, i32
  }
  func.func @transform_5(%arg0: i32) -> (i32, i32) {
    %c0_i32 = arith.constant 0 : i32
    %c0_i32_0 = arith.constant 0 : i32
    return %arg0, %c0_i32 : i32, i32
  }
  func.func @transform_6(%arg0: i32) -> (i32, i32, i32) {
    %c0_i32 = arith.constant 0 : i32
    %c0_i32_0 = arith.constant 0 : i32
    %c0_i32_1 = arith.constant 0 : i32
    return %arg0, %c0_i32, %c0_i32_0 : i32, i32, i32
  }
}

module attributes {stable_mosaic.version = 11 : i64} {
  func.func @bn_res_act_upconv_kernel(%arg0: i32, %arg1: memref<512x128xf32, #tpu.memory_space<vmem>>, %arg2: memref<512x128xf32, #tpu.memory_space<vmem>>, %arg3: memref<1x128xf32, #tpu.memory_space<vmem>>, %arg4: memref<1x128xf32, #tpu.memory_space<vmem>>, %arg5: memref<128x256xbf16, #tpu.memory_space<vmem>>, %arg6: memref<1x256xf32, #tpu.memory_space<vmem>>, %arg7: memref<512x256xf32, #tpu.memory_space<vmem>>) attributes {dimension_semantics = [#tpu.dimension_semantics<parallel>], iteration_bounds = array<i64: 4>, scalar_prefetch = 0 : i64, scratch_operands = 0 : i64, tpu.core_type = #tpu.core_type<tc>, window_params = [{transform_indices = @transform_0, window_bounds = array<i64: 512, 128>}, {transform_indices = @transform_1, window_bounds = array<i64: 512, 128>}, {pipeline_mode = #tpu.pipeline_mode<synchronous>, transform_indices = @transform_2, window_bounds = array<i64: 1, 128>}, {pipeline_mode = #tpu.pipeline_mode<synchronous>, transform_indices = @transform_3, window_bounds = array<i64: 1, 128>}, {pipeline_mode = #tpu.pipeline_mode<synchronous>, transform_indices = @transform_4, window_bounds = array<i64: 128, 256>}, {pipeline_mode = #tpu.pipeline_mode<synchronous>, transform_indices = @transform_5, window_bounds = array<i64: 1, 256>}, {transform_indices = @transform_6, window_bounds = array<i64: 512, 256>}]} {
    %c0 = arith.constant 0 : index
    %c0_0 = arith.constant 0 : index
    %0 = vector.load %arg1[%c0, %c0_0] : memref<512x128xf32, #tpu.memory_space<vmem>>, vector<512x128xf32>
    %c0_1 = arith.constant 0 : index
    %c0_2 = arith.constant 0 : index
    %1 = vector.load %arg3[%c0_1, %c0_2] : memref<1x128xf32, #tpu.memory_space<vmem>>, vector<1x128xf32>
    %2 = vector.broadcast %1 : vector<1x128xf32> to vector<512x128xf32>
    %3 = arith.mulf %0, %2 : vector<512x128xf32>
    %c0_3 = arith.constant 0 : index
    %c0_4 = arith.constant 0 : index
    %4 = vector.load %arg4[%c0_3, %c0_4] : memref<1x128xf32, #tpu.memory_space<vmem>>, vector<1x128xf32>
    %5 = vector.broadcast %4 : vector<1x128xf32> to vector<512x128xf32>
    %6 = arith.addf %3, %5 : vector<512x128xf32>
    %c0_5 = arith.constant 0 : index
    %c0_6 = arith.constant 0 : index
    %7 = vector.load %arg2[%c0_5, %c0_6] : memref<512x128xf32, #tpu.memory_space<vmem>>, vector<512x128xf32>
    %8 = arith.addf %6, %7 : vector<512x128xf32>
    %cst = arith.constant 0.000000e+00 : f32
    %9 = vector.broadcast %cst : f32 to vector<512x128xf32>
    %10 = arith.cmpf oge, %8, %9 : vector<512x128xf32>
    %cst_7 = arith.constant 0.00999999977 : f32
    %11 = vector.broadcast %cst_7 : f32 to vector<512x128xf32>
    %12 = arith.mulf %11, %8 : vector<512x128xf32>
    %13 = arith.select %10, %8, %12 : vector<512x128xi1>, vector<512x128xf32>
    %14 = arith.truncf %13 : vector<512x128xf32> to vector<512x128xbf16>
    %c0_8 = arith.constant 0 : index
    %c0_9 = arith.constant 0 : index
    %15 = vector.load %arg5[%c0_8, %c0_9] : memref<128x256xbf16, #tpu.memory_space<vmem>>, vector<128x256xbf16>
    %cst_10 = arith.constant dense<0.000000e+00> : vector<512x256xf32>
    %16 = tpu.matmul %14, %15, %cst_10 {dimension_numbers = #tpu.dot_dimension_numbers<[1], [0], [0], [1], [0, 0, 1, 1], [], []>} : vector<512x128xbf16>, vector<128x256xbf16>, vector<512x256xf32> -> vector<512x256xf32>
    %c0_11 = arith.constant 0 : index
    %c0_12 = arith.constant 0 : index
    %17 = vector.load %arg6[%c0_11, %c0_12] : memref<1x256xf32, #tpu.memory_space<vmem>>, vector<1x256xf32>
    %18 = vector.broadcast %17 : vector<1x256xf32> to vector<512x256xf32>
    %19 = arith.addf %16, %18 : vector<512x256xf32>
    %c0_13 = arith.constant 0 : index
    %c0_14 = arith.constant 0 : index
    %20 = vector.load %arg7[%c0_13, %c0_14] : memref<512x256xf32, #tpu.memory_space<vmem>>, vector<512x256xf32>
    tpu.vector_store %arg7[%c0_13, %c0_14], %19 {strides = array<i32>} : memref<512x256xf32, #tpu.memory_space<vmem>>, vector<512x256xf32>,
    return
  }
  func.func @transform_0(%arg0: i32) -> (i32, i32) {
    %c0_i32 = arith.constant 0 : i32
    %c0_i32_0 = arith.constant 0 : i32
    return %arg0, %c0_i32 : i32, i32
  }
  func.func @transform_1(%arg0: i32) -> (i32, i32) {
    %c0_i32 = arith.constant 0 : i32
    %c0_i32_0 = arith.constant 0 : i32
    return %arg0, %c0_i32 : i32, i32
  }
  func.func @transform_2(%arg0: i32) -> (i32, i32) {
    %c0_i32 = arith.constant 0 : i32
    %c0_i32_0 = arith.constant 0 : i32
    %c0_i32_1 = arith.constant 0 : i32
    return %c0_i32, %c0_i32_0 : i32, i32
  }
  func.func @transform_3(%arg0: i32) -> (i32, i32) {
    %c0_i32 = arith.constant 0 : i32
    %c0_i32_0 = arith.constant 0 : i32
    %c0_i32_1 = arith.constant 0 : i32
    return %c0_i32, %c0_i32_0 : i32, i32
  }
  func.func @transform_4(%arg0: i32) -> (i32, i32) {
    %c0_i32 = arith.constant 0 : i32
    %c0_i32_0 = arith.constant 0 : i32
    %c0_i32_1 = arith.constant 0 : i32
    return %c0_i32, %c0_i32_0 : i32, i32
  }
  func.func @transform_5(%arg0: i32) -> (i32, i32) {
    %c0_i32 = arith.constant 0 : i32
    %c0_i32_0 = arith.constant 0 : i32
    %c0_i32_1 = arith.constant 0 : i32
    return %c0_i32, %c0_i32_0 : i32, i32
  }
  func.func @transform_6(%arg0: i32) -> (i32, i32) {
    %c0_i32 = arith.constant 0 : i32
    %c0_i32_0 = arith.constant 0 : i32
    return %arg0, %c0_i32 : i32, i32
  }
}

module attributes {stable_mosaic.version = 11 : i64} {
  func.func @conv_stats_kernel(%arg0: i32, %arg1: memref<512x128xf32, #tpu.memory_space<vmem>>, %arg2: memref<384x128xbf16, #tpu.memory_space<vmem>>, %arg3: memref<1x128xf32, #tpu.memory_space<vmem>>, %arg4: memref<512x128xf32, #tpu.memory_space<vmem>>, %arg5: memref<1x2x128xf32, #tpu.memory_space<vmem>>) attributes {dimension_semantics = [#tpu.dimension_semantics<parallel>], iteration_bounds = array<i64: 4>, scalar_prefetch = 0 : i64, scratch_operands = 0 : i64, tpu.core_type = #tpu.core_type<tc>, window_params = [{transform_indices = @transform_0, window_bounds = array<i64: 512, 128>}, {pipeline_mode = #tpu.pipeline_mode<synchronous>, transform_indices = @transform_1, window_bounds = array<i64: 384, 128>}, {pipeline_mode = #tpu.pipeline_mode<synchronous>, transform_indices = @transform_2, window_bounds = array<i64: 1, 128>}, {transform_indices = @transform_3, window_bounds = array<i64: 512, 128>}, {transform_indices = @transform_4, window_bounds = array<i64: 1, 2, 128>}]} {
    %c0 = arith.constant 0 : index
    %c0_0 = arith.constant 0 : index
    %0 = vector.load %arg1[%c0, %c0_0] : memref<512x128xf32, #tpu.memory_space<vmem>>, vector<512x128xf32>
    %1 = tpu.iota {dimensions = array<i32: 0>} : vector<512x1xi32>
    %c256_i32 = arith.constant 256 : i32
    %c0_i32 = arith.constant 0 : i32
    %2 = arith.cmpi eq, %c256_i32, %c0_i32 : i32
    %c1_i32 = arith.constant 1 : i32
    %3 = arith.select %2, %c1_i32, %c256_i32 : i32
    %4 = vector.broadcast %3 : i32 to vector<512x1xi32>
    %5 = arith.remsi %1, %4 : vector<512x1xi32>
    %c0_i32_1 = arith.constant 0 : i32
    %6 = vector.broadcast %c0_i32_1 : i32 to vector<512x1xi32>
    %7 = arith.cmpi ne, %5, %6 : vector<512x1xi32>
    %c0_i32_2 = arith.constant 0 : i32
    %8 = vector.broadcast %c0_i32_2 : i32 to vector<512x1xi32>
    %9 = arith.cmpi slt, %5, %8 : vector<512x1xi32>
    %c0_i32_3 = arith.constant 0 : i32
    %10 = arith.cmpi slt, %3, %c0_i32_3 : i32
    %11 = vector.broadcast %10 : i1 to vector<512x1xi1>
    %12 = vector.broadcast %11 : vector<512x1xi1> to vector<512x1xi1>
    %13 = arith.xori %9, %12 : vector<512x1xi1>
    %14 = arith.andi %13, %7 : vector<512x1xi1>
    %15 = vector.broadcast %3 : i32 to vector<512x1xi32>
    %16 = arith.addi %5, %15 : vector<512x1xi32>
    %17 = arith.select %14, %16, %5 : vector<512x1xi1>, vector<512x1xi32>
    %c0_i32_4 = arith.constant 0 : i32
    %18 = vector.broadcast %c0_i32_4 : i32 to vector<512x1xi32>
    %19 = arith.cmpi eq, %17, %18 : vector<512x1xi32>
    %c1_i32_5 = arith.constant 1 : i32
    %20 = tpu.dynamic_rotate %0 by %c1_i32_5 dim 0 : vector<512x128xf32>, i32 -> vector<512x128xf32>
    %cst = arith.constant 0.000000e+00 : f32
    %21 = vector.shape_cast %19 : vector<512x1xi1> to vector<512x1xi1>
    %22 = vector.broadcast %21 : vector<512x1xi1> to vector<512x128xi1>
    %23 = vector.broadcast %cst : f32 to vector<512x128xf32>
    %24 = arith.select %22, %23, %20 : vector<512x128xi1>, vector<512x128xf32>
    %c255_i32 = arith.constant 255 : i32
    %25 = vector.broadcast %c255_i32 : i32 to vector<512x1xi32>
    %26 = arith.cmpi eq, %17, %25 : vector<512x1xi32>
    %c511_i32 = arith.constant 511 : i32
    %27 = tpu.dynamic_rotate %0 by %c511_i32 dim 0 : vector<512x128xf32>, i32 -> vector<512x128xf32>
    %cst_6 = arith.constant 0.000000e+00 : f32
    %28 = vector.shape_cast %26 : vector<512x1xi1> to vector<512x1xi1>
    %29 = vector.broadcast %28 : vector<512x1xi1> to vector<512x128xi1>
    %30 = vector.broadcast %cst_6 : f32 to vector<512x128xf32>
    %31 = arith.select %29, %30, %27 : vector<512x128xi1>, vector<512x128xf32>
    %32 = tpu.concatenate %24, %0, %31 in 1 : vector<512x128xf32>, vector<512x128xf32>, vector<512x128xf32> -> vector<512x384xf32>
    %33 = arith.truncf %32 : vector<512x384xf32> to vector<512x384xbf16>
    %c0_7 = arith.constant 0 : index
    %c0_8 = arith.constant 0 : index
    %34 = vector.load %arg2[%c0_7, %c0_8] : memref<384x128xbf16, #tpu.memory_space<vmem>>, vector<384x128xbf16>
    %cst_9 = arith.constant dense<0.000000e+00> : vector<512x128xf32>
    %35 = tpu.matmul %33, %34, %cst_9 {dimension_numbers = #tpu.dot_dimension_numbers<[1], [0], [0], [1], [0, 0, 1, 1], [], []>} : vector<512x384xbf16>, vector<384x128xbf16>, vector<512x128xf32> -> vector<512x128xf32>
    %c0_10 = arith.constant 0 : index
    %c0_11 = arith.constant 0 : index
    %36 = vector.load %arg3[%c0_10, %c0_11] : memref<1x128xf32, #tpu.memory_space<vmem>>, vector<1x128xf32>
    %37 = vector.broadcast %36 : vector<1x128xf32> to vector<512x128xf32>
    %38 = arith.addf %35, %37 : vector<512x128xf32>
    %c0_12 = arith.constant 0 : index
    %c0_13 = arith.constant 0 : index
    %39 = vector.load %arg4[%c0_12, %c0_13] : memref<512x128xf32, #tpu.memory_space<vmem>>, vector<512x128xf32>
    tpu.vector_store %arg4[%c0_12, %c0_13], %38 {strides = array<i32>} : memref<512x128xf32, #tpu.memory_space<vmem>>, vector<512x128xf32>,
    %cst_14 = arith.constant dense<0.000000e+00> : vector<128xf32>
    %40 = vector.multi_reduction <add>, %38, %cst_14 [0] : vector<512x128xf32> to vector<128xf32>
    %41 = vector.shape_cast %40 : vector<128xf32> to vector<1x128xf32>
    %42 = arith.mulf %38, %38 : vector<512x128xf32>
    %cst_15 = arith.constant dense<0.000000e+00> : vector<128xf32>
    %43 = vector.multi_reduction <add>, %42, %cst_15 [0] : vector<512x128xf32> to vector<128xf32>
    %44 = vector.shape_cast %43 : vector<128xf32> to vector<1x128xf32>
    %45 = tpu.concatenate %41, %44 in 0 : vector<1x128xf32>, vector<1x128xf32> -> vector<2x128xf32>
    %c0_16 = arith.constant 0 : index
    %c0_17 = arith.constant 0 : index
    %c0_18 = arith.constant 0 : index
    %46 = vector.load %arg5[%c0_16, %c0_17, %c0_18] : memref<1x2x128xf32, #tpu.memory_space<vmem>>, vector<1x2x128xf32>
    %47 = vector.shape_cast %46 : vector<1x2x128xf32> to vector<2x128xf32>
    %48 = vector.shape_cast %45 : vector<2x128xf32> to vector<1x2x128xf32>
    tpu.vector_store %arg5[%c0_16, %c0_17, %c0_18], %48 {strides = array<i32>} : memref<1x2x128xf32, #tpu.memory_space<vmem>>, vector<1x2x128xf32>,
    return
  }
  func.func @transform_0(%arg0: i32) -> (i32, i32) {
    %c0_i32 = arith.constant 0 : i32
    %c0_i32_0 = arith.constant 0 : i32
    return %arg0, %c0_i32 : i32, i32
  }
  func.func @transform_1(%arg0: i32) -> (i32, i32) {
    %c0_i32 = arith.constant 0 : i32
    %c0_i32_0 = arith.constant 0 : i32
    %c0_i32_1 = arith.constant 0 : i32
    return %c0_i32, %c0_i32_0 : i32, i32
  }
  func.func @transform_2(%arg0: i32) -> (i32, i32) {
    %c0_i32 = arith.constant 0 : i32
    %c0_i32_0 = arith.constant 0 : i32
    %c0_i32_1 = arith.constant 0 : i32
    return %c0_i32, %c0_i32_0 : i32, i32
  }
  func.func @transform_3(%arg0: i32) -> (i32, i32) {
    %c0_i32 = arith.constant 0 : i32
    %c0_i32_0 = arith.constant 0 : i32
    return %arg0, %c0_i32 : i32, i32
  }
  func.func @transform_4(%arg0: i32) -> (i32, i32, i32) {
    %c0_i32 = arith.constant 0 : i32
    %c0_i32_0 = arith.constant 0 : i32
    %c0_i32_1 = arith.constant 0 : i32
    return %arg0, %c0_i32, %c0_i32_0 : i32, i32, i32
  }
}

</mosaic_0001>

<bundles_post_ra>
// kernel: upblock_forward.5
= control target key start
LH: loop header
LB: loop body
LE: loop exit
PB: predicated region body
PF: predicated region fallthrough
CT: control target
= control target key end

     0   :  { %s1625_s21 = smov 0   ;;  %s2522_s0 = inlined_call_operand.vmem [shape: f32[2048,128], index: 0, kind: input, shape index: {}]   ;;  %s2523_s1 = inlined_call_operand.vmem [shape: f32[2048,128], index: 1, kind: input, shape index: {}]   ;;  %s2524_s2 = inlined_call_operand.vmem [shape: f32[1,128], index: 2, kind: input, shape index: {}]   ;;  %s2525_s3 = inlined_call_operand.vmem [shape: f32[1,128], index: 3, kind: input, shape index: {}]   ;;  %s2526_s4 = inlined_call_operand.vmem [shape: bf16[128,256], index: 4, kind: input, shape index: {}]   ;;  %s2527_s5 = inlined_call_operand.vmem [shape: f32[1,256], index: 5, kind: input, shape index: {}]   ;;  %s2528_s6 = inlined_call_operand.vmem [shape: f32[2048,256], index: 6, kind: output, shape index: {}]  }
   0x1 LB: > { %s1497_s22 = sadd.s32 4294967295, %s1587_s21   ;;  %p1501_p0 = scmp.ge.s32.totalorder %s1587_s21, 1  ;;  %s1587_s21 = sphi %s1625_s21, %s16_s21  }
   0x2   : > { %p224_p1 = scmp.lt.s32.totalorder %s1587_s21, 5 }
   0x4   : > { %p225_p2 = pnand %p1501_p0, %p224_p1 }
   0x5   : > { %v1555_v0 = vld [vmem:[%s2526_s4 + $0x4] ss:$8 sps:$4 sm:$0xff] (!%p225_p2)   ;;  %s1502_s25 = sshll.u32 (!%p225_p2), %s1497_s22, 6  ;;  %v1557_v1 = vld [vmem:[%s2526_s4] ss:$8 sps:$4 sm:$0xff] (!%p225_p2)   ;;  %v1589_v2 = vmov (!%p225_p2), 0  }
   0x6   : > { %228 = sbr.rel (%p225_p2) target bundleno = 377 (0x179), region = 44  ;;  %978 = vmatprep.mubr.bf16.mxu0 (!%p225_p2), %v1589_v2  ;;  %1138 = vmatprep.mubr.bf16.mxu1 (!%p225_p2), %v1589_v2  ;;  %p261_p3 = scmp.lt.s32.totalorder (!%p225_p2), %s1502_s25, 255  ;;  %v1558_v3 = vld [vmem:[%s2526_s4 + $0x14] ss:$8 sps:$4 sm:$0xff] (!%p225_p2)   ;;  %v1560_v4 = vld [vmem:[%s2526_s4 + $0x10] ss:$8 sps:$4 sm:$0xff] (!%p225_p2)  }
   0x7   : > { %946 = vmatprep.subr.bf16.mxu0 (!%p225_p2), %v1555_v0  ;;  %1530 = vmatprep.subr.bf16.mxu1 (!%p225_p2), %v1555_v0  ;;  %v1561_v5 = vld [vmem:[%s2526_s4 + $0x24] ss:$8 sps:$4 sm:$0xff] (!%p225_p2)   ;;  %v1563_v6 = vld [vmem:[%s2526_s4 + $0x20] ss:$8 sps:$4 sm:$0xff] (!%p225_p2)   ;;  %v1564_v7 = vld [vmem:[%s2526_s4 + $0x34] ss:$8 sps:$4 sm:$0xff] (!%p225_p2)  }
   0x8   : > { %947 = vmatpush1.bf16.msra.mxu0 (!%p225_p2), %v1557_v1  ;;  %1538 = vmatpush1.bf16.msra.mxu1 (!%p225_p2), %v1557_v1  ;;  %v1566_v8 = vld [vmem:[%s2526_s4 + $0x30] ss:$8 sps:$4 sm:$0xff] (!%p225_p2)   ;;  %v1677_v11 = vld [vmem:[%s2524_s2] ss:$0 sm:$0xff] (!%p225_p2)  ;;  %v1567_v13 = vld [vmem:[%s2526_s4 + $0x44] ss:$8 sps:$4 sm:$0xff] (!%p225_p2)  }
   0x9   : > { %948 = vmatprep.subr.bf16.mxu0 (!%p225_p2), %v1558_v3  ;;  %1531 = vmatprep.subr.bf16.mxu1 (!%p225_p2), %v1558_v3  ;;  %v1682_v12 = vld [vmem:[%s2525_s3] ss:$0 sm:$0xff] (!%p225_p2)  ;;  %v1570_v32 = vld [vmem:[%s2526_s4 + $0x54] ss:$8 sps:$4 sm:$0xff] (!%p225_p2)   ;;  %v1572_v45 = vld [vmem:[%s2526_s4 + $0x50] ss:$8 sps:$4 sm:$0xff] (!%p225_p2)  }
   0xa   : > { %v1569_v27 = vld [vmem:[%s2526_s4 + $0x40] ss:$8 sps:$4 sm:$0xff] (!%p225_p2)   ;;  %v1573_v49 = vld [vmem:[%s2526_s4 + $0x64] ss:$8 sps:$4 sm:$0xff] (!%p225_p2)  }
   0xb   : > { %v1575_v54 = vld [vmem:[%s2526_s4 + $0x60] ss:$8 sps:$4 sm:$0xff] (!%p225_p2)  }
   0xc   : > { %949 = vmatpush1.bf16.msra.mxu0 (!%p225_p2), %v1560_v4  ;;  %1539 = vmatpush1.bf16.msra.mxu1 (!%p225_p2), %v1560_v4 }
   0xd   : > { %s2530_s25 = smov (!%p261_p3, %s1502_s25), 255  ;;  %950 = vmatprep.subr.bf16.mxu0 %v1561_v5  ;;  %1532 = vmatprep.subr.bf16.mxu1 %v1561_v5 }
   0xe   : > { %s1503_s10 = sshll.u32 %s2530_s25, 3  ;;  %s1529_s29 = sshll.u32 %s2530_s25, 4 }
   0xf   : > { %s1659_s15 = scalar_lea.vmem %s2522_s0, %s1503_s10  ;;  %s1670_s23 = scalar_lea.vmem %s2523_s1, %s1503_s10 }
  0x10   : > { %v280_v9 = vld [vmem:[%s1659_s15] sm:$0xff]  ;;  %951 = vmatpush1.bf16.msra.mxu0 %v1563_v6  ;;  %1540 = vmatpush1.bf16.msra.mxu1 %v1563_v6  ;;  %v281_v10 = vld [vmem:[%s1659_s15 + $0x8] sm:$0xff]  ;;  %v282_v25 = vld [vmem:[%s1659_s15 + $0x10] sm:$0xff]  ;;  %s2261_s8 = scalar_lea.vmem %s2528_s6, %s1529_s29 }
  0x11   : > { %952 = vmatprep.subr.bf16.mxu0 %v1564_v7  ;;  %1533 = vmatprep.subr.bf16.mxu1 %v1564_v7  ;;  %v351_v14 = vmul.f32 %v1677_v11, %v280_v9  ;;  %v352_v15 = vmul.f32 %v1677_v11, %v281_v10  ;;  %v312_v16 = vld [vmem:[%s1659_s15 + $0x100] sm:$0xff]  ;;  %v487_v18 = vld [vmem:[%s1670_s23 + $0x8] sm:$0xff]  ;;  %v283_v26 = vld [vmem:[%s1659_s15 + $0x18] sm:$0xff]  ;;  %v353_v29 = vmul.f32 %v1677_v11, %v282_v25 }
  0x12   : > { %v486_v17 = vld [vmem:[%s1670_s23] sm:$0xff]  ;;  %v313_v19 = vld [vmem:[%s1659_s15 + $0x108] sm:$0xff]  ;;  %v383_v20 = vmul.f32 %v1677_v11, %v312_v16  ;;  %v354_v30 = vmul.f32 %v1677_v11, %v283_v26  ;;  %v314_v31 = vld [vmem:[%s1659_s15 + $0x110] sm:$0xff] }
  0x13   : > { %v422_v21 = vadd.f32 %v1682_v12, %v351_v14  ;;  %v423_v22 = vadd.f32 %v1682_v12, %v352_v15  ;;  %v384_v23 = vmul.f32 %v1677_v11, %v313_v19  ;;  %v518_v24 = vld [vmem:[%s1670_s23 + $0x100] sm:$0xff]  ;;  %v519_v36 = vld [vmem:[%s1670_s23 + $0x108] sm:$0xff]  ;;  %v488_v37 = vld [vmem:[%s1670_s23 + $0x10] sm:$0xff]  ;;  %v424_v39 = vadd.f32 %v1682_v12, %v353_v29 }
  0x14   : > { %953 = vmatpush1.bf16.msra.mxu0 %v1566_v8  ;;  %1541 = vmatpush1.bf16.msra.mxu1 %v1566_v8  ;;  %v454_v28 = vadd.f32 %v1682_v12, %v383_v20  ;;  %v425_v40 = vadd.f32 %v1682_v12, %v354_v30  ;;  %v489_v41 = vld [vmem:[%s1670_s23 + $0x18] sm:$0xff]  ;;  %v385_v42 = vmul.f32 %v1677_v11, %v314_v31  ;;  %v520_v58 = vld [vmem:[%s1670_s23 + $0x110] sm:$0xff]  ;;  %v284_v59 = vld [vmem:[%s1659_s15 + $0x20] sm:$0xff] }
  0x15   : > { %954 = vmatprep.subr.bf16.mxu0 %v1567_v13  ;;  %1534 = vmatprep.subr.bf16.mxu1 %v1567_v13  ;;  %v550_v33 = vadd.f32 %v486_v17, %v422_v21  ;;  %v551_v34 = vadd.f32 %v487_v18, %v423_v22  ;;  %v455_v35 = vadd.f32 %v1682_v12, %v384_v23  ;;  %v315_v53 = vld [vmem:[%s1659_s15 + $0x118] sm:$0xff]  ;;  %v285_v60 = vld [vmem:[%s1659_s15 + $0x28] sm:$0xff]  ;;  %v316_v3 = vld [vmem:[%s1659_s15 + $0x120] sm:$0xff] }
  0x16   : > { %v582_v38 = vadd.f32 %v518_v24, %v454_v28  ;;  %v552_v48 = vadd.f32 %v488_v37, %v424_v39  ;;  %v553_v52 = vadd.f32 %v489_v41, %v425_v40  ;;  %v386_v0 = vmul.f32 %v1677_v11, %v315_v53  ;;  %v317_v4 = vld [vmem:[%s1659_s15 + $0x128] sm:$0xff]  ;;  %v286_v5 = vld [vmem:[%s1659_s15 + $0x30] sm:$0xff]  ;;  %v521_v10 = vld [vmem:[%s1670_s23 + $0x118] sm:$0xff] }
  0x17   : > { %vm614_vm0 = vcmp.ge.f32.partialorder %v550_v33, 0.0  ;;  %vm615_vm1 = vcmp.ge.f32.partialorder %v551_v34, 0.0  ;;  %v678_v43 = vmul.f32 0.01, %v550_v33  ;;  %v679_v44 = vmul.f32 0.01, %v551_v34 }
  0x18   : > { %955 = vmatpush1.bf16.msra.mxu0 %v1569_v27  ;;  %1542 = vmatpush1.bf16.msra.mxu1 %v1569_v27  ;;  %v583_v46 = vadd.f32 %v519_v36, %v455_v35  ;;  %vm646_vm2 = vcmp.ge.f32.partialorder %v582_v38, 0.0  ;;  %v710_v47 = vmul.f32 0.01, %v582_v38  ;;  %vm616_vm4 = vcmp.ge.f32.partialorder %v552_v48, 0.0  ;;  %v1576_v6 = vld [vmem:[%s2526_s4 + $0x74] ss:$8 sps:$4 sm:$0xff]  }
  0x19   : > { %956 = vmatprep.subr.bf16.mxu0 %v1570_v32  ;;  %1535 = vmatprep.subr.bf16.mxu1 %v1570_v32  ;;  %v1723_v50 = vsel %vm614_vm0, %v550_v33, %v678_v43  ;;  %v1725_v51 = vsel %vm615_vm1, %v551_v34, %v679_v44  ;;  %vm617_vm5 = vcmp.ge.f32.partialorder %v553_v52, 0.0  ;;  %v680_v61 = vmul.f32 0.01, %v552_v48  ;;  %v1578_v17 = vld [vmem:[%s2526_s4 + $0x70] ss:$8 sps:$4 sm:$0xff]   ;;  %v490_v19 = vld [vmem:[%s1670_s23 + $0x20] sm:$0xff] }
  0x1a   : > { %v806_v55 = vpack.c.bf16 %v1725_v51, %v1723_v50  ;;  %vm647_vm3 = vcmp.ge.f32.partialorder %v583_v46, 0.0  ;;  %v711_v56 = vmul.f32 0.01, %v583_v46  ;;  %v1733_v57 = vsel %vm646_vm2, %v582_v38, %v710_v47  ;;  %v491_v20 = vld [vmem:[%s1670_s23 + $0x28] sm:$0xff]  ;;  %v522_v27 = vld [vmem:[%s1670_s23 + $0x120] sm:$0xff]  ;;  %v287_v29 = vld [vmem:[%s1659_s15 + $0x38] sm:$0xff] }
  0x1b   : > { %v681_v62 = vmul.f32 0.01, %v553_v52  ;;  %v456_v1 = vadd.f32 %v1682_v12, %v385_v42  ;;  %v1751_v8 = vsel %vm616_vm4, %v552_v48, %v680_v61  ;;  %v457_v14 = vadd.f32 %v1682_v12, %v386_v0  ;;  %v523_v28 = vld [vmem:[%s1670_s23 + $0x128] sm:$0xff]  ;;  %v492_v43 = vld [vmem:[%s1670_s23 + $0x30] sm:$0xff] }
  0x1c   : > { %957 = vmatpush1.bf16.msra.mxu0 %v1572_v45  ;;  %1543 = vmatpush1.bf16.msra.mxu1 %v1572_v45  ;;  %v1738_v63 = vsel %vm647_vm3, %v583_v46, %v711_v56  ;;  %v355_v16 = vmul.f32 %v1677_v11, %v284_v59  ;;  %v356_v18 = vmul.f32 %v1677_v11, %v285_v60  ;;  %v493_v46 = vld [vmem:[%s1670_s23 + $0x38] sm:$0xff]  ;;  %v289_v59 = vld [vmem:[%s1659_s15 + $0x48] sm:$0xff] }
  0x1d   : > { %958 = vmatprep.subr.bf16.mxu0 %v1573_v49  ;;  %1536 = vmatprep.subr.bf16.mxu1 %v1573_v49  ;;  %v822_v7 = vpack.c.bf16 %v1738_v63, %v1733_v57  ;;  %v1754_v9 = vsel %vm617_vm5, %v553_v52, %v681_v62  ;;  %v584_v15 = vadd.f32 %v520_v58, %v456_v1  ;;  %v318_v52 = vld [vmem:[%s1659_s15 + $0x130] sm:$0xff]  ;;  %v319_v57 = vld [vmem:[%s1659_s15 + $0x138] sm:$0xff]  ;;  %v288_v58 = vld [vmem:[%s1659_s15 + $0x40] sm:$0xff] }
  0x1e   : > { %v807_v13 = vpack.c.bf16 %v1754_v9, %v1751_v8  ;;  %v387_v21 = vmul.f32 %v1677_v11, %v316_v3  ;;  %v388_v22 = vmul.f32 %v1677_v11, %v317_v4  ;;  %v357_v23 = vmul.f32 %v1677_v11, %v286_v5  ;;  %v321_v5 = vld [vmem:[%s1659_s15 + $0x148] sm:$0xff] }
  0x1f   : > { %v585_v24 = vadd.f32 %v521_v10, %v457_v14  ;;  %vm648_vm6 = vcmp.ge.f32.partialorder %v584_v15, 0.0  ;;  %v712_v25 = vmul.f32 0.01, %v584_v15  ;;  %v426_v26 = vadd.f32 %v1682_v12, %v355_v16  ;;  %v524_v14 = vld [vmem:[%s1670_s23 + $0x130] sm:$0xff]  ;;  %v494_v16 = vld [vmem:[%s1670_s23 + $0x40] sm:$0xff] }
  0x20   : > { %959 = vmatpush1.bf16.msra.mxu0 %v1575_v54  ;;  %1544 = vmatpush1.bf16.msra.mxu1 %v1575_v54  ;;  %v427_v30 = vadd.f32 %v1682_v12, %v356_v18  ;;  %v458_v31 = vadd.f32 %v1682_v12, %v387_v21  ;;  %v459_v32 = vadd.f32 %v1682_v12, %v388_v22  ;;  %v495_v22 = vld [vmem:[%s1670_s23 + $0x48] sm:$0xff] }
  0x21   : > { %960 = vmatprep.subr.bf16.mxu0 %v1576_v6  ;;  %1537 = vmatprep.subr.bf16.mxu1 %v1576_v6  ;;  %vm649_vm7 = vcmp.ge.f32.partialorder %v585_v24, 0.0  ;;  %v713_v33 = vmul.f32 0.01, %v585_v24  ;;  %v1777_v34 = vsel %vm648_vm6, %v584_v15, %v712_v25  ;;  %v554_v35 = vadd.f32 %v490_v19, %v426_v26  ;;  %v290_v6 = vld [vmem:[%s1659_s15 + $0x50] sm:$0xff]  ;;  %v525_v15 = vld [vmem:[%s1670_s23 + $0x138] sm:$0xff] }
  0x22   : > { %v555_v36 = vadd.f32 %v491_v20, %v427_v30  ;;  %v586_v37 = vadd.f32 %v522_v27, %v458_v31  ;;  %v587_v38 = vadd.f32 %v523_v28, %v459_v32  ;;  %v358_v39 = vmul.f32 %v1677_v11, %v287_v29 }
  0x23   : > { %v777_v40 = vsel %vm649_vm7, %v585_v24, %v713_v33  ;;  %vm618_vm8 = vcmp.ge.f32.partialorder %v554_v35, 0.0  ;;  %v682_v41 = vmul.f32 0.01, %v554_v35  ;;  %v428_v42 = vadd.f32 %v1682_v12, %v357_v23  ;;  %v526_v23 = vld [vmem:[%s1670_s23 + $0x140] sm:$0xff] }
  0x24   : > { %961 = vmatpush1.bf16.msra.mxu0 %v1578_v17  ;;  %1545 = vmatpush1.bf16.msra.mxu1 %v1578_v17  ;;  %v823_v44 = vpack.c.bf16 %v777_v40, %v1777_v34  ;;  %vm619_vm9 = vcmp.ge.f32.partialorder %v555_v36, 0.0  ;;  %v683_v45 = vmul.f32 0.01, %v555_v36  ;;  %vm650_vm10 = vcmp.ge.f32.partialorder %v586_v37, 0.0  ;;  %v527_v34 = vld [vmem:[%s1670_s23 + $0x148] sm:$0xff] }
  0x25   : > { %v1784_v47 = vsel %vm618_vm8, %v554_v35, %v682_v41  ;;  %vm651_vm11 = vcmp.ge.f32.partialorder %v587_v38, 0.0  ;;  %v714_v48 = vmul.f32 0.01, %v586_v37  ;;  %v715_v49 = vmul.f32 0.01, %v587_v38  ;;  %v322_v41 = vld [vmem:[%s1659_s15 + $0x150] sm:$0xff] }
  0x26   : > { %v1790_v53 = vsel %vm619_vm9, %v555_v36, %v683_v45  ;;  %v429_v54 = vadd.f32 %v1682_v12, %v358_v39  ;;  %v556_v56 = vadd.f32 %v492_v43, %v428_v42  ;;  %v389_v0 = vmul.f32 %v1677_v11, %v318_v52  ;;  %v291_v36 = vld [vmem:[%s1659_s15 + $0x58] sm:$0xff] }
  0x27   : > { %979 = vmatmul.mubr.bf16.vlgmr.msra.gmra.mrb[0].mxu0 %v806_v55  ;;  %1139 = vmatmul.mubr.bf16.vlgmr.msra.gmra.mrb[0].mxu1 %v822_v7  ;;  %v808_v60 = vpack.c.bf16 %v1790_v53, %v1784_v47  ;;  %v1801_v50 = vsel %vm650_vm10, %v586_v37, %v714_v48  ;;  %v1804_v51 = vsel %vm651_vm11, %v587_v38, %v715_v49  ;;  %v320_v55 = vld [vmem:[%s1659_s15 + $0x140] sm:$0xff]  ;;  %v323_v42 = vld [vmem:[%s1659_s15 + $0x158] sm:$0xff]  ;;  %v293_v49 = vld [vmem:[%s1659_s15 + $0x68] sm:$0xff] }
  0x28   : > { %988 = vmatprep.mubr.bf16.mxu0 %v1589_v2  ;;  %1148 = vmatprep.mubr.bf16.mxu1 %v1589_v2  ;;  %v824_v61 = vpack.c.bf16 %v1804_v51, %v1801_v50  ;;  %v557_v62 = vadd.f32 %v493_v46, %v429_v54  ;;  %vm620_vm12 = vcmp.ge.f32.partialorder %v556_v56, 0.0  ;;  %v684_v63 = vmul.f32 0.01, %v556_v56  ;;  %v292_v48 = vld [vmem:[%s1659_s15 + $0x60] sm:$0xff] }
  0x29   : > { %v390_v1 = vmul.f32 %v1677_v11, %v319_v57  ;;  %v359_v3 = vmul.f32 %v1677_v11, %v288_v58  ;;  %v360_v4 = vmul.f32 %v1677_v11, %v289_v59  ;;  %v391_v17 = vmul.f32 %v1677_v11, %v320_v55  ;;  %v496_v57 = vld [vmem:[%s1670_s23 + $0x50] sm:$0xff]  ;;  %v497_v55 = vld [vmem:[%s1670_s23 + $0x58] sm:$0xff] }
  0x2a   : > { %vm621_vm13 = vcmp.ge.f32.partialorder %v557_v62, 0.0  ;;  %v685_v7 = vmul.f32 0.01, %v557_v62  ;;  %v1815_v10 = vsel %vm620_vm12, %v556_v56, %v684_v63  ;;  %v460_v18 = vadd.f32 %v1682_v12, %v389_v0 }
  0x2b   : > { %v461_v19 = vadd.f32 %v1682_v12, %v390_v1  ;;  %v430_v20 = vadd.f32 %v1682_v12, %v359_v3  ;;  %v431_v21 = vadd.f32 %v1682_v12, %v360_v4  ;;  %v392_v25 = vmul.f32 %v1677_v11, %v321_v5  ;;  %v528_v3 = vld [vmem:[%s1670_s23 + $0x150] sm:$0xff] }
  0x2c   : > { %v1827_v24 = vsel %vm621_vm13, %v557_v62, %v685_v7  ;;  %v462_v26 = vadd.f32 %v1682_v12, %v391_v17  ;;  %v361_v27 = vmul.f32 %v1677_v11, %v290_v6  ;;  %v588_v29 = vadd.f32 %v524_v14, %v460_v18 }
  0x2d   : > { %v809_v28 = vpack.c.bf16 %v1827_v24, %v1815_v10  ;;  %v589_v30 = vadd.f32 %v525_v15, %v461_v19  ;;  %v558_v31 = vadd.f32 %v494_v16, %v430_v20  ;;  %v559_v32 = vadd.f32 %v495_v22, %v431_v21  ;;  %v529_v15 = vld [vmem:[%s1670_s23 + $0x158] sm:$0xff]  ;;  %v498_v16 = vld [vmem:[%s1670_s23 + $0x60] sm:$0xff] }
  0x2e   : > { %v463_v33 = vadd.f32 %v1682_v12, %v392_v25  ;;  %v590_v35 = vadd.f32 %v526_v23, %v462_v26  ;;  %vm652_vm14 = vcmp.ge.f32.partialorder %v588_v29, 0.0  ;;  %v716_v37 = vmul.f32 0.01, %v588_v29  ;;  %v324_v25 = vld [vmem:[%s1659_s15 + $0x160] sm:$0xff]  ;;  %v325_v26 = vld [vmem:[%s1659_s15 + $0x168] sm:$0xff] }
  0x2f   : > { %989 = vmatmul.mubr.bf16.gmra.mrb[4].mxu0 %v807_v13  ;;  %1149 = vmatmul.mubr.bf16.gmra.mrb[4].mxu1 %v823_v44  ;;  %vm653_vm15 = vcmp.ge.f32.partialorder %v589_v30, 0.0  ;;  %v717_v38 = vmul.f32 0.01, %v589_v30  ;;  %vm622_vm0 = vcmp.ge.f32.partialorder %v558_v31, 0.0  ;;  %vm623_vm1 = vcmp.ge.f32.partialorder %v559_v32, 0.0 }
  0x30   : > { %998 = vmatprep.mubr.bf16.mxu0 %v1589_v2  ;;  %1158 = vmatprep.mubr.bf16.mxu1 %v1589_v2  ;;  %v686_v8 = vmul.f32 0.01, %v558_v31  ;;  %v687_v9 = vmul.f32 0.01, %v559_v32  ;;  %v1842_v13 = vsel %vm652_vm14, %v588_v29, %v716_v37  ;;  %v591_v40 = vadd.f32 %v527_v34, %v463_v33 }
  0x31   : > { %v1844_v39 = vsel %vm653_vm15, %v589_v30, %v717_v38  ;;  %vm654_vm2 = vcmp.ge.f32.partialorder %v590_v35, 0.0  ;;  %v718_v46 = vmul.f32 0.01, %v590_v35  ;;  %v362_v56 = vmul.f32 %v1677_v11, %v291_v36  ;;  %v294_v30 = vld [vmem:[%s1659_s15 + $0x70] sm:$0xff]  ;;  %v530_v38 = vld [vmem:[%s1670_s23 + $0x160] sm:$0xff] }
  0x32   : > { %v825_v43 = vpack.c.bf16 %v1844_v39, %v1842_v13  ;;  %v1850_v44 = vsel %vm622_vm0, %v558_v31, %v686_v8  ;;  %v1852_v45 = vsel %vm623_vm1, %v559_v32, %v687_v9  ;;  %vm655_vm3 = vcmp.ge.f32.partialorder %v591_v40, 0.0  ;;  %v295_v8 = vld [vmem:[%s1659_s15 + $0x78] sm:$0xff]  ;;  %v326_v9 = vld [vmem:[%s1659_s15 + $0x170] sm:$0xff]  ;;  %v297_v39 = vld [vmem:[%s1659_s15 + $0x88] sm:$0xff] }
  0x33   : > { %v810_v52 = vpack.c.bf16 %v1852_v45, %v1850_v44  ;;  %v719_v54 = vmul.f32 0.01, %v591_v40  ;;  %v1860_v58 = vsel %vm654_vm2, %v590_v35, %v718_v46  ;;  %v432_v59 = vadd.f32 %v1682_v12, %v361_v27  ;;  %v500_v13 = vld [vmem:[%s1670_s23 + $0x70] sm:$0xff] }
  0x34   : > { %v393_v62 = vmul.f32 %v1677_v11, %v322_v41  ;;  %v394_v63 = vmul.f32 %v1677_v11, %v323_v42  ;;  %v433_v1 = vadd.f32 %v1682_v12, %v362_v56  ;;  %v363_v4 = vmul.f32 %v1677_v11, %v292_v48  ;;  %v531_v42 = vld [vmem:[%s1670_s23 + $0x168] sm:$0xff]  ;;  %v327_v48 = vld [vmem:[%s1659_s15 + $0x178] sm:$0xff] }
  0x35   : > { %v1866_v0 = vsel %vm655_vm3, %v591_v40, %v719_v54  ;;  %v364_v5 = vmul.f32 %v1677_v11, %v293_v49  ;;  %v560_v7 = vadd.f32 %v496_v57, %v432_v59  ;;  %v395_v36 = vmul.f32 %v1677_v11, %v324_v25  ;;  %v296_v49 = vld [vmem:[%s1659_s15 + $0x80] sm:$0xff] }
  0x36   : > { %v826_v6 = vpack.c.bf16 %v1866_v0, %v1860_v58  ;;  %v464_v14 = vadd.f32 %v1682_v12, %v393_v62  ;;  %v561_v17 = vadd.f32 %v497_v55, %v433_v1  ;;  %v465_v47 = vadd.f32 %v1682_v12, %v394_v63  ;;  %v501_v62 = vld [vmem:[%s1670_s23 + $0x78] sm:$0xff]  ;;  %v503_v58 = vld [vmem:[%s1670_s23 + $0x88] sm:$0xff] }
  0x37   : > { %999 = vmatmul.mubr.bf16.gmra.mrb[8].mxu0 %v808_v60  ;;  %1159 = vmatmul.mubr.bf16.gmra.mrb[8].mxu1 %v824_v61  ;;  %v434_v53 = vadd.f32 %v1682_v12, %v363_v4  ;;  %v499_v60 = vld [vmem:[%s1670_s23 + $0x68] sm:$0xff]  ;;  %vm624_vm4 = vcmp.ge.f32.partialorder %v560_v7, 0.0  ;;  %v688_v50 = vmul.f32 0.01, %v560_v7  ;;  %v435_v61 = vadd.f32 %v1682_v12, %v364_v5 }
  0x38   : > { %1008 = vmatprep.mubr.bf16.mxu0 %v1589_v2  ;;  %1168 = vmatprep.mubr.bf16.mxu1 %v1589_v2  ;;  %v592_v51 = vadd.f32 %v528_v3, %v464_v14  ;;  %vm625_vm5 = vcmp.ge.f32.partialorder %v561_v17, 0.0  ;;  %v689_v18 = vmul.f32 0.01, %v561_v17  ;;  %v593_v19 = vadd.f32 %v529_v15, %v465_v47 }
  0x39   : > { %v562_v20 = vadd.f32 %v498_v16, %v434_v53  ;;  %v1889_v21 = vsel %vm624_vm4, %v560_v7, %v688_v50  ;;  %v563_v23 = vadd.f32 %v499_v60, %v435_v61  ;;  %v396_v37 = vmul.f32 %v1677_v11, %v325_v26  ;;  %v532_v7 = vld [vmem:[%s1670_s23 + $0x170] sm:$0xff]  ;;  %v533_v60 = vld [vmem:[%s1670_s23 + $0x178] sm:$0xff] }
  0x3a   : > { %vm656_vm6 = vcmp.ge.f32.partialorder %v592_v51, 0.0  ;;  %v720_v22 = vmul.f32 0.01, %v592_v51  ;;  %v1893_v27 = vsel %vm625_vm5, %v561_v17, %v689_v18  ;;  %vm657_vm7 = vcmp.ge.f32.partialorder %v593_v19, 0.0 }
  0x3b   : > { %v721_v29 = vmul.f32 0.01, %v593_v19  ;;  %vm626_vm8 = vcmp.ge.f32.partialorder %v562_v20, 0.0  ;;  %v811_v31 = vpack.c.bf16 %v1893_v27, %v1889_v21  ;;  %vm627_vm9 = vcmp.ge.f32.partialorder %v563_v23, 0.0 }
  0x3c   : > { %v1898_v32 = vsel %vm656_vm6, %v592_v51, %v720_v22  ;;  %v690_v33 = vmul.f32 0.01, %v562_v20  ;;  %v691_v35 = vmul.f32 0.01, %v563_v23  ;;  %v365_v46 = vmul.f32 %v1677_v11, %v294_v30  ;;  %v329_v22 = vld [vmem:[%s1659_s15 + $0x188] sm:$0xff] }
  0x3d   : > { %v1900_v34 = vsel %vm657_vm7, %v593_v19, %v721_v29  ;;  %v466_v24 = vadd.f32 %v1682_v12, %v395_v36  ;;  %v366_v54 = vmul.f32 %v1677_v11, %v295_v8  ;;  %v397_v57 = vmul.f32 %v1677_v11, %v326_v9  ;;  %v502_v19 = vld [vmem:[%s1670_s23 + $0x80] sm:$0xff] }
  0x3e   : > { %v827_v40 = vpack.c.bf16 %v1900_v34, %v1898_v32  ;;  %v1916_v41 = vsel %vm626_vm8, %v562_v20, %v690_v33  ;;  %v1925_v10 = vsel %vm627_vm9, %v563_v23, %v691_v35  ;;  %v436_v56 = vadd.f32 %v1682_v12, %v365_v46  ;;  %v328_v20 = vld [vmem:[%s1659_s15 + $0x180] sm:$0xff]  ;;  %v298_v33 = vld [vmem:[%s1659_s15 + $0x90] sm:$0xff]  ;;  %v299_v35 = vld [vmem:[%s1659_s15 + $0x98] sm:$0xff] }
  0x3f   : > { %1009 = vmatmul.mubr.bf16.gmra.mrb[12].mxu0 %v809_v28  ;;  %1169 = vmatmul.mubr.bf16.gmra.mrb[12].mxu1 %v825_v43  ;;  %v467_v28 = vadd.f32 %v1682_v12, %v396_v37  ;;  %v812_v43 = vpack.c.bf16 %v1925_v10, %v1916_v41  ;;  %v594_v59 = vadd.f32 %v530_v38, %v466_v24  ;;  %v534_v46 = vld [vmem:[%s1670_s23 + $0x180] sm:$0xff] }
  0x40   : > { %1018 = vmatprep.mubr.bf16.mxu0 %v1589_v2  ;;  %1178 = vmatprep.mubr.bf16.mxu1 %v1589_v2  ;;  %v398_v63 = vmul.f32 %v1677_v11, %v327_v48  ;;  %v367_v1 = vmul.f32 %v1677_v11, %v296_v49  ;;  %v437_v3 = vadd.f32 %v1682_v12, %v366_v54  ;;  %v535_v48 = vld [vmem:[%s1670_s23 + $0x188] sm:$0xff]  ;;  %v331_v54 = vld [vmem:[%s1659_s15 + $0x198] sm:$0xff] }
  0x41   : > { %v595_v55 = vadd.f32 %v531_v42, %v467_v28  ;;  %v564_v4 = vadd.f32 %v500_v13, %v436_v56  ;;  %v468_v5 = vadd.f32 %v1682_v12, %v397_v57  ;;  %v368_v14 = vmul.f32 %v1677_v11, %v297_v39  ;;  %v330_v39 = vld [vmem:[%s1659_s15 + $0x190] sm:$0xff] }
  0x42   : > { %vm658_vm10 = vcmp.ge.f32.partialorder %v594_v59, 0.0  ;;  %v722_v15 = vmul.f32 0.01, %v594_v59  ;;  %v565_v17 = vadd.f32 %v501_v62, %v437_v3  ;;  %v469_v53 = vadd.f32 %v1682_v12, %v398_v63  ;;  %v504_v3 = vld [vmem:[%s1670_s23 + $0x90] sm:$0xff] }
  0x43   : > { %vm659_vm11 = vcmp.ge.f32.partialorder %v595_v55, 0.0  ;;  %v723_v16 = vmul.f32 0.01, %v595_v55  ;;  %vm628_vm12 = vcmp.ge.f32.partialorder %v564_v4, 0.0  ;;  %v692_v47 = vmul.f32 0.01, %v564_v4 }
  0x44   : > { %v1945_v50 = vsel %vm658_vm10, %v594_v59, %v722_v15  ;;  %v596_v61 = vadd.f32 %v532_v7, %v468_v5  ;;  %v438_v18 = vadd.f32 %v1682_v12, %v367_v1  ;;  %vm629_vm13 = vcmp.ge.f32.partialorder %v565_v17, 0.0  ;;  %v300_v15 = vld [vmem:[%s1659_s15 + $0xa0] sm:$0xff] }
  0x45   : > { %v1947_v51 = vsel %vm659_vm11, %v595_v55, %v723_v16  ;;  %v693_v25 = vmul.f32 0.01, %v565_v17  ;;  %v1962_v26 = vsel %vm628_vm12, %v564_v4, %v692_v47  ;;  %v597_v44 = vadd.f32 %v533_v60, %v469_v53  ;;  %v505_v4 = vld [vmem:[%s1670_s23 + $0x98] sm:$0xff]  ;;  %v301_v16 = vld [vmem:[%s1659_s15 + $0xa8] sm:$0xff] }
  0x46   : > { %v828_v23 = vpack.c.bf16 %v1947_v51, %v1945_v50  ;;  %vm660_vm14 = vcmp.ge.f32.partialorder %v596_v61, 0.0  ;;  %v724_v45 = vmul.f32 0.01, %v596_v61  ;;  %v399_v29 = vmul.f32 %v1677_v11, %v328_v20  ;;  %v537_v47 = vld [vmem:[%s1670_s23 + $0x198] sm:$0xff]  ;;  %v334_v51 = vld [vmem:[%s1659_s15 + $0x1b0] sm:$0xff] }
  0x47   : > { %1019 = vmatmul.mubr.bf16.gmra.mrb[16].mxu0 %v810_v52  ;;  %1179 = vmatmul.mubr.bf16.gmra.mrb[16].mxu1 %v826_v6  ;;  %v439_v52 = vadd.f32 %v1682_v12, %v368_v14  ;;  %v1968_v0 = vsel %vm629_vm13, %v565_v17, %v693_v25  ;;  %v566_v6 = vadd.f32 %v502_v19, %v438_v18  ;;  %vm661_vm15 = vcmp.ge.f32.partialorder %v597_v44, 0.0  ;;  %v536_v17 = vld [vmem:[%s1670_s23 + $0x190] sm:$0xff]  ;;  %v332_v19 = vld [vmem:[%s1659_s15 + $0x1a0] sm:$0xff]  ;;  %v303_v50 = vld [vmem:[%s1659_s15 + $0xb8] sm:$0xff] }
  0x48   : > { %1028 = vmatprep.mubr.bf16.mxu0 %v1589_v2  ;;  %1188 = vmatprep.mubr.bf16.mxu1 %v1589_v2  ;;  %v400_v30 = vmul.f32 %v1677_v11, %v329_v22  ;;  %v813_v36 = vpack.c.bf16 %v1968_v0, %v1962_v26  ;;  %v725_v37 = vmul.f32 0.01, %v597_v44  ;;  %v1976_v38 = vsel %vm660_vm14, %v596_v61, %v724_v45  ;;  %v305_v26 = vld [vmem:[%s1659_s15 + $0xc8] sm:$0xff] }
  0x49   : > { %v567_v8 = vadd.f32 %v503_v58, %v439_v52  ;;  %vm630_vm0 = vcmp.ge.f32.partialorder %v566_v6, 0.0  ;;  %v694_v9 = vmul.f32 0.01, %v566_v6  ;;  %v470_v42 = vadd.f32 %v1682_v12, %v399_v29  ;;  %v506_v58 = vld [vmem:[%s1670_s23 + $0xa0] sm:$0xff] }
  0x4a   : > { %v1981_v49 = vsel %vm661_vm15, %v597_v44, %v725_v37  ;;  %v471_v24 = vadd.f32 %v1682_v12, %v400_v30  ;;  %v369_v28 = vmul.f32 %v1677_v11, %v298_v33  ;;  %v370_v13 = vmul.f32 %v1677_v11, %v299_v35  ;;  %v333_v35 = vld [vmem:[%s1659_s15 + $0x1a8] sm:$0xff] }
  0x4b   : > { %v829_v56 = vpack.c.bf16 %v1981_v49, %v1976_v38  ;;  %vm631_vm1 = vcmp.ge.f32.partialorder %v567_v8, 0.0  ;;  %v695_v57 = vmul.f32 0.01, %v567_v8  ;;  %v1990_v59 = vsel %vm630_vm0, %v566_v6, %v694_v9  ;;  %v507_v6 = vld [vmem:[%s1670_s23 + $0xa8] sm:$0xff] }
  0x4c   : > { %v598_v55 = vadd.f32 %v534_v46, %v470_v42  ;;  %v599_v62 = vadd.f32 %v535_v48, %v471_v24  ;;  %v440_v63 = vadd.f32 %v1682_v12, %v369_v28  ;;  %v441_v1 = vadd.f32 %v1682_v12, %v370_v13  ;;  %v538_v28 = vld [vmem:[%s1670_s23 + $0x1a0] sm:$0xff] }
  0x4d   : > { %v2002_v5 = vsel %vm631_vm1, %v567_v8, %v695_v57  ;;  %v401_v7 = vmul.f32 %v1677_v11, %v330_v39  ;;  %v402_v14 = vmul.f32 %v1677_v11, %v331_v54  ;;  %v371_v61 = vmul.f32 %v1677_v11, %v300_v15  ;;  %v539_v54 = vld [vmem:[%s1670_s23 + $0x1a8] sm:$0xff] }
  0x4e   : > { %v814_v21 = vpack.c.bf16 %v2002_v5, %v1990_v59  ;;  %vm662_vm2 = vcmp.ge.f32.partialorder %v598_v55, 0.0  ;;  %vm663_vm3 = vcmp.ge.f32.partialorder %v599_v62, 0.0  ;;  %v726_v27 = vmul.f32 0.01, %v598_v55 }
  0x4f   : > { %1029 = vmatmul.mubr.bf16.gmra.mrb[20].mxu0 %v811_v31  ;;  %1189 = vmatmul.mubr.bf16.gmra.mrb[20].mxu1 %v827_v40  ;;  %v727_v31 = vmul.f32 0.01, %v599_v62  ;;  %v568_v32 = vadd.f32 %v504_v3, %v440_v63  ;;  %v569_v34 = vadd.f32 %v505_v4, %v441_v1  ;;  %v472_v40 = vadd.f32 %v1682_v12, %v401_v7  ;;  %v335_v1 = vld [vmem:[%s1659_s15 + $0x1b8] sm:$0xff] }
  0x50   : > { %1038 = vmatprep.mubr.bf16.mxu0 %v1589_v2  ;;  %1198 = vmatprep.mubr.bf16.mxu1 %v1589_v2  ;;  %v2015_v53 = vsel %vm662_vm2, %v598_v55, %v726_v27  ;;  %v473_v60 = vadd.f32 %v1682_v12, %v402_v14  ;;  %v372_v18 = vmul.f32 %v1677_v11, %v301_v16 }
  0x51   : > { %v2021_v20 = vsel %vm663_vm3, %v599_v62, %v727_v31  ;;  %vm632_vm4 = vcmp.ge.f32.partialorder %v568_v32, 0.0  ;;  %vm633_vm5 = vcmp.ge.f32.partialorder %v569_v34, 0.0  ;;  %v696_v22 = vmul.f32 0.01, %v568_v32  ;;  %v508_v31 = vld [vmem:[%s1670_s23 + $0xb0] sm:$0xff] }
  0x52   : > { %v830_v25 = vpack.c.bf16 %v2021_v20, %v2015_v53  ;;  %v697_v44 = vmul.f32 0.01, %v569_v34  ;;  %v600_v45 = vadd.f32 %v536_v17, %v472_v40  ;;  %v601_v52 = vadd.f32 %v537_v47, %v473_v60  ;;  %v540_v60 = vld [vmem:[%s1670_s23 + $0x1b0] sm:$0xff]  ;;  %v339_v20 = vld [vmem:[%s1659_s15 + $0x1d8] sm:$0xff] }
  0x53   : > { %v2027_v29 = vsel %vm632_vm4, %v568_v32, %v696_v22  ;;  %v442_v30 = vadd.f32 %v1682_v12, %v371_v61  ;;  %v443_v33 = vadd.f32 %v1682_v12, %v372_v18  ;;  %v403_v37 = vmul.f32 %v1677_v11, %v332_v19  ;;  %v509_v32 = vld [vmem:[%s1670_s23 + $0xb8] sm:$0xff]  ;;  %v304_v61 = vld [vmem:[%s1659_s15 + $0xc0] sm:$0xff]  ;;  %v338_v53 = vld [vmem:[%s1659_s15 + $0x1d0] sm:$0xff] }
  0x54   : > { %v2033_v8 = vsel %vm633_vm5, %v569_v34, %v697_v44  ;;  %vm664_vm6 = vcmp.ge.f32.partialorder %v600_v45, 0.0  ;;  %vm665_vm7 = vcmp.ge.f32.partialorder %v601_v52, 0.0  ;;  %v728_v9 = vmul.f32 0.01, %v600_v45 }
  0x55   : > { %v815_v42 = vpack.c.bf16 %v2033_v8, %v2027_v29  ;;  %v729_v46 = vmul.f32 0.01, %v601_v52  ;;  %v570_v48 = vadd.f32 %v506_v58, %v442_v30  ;;  %v571_v24 = vadd.f32 %v507_v6, %v443_v33  ;;  %v541_v58 = vld [vmem:[%s1670_s23 + $0x1b8] sm:$0xff] }
  0x56   : > { %v2046_v13 = vsel %vm664_vm6, %v600_v45, %v728_v9  ;;  %v404_v41 = vmul.f32 %v1677_v11, %v333_v35  ;;  %v474_v10 = vadd.f32 %v1682_v12, %v403_v37  ;;  %v374_v7 = vmul.f32 %v1677_v11, %v303_v50  ;;  %v337_v9 = vld [vmem:[%s1659_s15 + $0x1c8] sm:$0xff] }
  0x57   : > { %1039 = vmatmul.mubr.bf16.gmra.mrb[24].mxu0 %v812_v43  ;;  %1199 = vmatmul.mubr.bf16.gmra.mrb[24].mxu1 %v828_v23  ;;  %v302_v43 = vld [vmem:[%s1659_s15 + $0xb0] sm:$0xff]  ;;  %v2054_v23 = vsel %vm665_vm7, %v601_v52, %v729_v46  ;;  %vm634_vm8 = vcmp.ge.f32.partialorder %v570_v48, 0.0  ;;  %vm635_vm9 = vcmp.ge.f32.partialorder %v571_v24, 0.0  ;;  %v698_v39 = vmul.f32 0.01, %v570_v48 }
  0x58   : > { %1048 = vmatprep.mubr.bf16.mxu0 %v1589_v2  ;;  %1208 = vmatprep.mubr.bf16.mxu1 %v1589_v2  ;;  %v831_v57 = vpack.c.bf16 %v2054_v23, %v2046_v13  ;;  %v699_v55 = vmul.f32 0.01, %v571_v24  ;;  %v475_v62 = vadd.f32 %v1682_v12, %v404_v41  ;;  %v602_v63 = vadd.f32 %v538_v28, %v474_v10  ;;  %v306_v41 = vld [vmem:[%s1659_s15 + $0xd0] sm:$0xff]  ;;  %v307_v10 = vld [vmem:[%s1659_s15 + $0xd8] sm:$0xff]  ;;  %v514_v13 = vld [vmem:[%s1670_s23 + $0xe0] sm:$0xff] }
  0x59   : > { %v2061_v3 = vsel %vm634_vm8, %v570_v48, %v698_v39  ;;  %v373_v4 = vmul.f32 %v1677_v11, %v302_v43  ;;  %v405_v14 = vmul.f32 %v1677_v11, %v334_v51  ;;  %v445_v17 = vadd.f32 %v1682_v12, %v374_v7  ;;  %v511_v39 = vld [vmem:[%s1670_s23 + $0xc8] sm:$0xff] }
  0x5a   : > { %v2066_v15 = vsel %vm635_vm9, %v571_v24, %v699_v55  ;;  %v603_v16 = vadd.f32 %v539_v54, %v475_v62  ;;  %vm666_vm10 = vcmp.ge.f32.partialorder %v602_v63, 0.0  ;;  %v730_v27 = vmul.f32 0.01, %v602_v63 }
  0x5b   : > { %v816_v34 = vpack.c.bf16 %v2066_v15, %v2061_v3  ;;  %v444_v40 = vadd.f32 %v1682_v12, %v373_v4  ;;  %v406_v47 = vmul.f32 %v1677_v11, %v335_v1  ;;  %v476_v22 = vadd.f32 %v1682_v12, %v405_v14  ;;  %v542_v1 = vld [vmem:[%s1670_s23 + $0x1c0] sm:$0xff] }
  0x5c   : > { %vm667_vm11 = vcmp.ge.f32.partialorder %v603_v16, 0.0  ;;  %v731_v18 = vmul.f32 0.01, %v603_v16  ;;  %v2077_v19 = vsel %vm666_vm10, %v602_v63, %v730_v27  ;;  %v573_v45 = vadd.f32 %v509_v32, %v445_v17  ;;  %v512_v17 = vld [vmem:[%s1670_s23 + $0xd0] sm:$0xff] }
  0x5d   : > { %v572_v44 = vadd.f32 %v508_v31, %v444_v40  ;;  %v477_v52 = vadd.f32 %v1682_v12, %v406_v47  ;;  %v604_v30 = vadd.f32 %v540_v60, %v476_v22  ;;  %v375_v0 = vmul.f32 %v1677_v11, %v304_v61  ;;  %v543_v40 = vld [vmem:[%s1670_s23 + $0x1c8] sm:$0xff] }
  0x5e   : > { %v2090_v6 = vsel %vm667_vm11, %v603_v16, %v731_v18  ;;  %vm637_vm13 = vcmp.ge.f32.partialorder %v573_v45, 0.0  ;;  %v701_v33 = vmul.f32 0.01, %v573_v45  ;;  %v376_v48 = vmul.f32 %v1677_v11, %v305_v26  ;;  %v308_v26 = vld [vmem:[%s1659_s15 + $0xe0] sm:$0xff] }
  0x5f   : > { %1049 = vmatmul.mubr.bf16.gmra.mrb[28].mxu0 %v813_v36  ;;  %1209 = vmatmul.mubr.bf16.gmra.mrb[28].mxu1 %v829_v56  ;;  %v336_v36 = vld [vmem:[%s1659_s15 + $0x1c0] sm:$0xff]  ;;  %v832_v38 = vpack.c.bf16 %v2090_v6, %v2077_v19  ;;  %vm636_vm12 = vcmp.ge.f32.partialorder %v572_v44, 0.0  ;;  %v700_v49 = vmul.f32 0.01, %v572_v44  ;;  %v605_v35 = vadd.f32 %v541_v58, %v477_v52  ;;  %v548_v6 = vld [vmem:[%s1670_s23 + $0x1f0] sm:$0xff] }
  0x60   : > { %1058 = vmatprep.mubr.bf16.mxu0 %v1589_v2  ;;  %1218 = vmatprep.mubr.bf16.mxu1 %v1589_v2  ;;  %v510_v56 = vld [vmem:[%s1670_s23 + $0xc0] sm:$0xff]  ;;  %vm668_vm14 = vcmp.ge.f32.partialorder %v604_v30, 0.0  ;;  %v732_v37 = vmul.f32 0.01, %v604_v30  ;;  %v446_v24 = vadd.f32 %v1682_v12, %v375_v0  ;;  %v407_v28 = vmul.f32 %v1677_v11, %v336_v36 }
  0x61   : > { %v2099_v46 = vsel %vm636_vm12, %v572_v44, %v700_v49  ;;  %v2106_v43 = vsel %vm637_vm13, %v573_v45, %v701_v33  ;;  %vm669_vm15 = vcmp.ge.f32.partialorder %v605_v35, 0.0  ;;  %v733_v50 = vmul.f32 0.01, %v605_v35  ;;  %v2146_v52 = vld [vmem:[%s2524_s2] ss:$0 sm:$0xff]  ;;  %v544_v49 = vld [vmem:[%s1670_s23 + $0x1d0] sm:$0xff] }
  0x62   : > { %v2108_v51 = vsel %vm668_vm14, %v604_v30, %v732_v37  ;;  %v817_v54 = vpack.c.bf16 %v2106_v43, %v2099_v46  ;;  %v447_v55 = vadd.f32 %v1682_v12, %v376_v48  ;;  %v574_v62 = vadd.f32 %v510_v56, %v446_v24  ;;  %v545_v56 = vld [vmem:[%s1670_s23 + $0x1d8] sm:$0xff] }
  0x63   : > { %v408_v63 = vmul.f32 %v1677_v11, %v337_v9  ;;  %v2116_v4 = vsel %vm669_vm15, %v605_v35, %v733_v50  ;;  %v478_v7 = vadd.f32 %v1682_v12, %v407_v28  ;;  %v377_v14 = vmul.f32 %v1677_v11, %v306_v41  ;;  %v2162_v9 = vld [vmem:[%s2525_s3] ss:$0 sm:$0xff]  ;;  %v309_v28 = vld [vmem:[%s1659_s15 + $0xe8] sm:$0xff] }
  0x64   : > { %v378_v16 = vmul.f32 %v1677_v11, %v307_v10  ;;  %v833_v27 = vpack.c.bf16 %v2116_v4, %v2108_v51  ;;  %v575_v31 = vadd.f32 %v511_v39, %v447_v55  ;;  %vm638_vm0 = vcmp.ge.f32.partialorder %v574_v62, 0.0  ;;  %v340_v10 = vld [vmem:[%s1659_s15 + $0x1e0] sm:$0xff]  ;;  %v341_v50 = vld [vmem:[%s1659_s15 + $0x1e8] sm:$0xff] }
  0x65   : > { %v702_v32 = vmul.f32 0.01, %v574_v62  ;;  %v479_v11 = vadd.f32 %v1682_v12, %v408_v63  ;;  %v606_v59 = vadd.f32 %v542_v1, %v478_v7  ;;  %v448_v5 = vadd.f32 %v1682_v12, %v377_v14  ;;  %v515_v63 = vld [vmem:[%s1670_s23 + $0xe8] sm:$0xff]  ;;  %v310_v14 = vld [vmem:[%s1659_s15 + $0xf0] sm:$0xff] }
  0x66   : > { %vm639_vm1 = vcmp.ge.f32.partialorder %v575_v31, 0.0  ;;  %v449_v60 = vadd.f32 %v1682_v12, %v378_v16  ;;  %v409_v58 = vmul.f32 %v2146_v52, %v338_v53  ;;  %v410_v30 = vmul.f32 %v2146_v52, %v339_v20  ;;  %v311_v16 = vld [vmem:[%s1659_s15 + $0xf8] sm:$0xff] }
  0x67   : > { %1059 = vmatmul.mubr.bf16.gmra.mrb[32].mxu0 %v814_v21  ;;  %1219 = vmatmul.mubr.bf16.gmra.mrb[32].mxu1 %v830_v25  ;;  %v513_v21 = vld [vmem:[%s1670_s23 + $0xd8] sm:$0xff]  ;;  %v703_v25 = vmul.f32 0.01, %v575_v31  ;;  %v2138_v47 = vsel %vm638_vm0, %v574_v62, %v702_v32  ;;  %v607_v61 = vadd.f32 %v543_v40, %v479_v11  ;;  %vm670_vm2 = vcmp.ge.f32.partialorder %v606_v59, 0.0 }
  0x68   : > { %1068 = vmatprep.mubr.bf16.mxu0 %v1589_v2  ;;  %1228 = vmatprep.mubr.bf16.mxu1 %v1589_v2  ;;  %v734_v18 = vmul.f32 0.01, %v606_v59  ;;  %v576_v22 = vadd.f32 %v512_v17, %v448_v5  ;;  %v577_v45 = vadd.f32 %v513_v21, %v449_v60  ;;  %v480_v48 = vadd.f32 %v2162_v9, %v409_v58  ;;  %v546_v5 = vld [vmem:[%s1670_s23 + $0x1e0] sm:$0xff]  ;;  %v547_v21 = vld [vmem:[%s1670_s23 + $0x1e8] sm:$0xff] }
  0x69   : > { %v2141_v44 = vsel %vm639_vm1, %v575_v31, %v703_v25  ;;  %vm671_vm3 = vcmp.ge.f32.partialorder %v607_v61, 0.0  ;;  %v735_v0 = vmul.f32 0.01, %v607_v61  ;;  %v481_v24 = vadd.f32 %v2162_v9, %v410_v30 }
  0x6a   : > { %v818_v12 = vpack.c.bf16 %v2141_v44, %v2138_v47  ;;  %v2153_v36 = vsel %vm670_vm2, %v606_v59, %v734_v18  ;;  %vm640_vm4 = vcmp.ge.f32.partialorder %v576_v22, 0.0  ;;  %vm641_vm5 = vcmp.ge.f32.partialorder %v577_v45, 0.0 }
  0x6b   : > { %v704_v33 = vmul.f32 0.01, %v576_v22  ;;  %v705_v35 = vmul.f32 0.01, %v577_v45  ;;  %v2157_v37 = vsel %vm671_vm3, %v607_v61, %v735_v0  ;;  %v379_v41 = vmul.f32 %v2146_v52, %v308_v26  ;;  %v342_v61 = vld [vmem:[%s1659_s15 + $0x1f0] sm:$0xff] }
  0x6c   : > { %v834_v39 = vpack.c.bf16 %v2157_v37, %v2153_v36  ;;  %v608_v8 = vadd.f32 %v544_v49, %v480_v48  ;;  %v380_v23 = vmul.f32 %v2146_v52, %v309_v28  ;;  %v411_v1 = vmul.f32 %v2146_v52, %v340_v10  ;;  %v516_v49 = vld [vmem:[%s1670_s23 + $0xf0] sm:$0xff] }
  0x6d   : > { %v2178_v55 = vsel %vm640_vm4, %v576_v22, %v704_v33  ;;  %v2180_v62 = vsel %vm641_vm5, %v577_v45, %v705_v35  ;;  %v412_v7 = vmul.f32 %v2146_v52, %v341_v50  ;;  %v381_v25 = vmul.f32 %v2146_v52, %v310_v14  ;;  %v343_v33 = vld [vmem:[%s1659_s15 + $0x1f8] sm:$0xff] }
  0x6e   : > { %v819_v29 = vpack.c.bf16 %v2180_v62, %v2178_v55  ;;  %vm672_vm6 = vcmp.ge.f32.partialorder %v608_v8, 0.0  ;;  %v736_v31 = vmul.f32 0.01, %v608_v8  ;;  %v451_v40 = vadd.f32 %v2162_v9, %v380_v23  ;;  %v549_v23 = vld [vmem:[%s1670_s23 + $0x1f8] sm:$0xff] }
  0x6f   : > { %1069 = vmatmul.mubr.bf16.gmra.mrb[36].mxu0 %v815_v42  ;;  %1229 = vmatmul.mubr.bf16.gmra.mrb[36].mxu1 %v831_v57  ;;  %v609_v42 = vadd.f32 %v545_v56, %v481_v24  ;;  %v450_v57 = vadd.f32 %v2162_v9, %v379_v41  ;;  %v482_v11 = vadd.f32 %v2162_v9, %v411_v1  ;;  %v517_v56 = vld [vmem:[%s1670_s23 + $0xf8] sm:$0xff]  ;;  %v856_v46 = vlaneseq }
  0x70   : > { %1078 = vmatprep.mubr.bf16.mxu0 %v1589_v2  ;;  %1238 = vmatprep.mubr.bf16.mxu1 %v1589_v2  ;;  %v483_v59 = vadd.f32 %v2162_v9, %v412_v7  ;;  %v2199_v53 = vsel %vm672_vm6, %v608_v8, %v736_v31  ;;  %v382_v60 = vmul.f32 %v2146_v52, %v311_v16 }
  0x71   : > { %vm673_vm7 = vcmp.ge.f32.partialorder %v609_v42, 0.0  ;;  %v737_v32 = vmul.f32 0.01, %v609_v42  ;;  %v578_v17 = vadd.f32 %v514_v13, %v450_v57  ;;  %v579_v22 = vadd.f32 %v515_v63, %v451_v40 }
  0x72   : > { %v610_v58 = vadd.f32 %v546_v5, %v482_v11  ;;  %v611_v30 = vadd.f32 %v547_v21, %v483_v59  ;;  %v452_v26 = vadd.f32 %v2162_v9, %v381_v25  ;;  %v453_v0 = vadd.f32 %v2162_v9, %v382_v60 }
  0x73   : > { %v2201_v20 = vsel %vm673_vm7, %v609_v42, %v737_v32  ;;  %vm642_vm8 = vcmp.ge.f32.partialorder %v578_v17, 0.0  ;;  %v706_v45 = vmul.f32 0.01, %v578_v17  ;;  %vm643_vm9 = vcmp.ge.f32.partialorder %v579_v22, 0.0 }
  0x74   : > { %v835_v18 = vpack.c.bf16 %v2201_v20, %v2199_v53  ;;  %v707_v35 = vmul.f32 0.01, %v579_v22  ;;  %v413_v24 = vmul.f32 %v2146_v52, %v342_v61  ;;  %vm674_vm10 = vcmp.ge.f32.partialorder %v610_v58, 0.0 }
  0x75   : > { %v770_v48 = vsel %vm642_vm8, %v578_v17, %v706_v45  ;;  %vm675_vm11 = vcmp.ge.f32.partialorder %v611_v30, 0.0  ;;  %v738_v28 = vmul.f32 0.01, %v610_v58  ;;  %v739_v3 = vmul.f32 0.01, %v611_v30 }
  0x76   : > { %v771_v15 = vsel %vm643_vm9, %v579_v22, %v707_v35  ;;  %v581_v41 = vadd.f32 %v517_v56, %v453_v0  ;;  %v414_v19 = vmul.f32 %v2146_v52, %v343_v33  ;;  %v484_v8 = vadd.f32 %v2162_v9, %v413_v24 }
  0x77   : > { %1079 = vmatmul.mubr.bf16.gmra.mrb[40].mxu0 %v816_v34  ;;  %1239 = vmatmul.mubr.bf16.gmra.mrb[40].mxu1 %v832_v38  ;;  %v580_v34 = vadd.f32 %v516_v49, %v452_v26  ;;  %v820_v38 = vpack.c.bf16 %v771_v15, %v770_v48  ;;  %v802_v10 = vsel %vm674_vm10, %v610_v58, %v738_v28  ;;  %v857_v43 = vshrl.u32 %v856_v46, 7 }
  0x78   : > { %1088 = vmatprep.mubr.bf16.mxu0 %v1589_v2  ;;  %1248 = vmatprep.mubr.bf16.mxu1 %v1589_v2  ;;  %v803_v50 = vsel %vm675_vm11, %v611_v30, %v739_v3  ;;  %vm645_vm13 = vcmp.ge.f32.partialorder %v581_v41, 0.0  ;;  %v709_v57 = vmul.f32 0.01, %v581_v41  ;;  %v485_v63 = vadd.f32 %v2162_v9, %v414_v19 }
  0x79   : > { %v836_v42 = vpack.c.bf16 %v803_v50, %v802_v10  ;;  %vm644_vm12 = vcmp.ge.f32.partialorder %v580_v34, 0.0  ;;  %v708_v13 = vmul.f32 0.01, %v580_v34  ;;  %v612_v1 = vadd.f32 %v548_v6, %v484_v8 }
  0x7a   : > { %v773_v14 = vsel %vm645_vm13, %v581_v41, %v709_v57  ;;  %v613_v16 = vadd.f32 %v549_v23, %v485_v63  ;;  %v858_v51 = vsub.s32 0, %v857_v43  ;;  %v862_v4 = vsub.s32 1, %v857_v43 }
  0x7b   : > { %v772_v7 = vsel %vm644_vm12, %v580_v34, %v708_v13  ;;  %vm676_vm14 = vcmp.ge.f32.partialorder %v612_v1, 0.0  ;;  %v740_v52 = vmul.f32 0.01, %v612_v1 }
  0x7c   : > { %v821_v31 = vpack.c.bf16 %v773_v14, %v772_v7  ;;  %vm677_vm15 = vcmp.ge.f32.partialorder %v613_v16, 0.0  ;;  %v741_v9 = vmul.f32 0.01, %v613_v16 }
  0x7d   : > { %v804_v32 = vsel %vm676_vm14, %v612_v1, %v740_v52 }
  0x7e   : > { %v805_v40 = vsel %vm677_vm15, %v613_v16, %v741_v9 }
  0x7f   : > { %1089 = vmatmul.mubr.bf16.gmra.mrb[44].mxu0 %v817_v54  ;;  %1249 = vmatmul.mubr.bf16.gmra.mrb[44].mxu1 %v833_v27  ;;  %v837_v17 = vpack.c.bf16 %v805_v40, %v804_v32  ;;  %v854_v54 = vld [vmem:[%s2527_s5] sm:$0x3] }
  0x80   : > { %1098 = vmatprep.mubr.bf16.mxu0 %v1589_v2  ;;  %1258 = vmatprep.mubr.bf16.mxu1 %v1589_v2  ;;  %v2254_v27 = vrot.slane %v854_v54, %v858_v51  ;;  %v2256_v47 = vrot.slane %v854_v54, %v862_v4 }
  0x87   : > { %1099 = vmatmul.mubr.bf16.gmra.mrb[48].mxu0 %v818_v12  ;;  %1259 = vmatmul.mubr.bf16.gmra.mrb[48].mxu1 %v834_v39 }
  0x88   : > { %1108 = vmatprep.mubr.bf16.mxu0 %v1589_v2  ;;  %1268 = vmatprep.mubr.bf16.mxu1 %v1589_v2 }
  0x8f   : > { %1109 = vmatmul.mubr.bf16.gmra.mrb[52].mxu0 %v819_v29  ;;  %1269 = vmatmul.mubr.bf16.gmra.mrb[52].mxu1 %v835_v18 }
  0x90   : > { %1118 = vmatprep.mubr.bf16.mxu0 %v1589_v2  ;;  %1278 = vmatprep.mubr.bf16.mxu1 %v1589_v2 }
  0x97   : > { %1119 = vmatmul.mubr.bf16.gmra.mrb[56].mxu0 %v820_v38  ;;  %1279 = vmatmul.mubr.bf16.gmra.mrb[56].mxu1 %v836_v42 }
  0x98   : > { %1128 = vmatprep.mubr.bf16.mxu0 %v1589_v2  ;;  %1288 = vmatprep.mubr.bf16.mxu1 %v1589_v2 }
  0x9f   : > { %1129 = vmatmul.mubr.bf16.gmra.mrb[60].mxu0 %v821_v31  ;;  %1289 = vmatmul.mubr.bf16.gmra.mrb[60].mxu1 %v837_v17 }
  0xfa   : > { %v980_v2 = vpop.f32.mrb[0].mxu0  ;;  %v1140_v44 = vpop.f32.mrb[0].mxu1 }
  0xfb   : > { %v981_v12 = vadd.f32 %v980_v2, %v2254_v27  ;;  %v1141_v36 = vadd.f32 %v1140_v44, %v2254_v27  ;;  %v982_v37 = vpop.f32.mrb[1].mxu0  ;;  %v1142_v39 = vpop.f32.mrb[1].mxu1 }
  0xfc   : > { %v983_v55 = vadd.f32 %v982_v37, %v2256_v47  ;;  %v1143_v62 = vadd.f32 %v1142_v39, %v2256_v47  ;;  %v984_v29 = vpop.f32.mrb[2].mxu0  ;;  %v1144_v11 = vpop.f32.mrb[2].mxu1 }
  0xfd   : > { %1299 = vst [vmem:[%s2261_s8] sm:$0xff] %v981_v12  ;;  %1363 = vst [vmem:[%s2261_s8 + $0x200] sm:$0xff] %v1141_v36  ;;  %v985_v59 = vadd.f32 %v984_v29, %v2254_v27  ;;  %v1145_v5 = vadd.f32 %v1144_v11, %v2254_v27  ;;  %v986_v21 = vpop.f32.mrb[3].mxu0  ;;  %v1146_v53 = vpop.f32.mrb[3].mxu1 }
  0xfe   : > { %1300 = vst [vmem:[%s2261_s8 + $0x8] sm:$0xff] %v983_v55  ;;  %1364 = vst [vmem:[%s2261_s8 + $0x208] sm:$0xff] %v1143_v62  ;;  %v987_v20 = vadd.f32 %v986_v21, %v2256_v47  ;;  %v1147_v25 = vadd.f32 %v1146_v53, %v2256_v47 }
  0xff   : > { %1301 = vst [vmem:[%s2261_s8 + $0x10] sm:$0xff] %v985_v59  ;;  %1365 = vst [vmem:[%s2261_s8 + $0x210] sm:$0xff] %v1145_v5 }
 0x100   : > { %1302 = vst [vmem:[%s2261_s8 + $0x18] sm:$0xff] %v987_v20  ;;  %1366 = vst [vmem:[%s2261_s8 + $0x218] sm:$0xff] %v1147_v25 }
 0x102   : > { %v990_v60 = vpop.f32.mrb[4].mxu0  ;;  %v1150_v61 = vpop.f32.mrb[4].mxu1 }
 0x103   : > { %v991_v18 = vadd.f32 %v990_v60, %v2254_v27  ;;  %v1151_v22 = vadd.f32 %v1150_v61, %v2254_v27  ;;  %v992_v45 = vpop.f32.mrb[5].mxu0  ;;  %v1152_v58 = vpop.f32.mrb[5].mxu1 }
 0x104   : > { %v993_v30 = vadd.f32 %v992_v45, %v2256_v47  ;;  %v1153_v26 = vadd.f32 %v1152_v58, %v2256_v47  ;;  %v994_v0 = vpop.f32.mrb[6].mxu0  ;;  %v1154_v49 = vpop.f32.mrb[6].mxu1 }
 0x105   : > { %1303 = vst [vmem:[%s2261_s8 + $0x20] sm:$0xff] %v991_v18  ;;  %1367 = vst [vmem:[%s2261_s8 + $0x220] sm:$0xff] %v1151_v22  ;;  %v995_v56 = vadd.f32 %v994_v0, %v2254_v27  ;;  %v1155_v33 = vadd.f32 %v1154_v49, %v2254_v27  ;;  %v996_v35 = vpop.f32.mrb[7].mxu0  ;;  %v1156_v48 = vpop.f32.mrb[7].mxu1 }
 0x106   : > { %1304 = vst [vmem:[%s2261_s8 + $0x28] sm:$0xff] %v993_v30  ;;  %1368 = vst [vmem:[%s2261_s8 + $0x228] sm:$0xff] %v1153_v26  ;;  %v997_v24 = vadd.f32 %v996_v35, %v2256_v47  ;;  %v1157_v28 = vadd.f32 %v1156_v48, %v2256_v47 }
 0x107   : > { %1305 = vst [vmem:[%s2261_s8 + $0x30] sm:$0xff] %v995_v56  ;;  %1369 = vst [vmem:[%s2261_s8 + $0x230] sm:$0xff] %v1155_v33 }
 0x108   : > { %1306 = vst [vmem:[%s2261_s8 + $0x38] sm:$0xff] %v997_v24  ;;  %1370 = vst [vmem:[%s2261_s8 + $0x238] sm:$0xff] %v1157_v28 }
 0x10a   : > { %v1000_v3 = vpop.f32.mrb[8].mxu0  ;;  %v1160_v15 = vpop.f32.mrb[8].mxu1 }
 0x10b   : > { %v1001_v34 = vadd.f32 %v1000_v3, %v2254_v27  ;;  %v1161_v41 = vadd.f32 %v1160_v15, %v2254_v27  ;;  %v1002_v19 = vpop.f32.mrb[9].mxu0  ;;  %v1162_v6 = vpop.f32.mrb[9].mxu1 }
 0x10c   : > { %v1003_v38 = vadd.f32 %v1002_v19, %v2256_v47  ;;  %v1163_v10 = vadd.f32 %v1162_v6, %v2256_v47  ;;  %v1004_v50 = vpop.f32.mrb[10].mxu0  ;;  %v1164_v8 = vpop.f32.mrb[10].mxu1 }
 0x10d   : > { %1307 = vst [vmem:[%s2261_s8 + $0x40] sm:$0xff] %v1001_v34  ;;  %1371 = vst [vmem:[%s2261_s8 + $0x240] sm:$0xff] %v1161_v41  ;;  %v1005_v42 = vadd.f32 %v1004_v50, %v2254_v27  ;;  %v1165_v13 = vadd.f32 %v1164_v8, %v2254_v27  ;;  %v1006_v23 = vpop.f32.mrb[11].mxu0  ;;  %v1166_v57 = vpop.f32.mrb[11].mxu1 }
 0x10e   : > { %1308 = vst [vmem:[%s2261_s8 + $0x48] sm:$0xff] %v1003_v38  ;;  %1372 = vst [vmem:[%s2261_s8 + $0x248] sm:$0xff] %v1163_v10  ;;  %v1007_v63 = vadd.f32 %v1006_v23, %v2256_v47  ;;  %v1167_v1 = vadd.f32 %v1166_v57, %v2256_v47 }
 0x10f   : > { %1309 = vst [vmem:[%s2261_s8 + $0x50] sm:$0xff] %v1005_v42  ;;  %1373 = vst [vmem:[%s2261_s8 + $0x250] sm:$0xff] %v1165_v13 }
 0x110   : > { %1310 = vst [vmem:[%s2261_s8 + $0x58] sm:$0xff] %v1007_v63  ;;  %1374 = vst [vmem:[%s2261_s8 + $0x258] sm:$0xff] %v1167_v1 }
 0x112   : > { %v1010_v7 = vpop.f32.mrb[12].mxu0  ;;  %v1170_v14 = vpop.f32.mrb[12].mxu1 }
 0x113   : > { %v1011_v16 = vadd.f32 %v1010_v7, %v2254_v27  ;;  %v1171_v52 = vadd.f32 %v1170_v14, %v2254_v27  ;;  %v1012_v31 = vpop.f32.mrb[13].mxu0  ;;  %v1172_v9 = vpop.f32.mrb[13].mxu1 }
 0x114   : > { %v1013_v32 = vadd.f32 %v1012_v31, %v2256_v47  ;;  %v1173_v40 = vadd.f32 %v1172_v9, %v2256_v47  ;;  %v1014_v17 = vpop.f32.mrb[14].mxu0  ;;  %v1174_v46 = vpop.f32.mrb[14].mxu1 }
 0x115   : > { %1311 = vst [vmem:[%s2261_s8 + $0x60] sm:$0xff] %v1011_v16  ;;  %1375 = vst [vmem:[%s2261_s8 + $0x260] sm:$0xff] %v1171_v52  ;;  %v1015_v43 = vadd.f32 %v1014_v17, %v2254_v27  ;;  %v1175_v51 = vadd.f32 %v1174_v46, %v2254_v27  ;;  %v1016_v54 = vpop.f32.mrb[15].mxu0  ;;  %v1176_v4 = vpop.f32.mrb[15].mxu1 }
 0x116   : > { %1312 = vst [vmem:[%s2261_s8 + $0x68] sm:$0xff] %v1013_v32  ;;  %1376 = vst [vmem:[%s2261_s8 + $0x268] sm:$0xff] %v1173_v40  ;;  %v1017_v2 = vadd.f32 %v1016_v54, %v2256_v47  ;;  %v1177_v44 = vadd.f32 %v1176_v4, %v2256_v47 }
 0x117   : > { %1313 = vst [vmem:[%s2261_s8 + $0x70] sm:$0xff] %v1015_v43  ;;  %1377 = vst [vmem:[%s2261_s8 + $0x270] sm:$0xff] %v1175_v51 }
 0x118   : > { %1314 = vst [vmem:[%s2261_s8 + $0x78] sm:$0xff] %v1017_v2  ;;  %1378 = vst [vmem:[%s2261_s8 + $0x278] sm:$0xff] %v1177_v44 }
 0x11a   : > { %v1020_v12 = vpop.f32.mrb[16].mxu0  ;;  %v1180_v36 = vpop.f32.mrb[16].mxu1 }
 0x11b   : > { %v1021_v37 = vadd.f32 %v1020_v12, %v2254_v27  ;;  %v1181_v39 = vadd.f32 %v1180_v36, %v2254_v27  ;;  %v1022_v55 = vpop.f32.mrb[17].mxu0  ;;  %v1182_v62 = vpop.f32.mrb[17].mxu1 }
 0x11c   : > { %v1023_v29 = vadd.f32 %v1022_v55, %v2256_v47  ;;  %v1183_v11 = vadd.f32 %v1182_v62, %v2256_v47  ;;  %v1024_v59 = vpop.f32.mrb[18].mxu0  ;;  %v1184_v5 = vpop.f32.mrb[18].mxu1 }
 0x11d   : > { %1315 = vst [vmem:[%s2261_s8 + $0x80] sm:$0xff] %v1021_v37  ;;  %1379 = vst [vmem:[%s2261_s8 + $0x280] sm:$0xff] %v1181_v39  ;;  %v1025_v21 = vadd.f32 %v1024_v59, %v2254_v27  ;;  %v1185_v53 = vadd.f32 %v1184_v5, %v2254_v27  ;;  %v1026_v20 = vpop.f32.mrb[19].mxu0  ;;  %v1186_v25 = vpop.f32.mrb[19].mxu1 }
 0x11e   : > { %1316 = vst [vmem:[%s2261_s8 + $0x88] sm:$0xff] %v1023_v29  ;;  %1380 = vst [vmem:[%s2261_s8 + $0x288] sm:$0xff] %v1183_v11  ;;  %v1027_v60 = vadd.f32 %v1026_v20, %v2256_v47  ;;  %v1187_v61 = vadd.f32 %v1186_v25, %v2256_v47 }
 0x11f   : > { %1317 = vst [vmem:[%s2261_s8 + $0x90] sm:$0xff] %v1025_v21  ;;  %1381 = vst [vmem:[%s2261_s8 + $0x290] sm:$0xff] %v1185_v53 }
 0x120   : > { %1318 = vst [vmem:[%s2261_s8 + $0x98] sm:$0xff] %v1027_v60  ;;  %1382 = vst [vmem:[%s2261_s8 + $0x298] sm:$0xff] %v1187_v61 }
 0x122   : > { %v1030_v18 = vpop.f32.mrb[20].mxu0  ;;  %v1190_v22 = vpop.f32.mrb[20].mxu1 }
 0x123   : > { %v1031_v45 = vadd.f32 %v1030_v18, %v2254_v27  ;;  %v1191_v58 = vadd.f32 %v1190_v22, %v2254_v27  ;;  %v1032_v30 = vpop.f32.mrb[21].mxu0  ;;  %v1192_v26 = vpop.f32.mrb[21].mxu1 }
 0x124   : > { %v1033_v0 = vadd.f32 %v1032_v30, %v2256_v47  ;;  %v1193_v49 = vadd.f32 %v1192_v26, %v2256_v47  ;;  %v1034_v56 = vpop.f32.mrb[22].mxu0  ;;  %v1194_v33 = vpop.f32.mrb[22].mxu1 }
 0x125   : > { %1319 = vst [vmem:[%s2261_s8 + $0xa0] sm:$0xff] %v1031_v45  ;;  %1383 = vst [vmem:[%s2261_s8 + $0x2a0] sm:$0xff] %v1191_v58  ;;  %v1035_v35 = vadd.f32 %v1034_v56, %v2254_v27  ;;  %v1195_v48 = vadd.f32 %v1194_v33, %v2254_v27  ;;  %v1036_v24 = vpop.f32.mrb[23].mxu0  ;;  %v1196_v28 = vpop.f32.mrb[23].mxu1 }
 0x126   : > { %1320 = vst [vmem:[%s2261_s8 + $0xa8] sm:$0xff] %v1033_v0  ;;  %1384 = vst [vmem:[%s2261_s8 + $0x2a8] sm:$0xff] %v1193_v49  ;;  %v1037_v3 = vadd.f32 %v1036_v24, %v2256_v47  ;;  %v1197_v15 = vadd.f32 %v1196_v28, %v2256_v47 }
 0x127   : > { %1321 = vst [vmem:[%s2261_s8 + $0xb0] sm:$0xff] %v1035_v35  ;;  %1385 = vst [vmem:[%s2261_s8 + $0x2b0] sm:$0xff] %v1195_v48 }
 0x128   : > { %1322 = vst [vmem:[%s2261_s8 + $0xb8] sm:$0xff] %v1037_v3  ;;  %1386 = vst [vmem:[%s2261_s8 + $0x2b8] sm:$0xff] %v1197_v15 }
 0x12a   : > { %v1040_v34 = vpop.f32.mrb[24].mxu0  ;;  %v1200_v41 = vpop.f32.mrb[24].mxu1 }
 0x12b   : > { %v1041_v19 = vadd.f32 %v1040_v34, %v2254_v27  ;;  %v1201_v6 = vadd.f32 %v1200_v41, %v2254_v27  ;;  %v1042_v38 = vpop.f32.mrb[25].mxu0  ;;  %v1202_v10 = vpop.f32.mrb[25].mxu1 }
 0x12c   : > { %v1043_v50 = vadd.f32 %v1042_v38, %v2256_v47  ;;  %v1203_v8 = vadd.f32 %v1202_v10, %v2256_v47  ;;  %v1044_v42 = vpop.f32.mrb[26].mxu0  ;;  %v1204_v13 = vpop.f32.mrb[26].mxu1 }
 0x12d   : > { %1323 = vst [vmem:[%s2261_s8 + $0xc0] sm:$0xff] %v1041_v19  ;;  %1387 = vst [vmem:[%s2261_s8 + $0x2c0] sm:$0xff] %v1201_v6  ;;  %v1045_v23 = vadd.f32 %v1044_v42, %v2254_v27  ;;  %v1205_v57 = vadd.f32 %v1204_v13, %v2254_v27  ;;  %v1046_v63 = vpop.f32.mrb[27].mxu0  ;;  %v1206_v1 = vpop.f32.mrb[27].mxu1 }
 0x12e   : > { %1324 = vst [vmem:[%s2261_s8 + $0xc8] sm:$0xff] %v1043_v50  ;;  %1388 = vst [vmem:[%s2261_s8 + $0x2c8] sm:$0xff] %v1203_v8  ;;  %v1047_v7 = vadd.f32 %v1046_v63, %v2256_v47  ;;  %v1207_v14 = vadd.f32 %v1206_v1, %v2256_v47 }
 0x12f   : > { %1325 = vst [vmem:[%s2261_s8 + $0xd0] sm:$0xff] %v1045_v23  ;;  %1389 = vst [vmem:[%s2261_s8 + $0x2d0] sm:$0xff] %v1205_v57 }
 0x130   : > { %1326 = vst [vmem:[%s2261_s8 + $0xd8] sm:$0xff] %v1047_v7  ;;  %1390 = vst [vmem:[%s2261_s8 + $0x2d8] sm:$0xff] %v1207_v14 }
 0x132   : > { %v1050_v16 = vpop.f32.mrb[28].mxu0  ;;  %v1210_v52 = vpop.f32.mrb[28].mxu1 }
 0x133   : > { %v1051_v31 = vadd.f32 %v1050_v16, %v2254_v27  ;;  %v1211_v9 = vadd.f32 %v1210_v52, %v2254_v27  ;;  %v1052_v32 = vpop.f32.mrb[29].mxu0  ;;  %v1212_v40 = vpop.f32.mrb[29].mxu1 }
 0x134   : > { %v1053_v17 = vadd.f32 %v1052_v32, %v2256_v47  ;;  %v1213_v46 = vadd.f32 %v1212_v40, %v2256_v47  ;;  %v1054_v43 = vpop.f32.mrb[30].mxu0  ;;  %v1214_v51 = vpop.f32.mrb[30].mxu1 }
 0x135   : > { %1327 = vst [vmem:[%s2261_s8 + $0xe0] sm:$0xff] %v1051_v31  ;;  %1391 = vst [vmem:[%s2261_s8 + $0x2e0] sm:$0xff] %v1211_v9  ;;  %v1055_v54 = vadd.f32 %v1054_v43, %v2254_v27  ;;  %v1215_v4 = vadd.f32 %v1214_v51, %v2254_v27  ;;  %v1056_v2 = vpop.f32.mrb[31].mxu0  ;;  %v1216_v44 = vpop.f32.mrb[31].mxu1 }
 0x136   : > { %1328 = vst [vmem:[%s2261_s8 + $0xe8] sm:$0xff] %v1053_v17  ;;  %1392 = vst [vmem:[%s2261_s8 + $0x2e8] sm:$0xff] %v1213_v46  ;;  %v1057_v12 = vadd.f32 %v1056_v2, %v2256_v47  ;;  %v1217_v36 = vadd.f32 %v1216_v44, %v2256_v47 }
 0x137   : > { %1329 = vst [vmem:[%s2261_s8 + $0xf0] sm:$0xff] %v1055_v54  ;;  %1393 = vst [vmem:[%s2261_s8 + $0x2f0] sm:$0xff] %v1215_v4 }
 0x138   : > { %1330 = vst [vmem:[%s2261_s8 + $0xf8] sm:$0xff] %v1057_v12  ;;  %1394 = vst [vmem:[%s2261_s8 + $0x2f8] sm:$0xff] %v1217_v36 }
 0x13a   : > { %v1060_v37 = vpop.f32.mrb[32].mxu0  ;;  %v1220_v39 = vpop.f32.mrb[32].mxu1 }
 0x13b   : > { %v1061_v55 = vadd.f32 %v1060_v37, %v2254_v27  ;;  %v1221_v62 = vadd.f32 %v1220_v39, %v2254_v27  ;;  %v1062_v29 = vpop.f32.mrb[33].mxu0  ;;  %v1222_v11 = vpop.f32.mrb[33].mxu1 }
 0x13c   : > { %v1063_v59 = vadd.f32 %v1062_v29, %v2256_v47  ;;  %v1223_v5 = vadd.f32 %v1222_v11, %v2256_v47  ;;  %v1064_v21 = vpop.f32.mrb[34].mxu0  ;;  %v1224_v53 = vpop.f32.mrb[34].mxu1 }
 0x13d   : > { %1331 = vst [vmem:[%s2261_s8 + $0x100] sm:$0xff] %v1061_v55  ;;  %1395 = vst [vmem:[%s2261_s8 + $0x300] sm:$0xff] %v1221_v62  ;;  %v1065_v20 = vadd.f32 %v1064_v21, %v2254_v27  ;;  %v1225_v25 = vadd.f32 %v1224_v53, %v2254_v27  ;;  %v1066_v60 = vpop.f32.mrb[35].mxu0  ;;  %v1226_v61 = vpop.f32.mrb[35].mxu1 }
 0x13e   : > { %1332 = vst [vmem:[%s2261_s8 + $0x108] sm:$0xff] %v1063_v59  ;;  %1396 = vst [vmem:[%s2261_s8 + $0x308] sm:$0xff] %v1223_v5  ;;  %v1067_v18 = vadd.f32 %v1066_v60, %v2256_v47  ;;  %v1227_v22 = vadd.f32 %v1226_v61, %v2256_v47 }
 0x13f   : > { %1333 = vst [vmem:[%s2261_s8 + $0x110] sm:$0xff] %v1065_v20  ;;  %1397 = vst [vmem:[%s2261_s8 + $0x310] sm:$0xff] %v1225_v25 }
 0x140   : > { %1334 = vst [vmem:[%s2261_s8 + $0x118] sm:$0xff] %v1067_v18  ;;  %1398 = vst [vmem:[%s2261_s8 + $0x318] sm:$0xff] %v1227_v22 }
 0x142   : > { %v1070_v45 = vpop.f32.mrb[36].mxu0  ;;  %v1230_v58 = vpop.f32.mrb[36].mxu1 }
 0x143   : > { %v1071_v30 = vadd.f32 %v1070_v45, %v2254_v27  ;;  %v1231_v26 = vadd.f32 %v1230_v58, %v2254_v27  ;;  %v1072_v0 = vpop.f32.mrb[37].mxu0  ;;  %v1232_v49 = vpop.f32.mrb[37].mxu1 }
 0x144   : > { %v1073_v56 = vadd.f32 %v1072_v0, %v2256_v47  ;;  %v1233_v33 = vadd.f32 %v1232_v49, %v2256_v47  ;;  %v1074_v35 = vpop.f32.mrb[38].mxu0  ;;  %v1234_v48 = vpop.f32.mrb[38].mxu1 }
 0x145   : > { %1335 = vst [vmem:[%s2261_s8 + $0x120] sm:$0xff] %v1071_v30  ;;  %1399 = vst [vmem:[%s2261_s8 + $0x320] sm:$0xff] %v1231_v26  ;;  %v1075_v24 = vadd.f32 %v1074_v35, %v2254_v27  ;;  %v1235_v28 = vadd.f32 %v1234_v48, %v2254_v27  ;;  %v1076_v3 = vpop.f32.mrb[39].mxu0  ;;  %v1236_v15 = vpop.f32.mrb[39].mxu1 }
 0x146   : > { %1336 = vst [vmem:[%s2261_s8 + $0x128] sm:$0xff] %v1073_v56  ;;  %1400 = vst [vmem:[%s2261_s8 + $0x328] sm:$0xff] %v1233_v33  ;;  %v1077_v34 = vadd.f32 %v1076_v3, %v2256_v47  ;;  %v1237_v41 = vadd.f32 %v1236_v15, %v2256_v47 }
 0x147   : > { %1337 = vst [vmem:[%s2261_s8 + $0x130] sm:$0xff] %v1075_v24  ;;  %1401 = vst [vmem:[%s2261_s8 + $0x330] sm:$0xff] %v1235_v28 }
 0x148   : > { %1338 = vst [vmem:[%s2261_s8 + $0x138] sm:$0xff] %v1077_v34  ;;  %1402 = vst [vmem:[%s2261_s8 + $0x338] sm:$0xff] %v1237_v41 }
 0x14a   : > { %v1080_v19 = vpop.f32.mrb[40].mxu0  ;;  %v1240_v6 = vpop.f32.mrb[40].mxu1 }
 0x14b   : > { %v1081_v38 = vadd.f32 %v1080_v19, %v2254_v27  ;;  %v1241_v10 = vadd.f32 %v1240_v6, %v2254_v27  ;;  %v1082_v50 = vpop.f32.mrb[41].mxu0  ;;  %v1242_v8 = vpop.f32.mrb[41].mxu1 }
 0x14c   : > { %v1083_v42 = vadd.f32 %v1082_v50, %v2256_v47  ;;  %v1243_v13 = vadd.f32 %v1242_v8, %v2256_v47  ;;  %v1084_v23 = vpop.f32.mrb[42].mxu0  ;;  %v1244_v57 = vpop.f32.mrb[42].mxu1 }
 0x14d   : > { %1339 = vst [vmem:[%s2261_s8 + $0x140] sm:$0xff] %v1081_v38  ;;  %1403 = vst [vmem:[%s2261_s8 + $0x340] sm:$0xff] %v1241_v10  ;;  %v1085_v63 = vadd.f32 %v1084_v23, %v2254_v27  ;;  %v1245_v1 = vadd.f32 %v1244_v57, %v2254_v27  ;;  %v1086_v7 = vpop.f32.mrb[43].mxu0  ;;  %v1246_v14 = vpop.f32.mrb[43].mxu1 }
 0x14e   : > { %1340 = vst [vmem:[%s2261_s8 + $0x148] sm:$0xff] %v1083_v42  ;;  %1404 = vst [vmem:[%s2261_s8 + $0x348] sm:$0xff] %v1243_v13  ;;  %v1087_v16 = vadd.f32 %v1086_v7, %v2256_v47  ;;  %v1247_v52 = vadd.f32 %v1246_v14, %v2256_v47 }
 0x14f   : > { %1341 = vst [vmem:[%s2261_s8 + $0x150] sm:$0xff] %v1085_v63  ;;  %1405 = vst [vmem:[%s2261_s8 + $0x350] sm:$0xff] %v1245_v1 }
 0x150   : > { %1342 = vst [vmem:[%s2261_s8 + $0x158] sm:$0xff] %v1087_v16  ;;  %1406 = vst [vmem:[%s2261_s8 + $0x358] sm:$0xff] %v1247_v52 }
 0x152   : > { %v1090_v31 = vpop.f32.mrb[44].mxu0  ;;  %v1250_v9 = vpop.f32.mrb[44].mxu1 }
 0x153   : > { %v1091_v32 = vadd.f32 %v1090_v31, %v2254_v27  ;;  %v1251_v40 = vadd.f32 %v1250_v9, %v2254_v27  ;;  %v1092_v17 = vpop.f32.mrb[45].mxu0  ;;  %v1252_v46 = vpop.f32.mrb[45].mxu1 }
 0x154   : > { %v1093_v43 = vadd.f32 %v1092_v17, %v2256_v47  ;;  %v1253_v51 = vadd.f32 %v1252_v46, %v2256_v47  ;;  %v1094_v54 = vpop.f32.mrb[46].mxu0  ;;  %v1254_v4 = vpop.f32.mrb[46].mxu1 }
 0x155   : > { %1343 = vst [vmem:[%s2261_s8 + $0x160] sm:$0xff] %v1091_v32  ;;  %1407 = vst [vmem:[%s2261_s8 + $0x360] sm:$0xff] %v1251_v40  ;;  %v1095_v2 = vadd.f32 %v1094_v54, %v2254_v27  ;;  %v1255_v44 = vadd.f32 %v1254_v4, %v2254_v27  ;;  %v1096_v12 = vpop.f32.mrb[47].mxu0  ;;  %v1256_v36 = vpop.f32.mrb[47].mxu1 }
 0x156   : > { %1344 = vst [vmem:[%s2261_s8 + $0x168] sm:$0xff] %v1093_v43  ;;  %1408 = vst [vmem:[%s2261_s8 + $0x368] sm:$0xff] %v1253_v51  ;;  %v1097_v37 = vadd.f32 %v1096_v12, %v2256_v47  ;;  %v1257_v39 = vadd.f32 %v1256_v36, %v2256_v47 }
 0x157   : > { %1345 = vst [vmem:[%s2261_s8 + $0x170] sm:$0xff] %v1095_v2  ;;  %1409 = vst [vmem:[%s2261_s8 + $0x370] sm:$0xff] %v1255_v44 }
 0x158   : > { %1346 = vst [vmem:[%s2261_s8 + $0x178] sm:$0xff] %v1097_v37  ;;  %1410 = vst [vmem:[%s2261_s8 + $0x378] sm:$0xff] %v1257_v39 }
 0x15a   : > { %v1100_v55 = vpop.f32.mrb[48].mxu0  ;;  %v1260_v62 = vpop.f32.mrb[48].mxu1 }
 0x15b   : > { %v1101_v29 = vadd.f32 %v1100_v55, %v2254_v27  ;;  %v1261_v11 = vadd.f32 %v1260_v62, %v2254_v27  ;;  %v1102_v59 = vpop.f32.mrb[49].mxu0  ;;  %v1262_v5 = vpop.f32.mrb[49].mxu1 }
 0x15c   : > { %v1103_v21 = vadd.f32 %v1102_v59, %v2256_v47  ;;  %v1263_v53 = vadd.f32 %v1262_v5, %v2256_v47  ;;  %v1104_v20 = vpop.f32.mrb[50].mxu0  ;;  %v1264_v25 = vpop.f32.mrb[50].mxu1 }
 0x15d   : > { %1347 = vst [vmem:[%s2261_s8 + $0x180] sm:$0xff] %v1101_v29  ;;  %1411 = vst [vmem:[%s2261_s8 + $0x380] sm:$0xff] %v1261_v11  ;;  %v1105_v60 = vadd.f32 %v1104_v20, %v2254_v27  ;;  %v1265_v61 = vadd.f32 %v1264_v25, %v2254_v27  ;;  %v1106_v18 = vpop.f32.mrb[51].mxu0  ;;  %v1266_v22 = vpop.f32.mrb[51].mxu1 }
 0x15e   : > { %1348 = vst [vmem:[%s2261_s8 + $0x188] sm:$0xff] %v1103_v21  ;;  %1412 = vst [vmem:[%s2261_s8 + $0x388] sm:$0xff] %v1263_v53  ;;  %v1107_v45 = vadd.f32 %v1106_v18, %v2256_v47  ;;  %v1267_v58 = vadd.f32 %v1266_v22, %v2256_v47 }
 0x15f   : > { %1349 = vst [vmem:[%s2261_s8 + $0x190] sm:$0xff] %v1105_v60  ;;  %1413 = vst [vmem:[%s2261_s8 + $0x390] sm:$0xff] %v1265_v61 }
 0x160   : > { %1350 = vst [vmem:[%s2261_s8 + $0x198] sm:$0xff] %v1107_v45  ;;  %1414 = vst [vmem:[%s2261_s8 + $0x398] sm:$0xff] %v1267_v58 }
 0x162   : > { %v1110_v30 = vpop.f32.mrb[52].mxu0  ;;  %v1270_v26 = vpop.f32.mrb[52].mxu1 }
 0x163   : > { %v1111_v0 = vadd.f32 %v1110_v30, %v2254_v27  ;;  %v1271_v49 = vadd.f32 %v1270_v26, %v2254_v27  ;;  %v1112_v56 = vpop.f32.mrb[53].mxu0  ;;  %v1272_v33 = vpop.f32.mrb[53].mxu1 }
 0x164   : > { %v1113_v35 = vadd.f32 %v1112_v56, %v2256_v47  ;;  %v1273_v48 = vadd.f32 %v1272_v33, %v2256_v47  ;;  %v1114_v24 = vpop.f32.mrb[54].mxu0  ;;  %v1274_v28 = vpop.f32.mrb[54].mxu1 }
 0x165   : > { %1351 = vst [vmem:[%s2261_s8 + $0x1a0] sm:$0xff] %v1111_v0  ;;  %1415 = vst [vmem:[%s2261_s8 + $0x3a0] sm:$0xff] %v1271_v49  ;;  %v1115_v3 = vadd.f32 %v1114_v24, %v2254_v27  ;;  %v1275_v15 = vadd.f32 %v1274_v28, %v2254_v27  ;;  %v1116_v34 = vpop.f32.mrb[55].mxu0  ;;  %v1276_v41 = vpop.f32.mrb[55].mxu1 }
 0x166   : > { %1352 = vst [vmem:[%s2261_s8 + $0x1a8] sm:$0xff] %v1113_v35  ;;  %1416 = vst [vmem:[%s2261_s8 + $0x3a8] sm:$0xff] %v1273_v48  ;;  %v1117_v19 = vadd.f32 %v1116_v34, %v2256_v47  ;;  %v1277_v6 = vadd.f32 %v1276_v41, %v2256_v47 }
 0x167   : > { %1353 = vst [vmem:[%s2261_s8 + $0x1b0] sm:$0xff] %v1115_v3  ;;  %1417 = vst [vmem:[%s2261_s8 + $0x3b0] sm:$0xff] %v1275_v15 }
 0x168   : > { %1354 = vst [vmem:[%s2261_s8 + $0x1b8] sm:$0xff] %v1117_v19  ;;  %1418 = vst [vmem:[%s2261_s8 + $0x3b8] sm:$0xff] %v1277_v6 }
 0x16a   : > { %v1120_v38 = vpop.f32.mrb[56].mxu0  ;;  %v1280_v10 = vpop.f32.mrb[56].mxu1 }
 0x16b   : > { %v1121_v50 = vadd.f32 %v1120_v38, %v2254_v27  ;;  %v1281_v8 = vadd.f32 %v1280_v10, %v2254_v27  ;;  %v1122_v42 = vpop.f32.mrb[57].mxu0  ;;  %v1282_v13 = vpop.f32.mrb[57].mxu1 }
 0x16c   : > { %v1123_v23 = vadd.f32 %v1122_v42, %v2256_v47  ;;  %v1283_v57 = vadd.f32 %v1282_v13, %v2256_v47  ;;  %v1124_v63 = vpop.f32.mrb[58].mxu0  ;;  %v1284_v1 = vpop.f32.mrb[58].mxu1 }
 0x16d   : > { %1355 = vst [vmem:[%s2261_s8 + $0x1c0] sm:$0xff] %v1121_v50  ;;  %1419 = vst [vmem:[%s2261_s8 + $0x3c0] sm:$0xff] %v1281_v8  ;;  %v1125_v7 = vadd.f32 %v1124_v63, %v2254_v27  ;;  %v1285_v14 = vadd.f32 %v1284_v1, %v2254_v27  ;;  %v1126_v16 = vpop.f32.mrb[59].mxu0  ;;  %v1286_v52 = vpop.f32.mrb[59].mxu1 }
 0x16e   : > { %1356 = vst [vmem:[%s2261_s8 + $0x1c8] sm:$0xff] %v1123_v23  ;;  %1420 = vst [vmem:[%s2261_s8 + $0x3c8] sm:$0xff] %v1283_v57  ;;  %v1127_v31 = vadd.f32 %v1126_v16, %v2256_v47  ;;  %v1287_v9 = vadd.f32 %v1286_v52, %v2256_v47 }
 0x16f   : > { %1357 = vst [vmem:[%s2261_s8 + $0x1d0] sm:$0xff] %v1125_v7  ;;  %1421 = vst [vmem:[%s2261_s8 + $0x3d0] sm:$0xff] %v1285_v14 }
 0x170   : > { %1358 = vst [vmem:[%s2261_s8 + $0x1d8] sm:$0xff] %v1127_v31  ;;  %1422 = vst [vmem:[%s2261_s8 + $0x3d8] sm:$0xff] %v1287_v9 }
 0x172   : > { %v1130_v32 = vpop.f32.mrb[60].mxu0  ;;  %v1290_v40 = vpop.f32.mrb[60].mxu1 }
 0x173   : > { %v1131_v17 = vadd.f32 %v1130_v32, %v2254_v27  ;;  %v1291_v46 = vadd.f32 %v1290_v40, %v2254_v27  ;;  %v1132_v43 = vpop.f32.mrb[61].mxu0  ;;  %v1292_v51 = vpop.f32.mrb[61].mxu1 }
 0x174   : > { %v1133_v54 = vadd.f32 %v1132_v43, %v2256_v47  ;;  %v1293_v4 = vadd.f32 %v1292_v51, %v2256_v47  ;;  %v1134_v2 = vpop.f32.mrb[62].mxu0  ;;  %v1294_v44 = vpop.f32.mrb[62].mxu1 }
 0x175   : > { %1359 = vst [vmem:[%s2261_s8 + $0x1e0] sm:$0xff] %v1131_v17  ;;  %1423 = vst [vmem:[%s2261_s8 + $0x3e0] sm:$0xff] %v1291_v46  ;;  %v1135_v12 = vadd.f32 %v1134_v2, %v2254_v27  ;;  %v1295_v36 = vadd.f32 %v1294_v44, %v2254_v27  ;;  %v1136_v37 = vpop.f32.mrb[63].mxu0  ;;  %v1296_v39 = vpop.f32.mrb[63].mxu1 }
 0x176   : > { %1360 = vst [vmem:[%s2261_s8 + $0x1e8] sm:$0xff] %v1133_v54  ;;  %1424 = vst [vmem:[%s2261_s8 + $0x3e8] sm:$0xff] %v1293_v4  ;;  %v1137_v55 = vadd.f32 %v1136_v37, %v2256_v47  ;;  %v1297_v62 = vadd.f32 %v1296_v39, %v2256_v47 }
 0x177   : > { %1361 = vst [vmem:[%s2261_s8 + $0x1f0] sm:$0xff] %v1135_v12  ;;  %1425 = vst [vmem:[%s2261_s8 + $0x3f0] sm:$0xff] %v1295_v36 }
 0x178   : > { %1362 = vst [vmem:[%s2261_s8 + $0x1f8] sm:$0xff] %v1137_v55  ;;  %1426 = vst [vmem:[%s2261_s8 + $0x3f8] sm:$0xff] %v1297_v62 }
 0x179 PF: > { %s16_s21 = sadd.s32 1, %s1587_s21  }
 0x17a   : > { %p13_p4 = scmp.ge.s32.totalorder %s16_s21, 6  }
 0x17c   :  { %15 = sbr.rel (!%p13_p4) target bundleno = 1 (0x1), region = 77 }

// kernel: upblock_forward.4
= control target key start
LH: loop header
LB: loop body
LE: loop exit
PB: predicated region body
PF: predicated region fallthrough
CT: control target
= control target key end

     0   :  { %s3789_s21 = smov 0   ;;  %s5544_s0 = inlined_call_operand.vmem [shape: f32[2048,128], index: 0, kind: input, shape index: {}]   ;;  %s5545_s1 = inlined_call_operand.vmem [shape: f32[1,128], index: 1, kind: input, shape index: {}]   ;;  %s5546_s2 = inlined_call_operand.vmem [shape: f32[1,128], index: 2, kind: input, shape index: {}]   ;;  %s5547_s3 = inlined_call_operand.vmem [shape: bf16[384,128], index: 3, kind: input, shape index: {}]   ;;  %s5548_s4 = inlined_call_operand.vmem [shape: f32[1,128], index: 4, kind: input, shape index: {}]   ;;  %s5549_s5 = inlined_call_operand.vmem [shape: f32[2048,128], index: 5, kind: output, shape index: {0}]   ;;  %s5550_s6 = inlined_call_operand.vmem [shape: f32[4,2,128], index: 6, kind: output, shape index: {1}]  }
   0x1 LB: > { %s3795_s22 = sadd.s32 4294967295, %s3750_s21   ;;  %p3501_p0 = scmp.ge.s32.totalorder %s3750_s21, 1  ;;  %s3750_s21 = sphi %s3789_s21, %s17_s21  }
   0x2   : > { %p216_p1 = scmp.lt.s32.totalorder %s3750_s21, 5 }
   0x4   : > { %p217_p2 = pnand %p3501_p0, %p216_p1 }
   0x5   : > { %v3718_v0 = vld [vmem:[%s5547_s3] sm:$0xff] (!%p217_p2)   ;;  %v3752_v1 = vmov (!%p217_p2), 0   ;;  %s3502_s25 = sshll.u32 (!%p217_p2), %s3795_s22, 6  ;;  %v3719_v2 = vld [vmem:[%s5547_s3 + $0x8] sm:$0xff] (!%p217_p2)   ;;  %v3720_v3 = vld [vmem:[%s5547_s3 + $0x10] sm:$0xff] (!%p217_p2)   ;;  %v665_v41 = vlaneseq (!%p217_p2)  ;;  %p262_p4 = scmp.lt.s32.totalorder (!%p217_p2), %s3795_s22, 3 }
   0x6   : > { %220 = sbr.rel (%p217_p2) target bundleno = 527 (0x20f), region = 40  ;;  %2563 = vmatprep.subr.bf16.mxu0 (!%p217_p2), %v3752_v1  ;;  %3676 = vmatprep.subr.bf16.mxu1 (!%p217_p2), %v3752_v1  ;;  %p251_p3 = scmp.lt.s32.totalorder (!%p217_p2), %s3502_s25, 255  ;;  %v3721_v4 = vld [vmem:[%s5547_s3 + $0x18] sm:$0xff] (!%p217_p2)   ;;  %v3722_v5 = vld [vmem:[%s5547_s3 + $0x20] sm:$0xff] (!%p217_p2)   ;;  %v3723_v14 = vld [vmem:[%s5547_s3 + $0x28] sm:$0xff] (!%p217_p2)  }
   0x7   : > { %2564 = vmatpush1.bf16.msra.mxu0 (!%p217_p2), %v3718_v0  ;;  %3692 = vmatpush1.bf16.msra.mxu1 (!%p217_p2), %v3718_v0  ;;  %v3840_v8 = vld [vmem:[%s5545_s1] ss:$0 sm:$0xff] (!%p217_p2)  ;;  %v3724_v23 = vld [vmem:[%s5547_s3 + $0x30] sm:$0xff] (!%p217_p2)   ;;  %v3725_v29 = vld [vmem:[%s5547_s3 + $0x38] sm:$0xff] (!%p217_p2)   ;;  %v3915_v50 = vshrl.u32 (!%p217_p2), %v665_v41, 7 }
   0x8   : > { %2565 = vmatprep.subr.bf16.mxu0 (!%p217_p2), %v3752_v1  ;;  %3677 = vmatprep.subr.bf16.mxu1 (!%p217_p2), %v3752_v1  ;;  %v3847_v11 = vld [vmem:[%s5546_s2] ss:$0 sm:$0xff] (!%p217_p2)  ;;  %v3727_v37 = vld [vmem:[%s5547_s3 + $0x48] sm:$0xff] (!%p217_p2)   ;;  %v3728_v40 = vld [vmem:[%s5547_s3 + $0x50] sm:$0xff] (!%p217_p2)  }
   0x9   : > { %v3726_v34 = vld [vmem:[%s5547_s3 + $0x40] sm:$0xff] (!%p217_p2)   ;;  %v3729_v48 = vld [vmem:[%s5547_s3 + $0x58] sm:$0xff] (!%p217_p2)   ;;  %vm1626_vm6 = vcmp.lt.s32.totalorder (!%p217_p2), %v3915_v50, 1 }
   0xa   : > { %v3730_v56 = vld [vmem:[%s5547_s3 + $0x60] sm:$0xff] (!%p217_p2)  }
   0xb   : > { %2566 = vmatpush1.bf16.msra.mxu0 (!%p217_p2), %v3719_v2  ;;  %3693 = vmatpush1.bf16.msra.mxu1 (!%p217_p2), %v3719_v2 }
   0xc   : > { %2567 = vmatprep.subr.bf16.mxu0 (!%p217_p2), %v3752_v1  ;;  %3678 = vmatprep.subr.bf16.mxu1 (!%p217_p2), %v3752_v1 }
   0xd   : > { %s5635_s25 = smov (!%p251_p3, %s3502_s25), 255  ;;  %s5637_s22 = smov (!%p262_p4, %s3795_s22), 3 }
   0xe   : > { %s3503_s8 = sshll.u32 %s5635_s25, 3  ;;  %s3506_s25 = sshll.u32 %s5637_s22, 1 }
   0xf   : > { %2568 = vmatpush1.bf16.msra.mxu0 %v3720_v3  ;;  %3694 = vmatpush1.bf16.msra.mxu1 %v3720_v3  ;;  %s3828_s11 = scalar_lea.vmem %s5544_s0, %s3503_s8  ;;  %s5267_s28 = scalar_lea.vmem %s5549_s5, %s3503_s8 }
  0x10   : > { %2569 = vmatprep.subr.bf16.mxu0 %v3752_v1  ;;  %3679 = vmatprep.subr.bf16.mxu1 %v3752_v1  ;;  %v267_v6 = vld [vmem:[%s3828_s11] sm:$0xff]  ;;  %v268_v7 = vld [vmem:[%s3828_s11 + $0x8] sm:$0xff]  ;;  %v330_v33 = vld [vmem:[%s3828_s11 + $0x1f8] sm:$0xff]  ;;  %s265_s30 = scalar_lea.vmem %s5550_s6, %s3506_s25 }
  0x11   : > { %v338_v9 = vmul.f32 %v3840_v8, %v267_v6  ;;  %v339_v10 = vmul.f32 %v3840_v8, %v268_v7  ;;  %v315_v12 = vld [vmem:[%s3828_s11 + $0x180] sm:$0xff]  ;;  %v316_v13 = vld [vmem:[%s3828_s11 + $0x188] sm:$0xff]  ;;  %v401_v35 = vmul.f32 %v3840_v8, %v330_v33  ;;  %v314_v36 = vld [vmem:[%s3828_s11 + $0x178] sm:$0xff] }
  0x12   : > { %v386_v15 = vmul.f32 %v3840_v8, %v315_v12  ;;  %v387_v16 = vmul.f32 %v3840_v8, %v316_v13  ;;  %v385_v38 = vmul.f32 %v3840_v8, %v314_v36  ;;  %v269_v43 = vld [vmem:[%s3828_s11 + $0x10] sm:$0xff]  ;;  %v270_v44 = vld [vmem:[%s3828_s11 + $0x18] sm:$0xff]  ;;  %v271_v60 = vld [vmem:[%s3828_s11 + $0x20] sm:$0xff] }
  0x13   : > { %2570 = vmatpush1.bf16.msra.mxu0 %v3721_v4  ;;  %3695 = vmatpush1.bf16.msra.mxu1 %v3721_v4  ;;  %v409_v17 = vadd.f32 %v3847_v11, %v338_v9  ;;  %v410_v18 = vadd.f32 %v3847_v11, %v339_v10  ;;  %v472_v39 = vadd.f32 %v3847_v11, %v401_v35  ;;  %v317_v46 = vld [vmem:[%s3828_s11 + $0x190] sm:$0xff]  ;;  %v318_v47 = vld [vmem:[%s3828_s11 + $0x198] sm:$0xff]  ;;  %v272_v61 = vld [vmem:[%s3828_s11 + $0x28] sm:$0xff]  ;;  %v734_v9 = vand.u32 255, %v3915_v50 }
  0x14   : > { %2571 = vmatprep.subr.bf16.mxu0 %v3752_v1  ;;  %3680 = vmatprep.subr.bf16.mxu1 %v3752_v1  ;;  %v457_v19 = vadd.f32 %v3847_v11, %v386_v15  ;;  %v458_v20 = vadd.f32 %v3847_v11, %v387_v16  ;;  %v456_v42 = vadd.f32 %v3847_v11, %v385_v38  ;;  %v319_v6 = vld [vmem:[%s3828_s11 + $0x1a0] sm:$0xff]  ;;  %v320_v7 = vld [vmem:[%s3828_s11 + $0x1a8] sm:$0xff] }
  0x15   : > { %vm473_vm0 = vcmp.ge.f32.partialorder %v409_v17, 0.0  ;;  %vm474_vm1 = vcmp.ge.f32.partialorder %v410_v18, 0.0  ;;  %v537_v21 = vmul.f32 0.01, %v409_v17  ;;  %v538_v22 = vmul.f32 0.01, %v410_v18 }
  0x16   : > { %v585_v24 = vmul.f32 0.01, %v457_v19  ;;  %v586_v25 = vmul.f32 0.01, %v458_v20  ;;  %vm521_vm2 = vcmp.ge.f32.partialorder %v457_v19, 0.0  ;;  %vm522_vm3 = vcmp.ge.f32.partialorder %v458_v20, 0.0 }
  0x17   : > { %2572 = vmatpush1.bf16.msra.mxu0 %v3722_v5  ;;  %3696 = vmatpush1.bf16.msra.mxu1 %v3722_v5  ;;  %v3867_v26 = vsel %vm473_vm0, %v409_v17, %v537_v21  ;;  %v3869_v27 = vsel %vm474_vm1, %v410_v18, %v538_v22  ;;  %v600_v45 = vmul.f32 0.01, %v472_v39  ;;  %vm536_vm4 = vcmp.ge.f32.partialorder %v472_v39, 0.0  ;;  %v3731_v13 = vld [vmem:[%s5547_s3 + $0x68] sm:$0xff]  }
  0x18   : > { %2573 = vmatprep.subr.bf16.mxu0 %v3752_v1  ;;  %3681 = vmatprep.subr.bf16.mxu1 %v3752_v1  ;;  %v2269_v28 = vpack.c.bf16 %v3869_v27, %v3867_v26  ;;  %v3876_v30 = vsel %vm521_vm2, %v457_v19, %v585_v24  ;;  %v3878_v31 = vsel %vm522_vm3, %v458_v20, %v586_v25  ;;  %v584_v51 = vmul.f32 0.01, %v456_v42 }
  0x19   : > { %v2341_v32 = vpack.c.bf16 %v3878_v31, %v3876_v30  ;;  %v340_v49 = vmul.f32 %v3840_v8, %v269_v43  ;;  %v341_v52 = vmul.f32 %v3840_v8, %v270_v44  ;;  %v3918_v53 = vsel %vm536_vm4, %v472_v39, %v600_v45  ;;  %v3733_v44 = vld [vmem:[%s5547_s3 + $0x78] sm:$0xff]  }
  0x1a   : > { %2595 = vmatprep.mubr.bf16.mxu0 %v2269_v28  ;;  %vm520_vm5 = vcmp.ge.f32.partialorder %v456_v42, 0.0  ;;  %v388_v54 = vmul.f32 %v3840_v8, %v317_v46  ;;  %v389_v55 = vmul.f32 %v3840_v8, %v318_v47  ;;  %v1562_v57 = vrot.slane %v3867_v26, 7  ;;  %v273_v28 = vld [vmem:[%s3828_s11 + $0x30] sm:$0xff] }
  0x1b   : > { %2574 = vmatpush1.bf16.msra.mxu0 %v3723_v14  ;;  %3697 = vmatpush1.bf16.msra.mxu1 %v3723_v14  ;;  %v1563_v58 = vrot.slane %v3869_v27, 7  ;;  %v411_v59 = vadd.f32 %v3847_v11, %v340_v49  ;;  %v5552_v62 = vrot.slane %v3918_v53, 7  ;;  %v3934_v63 = vsel %vm520_vm5, %v456_v42, %v584_v51 }
  0x1c   : > { %2575 = vmatprep.subr.bf16.mxu0 %v3752_v1  ;;  %3682 = vmatprep.subr.bf16.mxu1 %v3752_v1  ;;  %v412_v0 = vadd.f32 %v3847_v11, %v341_v52  ;;  %v1610_v2 = vrot.slane %v3876_v30, 7  ;;  %v1611_v3 = vrot.slane %v3878_v31, 7  ;;  %v459_v4 = vadd.f32 %v3847_v11, %v388_v54  ;;  %v321_v52 = vld [vmem:[%s3828_s11 + $0x1b0] sm:$0xff]  ;;  %v322_v54 = vld [vmem:[%s3828_s11 + $0x1b8] sm:$0xff] }
  0x1d   : > { %2787 = vmatprep.mubr.bf16.mxu1 %v2341_v32  ;;  %v460_v5 = vadd.f32 %v3847_v11, %v389_v55  ;;  %v342_v10 = vmul.f32 %v3840_v8, %v271_v60  ;;  %v343_v12 = vmul.f32 %v3840_v8, %v272_v61  ;;  %v3953_v14 = vsel %vm1626_vm6, %v1562_v57, %v1563_v58  ;;  %v3732_v32 = vld [vmem:[%s5547_s3 + $0x70] sm:$0xff]   ;;  %v3734_v55 = vld [vmem:[%s5547_s3 + $0x80] sm:$0xff]  }
  0x1e   : > { %v5551_v15 = vrot.slane %v3934_v63, 7  ;;  %vm475_vm7 = vcmp.ge.f32.partialorder %v411_v59, 0.0  ;;  %v539_v16 = vmul.f32 0.01, %v411_v59  ;;  %v3962_v17 = vsel %vm1626_vm6, %v5552_v62, %v1562_v57 }
  0x1f   : > { %2576 = vmatpush1.bf16.msra.mxu0 %v3724_v23  ;;  %3698 = vmatpush1.bf16.msra.mxu1 %v3724_v23  ;;  %v540_v18 = vmul.f32 0.01, %v412_v0  ;;  %v390_v19 = vmul.f32 %v3840_v8, %v319_v6  ;;  %v391_v20 = vmul.f32 %v3840_v8, %v320_v7  ;;  %v3970_v21 = vsel %vm1626_vm6, %v1610_v2, %v1611_v3  ;;  %v285_v6 = vld [vmem:[%s3828_s11 + $0x90] sm:$0xff] }
  0x20   : > { %2577 = vmatprep.subr.bf16.mxu0 %v3752_v1  ;;  %3683 = vmatprep.subr.bf16.mxu1 %v3752_v1  ;;  %vm476_vm8 = vcmp.ge.f32.partialorder %v412_v0, 0.0  ;;  %v587_v22 = vmul.f32 0.01, %v459_v4  ;;  %v588_v23 = vmul.f32 0.01, %v460_v5  ;;  %vm523_vm9 = vcmp.ge.f32.partialorder %v459_v4, 0.0 }
  0x21   : > { %vm524_vm10 = vcmp.ge.f32.partialorder %v460_v5, 0.0  ;;  %v413_v24 = vadd.f32 %v3847_v11, %v342_v10  ;;  %v414_v25 = vadd.f32 %v3847_v11, %v343_v12  ;;  %vm3979_vm11 = vcmp.ne.s32.totalorder %v734_v9, 0 }
  0x22   : > { %v1642_v35 = vsel %vm1626_vm6, %v5551_v15, %v1610_v2  ;;  %v3990_v36 = vsel %vm475_vm7, %v411_v59, %v539_v16  ;;  %v461_v38 = vadd.f32 %v3847_v11, %v390_v19  ;;  %v462_v39 = vadd.f32 %v3847_v11, %v391_v20 }
  0x23   : > { %2578 = vmatpush1.bf16.msra.mxu0 %v3725_v29  ;;  %3699 = vmatpush1.bf16.msra.mxu1 %v3725_v29  ;;  %v274_v29 = vld [vmem:[%s3828_s11 + $0x38] sm:$0xff]  ;;  %v4003_v41 = vsel %vm524_vm10, %v460_v5, %v588_v23  ;;  %v344_v42 = vmul.f32 %v3840_v8, %v273_v28  ;;  %v2340_v45 = vpack.c.bf16 %v3970_v21, %v1642_v35  ;;  %v1564_v46 = vrot.slane %v3990_v36, 7  ;;  %v276_v23 = vld [vmem:[%s3828_s11 + $0x48] sm:$0xff] }
  0x24   : > { %2579 = vmatprep.subr.bf16.mxu0 %v3752_v1  ;;  %3684 = vmatprep.subr.bf16.mxu1 %v3752_v1  ;;  %v345_v43 = vmul.f32 %v3840_v8, %v274_v29  ;;  %v541_v47 = vmul.f32 0.01, %v413_v24  ;;  %vm477_vm12 = vcmp.ge.f32.partialorder %v413_v24, 0.0  ;;  %vm478_vm13 = vcmp.ge.f32.partialorder %v414_v25, 0.0 }
  0x25   : > { %v1613_v57 = vrot.slane %v4003_v41, 7  ;;  %v589_v59 = vmul.f32 0.01, %v461_v38  ;;  %v590_v60 = vmul.f32 0.01, %v462_v39  ;;  %vm525_vm14 = vcmp.ge.f32.partialorder %v461_v38, 0.0 }
  0x26   : > { %vm526_vm15 = vcmp.ge.f32.partialorder %v462_v39, 0.0  ;;  %v415_v61 = vadd.f32 %v3847_v11, %v344_v42  ;;  %v4026_v2 = vsel %vm477_vm12, %v413_v24, %v541_v47  ;;  %v392_v5 = vmul.f32 %v3840_v8, %v321_v52  ;;  %v286_v24 = vld [vmem:[%s3828_s11 + $0x98] sm:$0xff] }
  0x27   : > { %2580 = vmatpush1.bf16.msra.mxu0 %v3726_v34  ;;  %3700 = vmatpush1.bf16.msra.mxu1 %v3726_v34  ;;  %v3536_v34 = vpack.c.bf16 %v3953_v14, %v3962_v17  ;;  %vm3753_vm0 = vmmov 1   ;;  %v1688_v10 = vsel %vm1626_vm6, %v1563_v58, %v1564_v46  ;;  %v4055_v14 = vsel %vm525_vm14, %v461_v38, %v589_v59  ;;  %v275_v17 = vld [vmem:[%s3828_s11 + $0x40] sm:$0xff]  ;;  %v3735_v58 = vld [vmem:[%s5547_s3 + $0x88] sm:$0xff]  }
  0x28   : > { %2581 = vmatprep.subr.bf16.mxu0 %v3752_v1  ;;  %3685 = vmatprep.subr.bf16.mxu1 %v3752_v1  ;;  %vm3535_vm1 = vmpackc.low %vm3753_vm0, %vm3979_vm11  ;;  %v4058_v16 = vsel %vm526_vm15, %v462_v39, %v590_v60  ;;  %v543_v20 = vmul.f32 0.01, %v415_v61  ;;  %vm479_vm2 = vcmp.ge.f32.partialorder %v415_v61, 0.0  ;;  %v463_v21 = vadd.f32 %v3847_v11, %v392_v5  ;;  %v324_v39 = vld [vmem:[%s3828_s11 + $0x1c8] sm:$0xff] }
  0x29   : > { %v1614_v28 = vrot.slane %v4055_v14, 7  ;;  %v1615_v29 = vrot.slane %v4058_v16, 7  ;;  %v2347_v35 = vpack.c.bf16 %v4058_v16, %v4055_v14  ;;  %v346_v38 = vmul.f32 %v3840_v8, %v275_v17 }
  0x2a   : > { %vm527_vm4 = vcmp.ge.f32.partialorder %v463_v21, 0.0 }
  0x2b   : > { %2582 = vmatpush1.bf16.msra.mxu0 %v3727_v37  ;;  %3701 = vmatpush1.bf16.msra.mxu1 %v3727_v37  ;;  %v3995_v37 = vsel %vm476_vm8, %v412_v0, %v540_v18  ;;  %v416_v0 = vadd.f32 %v3847_v11, %v345_v43  ;;  %v1566_v18 = vrot.slane %v4026_v2, 7  ;;  %v4086_v43 = vsel %vm479_vm2, %v415_v61, %v543_v20  ;;  %v277_v61 = vld [vmem:[%s3828_s11 + $0x50] sm:$0xff] }
  0x2c   : > { %2583 = vmatprep.subr.bf16.mxu0 %v3752_v1  ;;  %3686 = vmatprep.subr.bf16.mxu1 %v3752_v1  ;;  %v1565_v49 = vrot.slane %v3995_v37, 7  ;;  %v2272_v51 = vpack.c.bf16 %v3995_v37, %v3990_v36  ;;  %v417_v60 = vadd.f32 %v3847_v11, %v346_v38  ;;  %v3738_v38 = vld [vmem:[%s5547_s3 + $0xa0] sm:$0xff]  }
  0x2d   : > { %vm480_vm3 = vcmp.ge.f32.partialorder %v416_v0, 0.0 }
  0x2e   : > { %v1687_v9 = vsel %vm1626_vm6, %v1564_v46, %v1565_v49  ;;  %v3736_v46 = vld [vmem:[%s5547_s3 + $0x90] sm:$0xff]   ;;  %v4099_v47 = vsel %vm1626_vm6, %v1565_v49, %v1566_v18  ;;  %v1638_v49 = vsel %vm1626_vm6, %v1613_v57, %v1614_v28  ;;  %vm481_vm7 = vcmp.ge.f32.partialorder %v417_v60, 0.0 }
  0x2f   : > { %2584 = vmatpush1.bf16.msra.mxu0 %v3728_v40  ;;  %3702 = vmatpush1.bf16.msra.mxu1 %v3728_v40  ;;  %v4000_v40 = vsel %vm523_vm9, %v459_v4, %v587_v22 }
  0x30   : > { %2585 = vmatprep.subr.bf16.mxu0 %v3752_v1  ;;  %3687 = vmatprep.subr.bf16.mxu1 %v3752_v1  ;;  %v2344_v7 = vpack.c.bf16 %v4003_v41, %v4000_v40 }
  0x33   : > { %2586 = vmatpush1.bf16.msra.mxu0 %v3729_v48  ;;  %3703 = vmatpush1.bf16.msra.mxu1 %v3729_v48  ;;  %v542_v48 = vmul.f32 0.01, %v414_v25 }
  0x34   : > { %2587 = vmatprep.subr.bf16.mxu0 %v3752_v1  ;;  %3688 = vmatprep.subr.bf16.mxu1 %v3752_v1 }
  0x35   : > { %v4028_v4 = vsel %vm478_vm13, %v414_v25, %v542_v48  ;;  %v2271_v25 = vpack.c.bf16 %v1687_v9, %v1688_v10  ;;  %v591_v48 = vmul.f32 0.01, %v463_v21  ;;  %v278_v9 = vld [vmem:[%s3828_s11 + $0x58] sm:$0xff] }
  0x36   : > { %v1567_v19 = vrot.slane %v4028_v4, 7 }
  0x37   : > { %2588 = vmatpush1.bf16.msra.mxu0 %v3730_v56  ;;  %3704 = vmatpush1.bf16.msra.mxu1 %v3730_v56  ;;  %v1612_v56 = vrot.slane %v4000_v40, 7 }
  0x38   : > { %2589 = vmatprep.subr.bf16.mxu0 %v3752_v1  ;;  %3689 = vmatprep.subr.bf16.mxu1 %v3752_v1  ;;  %v4083_v42 = vsel %vm1626_vm6, %v1566_v18, %v1567_v19 }
  0x39   : > { %v1639_v12 = vsel %vm1626_vm6, %v1612_v56, %v1613_v57  ;;  %v3737_v57 = vld [vmem:[%s5547_s3 + $0x98] sm:$0xff]  }
  0x3b   : > { %2590 = vmatpush1.bf16.msra.mxu0 %v3731_v13  ;;  %3705 = vmatpush1.bf16.msra.mxu1 %v3731_v13  ;;  %v1640_v13 = vsel %vm1626_vm6, %v1611_v3, %v1612_v56  ;;  %v544_v3 = vmul.f32 0.01, %v416_v0  ;;  %v1568_v56 = vrot.slane %v4086_v43, 7 }
  0x3c   : > { %2591 = vmatprep.subr.bf16.mxu0 %v3752_v1  ;;  %3690 = vmatprep.subr.bf16.mxu1 %v3752_v1  ;;  %v2343_v33 = vpack.c.bf16 %v1639_v12, %v1640_v13  ;;  %v4128_v12 = vsel %vm527_vm4, %v463_v21, %v591_v48 }
  0x3f   : > { %2592 = vmatpush1.bf16.msra.mxu0 %v3732_v32  ;;  %3706 = vmatpush1.bf16.msra.mxu1 %v3732_v32  ;;  %v323_v32 = vld [vmem:[%s3828_s11 + $0x1c0] sm:$0xff] }
  0x40   : > { %2593 = vmatprep.subr.bf16.mxu0 %v3752_v1  ;;  %3691 = vmatprep.subr.bf16.mxu1 %v3752_v1  ;;  %v393_v1 = vmul.f32 %v3840_v8, %v322_v54  ;;  %v394_v52 = vmul.f32 %v3840_v8, %v323_v32  ;;  %v4106_v54 = vsel %vm1626_vm6, %v1614_v28, %v1615_v29  ;;  %v545_v28 = vmul.f32 0.01, %v417_v60 }
  0x41   : > { %v2346_v18 = vpack.c.bf16 %v4106_v54, %v1638_v49  ;;  %v349_v32 = vmul.f32 %v3840_v8, %v278_v9  ;;  %v283_v9 = vld [vmem:[%s3828_s11 + $0x80] sm:$0xff] }
  0x42   : > { %v464_v22 = vadd.f32 %v3847_v11, %v393_v1  ;;  %v2274_v1 = vpack.c.bf16 %v4083_v42, %v4099_v47  ;;  %v465_v17 = vadd.f32 %v3847_v11, %v394_v52  ;;  %v4163_v52 = vsel %vm481_vm7, %v417_v60, %v545_v28  ;;  %v3739_v60 = vld [vmem:[%s5547_s3 + $0xa8] sm:$0xff]  }
  0x43   : > { %2594 = vmatpush1.bf16.msra.mxu0 %v3733_v44  ;;  %3707 = vmatpush1.bf16.msra.mxu1 %v3733_v44  ;;  %v4089_v44 = vsel %vm480_vm3, %v416_v0, %v544_v3  ;;  %v348_v3 = vmul.f32 %v3840_v8, %v277_v61  ;;  %v420_v54 = vadd.f32 %v3847_v11, %v349_v32  ;;  %vm2011_vm7 = vcmp.lt.s32.totalorder %v3915_v50, 7 }
  0x44   : > { %3596 = vmatprep.subr.bf16.mxu1 %v3734_v55  ;;  %vm528_vm5 = vcmp.ge.f32.partialorder %v464_v22, 0.0  ;;  %v1569_v59 = vrot.slane %v4089_v44, 7  ;;  %v2278_v21 = vpack.c.bf16 %v4089_v44, %v4086_v43  ;;  %vm529_vm9 = vcmp.ge.f32.partialorder %v465_v17, 0.0 }
  0x45   : > { %v419_v48 = vadd.f32 %v3847_v11, %v348_v3  ;;  %vm484_vm12 = vcmp.ge.f32.partialorder %v420_v54, 0.0 }
  0x46   : > { %3537 = vmatmul.mubr.msk.bf16.vlgmr.msra.gmra.mrb[0].mxu0 %vm3535_vm1, %v3536_v34  ;;  %2788 = vmatmul.mubr.bf16.vlgmr.msra.gmra.mrb[0].mxu1 %v2340_v45  ;;  %v2275_v34 = vpack.c.bf16 %v4028_v4, %v4026_v2  ;;  %v347_v45 = vmul.f32 %v3840_v8, %v276_v23  ;;  %v325_v23 = vld [vmem:[%s3828_s11 + $0x1d0] sm:$0xff] }
  0x47   : > { %2603 = vmatprep.mubr.bf16.mxu0 %v2272_v51  ;;  %2795 = vmatprep.mubr.bf16.mxu1 %v2344_v7  ;;  %v592_v51 = vmul.f32 0.01, %v464_v22  ;;  %v396_v42 = vmul.f32 %v3840_v8, %v325_v23  ;;  %v1570_v23 = vrot.slane %v4163_v52, 7  ;;  %vm483_vm11 = vcmp.ge.f32.partialorder %v419_v48, 0.0 }
  0x48   : > { %3597 = vmatpush3.bf16.msra.mxu1 %v3734_v55  ;;  %v395_v55 = vmul.f32 %v3840_v8, %v324_v39  ;;  %v418_v7 = vadd.f32 %v3847_v11, %v347_v45  ;;  %v593_v39 = vmul.f32 0.01, %v465_v17 }
  0x49   : > { %3598 = vmatprep.subr.bf16.mxu1 %v3735_v58  ;;  %v4131_v13 = vsel %vm528_vm5, %v464_v22, %v592_v51  ;;  %v4146_v22 = vsel %vm1626_vm6, %v1568_v56, %v1569_v59  ;;  %v1684_v51 = vsel %vm1626_vm6, %v1567_v19, %v1568_v56  ;;  %v279_v56 = vld [vmem:[%s3828_s11 + $0x60] sm:$0xff]  ;;  %v467_v3 = vadd.f32 %v3847_v11, %v396_v42 }
  0x4a   : > { %v466_v20 = vadd.f32 %v3847_v11, %v395_v55  ;;  %vm482_vm8 = vcmp.ge.f32.partialorder %v418_v7, 0.0  ;;  %v350_v32 = vmul.f32 %v3840_v8, %v279_v56 }
  0x4b   : > { %vm531_vm13 = vcmp.ge.f32.partialorder %v467_v3, 0.0 }
  0x4c   : > { %3599 = vmatpush3.bf16.msra.mxu1 %v3735_v58  ;;  %v594_v47 = vmul.f32 0.01, %v466_v20  ;;  %vm530_vm10 = vcmp.ge.f32.partialorder %v466_v20, 0.0 }
  0x4d   : > { %3600 = vmatprep.subr.bf16.mxu1 %v3736_v46 }
  0x4e   : > { %2604 = vmatmul.mubr.bf16.gmra.mrb[4].mxu0 %v2271_v25  ;;  %2796 = vmatmul.mubr.bf16.gmra.mrb[4].mxu1 %v2343_v33  ;;  %v326_v25 = vld [vmem:[%s3828_s11 + $0x1d8] sm:$0xff]  ;;  %v1616_v33 = vrot.slane %v4128_v12, 7 }
  0x4f   : > { %2611 = vmatprep.mubr.bf16.mxu0 %v2275_v34  ;;  %2803 = vmatprep.mubr.bf16.mxu1 %v2347_v35  ;;  %v1617_v34 = vrot.slane %v4131_v13, 7  ;;  %v546_v35 = vmul.f32 0.01, %v418_v7  ;;  %v397_v45 = vmul.f32 %v3840_v8, %v326_v25  ;;  %v4191_v25 = vsel %vm530_vm10, %v466_v20, %v594_v47  ;;  %v3740_v20 = vld [vmem:[%s5547_s3 + $0xb0] sm:$0xff]  }
  0x50   : > { %3601 = vmatpush3.bf16.msra.mxu1 %v3736_v46  ;;  %v2350_v46 = vpack.c.bf16 %v4131_v13, %v4128_v12  ;;  %v1636_v61 = vsel %vm1626_vm6, %v1615_v29, %v1616_v33  ;;  %v1619_v42 = vrot.slane %v4191_v25, 7 }
  0x51   : > { %3602 = vmatprep.subr.bf16.mxu1 %v3737_v57  ;;  %v1635_v49 = vsel %vm1626_vm6, %v1616_v33, %v1617_v34  ;;  %v4176_v19 = vsel %vm482_vm8, %v418_v7, %v546_v35  ;;  %v468_v29 = vadd.f32 %v3847_v11, %v397_v45  ;;  %v2277_v7 = vpack.c.bf16 %v4146_v22, %v1684_v51  ;;  %v327_v35 = vld [vmem:[%s3828_s11 + $0x1e0] sm:$0xff] }
  0x52   : > { %v2349_v28 = vpack.c.bf16 %v1635_v49, %v1636_v61  ;;  %v2281_v33 = vpack.c.bf16 %v4176_v19, %v4163_v52  ;;  %v595_v45 = vmul.f32 0.01, %v467_v3  ;;  %v421_v61 = vadd.f32 %v3847_v11, %v350_v32 }
  0x53   : > { %vm532_vm14 = vcmp.ge.f32.partialorder %v468_v29, 0.0  ;;  %v398_v56 = vmul.f32 %v3840_v8, %v327_v35 }
  0x54   : > { %3603 = vmatpush3.bf16.msra.mxu1 %v3737_v57  ;;  %v4184_v57 = vsel %vm529_vm9, %v465_v17, %v593_v39  ;;  %v548_v17 = vmul.f32 0.01, %v420_v54  ;;  %v328_v39 = vld [vmem:[%s3828_s11 + $0x1e8] sm:$0xff]  ;;  %vm485_vm15 = vcmp.ge.f32.partialorder %v421_v61, 0.0 }
  0x55   : > { %3604 = vmatprep.subr.bf16.mxu1 %v3738_v38  ;;  %v1618_v22 = vrot.slane %v4184_v57, 7  ;;  %v2353_v47 = vpack.c.bf16 %v4191_v25, %v4184_v57  ;;  %v399_v15 = vmul.f32 %v3840_v8, %v328_v39  ;;  %v281_v39 = vld [vmem:[%s3828_s11 + $0x70] sm:$0xff] }
  0x56   : > { %2612 = vmatmul.mubr.bf16.gmra.mrb[8].mxu0 %v2274_v1  ;;  %2804 = vmatmul.mubr.bf16.gmra.mrb[8].mxu1 %v2346_v18  ;;  %v547_v1 = vmul.f32 0.01, %v419_v48  ;;  %v280_v18 = vld [vmem:[%s3828_s11 + $0x68] sm:$0xff]  ;;  %v4211_v49 = vsel %vm484_vm12, %v420_v54, %v548_v17  ;;  %v1682_v54 = vsel %vm1626_vm6, %v1569_v59, %v1570_v23  ;;  %v4229_v17 = vsel %vm531_vm13, %v467_v3, %v595_v45 }
  0x57   : > { %2619 = vmatprep.mubr.bf16.mxu0 %v2278_v21  ;;  %2811 = vmatprep.mubr.bf16.mxu1 %v2350_v46  ;;  %v1571_v21 = vrot.slane %v4176_v19, 7  ;;  %v596_v46 = vmul.f32 0.01, %v468_v29  ;;  %v1633_v59 = vsel %vm1626_vm6, %v1618_v22, %v1619_v42  ;;  %v1634_v3 = vsel %vm1626_vm6, %v1617_v34, %v1618_v22  ;;  %v329_v34 = vld [vmem:[%s3828_s11 + $0x1f0] sm:$0xff] }
  0x58   : > { %3605 = vmatpush3.bf16.msra.mxu1 %v3738_v38  ;;  %v351_v38 = vmul.f32 %v3840_v8, %v280_v18  ;;  %v4209_v51 = vsel %vm483_vm11, %v419_v48, %v547_v1  ;;  %v3741_v1 = vld [vmem:[%s5547_s3 + $0xb8] sm:$0xff]   ;;  %v549_v45 = vmul.f32 0.01, %v421_v61  ;;  %v2352_v22 = vpack.c.bf16 %v1633_v59, %v1634_v3 }
  0x59   : > { %3606 = vmatprep.subr.bf16.mxu1 %v3739_v60  ;;  %v1681_v48 = vsel %vm1626_vm6, %v1570_v23, %v1571_v21  ;;  %v4232_v32 = vsel %vm532_vm14, %v468_v29, %v596_v46  ;;  %v1573_v29 = vrot.slane %v4211_v49, 7  ;;  %v282_v23 = vld [vmem:[%s3828_s11 + $0x78] sm:$0xff]  ;;  %v470_v46 = vadd.f32 %v3847_v11, %v399_v15 }
  0x5a   : > { %v422_v35 = vadd.f32 %v3847_v11, %v351_v38  ;;  %v1620_v38 = vrot.slane %v4229_v17, 7  ;;  %v2284_v5 = vpack.c.bf16 %v4211_v49, %v4209_v51  ;;  %v2356_v15 = vpack.c.bf16 %v4232_v32, %v4229_v17 }
  0x5b   : > { %v598_v3 = vmul.f32 0.01, %v470_v46  ;;  %v400_v55 = vmul.f32 %v3840_v8, %v329_v34  ;;  %vm534_vm3 = vcmp.ge.f32.partialorder %v470_v46, 0.0 }
  0x5c   : > { %3607 = vmatpush3.bf16.msra.mxu1 %v3739_v60  ;;  %v352_v60 = vmul.f32 %v3840_v8, %v281_v39  ;;  %vm486_vm1 = vcmp.ge.f32.partialorder %v422_v35, 0.0  ;;  %v4264_v39 = vsel %vm485_vm15, %v421_v61, %v549_v45  ;;  %v1632_v61 = vsel %vm1626_vm6, %v1619_v42, %v1620_v38 }
  0x5d   : > { %3608 = vmatprep.subr.bf16.mxu1 %v3740_v20 }
  0x5e   : > { %2620 = vmatmul.mubr.bf16.gmra.mrb[12].mxu0 %v2277_v7  ;;  %2812 = vmatmul.mubr.bf16.gmra.mrb[12].mxu1 %v2349_v28  ;;  %v1572_v7 = vrot.slane %v4209_v51, 7  ;;  %v2280_v28 = vpack.c.bf16 %v1681_v48, %v1682_v54  ;;  %v550_v48 = vmul.f32 0.01, %v422_v35  ;;  %v353_v54 = vmul.f32 %v3840_v8, %v282_v23 }
  0x5f   : > { %2627 = vmatprep.mubr.bf16.mxu0 %v2281_v33  ;;  %2819 = vmatprep.mubr.bf16.mxu1 %v2353_v47  ;;  %v469_v33 = vadd.f32 %v3847_v11, %v398_v56  ;;  %v1621_v47 = vrot.slane %v4232_v32, 7  ;;  %v423_v0 = vadd.f32 %v3847_v11, %v352_v60 }
  0x60   : > { %3609 = vmatpush3.bf16.msra.mxu1 %v3740_v20  ;;  %v1679_v20 = vsel %vm1626_vm6, %v1572_v7, %v1573_v29  ;;  %v1680_v56 = vsel %vm1626_vm6, %v1571_v21, %v1572_v7  ;;  %v424_v7 = vadd.f32 %v3847_v11, %v353_v54  ;;  %v284_v21 = vld [vmem:[%s3828_s11 + $0x88] sm:$0xff] }
  0x61   : > { %3610 = vmatprep.subr.bf16.mxu1 %v3741_v1  ;;  %v597_v59 = vmul.f32 0.01, %v469_v33  ;;  %v1631_v23 = vsel %vm1626_vm6, %v1620_v38, %v1621_v47  ;;  %vm533_vm2 = vcmp.ge.f32.partialorder %v469_v33, 0.0  ;;  %v2283_v60 = vpack.c.bf16 %v1679_v20, %v1680_v56 }
  0x62   : > { %v471_v38 = vadd.f32 %v3847_v11, %v400_v55  ;;  %vm487_vm4 = vcmp.ge.f32.partialorder %v423_v0, 0.0  ;;  %v552_v20 = vmul.f32 0.01, %v424_v7  ;;  %v354_v56 = vmul.f32 %v3840_v8, %v283_v9 }
  0x63   : > { %v4289_v42 = vsel %vm533_vm2, %v469_v33, %v597_v59  ;;  %v355_v34 = vmul.f32 %v3840_v8, %v284_v21  ;;  %vm488_vm5 = vcmp.ge.f32.partialorder %v424_v7, 0.0 }
  0x64   : > { %3611 = vmatpush3.bf16.msra.mxu1 %v3741_v1  ;;  %v4277_v1 = vsel %vm486_vm1, %v422_v35, %v550_v48  ;;  %v4292_v35 = vsel %vm534_vm3, %v470_v46, %v598_v3  ;;  %v2355_v48 = vpack.c.bf16 %v1631_v23, %v1632_v61  ;;  %v1622_v33 = vrot.slane %v4289_v42, 7 }
  0x65   : > { %v2287_v54 = vpack.c.bf16 %v4277_v1, %v4264_v39  ;;  %v1623_v46 = vrot.slane %v4292_v35, 7  ;;  %v2359_v55 = vpack.c.bf16 %v4292_v35, %v4289_v42  ;;  %v599_v3 = vmul.f32 0.01, %v471_v38 }
  0x66   : > { %2628 = vmatmul.mubr.bf16.gmra.mrb[16].mxu0 %v2280_v28  ;;  %2820 = vmatmul.mubr.bf16.gmra.mrb[16].mxu1 %v2352_v22  ;;  %v4285_v28 = vadd.s32 248, %v3915_v50  ;;  %v1574_v22 = vrot.slane %v4264_v39, 7  ;;  %v4307_v61 = vadd.s32 256, %v3915_v50  ;;  %vm535_vm8 = vcmp.ge.f32.partialorder %v471_v38, 0.0 }
  0x67   : > { %2635 = vmatprep.mubr.bf16.mxu0 %v2284_v5  ;;  %2827 = vmatprep.mubr.bf16.mxu1 %v2356_v15  ;;  %v1575_v5 = vrot.slane %v4277_v1, 7  ;;  %v551_v15 = vmul.f32 0.01, %v423_v0  ;;  %v4319_v23 = vsel %vm488_vm5, %v424_v7, %v552_v20  ;;  %v425_v58 = vadd.f32 %v3847_v11, %v354_v56 }
  0x68   : > { %v1678_v21 = vsel %vm1626_vm6, %v1573_v29, %v1574_v22  ;;  %v426_v18 = vadd.f32 %v3847_v11, %v355_v34  ;;  %v1630_v29 = vsel %vm1626_vm6, %v1621_v47, %v1622_v33  ;;  %v357_v20 = vmul.f32 %v3840_v8, %v286_v24 }
  0x69   : > { %v1677_v9 = vsel %vm1626_vm6, %v1574_v22, %v1575_v5  ;;  %v4316_v45 = vsel %vm487_vm4, %v423_v0, %v551_v15  ;;  %v1629_v0 = vsel %vm1626_vm6, %v1622_v33, %v1623_v46  ;;  %v356_v15 = vmul.f32 %v3840_v8, %v285_v6 }
  0x6a   : > { %v2286_v34 = vpack.c.bf16 %v1677_v9, %v1678_v21  ;;  %v2358_v56 = vpack.c.bf16 %v1629_v0, %v1630_v29  ;;  %v2290_v47 = vpack.c.bf16 %v4319_v23, %v4316_v45  ;;  %v553_v33 = vmul.f32 0.01, %v425_v58  ;;  %v287_v9 = vld [vmem:[%s3828_s11 + $0xa0] sm:$0xff]  ;;  %v288_v29 = vld [vmem:[%s3828_s11 + $0xa8] sm:$0xff] }
  0x6b   : > { %vm489_vm9 = vcmp.ge.f32.partialorder %v425_v58, 0.0  ;;  %vm490_vm10 = vcmp.ge.f32.partialorder %v426_v18, 0.0  ;;  %v427_v7 = vadd.f32 %v3847_v11, %v356_v15  ;;  %v428_v62 = vadd.f32 %v3847_v11, %v357_v20 }
  0x6c   : > { %v4362_v21 = vsel %vm489_vm9, %v425_v58, %v553_v33  ;;  %v358_v0 = vmul.f32 %v3840_v8, %v287_v9  ;;  %v1959_v6 = vrot.slane %v4264_v39, 1  ;;  %v359_v58 = vmul.f32 %v3840_v8, %v288_v29 }
  0x6d   : > { %v5558_v20 = vrot.slane %v3990_v36, 1  ;;  %vm491_vm11 = vcmp.ge.f32.partialorder %v427_v7, 0.0  ;;  %vm492_vm12 = vcmp.ge.f32.partialorder %v428_v62, 0.0 }
  0x6e   : > { %2636 = vmatmul.mubr.bf16.gmra.mrb[20].mxu0 %v2283_v60  ;;  %2828 = vmatmul.mubr.bf16.gmra.mrb[20].mxu1 %v2355_v48  ;;  %v4337_v60 = vsel %vm535_vm8, %v471_v38, %v599_v3  ;;  %v1576_v48 = vrot.slane %v4316_v45, 7  ;;  %v429_v29 = vadd.f32 %v3847_v11, %v358_v0 }
  0x6f   : > { %2643 = vmatprep.mubr.bf16.mxu0 %v2287_v54  ;;  %2835 = vmatprep.mubr.bf16.mxu1 %v2359_v55  ;;  %v1577_v54 = vrot.slane %v4319_v23, 7  ;;  %v554_v55 = vmul.f32 0.01, %v426_v18  ;;  %v1624_v38 = vrot.slane %v4337_v60, 7  ;;  %v2362_v3 = vpack.c.bf16 %v3918_v53, %v4337_v60 }
  0x70   : > { %v1676_v59 = vsel %vm1626_vm6, %v1575_v5, %v1576_v48  ;;  %v5557_v5 = vrot.slane %v3918_v53, 7  ;;  %vm493_vm13 = vcmp.ge.f32.partialorder %v429_v29, 0.0 }
  0x71   : > { %v1675_v22 = vsel %vm1626_vm6, %v1576_v48, %v1577_v54  ;;  %v4364_v24 = vsel %vm490_vm10, %v426_v18, %v554_v55  ;;  %v5561_v55 = vrot.slane %v3867_v26, 1 }
  0x72   : > { %v1627_v48 = vsel %vm1626_vm6, %v1624_v38, %v5557_v5  ;;  %v2289_v15 = vpack.c.bf16 %v1675_v22, %v1676_v59  ;;  %v555_v59 = vmul.f32 0.01, %v427_v7  ;;  %v556_v22 = vmul.f32 0.01, %v428_v62 }
  0x74   : > { %v4416_v10 = vsel %vm491_vm11, %v427_v7, %v555_v59  ;;  %v4418_v18 = vsel %vm492_vm12, %v428_v62, %v556_v22  ;;  %v5567_v7 = vrot.slane %v4028_v4, 1  ;;  %v5569_v59 = vrot.slane %v4026_v2, 1 }
  0x75   : > { %v1580_v22 = vrot.slane %v4416_v10, 7 }
  0x76   : > { %2644 = vmatmul.mubr.bf16.gmra.mrb[24].mxu0 %v2286_v34  ;;  %2836 = vmatmul.mubr.bf16.gmra.mrb[24].mxu1 %v2358_v56  ;;  %v1628_v34 = vsel %vm1626_vm6, %v1623_v46, %v1624_v38  ;;  %v5559_v56 = vrot.slane %v3869_v27, 1  ;;  %v1578_v38 = vrot.slane %v4362_v21, 7  ;;  %v2293_v27 = vpack.c.bf16 %v4364_v24, %v4362_v21 }
  0x77   : > { %2651 = vmatprep.mubr.bf16.mxu0 %v2290_v47  ;;  %2843 = vmatprep.mubr.bf16.mxu1 %v2362_v3  ;;  %v1579_v3 = vrot.slane %v4364_v24, 7  ;;  %v2361_v9 = vpack.c.bf16 %v1627_v48, %v1628_v34  ;;  %v5562_v48 = vrot.slane %v4026_v2, 1  ;;  %v5563_v34 = vrot.slane %v3995_v37, 1  ;;  %v292_v2 = vld [vmem:[%s3828_s11 + $0xc8] sm:$0xff] }
  0x78   : > { %v2073_v47 = vsel %vm2011_vm7, %v5559_v56, %v5558_v20  ;;  %v5560_v33 = vmov %v5559_v56  ;;  %v430_v56 = vadd.f32 %v3847_v11, %v359_v58  ;;  %v5565_v58 = vrot.slane %v3990_v36, 1 }
  0x79   : > { %v2074_v46 = vsel %vm2011_vm7, %v5561_v55, %v5560_v33  ;;  %v289_v33 = vld [vmem:[%s3828_s11 + $0xb0] sm:$0xff]  ;;  %v290_v55 = vld [vmem:[%s3828_s11 + $0xb8] sm:$0xff]  ;;  %v2071_v0 = vsel %vm2011_vm7, %v5563_v34, %v5562_v48  ;;  %v5564_v11 = vmov %v5563_v34  ;;  %v1674_v48 = vsel %vm1626_vm6, %v1577_v54, %v1578_v38 }
  0x7a   : > { %v2270_v20 = vpack.c.bf16 %v2073_v47, %v2074_v46  ;;  %v1673_v47 = vsel %vm1626_vm6, %v1578_v38, %v1579_v3  ;;  %v2072_v46 = vsel %vm2011_vm7, %v5565_v58, %v5564_v11  ;;  %v557_v34 = vmul.f32 0.01, %v429_v29 }
  0x7b   : > { %v360_v5 = vmul.f32 %v3840_v8, %v289_v33  ;;  %v361_v37 = vmul.f32 %v3840_v8, %v290_v55  ;;  %v5566_v36 = vrot.slane %v4086_v43, 1  ;;  %v558_v38 = vmul.f32 0.01, %v430_v56 }
  0x7c   : > { %v1962_v8 = vrot.slane %v4319_v23, 1  ;;  %vm494_vm14 = vcmp.ge.f32.partialorder %v430_v56, 0.0  ;;  %v1964_v33 = vrot.slane %v4364_v24, 1  ;;  %v2292_v4 = vpack.c.bf16 %v1673_v47, %v1674_v48  ;;  %v4448_v23 = vld [vmem:[%s5546_s2] ss:$0 sm:$0xff] }
  0x7d   : > { %v2069_v62 = vsel %vm2011_vm7, %v5567_v7, %v5566_v36  ;;  %v2273_v55 = vpack.c.bf16 %v2071_v0, %v2072_v46  ;;  %v4443_v58 = vsel %vm493_vm13, %v429_v29, %v557_v34  ;;  %v431_v36 = vadd.f32 %v4448_v23, %v360_v5  ;;  %v4465_v46 = vld [vmem:[%s5545_s1] ss:$0 sm:$0xff] }
  0x7e   : > { %2652 = vmatmul.mubr.bf16.gmra.mrb[28].mxu0 %v2289_v15  ;;  %2844 = vmatmul.mubr.bf16.gmra.mrb[28].mxu1 %v2361_v9  ;;  %v5568_v15 = vmov %v5567_v7  ;;  %v1581_v9 = vrot.slane %v4418_v18, 7  ;;  %v432_v7 = vadd.f32 %v4448_v23, %v361_v37  ;;  %v5571_v0 = vrot.slane %v4089_v44, 1 }
  0x7f   : > { %2659 = vmatprep.mubr.bf16.mxu0 %v2293_v27  ;;  %3612 = vmatprep.mubr.bf16.mxu1 %v2270_v20  ;;  %v2070_v54 = vsel %vm2011_vm7, %v5569_v59, %v5568_v15  ;;  %v291_v27 = vld [vmem:[%s3828_s11 + $0xc0] sm:$0xff]  ;;  %v1963_v20 = vrot.slane %v4362_v21, 1  ;;  %v2296_v15 = vpack.c.bf16 %v4418_v18, %v4416_v10  ;;  %v5570_v59 = vrot.slane %v4163_v52, 1 }
  0x80   : > { %v2276_v11 = vpack.c.bf16 %v2069_v62, %v2070_v54  ;;  %v4460_v47 = vsel %vm494_vm14, %v430_v56, %v558_v38  ;;  %v362_v5 = vmul.f32 %v4465_v46, %v291_v27  ;;  %v1671_v48 = vsel %vm1626_vm6, %v1580_v22, %v1581_v9 }
  0x81   : > { %v2067_v29 = vsel %vm2011_vm7, %v5571_v0, %v5570_v59  ;;  %v5572_v34 = vmov %v5571_v0  ;;  %v5573_v37 = vrot.slane %v4086_v43, 1  ;;  %v5574_v56 = vrot.slane %v4209_v51, 1 }
  0x82   : > { %v5575_v54 = vrot.slane %v4176_v19, 1  ;;  %v363_v59 = vmul.f32 %v4465_v46, %v292_v2  ;;  %v1672_v27 = vsel %vm1626_vm6, %v1579_v3, %v1580_v22  ;;  %v1582_v0 = vrot.slane %v4443_v58, 7 }
  0x83   : > { %v2068_v62 = vsel %vm2011_vm7, %v5573_v37, %v5572_v34  ;;  %v5577_v43 = vrot.slane %v4163_v52, 1  ;;  %v5578_v37 = vrot.slane %v4211_v49, 1  ;;  %v1583_v3 = vrot.slane %v4460_v47, 7 }
  0x84   : > { %v2065_v38 = vsel %vm2011_vm7, %v5575_v54, %v5574_v56  ;;  %v5576_v44 = vmov %v5575_v54  ;;  %v5580_v52 = vrot.slane %v4209_v51, 1  ;;  %v559_v2 = vmul.f32 0.01, %v431_v36 }
  0x85   : > { %v2066_v34 = vsel %vm2011_vm7, %v5577_v43, %v5576_v44  ;;  %v4498_v56 = vsel %vm2011_vm7, %v5578_v37, %v1959_v6  ;;  %v5579_v19 = vmov %v5578_v37  ;;  %v560_v54 = vmul.f32 0.01, %v432_v7  ;;  %v293_v37 = vld [vmem:[%s3828_s11 + $0xd0] sm:$0xff] }
  0x86   : > { %2660 = vmatmul.mubr.bf16.gmra.mrb[32].mxu0 %v2292_v4  ;;  %3613 = vmatmul.mubr.bf16.vlgmr.msra.gmra.mrb[32].mxu1 %v2273_v55  ;;  %v4507_v22 = vsel %vm2011_vm7, %v5580_v52, %v5579_v19  ;;  %v2279_v44 = vpack.c.bf16 %v2067_v29, %v2068_v62  ;;  %vm495_vm15 = vcmp.ge.f32.partialorder %v431_v36, 0.0  ;;  %vm496_vm1 = vcmp.ge.f32.partialorder %v432_v7, 0.0  ;;  %v294_v29 = vld [vmem:[%s3828_s11 + $0xd8] sm:$0xff] }
  0x87   : > { %2667 = vmatprep.mubr.bf16.mxu0 %v2296_v15  ;;  %3616 = vmatprep.mubr.bf16.mxu1 %v2276_v11  ;;  %v433_v4 = vadd.f32 %v4448_v23, %v362_v5  ;;  %v1965_v55 = vrot.slane %v4416_v10, 1  ;;  %v1966_v49 = vrot.slane %v4418_v18, 1  ;;  %v2295_v51 = vpack.c.bf16 %v1671_v48, %v1672_v27 }
  0x88   : > { %v434_v43 = vadd.f32 %v4448_v23, %v363_v59  ;;  %v2299_v19 = vpack.c.bf16 %v4460_v47, %v4443_v58  ;;  %v2282_v52 = vpack.c.bf16 %v2065_v38, %v2066_v34  ;;  %v1670_v11 = vsel %vm1626_vm6, %v1581_v9, %v1582_v0  ;;  %v295_v9 = vld [vmem:[%s3828_s11 + $0xe0] sm:$0xff] }
  0x89   : > { %v2285_v15 = vpack.c.bf16 %v4498_v56, %v4507_v22  ;;  %v1669_v10 = vsel %vm1626_vm6, %v1582_v0, %v1583_v3  ;;  %v4523_v18 = vsel %vm495_vm15, %v431_v36, %v559_v2  ;;  %v4525_v5 = vsel %vm496_vm1, %v432_v7, %v560_v54  ;;  %v296_v2 = vld [vmem:[%s3828_s11 + $0xe8] sm:$0xff] }
  0x8a   : > { %v5581_v48 = vrot.slane %v4316_v45, 1  ;;  %v5582_v62 = vrot.slane %v4277_v1, 1  ;;  %v4544_v36 = vsel %vm2011_vm7, %v1962_v8, %v1963_v20  ;;  %v561_v7 = vmul.f32 0.01, %v433_v4 }
  0x8b   : > { %v364_v0 = vmul.f32 %v4465_v46, %v293_v37  ;;  %vm497_vm2 = vcmp.ge.f32.partialorder %v433_v4, 0.0  ;;  %v562_v39 = vmul.f32 0.01, %v434_v43  ;;  %v365_v1 = vmul.f32 %v4465_v46, %v294_v29 }
  0x8c   : > { %v2061_v38 = vsel %vm2011_vm7, %v5582_v62, %v5581_v48  ;;  %v5583_v59 = vmov %v5582_v62  ;;  %v5584_v34 = vmov %v5581_v48  ;;  %v1585_v22 = vrot.slane %v4525_v5, 7 }
  0x8d   : > { %v2062_v27 = vsel %vm2011_vm7, %v1959_v6, %v5583_v59  ;;  %v4551_v56 = vsel %vm2011_vm7, %v5584_v34, %v1962_v8  ;;  %v1584_v6 = vrot.slane %v4523_v18, 7  ;;  %vm498_vm3 = vcmp.ge.f32.partialorder %v434_v43, 0.0 }
  0x8e   : > { %v366_v54 = vmul.f32 %v4465_v46, %v295_v9  ;;  %2668 = vmatmul.mubr.bf16.gmra.mrb[36].mxu0 %v2295_v51  ;;  %3617 = vmatmul.mubr.bf16.gmra.mrb[36].mxu1 %v2279_v44  ;;  %v1967_v45 = vrot.slane %v4443_v58, 1  ;;  %v2298_v37 = vpack.c.bf16 %v1669_v10, %v1670_v11  ;;  %v2288_v48 = vpack.c.bf16 %v2061_v38, %v2062_v27  ;;  %v297_v38 = vld [vmem:[%s3828_s11 + $0xf0] sm:$0xff] }
  0x8f   : > { %v4563_v8 = vsel %vm2011_vm7, %v1964_v33, %v1965_v55  ;;  %v1968_v29 = vrot.slane %v4460_v47, 1  ;;  %2675 = vmatprep.mubr.bf16.mxu0 %v2299_v19  ;;  %3620 = vmatprep.mubr.bf16.mxu1 %v2282_v52  ;;  %v4567_v62 = vsel %vm497_vm2, %v433_v4, %v561_v7  ;;  %v4575_v58 = vsel %vm2011_vm7, %v1963_v20, %v1964_v33 }
  0x90   : > { %v435_v44 = vadd.f32 %v4448_v23, %v364_v0  ;;  %v2291_v51 = vpack.c.bf16 %v4544_v36, %v4551_v56  ;;  %v4581_v47 = vsel %vm498_vm3, %v434_v43, %v562_v39  ;;  %v436_v19 = vadd.f32 %v4448_v23, %v365_v1 }
  0x91   : > { %v367_v4 = vmul.f32 %v4465_v46, %v296_v2  ;;  %v1969_v24 = vrot.slane %v4523_v18, 1  ;;  %v1667_v21 = vsel %vm1626_vm6, %v1584_v6, %v1585_v22  ;;  %v1668_v20 = vsel %vm1626_vm6, %v1583_v3, %v1584_v6 }
  0x92   : > { %v437_v33 = vadd.f32 %v4448_v23, %v366_v54  ;;  %v1970_v52 = vrot.slane %v4525_v5, 1  ;;  %v2302_v43 = vpack.c.bf16 %v4525_v5, %v4523_v18  ;;  %v1586_v11 = vrot.slane %v4567_v62, 7 }
  0x93   : > { %v2294_v10 = vpack.c.bf16 %v4563_v8, %v4575_v58  ;;  %v1587_v9 = vrot.slane %v4581_v47, 7  ;;  %v1971_v59 = vrot.slane %v4567_v62, 1  ;;  %v4602_v3 = vsel %vm2011_vm7, %v1966_v49, %v1967_v45 }
  0x94   : > { %v563_v27 = vmul.f32 0.01, %v435_v44  ;;  %v2301_v7 = vpack.c.bf16 %v1667_v21, %v1668_v20  ;;  %vm499_vm4 = vcmp.ge.f32.partialorder %v435_v44, 0.0  ;;  %v564_v0 = vmul.f32 0.01, %v436_v19  ;;  %v300_v21 = vld [vmem:[%s3828_s11 + $0x108] sm:$0xff] }
  0x95   : > { %v438_v18 = vadd.f32 %v4448_v23, %v367_v4  ;;  %v4607_v5 = vsel %vm2011_vm7, %v1965_v55, %v1966_v49  ;;  %vm500_vm5 = vcmp.ge.f32.partialorder %v436_v19, 0.0  ;;  %v565_v34 = vmul.f32 0.01, %v437_v33  ;;  %v298_v55 = vld [vmem:[%s3828_s11 + $0xf8] sm:$0xff] }
  0x96   : > { %v368_v39 = vmul.f32 %v4465_v46, %v297_v38  ;;  %2676 = vmatmul.mubr.bf16.gmra.mrb[40].mxu0 %v2298_v37  ;;  %3621 = vmatmul.mubr.bf16.gmra.mrb[40].mxu1 %v2285_v15  ;;  %v4612_v1 = vsel %vm1626_vm6, %v1585_v22, %v1586_v11  ;;  %v4616_v6 = vsel %vm2011_vm7, %v1968_v29, %v1969_v24  ;;  %vm501_vm8 = vcmp.ge.f32.partialorder %v437_v33, 0.0 }
  0x97   : > { %v4620_v2 = vsel %vm2011_vm7, %v1967_v45, %v1968_v29  ;;  %2683 = vmatprep.mubr.bf16.mxu0 %v2302_v43  ;;  %3624 = vmatprep.mubr.bf16.mxu1 %v2288_v48  ;;  %v1972_v49 = vrot.slane %v4581_v47, 1  ;;  %v4628_v15 = vsel %vm1626_vm6, %v1586_v11, %v1587_v9  ;;  %v4631_v22 = vsel %vm499_vm4, %v435_v44, %v563_v27  ;;  %v299_v45 = vld [vmem:[%s3828_s11 + $0x100] sm:$0xff] }
  0x98   : > { %v4635_v54 = vsel %vm2011_vm7, %v1970_v52, %v1971_v59  ;;  %v4639_v37 = vsel %vm500_vm5, %v436_v19, %v564_v0  ;;  %v1973_v48 = vrot.slane %v4631_v22, 1  ;;  %v4644_v8 = vsel %vm2011_vm7, %v1969_v24, %v1970_v52 }
  0x99   : > { %v566_v29 = vmul.f32 0.01, %v438_v18  ;;  %vm502_vm9 = vcmp.ge.f32.partialorder %v438_v18, 0.0  ;;  %v4646_v58 = vsel %vm501_vm8, %v437_v33, %v565_v34  ;;  %v369_v44 = vmul.f32 %v4465_v46, %v298_v55 }
  0x9a   : > { %v439_v4 = vadd.f32 %v4448_v23, %v368_v39  ;;  %v2305_v19 = vpack.c.bf16 %v4581_v47, %v4567_v62  ;;  %v2297_v20 = vpack.c.bf16 %v4602_v3, %v4607_v5  ;;  %v2300_v43 = vpack.c.bf16 %v4616_v6, %v4620_v2  ;;  %v301_v62 = vld [vmem:[%s3828_s11 + $0x110] sm:$0xff] }
  0x9b   : > { %v370_v24 = vmul.f32 %v4465_v46, %v299_v45  ;;  %v2304_v33 = vpack.c.bf16 %v4628_v15, %v4612_v1  ;;  %v1588_v52 = vrot.slane %v4631_v22, 7  ;;  %v1589_v11 = vrot.slane %v4639_v37, 7  ;;  %v302_v15 = vld [vmem:[%s3828_s11 + $0x118] sm:$0xff]  ;;  %v303_v45 = vld [vmem:[%s3828_s11 + $0x120] sm:$0xff] }
  0x9c   : > { %v2303_v38 = vpack.c.bf16 %v4635_v54, %v4644_v8  ;;  %v1974_v3 = vrot.slane %v4639_v37, 1  ;;  %v4666_v27 = vsel %vm502_vm9, %v438_v18, %v566_v29  ;;  %v1975_v0 = vrot.slane %v4646_v58, 1 }
  0x9d   : > { %v371_v5 = vmul.f32 %v4465_v46, %v300_v21  ;;  %v4672_v34 = vsel %vm2011_vm7, %v1972_v49, %v1973_v48  ;;  %v4676_v39 = vsel %vm2011_vm7, %v1971_v59, %v1972_v49  ;;  %v440_v1 = vadd.f32 %v4448_v23, %v369_v44 }
  0x9e   : > { %v567_v6 = vmul.f32 0.01, %v439_v4  ;;  %2684 = vmatmul.mubr.bf16.gmra.mrb[44].mxu0 %v2301_v7  ;;  %3625 = vmatmul.mubr.bf16.gmra.mrb[44].mxu1 %v2291_v51  ;;  %v2308_v18 = vpack.c.bf16 %v4639_v37, %v4631_v22  ;;  %vm503_vm10 = vcmp.ge.f32.partialorder %v439_v4, 0.0  ;;  %v441_v2 = vadd.f32 %v4448_v23, %v370_v24 }
  0x9f   : > { %v372_v55 = vmul.f32 %v4465_v46, %v301_v62  ;;  %2691 = vmatprep.mubr.bf16.mxu0 %v2305_v19  ;;  %3628 = vmatprep.mubr.bf16.mxu1 %v2294_v10  ;;  %v4690_v59 = vsel %vm1626_vm6, %v1588_v52, %v1589_v11  ;;  %v4696_v36 = vsel %vm1626_vm6, %v1587_v9, %v1588_v52  ;;  %v1590_v56 = vrot.slane %v4646_v58, 7  ;;  %v304_v52 = vld [vmem:[%s3828_s11 + $0x128] sm:$0xff] }
  0xa0   : > { %v1591_v51 = vrot.slane %v4666_v27, 7  ;;  %v4704_v10 = vsel %vm2011_vm7, %v1974_v3, %v1975_v0  ;;  %v4708_v49 = vsel %vm2011_vm7, %v1973_v48, %v1974_v3  ;;  %v442_v47 = vadd.f32 %v4448_v23, %v371_v5 }
  0xa1   : > { %v568_v9 = vmul.f32 0.01, %v440_v1  ;;  %v4712_v22 = vsel %vm503_vm10, %v439_v4, %v567_v6  ;;  %v373_v37 = vmul.f32 %v4465_v46, %v302_v15  ;;  %v374_v29 = vmul.f32 %v4465_v46, %v303_v45 }
  0xa2   : > { %v2307_v44 = vpack.c.bf16 %v4690_v59, %v4696_v36  ;;  %vm504_vm11 = vcmp.ge.f32.partialorder %v440_v1, 0.0  ;;  %v569_v21 = vmul.f32 0.01, %v441_v2  ;;  %v443_v19 = vadd.f32 %v4448_v23, %v372_v55  ;;  %v305_v55 = vld [vmem:[%s3828_s11 + $0x130] sm:$0xff] }
  0xa3   : > { %v1976_v48 = vrot.slane %v4666_v27, 1  ;;  %v4722_v24 = vsel %vm1626_vm6, %v1590_v56, %v1591_v51  ;;  %v4726_v4 = vsel %vm1626_vm6, %v1589_v11, %v1590_v56  ;;  %vm505_vm12 = vcmp.ge.f32.partialorder %v441_v2, 0.0  ;;  %v313_v59 = vld [vmem:[%s3828_s11 + $0x170] sm:$0xff] }
  0xa4   : > { %v2311_v62 = vpack.c.bf16 %v4666_v27, %v4646_v58  ;;  %v1977_v5 = vrot.slane %v4712_v22, 1  ;;  %v570_v6 = vmul.f32 0.01, %v442_v47  ;;  %v4735_v15 = vsel %vm504_vm11, %v440_v1, %v568_v9 }
  0xa5   : > { %vm506_vm13 = vcmp.ge.f32.partialorder %v442_v47, 0.0  ;;  %v444_v45 = vadd.f32 %v4448_v23, %v373_v37  ;;  %v445_v11 = vadd.f32 %v4448_v23, %v374_v29  ;;  %v4741_v58 = vsel %vm505_vm12, %v441_v2, %v569_v21 }
  0xa6   : > { %2692 = vmatmul.mubr.bf16.gmra.mrb[48].mxu0 %v2304_v33  ;;  %3629 = vmatmul.mubr.bf16.gmra.mrb[48].mxu1 %v2297_v20  ;;  %v571_v27 = vmul.f32 0.01, %v443_v19  ;;  %v375_v36 = vmul.f32 %v4465_v46, %v304_v52  ;;  %v1592_v1 = vrot.slane %v4712_v22, 7  ;;  %v4747_v56 = vsel %vm2011_vm7, %v1975_v0, %v1976_v48 }
  0xa7   : > { %2699 = vmatprep.mubr.bf16.mxu0 %v2308_v18  ;;  %3632 = vmatprep.mubr.bf16.mxu1 %v2300_v43  ;;  %vm507_vm14 = vcmp.ge.f32.partialorder %v443_v19, 0.0  ;;  %v376_v20 = vmul.f32 %v4465_v46, %v305_v55  ;;  %v1593_v33 = vrot.slane %v4735_v15, 7  ;;  %v1978_v2 = vrot.slane %v4735_v15, 1  ;;  %v306_v55 = vld [vmem:[%s3828_s11 + $0x138] sm:$0xff] }
  0xa8   : > { %v4754_v9 = vsel %vm2011_vm7, %v1976_v48, %v1977_v5  ;;  %v4757_v43 = vsel %vm506_vm13, %v442_v47, %v570_v6  ;;  %v1979_v18 = vrot.slane %v4741_v58, 1  ;;  %v1594_v0 = vrot.slane %v4741_v58, 7 }
  0xa9   : > { %v572_v37 = vmul.f32 0.01, %v444_v45  ;;  %v573_v29 = vmul.f32 0.01, %v445_v11  ;;  %v4761_v21 = vsel %vm507_vm14, %v443_v19, %v571_v27  ;;  %vm508_vm15 = vcmp.ge.f32.partialorder %v444_v45, 0.0 }
  0xaa   : > { %vm509_vm1 = vcmp.ge.f32.partialorder %v445_v11, 0.0  ;;  %v446_v52 = vadd.f32 %v4448_v23, %v375_v36  ;;  %v2314_v48 = vpack.c.bf16 %v4735_v15, %v4712_v22  ;;  %v4769_v47 = vsel %vm1626_vm6, %v1591_v51, %v1592_v1  ;;  %v307_v51 = vld [vmem:[%s3828_s11 + $0x140] sm:$0xff] }
  0xab   : > { %v447_v3 = vadd.f32 %v4448_v23, %v376_v20  ;;  %v2312_v19 = vpack.c.bf16 %v4754_v9, %v4747_v56  ;;  %v4778_v27 = vsel %vm1626_vm6, %v1592_v1, %v1593_v33  ;;  %v4782_v36 = vsel %vm2011_vm7, %v1977_v5, %v1978_v2 }
  0xac   : > { %v1980_v22 = vrot.slane %v4757_v43, 1  ;;  %v1981_v15 = vrot.slane %v4761_v21, 1  ;;  %v4787_v6 = vsel %vm508_vm15, %v444_v45, %v572_v37  ;;  %v4789_v20 = vsel %vm509_vm1, %v445_v11, %v573_v29 }
  0xad   : > { %v377_v7 = vmul.f32 %v4465_v46, %v306_v55  ;;  %v4797_v5 = vsel %vm2011_vm7, %v1978_v2, %v1979_v18  ;;  %v4801_v1 = vsel %vm1626_vm6, %v1593_v33, %v1594_v0  ;;  %v574_v45 = vmul.f32 0.01, %v446_v52 }
  0xae   : > { %2700 = vmatmul.mubr.bf16.gmra.mrb[52].mxu0 %v2307_v44  ;;  %3633 = vmatmul.mubr.bf16.gmra.mrb[52].mxu1 %v2303_v38  ;;  %v384_v11 = vmul.f32 %v4465_v46, %v313_v59  ;;  %v5585_v44 = vpack.c.bf16 %v4672_v34, %v4676_v39  ;;  %v5586_v54 = vrot.slane %v4757_v43, 7  ;;  %vm510_vm2 = vcmp.ge.f32.partialorder %v446_v52, 0.0 }
  0xaf   : > { %2707 = vmatprep.mubr.bf16.mxu0 %v2311_v62  ;;  %v575_v38 = vmul.f32 0.01, %v447_v3  ;;  %v378_v56 = vmul.f32 %v4465_v46, %v307_v51  ;;  %v5587_v33 = vand.u32 255, %v4285_v28  ;;  %v1982_v34 = vrot.slane %v4787_v6, 1  ;;  %v308_v62 = vld [vmem:[%s3828_s11 + $0x148] sm:$0xff] }
  0xb0   : > { %3636 = vmatprep.mubr.bf16.mxu1 %v5585_v44  ;;  %v4811_v8 = vsel %vm1626_vm6, %v1594_v0, %v5586_v54  ;;  %v1983_v39 = vrot.slane %v4789_v20, 1  ;;  %vm511_vm4 = vcmp.ge.f32.partialorder %v447_v3, 0.0  ;;  %v455_v2 = vadd.f32 %v4448_v23, %v384_v11  ;;  %v309_v11 = vld [vmem:[%s3828_s11 + $0x150] sm:$0xff] }
  0xb1   : > { %vm4816_vm3 = vcmp.ne.s32.totalorder %v5587_v33, 255  ;;  %v2313_v9 = vpack.c.bf16 %v4778_v27, %v4769_v47  ;;  %v4828_v0 = vsel %vm2011_vm7, %v1980_v22, %v1981_v15  ;;  %v4832_v28 = vsel %vm2011_vm7, %v1979_v18, %v1980_v22 }
  0xb2   : > { %v448_v37 = vadd.f32 %v4448_v23, %v377_v7  ;;  %v3544_v29 = vpack.c.bf16 %v4797_v5, %v4782_v36  ;;  %v2317_v55 = vpack.c.bf16 %v4757_v43, %v4741_v58  ;;  %v4839_v51 = vsel %vm510_vm2, %v446_v52, %v574_v45  ;;  %vm3543_vm10 = vmpackc.low %vm4816_vm3, %vm3753_vm0 }
  0xb3   : > { %vm519_vm5 = vcmp.ge.f32.partialorder %v455_v2, 0.0  ;;  %v3540_v47 = vpack.c.bf16 %v4811_v8, %v4801_v1  ;;  %v4844_v27 = vsel %vm511_vm4, %v447_v3, %v575_v38  ;;  %v379_v18 = vmul.f32 %v4465_v46, %v308_v62 }
  0xb4   : > { %v583_v22 = vmul.f32 0.01, %v455_v2  ;;  %v2318_v7 = vpack.c.bf16 %v4828_v0, %v4832_v28  ;;  %v4851_v36 = vsel %vm2011_vm7, %v1982_v34, %v1983_v39  ;;  %v4855_v52 = vsel %vm2011_vm7, %v1981_v15, %v1982_v34 }
  0xb5   : > { %v449_v5 = vadd.f32 %v4448_v23, %v378_v56  ;;  %v1984_v45 = vrot.slane %v4839_v51, 1  ;;  %v576_v3 = vmul.f32 0.01, %v448_v37  ;;  %v380_v44 = vmul.f32 %v4465_v46, %v309_v11 }
  0xb6   : > { %v4860_v54 = vsel %vm519_vm5, %v455_v2, %v583_v22  ;;  %v5590_v38 = vpack.c.bf16 %v4722_v24, %v4726_v4  ;;  %v5591_v33 = vpack.c.bf16 %v4704_v10, %v4708_v49  ;;  %v5554_v15 = vrot.slane %v4844_v27, 1 }
  0xb7   : > { %vm512_vm8 = vcmp.ge.f32.partialorder %v448_v37, 0.0  ;;  %v5553_v56 = vrot.slane %v4860_v54, 1  ;;  %v5592_v34 = vrot.slane %v3876_v30, 1  ;;  %v5593_v62 = vrot.slane %v3934_v63, 1 }
  0xb8   : > { %2708 = vmatmul.mubr.bf16.gmra.mrb[56].mxu0 %v5590_v38  ;;  %3637 = vmatmul.mubr.bf16.gmra.mrb[56].mxu1 %v5591_v33  ;;  %v2009_v24 = vrot.slane %v4337_v60, 1  ;;  %v450_v10 = vadd.f32 %v4448_v23, %v379_v18  ;;  %v5594_v49 = vrot.slane %v4000_v40, 1  ;;  %v5595_v4 = vrot.slane %v3878_v31, 1 }
  0xb9   : > { %v4876_v2 = vsel %vm2011_vm7, %v5593_v62, %v5592_v34  ;;  %2715 = vmatprep.mubr.bf16.mxu0 %v2314_v48  ;;  %3640 = vmatprep.mubr.bf16.mxu1 %v2312_v19  ;;  %v5597_v11 = vmov %v5592_v34  ;;  %vm513_vm9 = vcmp.ge.f32.partialorder %v449_v5, 0.0  ;;  %v577_v48 = vmul.f32 0.01, %v449_v5  ;;  %v310_v19 = vld [vmem:[%s3828_s11 + $0x158] sm:$0xff] }
  0xba   : > { %v4886_v0 = vsel %vm2011_vm7, %v5595_v4, %v5594_v49  ;;  %v5596_v28 = vmov %v5595_v4  ;;  %v5598_v18 = vmov %v5593_v62  ;;  %v4909_v30 = vsel %vm2011_vm7, %v1983_v39, %v1984_v45  ;;  %v311_v62 = vld [vmem:[%s3828_s11 + $0x160] sm:$0xff] }
  0xbb   : > { %v4894_v22 = vsel %vm2011_vm7, %v5597_v11, %v5596_v28  ;;  %v4903_v38 = vsel %vm2011_vm7, %v5553_v56, %v5598_v18  ;;  %v4911_v33 = vsel %vm512_vm8, %v448_v37, %v576_v3  ;;  %v451_v34 = vadd.f32 %v4448_v23, %v380_v44  ;;  %v312_v28 = vld [vmem:[%s3828_s11 + $0x168] sm:$0xff] }
  0xbc   : > { %v2037_v4 = vsel %vm2011_vm7, %v1984_v45, %v5554_v15  ;;  %v5599_v11 = vrot.slane %v4055_v14, 1  ;;  %v5600_v18 = vrot.slane %v4003_v41, 1  ;;  %v5602_v3 = vmov %v5594_v49 }
  0xbd   : > { %v5603_v31 = vrot.slane %v4128_v12, 1  ;;  %v5604_v45 = vrot.slane %v4058_v16, 1  ;;  %v381_v41 = vmul.f32 %v4465_v46, %v310_v19  ;;  %vm514_vm11 = vcmp.ge.f32.partialorder %v450_v10, 0.0 }
  0xbe   : > { %v4928_v39 = vsel %vm2011_vm7, %v5600_v18, %v5599_v11  ;;  %v5601_v37 = vmov %v5600_v18  ;;  %v578_v11 = vmul.f32 0.01, %v450_v10  ;;  %v5608_v19 = vrot.slane %v4131_v13, 1 }
  0xbf   : > { %v4936_v44 = vsel %vm2011_vm7, %v5602_v3, %v5601_v37  ;;  %v4944_v49 = vsel %vm2011_vm7, %v5604_v45, %v5603_v31  ;;  %v5605_v18 = vmov %v5604_v45  ;;  %v5606_v37 = vrot.slane %v4055_v14, 1 }
  0xc0   : > { %v382_v31 = vmul.f32 %v4465_v46, %v311_v62  ;;  %v5607_v45 = vrot.slane %v4184_v57, 1  ;;  %v579_v16 = vmul.f32 0.01, %v451_v34  ;;  %v383_v14 = vmul.f32 %v4465_v46, %v312_v28  ;;  %2716 = vmatmul.mubr.bf16.gmra.mrb[60].mxu0 %v2313_v9  ;;  %3641 = vmatmul.mubr.msk.bf16.gmra.mrb[60].mxu1 %vm3543_vm10, %v3544_v29 }
  0xc1   : > { %v4958_v3 = vsel %vm2011_vm7, %v5606_v37, %v5605_v18  ;;  %v5609_v18 = vmov %v5608_v19  ;;  %v5610_v37 = vrot.slane %v4128_v12, 1  ;;  %v5611_v59 = vrot.slane %v4229_v17, 1  ;;  %2723 = vmatprep.mubr.bf16.mxu0 %v2317_v55  ;;  %3644 = vmatprep.mubr.bf16.mxu1 %v2318_v7 }
  0xc2   : > { %v4969_v40 = vsel %vm2011_vm7, %v5608_v19, %v5607_v45  ;;  %v5612_v56 = vrot.slane %v4191_v25, 1  ;;  %v4989_v46 = vsel %vm513_vm9, %v449_v5, %v577_v48  ;;  %vm515_vm12 = vcmp.ge.f32.partialorder %v451_v34, 0.0 }
  0xc3   : > { %v4978_v62 = vsel %vm2011_vm7, %v5610_v37, %v5609_v18  ;;  %v5614_v28 = vmov %v5607_v45  ;;  %v5615_v9 = vand.u32 255, %v4307_v61  ;;  %v5011_v5 = vsel %vm514_vm11, %v450_v10, %v578_v11 }
  0xc4   : > { %v4986_v15 = vsel %vm2011_vm7, %v5612_v56, %v5611_v59  ;;  %v2351_v12 = vpack.c.bf16 %v4969_v40, %v4978_v62  ;;  %v5613_v13 = vmov %v5612_v56  ;;  %v5618_v25 = vrot.slane %v4289_v42, 1 }
  0xc5   : > { %v4999_v45 = vsel %vm2011_vm7, %v5614_v28, %v5613_v13  ;;  %vm5006_vm13 = vcmp.ne.s32.totalorder %v5615_v9, 0  ;;  %v5619_v56 = vrot.slane %v4232_v32, 1  ;;  %v452_v61 = vadd.f32 %v4448_v23, %v381_v41 }
  0xc6   : > { %v2354_v57 = vpack.c.bf16 %v4986_v15, %v4999_v45  ;;  %v453_v55 = vadd.f32 %v4448_v23, %v382_v31  ;;  %v5621_v10 = vmov %v5611_v59  ;;  %v5622_v11 = vrot.slane %v4292_v35, 1  ;;  %vm3539_vm14 = vmpackc.low %vm3753_vm0, %vm5006_vm13 }
  0xc7   : > { %v5021_v58 = vsel %vm2011_vm7, %v5619_v56, %v5618_v25  ;;  %v5620_v7 = vmov %v5619_v56  ;;  %v5041_v19 = vsel %vm515_vm12, %v451_v34, %v579_v16  ;;  %v454_v41 = vadd.f32 %v4448_v23, %v383_v14 }
  0xc8   : > { %v5031_v48 = vsel %vm2011_vm7, %v5621_v10, %v5620_v7  ;;  %v5039_v59 = vsel %vm2011_vm7, %v5622_v11, %v2009_v24  ;;  %v5623_v17 = vmov %v5622_v11  ;;  %v5624_v31 = vmov %v5618_v25  ;;  %3541 = vmatmul.mubr.msk.bf16.gmra.mrb[64].mxu0 %vm3539_vm14, %v3540_v47 }
  0xc9   : > { %v2357_v32 = vpack.c.bf16 %v5021_v58, %v5031_v48  ;;  %v5052_v18 = vsel %vm2011_vm7, %v5624_v31, %v5623_v17  ;;  %v2321_v37 = vpack.c.bf16 %v4851_v36, %v4855_v52  ;;  %v2320_v34 = vpack.c.bf16 %v4787_v6, %v4761_v21 }
  0xca   : > { %v1596_v16 = vrot.slane %v4761_v21, 7  ;;  %v2360_v23 = vpack.c.bf16 %v5039_v59, %v5052_v18  ;;  %v2324_v42 = vpack.c.bf16 %v2037_v4, %v4909_v30  ;;  %v1597_v35 = vrot.slane %v4787_v6, 7 }
  0xcb   : > { %v1986_v14 = vrot.slane %v4911_v33, 1  ;;  %v1987_v36 = vrot.slane %v4989_v46, 1  ;;  %v1988_v52 = vrot.slane %v5011_v5, 1  ;;  %v1989_v13 = vrot.slane %v5041_v19, 1  ;;  %3645 = vmatmul.mubr.bf16.gmra.mrb[64].mxu1 %v2321_v37  ;;  %2731 = vmatprep.mubr.bf16.mxu0 %v2320_v34 }
  0xcc   : > { %v580_v21 = vmul.f32 0.01, %v452_v61  ;;  %v581_v28 = vmul.f32 0.01, %v453_v55  ;;  %vm516_vm15 = vcmp.ge.f32.partialorder %v452_v61, 0.0  ;;  %vm517_vm1 = vcmp.ge.f32.partialorder %v453_v55, 0.0  ;;  %3648 = vmatprep.mubr.bf16.mxu1 %v2324_v42 }
  0xcd   : > { %v582_v9 = vmul.f32 0.01, %v454_v41  ;;  %v5625_v6 = vrot.slane %v4757_v43, 7  ;;  %vm518_vm2 = vcmp.ge.f32.partialorder %v454_v41, 0.0  ;;  %v1655_v4 = vsel %vm1626_vm6, %v1596_v16, %v1597_v35 }
  0xce   : > { %v2035_v29 = vsel %vm2011_vm7, %v1986_v14, %v1987_v36  ;;  %v5626_v25 = vrot.slane %v4844_v27, 1  ;;  %v2033_v43 = vsel %vm2011_vm7, %v1988_v52, %v1989_v13  ;;  %v2034_v8 = vsel %vm2011_vm7, %v1987_v36, %v1988_v52 }
  0xcf   : > { %v1656_v30 = vsel %vm1626_vm6, %v5625_v6, %v1596_v16  ;;  %v5089_v47 = vsel %vm516_vm15, %v452_v61, %v580_v21  ;;  %v5091_v56 = vsel %vm517_vm1, %v453_v55, %v581_v28  ;;  %v5093_v7 = vsel %vm518_vm2, %v454_v41, %v582_v9 }
  0xd0   : > { %v2036_v1 = vsel %vm2011_vm7, %v5626_v25, %v1986_v14  ;;  %v2319_v10 = vpack.c.bf16 %v1655_v4, %v1656_v30  ;;  %v2323_v17 = vpack.c.bf16 %v4839_v51, %v4789_v20  ;;  %v1598_v31 = vrot.slane %v4789_v20, 7 }
  0xd1   : > { %v2327_v11 = vpack.c.bf16 %v2035_v29, %v2036_v1  ;;  %v2330_v37 = vpack.c.bf16 %v2033_v43, %v2034_v8  ;;  %v1599_v34 = vrot.slane %v4839_v51, 7  ;;  %v1990_v16 = vrot.slane %v5089_v47, 1 }
  0xd2   : > { %v1991_v42 = vrot.slane %v5091_v56, 1  ;;  %v1992_v61 = vrot.slane %v5093_v7, 1  ;;  %2732 = vmatmul.mubr.bf16.gmra.mrb[68].mxu0 %v2319_v10  ;;  %v1654_v55 = vsel %vm1626_vm6, %v1597_v35, %v1598_v31  ;;  %v5627_v14 = vrot.slane %v4860_v54, 1 }
  0xd3   : > { %3649 = vmatmul.mubr.bf16.gmra.mrb[68].mxu1 %v2327_v11  ;;  %2739 = vmatprep.mubr.bf16.mxu0 %v2323_v17  ;;  %v1653_v41 = vsel %vm1626_vm6, %v1598_v31, %v1599_v34  ;;  %v2032_v51 = vsel %vm2011_vm7, %v1989_v13, %v1990_v16  ;;  %v2326_v28 = vpack.c.bf16 %v4911_v33, %v4844_v27  ;;  %v1600_v6 = vrot.slane %v4844_v27, 7 }
  0xd4   : > { %3652 = vmatprep.mubr.bf16.mxu1 %v2330_v37  ;;  %v2031_v20 = vsel %vm2011_vm7, %v1990_v16, %v1991_v42  ;;  %v2029_v36 = vsel %vm2011_vm7, %v1992_v61, %v5627_v14  ;;  %v2030_v52 = vsel %vm2011_vm7, %v1991_v42, %v1992_v61  ;;  %v2322_v35 = vpack.c.bf16 %v1653_v41, %v1654_v55 }
  0xd5   : > { %v2333_v21 = vpack.c.bf16 %v2031_v20, %v2032_v51  ;;  %v2336_v9 = vpack.c.bf16 %v2029_v36, %v2030_v52  ;;  %v1601_v30 = vrot.slane %v4911_v33, 7  ;;  %v1652_v4 = vsel %vm1626_vm6, %v1599_v34, %v1600_v6 }
  0xd6   : > { %v2329_v25 = vpack.c.bf16 %v5011_v5, %v4989_v46  ;;  %v1602_v1 = vrot.slane %v4989_v46, 7  ;;  %v1603_v27 = vrot.slane %v5011_v5, 7  ;;  %v5628_v33 = vpack.c.bf16 %v4876_v2, %v4903_v38 }
  0xd7   : > { %v1651_v13 = vsel %vm1626_vm6, %v1600_v6, %v1601_v30  ;;  %v5629_v43 = vpack.c.bf16 %v4886_v0, %v4894_v22  ;;  %v2332_v46 = vpack.c.bf16 %v5089_v47, %v5041_v19  ;;  %v1604_v5 = vrot.slane %v5041_v19, 7 }
  0xd8   : > { %v2325_v29 = vpack.c.bf16 %v1651_v13, %v1652_v4  ;;  %v1649_v8 = vsel %vm1626_vm6, %v1602_v1, %v1603_v27  ;;  %v1650_v10 = vsel %vm1626_vm6, %v1601_v30, %v1602_v1  ;;  %v1605_v2 = vrot.slane %v5089_v47, 7 }
  0xd9   : > { %v2328_v11 = vpack.c.bf16 %v1649_v8, %v1650_v10  ;;  %v5630_v38 = vpack.c.bf16 %v4928_v39, %v4936_v44  ;;  %v5631_v0 = vpack.c.bf16 %v4944_v49, %v4958_v3  ;;  %v1648_v17 = vsel %vm1626_vm6, %v1603_v27, %v1604_v5 }
  0xda   : > { %2740 = vmatmul.mubr.bf16.gmra.mrb[72].mxu0 %v2322_v35  ;;  %v1647_v22 = vsel %vm1626_vm6, %v1604_v5, %v1605_v2  ;;  %v2335_v19 = vpack.c.bf16 %v5093_v7, %v5091_v56  ;;  %v1606_v47 = vrot.slane %v5091_v56, 7  ;;  %v1607_v39 = vrot.slane %v5093_v7, 7 }
  0xdb   : > { %3653 = vmatmul.mubr.bf16.gmra.mrb[72].mxu1 %v2333_v21  ;;  %2747 = vmatprep.mubr.bf16.mxu0 %v2326_v28  ;;  %v2331_v31 = vpack.c.bf16 %v1647_v22, %v1648_v17  ;;  %v729_v3 = vadd.s32 504, %v3915_v50  ;;  %v1608_v7 = vrot.slane %v4860_v54, 7  ;;  %v2338_v40 = vpack.c.bf16 %v3934_v63, %v4860_v54 }
  0xdc   : > { %3656 = vmatprep.mubr.bf16.mxu1 %v2336_v9  ;;  %v1645_v49 = vsel %vm1626_vm6, %v1606_v47, %v1607_v39  ;;  %v1646_v44 = vsel %vm1626_vm6, %v1605_v2, %v1606_v47  ;;  %v2010_v62 = vrot.slane %v3918_v53, 1  ;;  %v5632_v15 = vrot.slane %v3934_v63, 7 }
  0xdd   : > { %v2334_v56 = vpack.c.bf16 %v1645_v49, %v1646_v44  ;;  %v1644_v54 = vsel %vm1626_vm6, %v1607_v39, %v1608_v7 }
  0xde   : > { %v1643_v45 = vsel %vm1626_vm6, %v1608_v7, %v5632_v15  ;;  %v2012_v53 = vsel %vm2011_vm7, %v2009_v24, %v2010_v62  ;;  %vm3407_vm6 = vcmask 1040384  }
  0xdf   : > { %v2337_v58 = vpack.c.bf16 %v1643_v45, %v1644_v54 }
  0xe2   : > { %2748 = vmatmul.mubr.bf16.gmra.mrb[76].mxu0 %v2325_v29 }
  0xe3   : > { %3657 = vmatmul.mubr.bf16.gmra.mrb[76].mxu1 %v5628_v33  ;;  %2755 = vmatprep.mubr.bf16.mxu0 %v2329_v25 }
  0xe4   : > { %3660 = vmatprep.mubr.bf16.mxu1 %v5629_v43 }
  0xea   : > { %2756 = vmatmul.mubr.bf16.gmra.mrb[80].mxu0 %v2328_v11 }
  0xeb   : > { %3661 = vmatmul.mubr.bf16.gmra.mrb[80].mxu1 %v5630_v38  ;;  %2763 = vmatprep.mubr.bf16.mxu0 %v2332_v46 }
  0xec   : > { %3664 = vmatprep.mubr.bf16.mxu1 %v5631_v0 }
  0xf2   : > { %2764 = vmatmul.mubr.bf16.gmra.mrb[84].mxu0 %v2331_v31 }
  0xf3   : > { %3665 = vmatmul.mubr.bf16.gmra.mrb[84].mxu1 %v2351_v12  ;;  %2771 = vmatprep.mubr.bf16.mxu0 %v2335_v19  ;;  %v1175_v12 = vand.u32 255, %v729_v3 }
  0xf4   : > { %3668 = vmatprep.mubr.bf16.mxu1 %v2354_v57  ;;  %v5633_v57 = vrot.slane %v3867_v26, 1 }
  0xf5   : > { %vm3555_vm3 = vcmp.ne.s32.totalorder %v1175_v12, 255 }
  0xf6   : > { %v2075_v63 = vsel %vm2011_vm7, %v2010_v62, %v5633_v57  ;;  %vm3547_vm4 = vmpackc.low %vm3555_vm3, %vm3753_vm0 }
  0xf7   : > { %v3548_v48 = vpack.c.bf16 %v2075_v63, %v2012_v53 }
  0xfa   : > { %2772 = vmatmul.mubr.bf16.gmra.mrb[88].mxu0 %v2334_v56 }
  0xfb   : > { %3669 = vmatmul.mubr.bf16.gmra.mrb[88].mxu1 %v2357_v32  ;;  %2779 = vmatprep.mubr.bf16.mxu0 %v2338_v40 }
  0xfc   : > { %3672 = vmatprep.mubr.bf16.mxu1 %v2360_v23 }
 0x102   : > { %2780 = vmatmul.mubr.bf16.gmra.mrb[92].mxu0 %v2337_v58 }
 0x103   : > { %3673 = vmatmul.mubr.msk.bf16.gmra.mrb[92].mxu1 %vm3547_vm4, %v3548_v48 }
 0x119   : > { %v5192_v59 = vpop.f32.mrb[0].mxu0  ;;  %v5194_v32 = vpop.f32.mrb[0].mxu1 }
 0x11a   : > { %v2599_v60 = vpop.f32.mrb[1].mxu0  ;;  %v2791_v18 = vpop.f32.mrb[1].mxu1 }
 0x11b   : > { %v5196_v23 = vpop.f32.mrb[2].mxu0  ;;  %v5198_v24 = vpop.f32.mrb[2].mxu1  ;;  %v5255_v60 = vld [vmem:[%s5548_s4] ss:$0 sm:$0xff] }
 0x11c   : > { %v2602_v26 = vpop.f32.mrb[3].mxu0  ;;  %v2794_v50 = vpop.f32.mrb[3].mxu1 }
 0x11d   : > { %v2598_v26 = vadd.f32 %v5255_v60, %v5192_v59  ;;  %v2601_v59 = vadd.f32 %v5255_v60, %v5196_v23 }
 0x121   : > { %v2605_v37 = vpop.f32.mrb[4].mxu0  ;;  %v5200_v34 = vpop.f32.mrb[4].mxu1 }
 0x122   : > { %v2607_v16 = vpop.f32.mrb[5].mxu0  ;;  %v2799_v42 = vpop.f32.mrb[5].mxu1  ;;  %v2606_v18 = vadd.f32 %v5255_v60, %v2605_v37 }
 0x123   : > { %v2608_v61 = vpop.f32.mrb[6].mxu0  ;;  %v5202_v55 = vpop.f32.mrb[6].mxu1 }
 0x124   : > { %v2610_v41 = vpop.f32.mrb[7].mxu0  ;;  %v2802_v20 = vpop.f32.mrb[7].mxu1  ;;  %v2609_v42 = vadd.f32 %v5255_v60, %v2608_v61 }
 0x129   : > { %v5204_v51 = vpop.f32.mrb[8].mxu0  ;;  %v5206_v14 = vpop.f32.mrb[8].mxu1 }
 0x12a   : > { %v2615_v36 = vpop.f32.mrb[9].mxu0  ;;  %v2807_v52 = vpop.f32.mrb[9].mxu1  ;;  %v2614_v23 = vadd.f32 %v5255_v60, %v5204_v51 }
 0x12b   : > { %v5208_v35 = vpop.f32.mrb[10].mxu0  ;;  %v5210_v21 = vpop.f32.mrb[10].mxu1 }
 0x12c   : > { %v2618_v28 = vpop.f32.mrb[11].mxu0  ;;  %v2810_v9 = vpop.f32.mrb[11].mxu1 }
 0x131   : > { %v5212_v6 = vpop.f32.mrb[12].mxu0  ;;  %v5214_v30 = vpop.f32.mrb[12].mxu1 }
 0x132   : > { %v2623_v13 = vpop.f32.mrb[13].mxu0  ;;  %v2815_v4 = vpop.f32.mrb[13].mxu1 }
 0x133   : > { %v5216_v29 = vpop.f32.mrb[14].mxu0  ;;  %v5218_v25 = vpop.f32.mrb[14].mxu1 }
 0x134   : > { %v2626_v1 = vpop.f32.mrb[15].mxu0  ;;  %v2818_v27 = vpop.f32.mrb[15].mxu1 }
 0x139   : > { %v5220_v33 = vpop.f32.mrb[16].mxu0  ;;  %v5222_v43 = vpop.f32.mrb[16].mxu1 }
 0x13a   : > { %v2631_v8 = vpop.f32.mrb[17].mxu0  ;;  %v2823_v10 = vpop.f32.mrb[17].mxu1 }
 0x13b   : > { %v5224_v11 = vpop.f32.mrb[18].mxu0  ;;  %v5226_v46 = vpop.f32.mrb[18].mxu1  ;;  %v2622_v10 = vadd.f32 %v5255_v60, %v5212_v6 }
 0x13c   : > { %v2634_v5 = vpop.f32.mrb[19].mxu0  ;;  %v2826_v2 = vpop.f32.mrb[19].mxu1 }
 0x141   : > { %v5228_v38 = vpop.f32.mrb[20].mxu0  ;;  %v5230_v0 = vpop.f32.mrb[20].mxu1 }
 0x142   : > { %v2639_v22 = vpop.f32.mrb[21].mxu0  ;;  %v2831_v17 = vpop.f32.mrb[21].mxu1 }
 0x143   : > { %v5232_v31 = vpop.f32.mrb[22].mxu0  ;;  %v5234_v19 = vpop.f32.mrb[22].mxu1 }
 0x144   : > { %v2642_v47 = vpop.f32.mrb[23].mxu0  ;;  %v2834_v39 = vpop.f32.mrb[23].mxu1 }
 0x145   : > { %v2617_v39 = vadd.f32 %v5255_v60, %v5208_v35 }
 0x149   : > { %v5236_v49 = vpop.f32.mrb[24].mxu0  ;;  %v5238_v44 = vpop.f32.mrb[24].mxu1 }
 0x14a   : > { %v2647_v3 = vpop.f32.mrb[25].mxu0  ;;  %v2839_v56 = vpop.f32.mrb[25].mxu1 }
 0x14b   : > { %v5240_v7 = vpop.f32.mrb[26].mxu0  ;;  %v5242_v40 = vpop.f32.mrb[26].mxu1  ;;  %v2625_v3 = vadd.f32 %v5255_v60, %v5216_v29 }
 0x14c   : > { %v2650_v62 = vpop.f32.mrb[27].mxu0  ;;  %v2842_v12 = vpop.f32.mrb[27].mxu1 }
 0x151   : > { %v5244_v15 = vpop.f32.mrb[28].mxu0  ;;  %v5246_v45 = vpop.f32.mrb[28].mxu1 }
 0x152   : > { %v2655_v54 = vpop.f32.mrb[29].mxu0  ;;  %v2847_v53 = vpop.f32.mrb[29].mxu1 }
 0x153   : > { %v5248_v57 = vpop.f32.mrb[30].mxu0  ;;  %v5250_v63 = vpop.f32.mrb[30].mxu1 }
 0x154   : > { %v2658_v58 = vpop.f32.mrb[31].mxu0  ;;  %v2850_v48 = vpop.f32.mrb[31].mxu1 }
 0x159   : > { %v5260_v50 = vpop.f32.mrb[32].mxu0  ;;  %v3614_v16 = vpop.f32.mrb[32].mxu1 }
 0x15a   : > { %v2895_v41 = vadd.f32 %v3614_v16, %v2606_v18  ;;  %v2663_v37 = vpop.f32.mrb[33].mxu0  ;;  %v2886_v20 = vpop.f32.mrb[33].mxu1 }
 0x15b   : > { %v2887_v36 = vadd.f32 %v2886_v20, %v2598_v26  ;;  %v5272_v52 = vpop.f32.mrb[34].mxu0  ;;  %v3615_v28 = vpop.f32.mrb[34].mxu1 }
 0x15c   : > { %3143 = vst [vmem:[%s5267_s28 + $0x10] sm:$0xff] %v2895_v41  ;;  %v2898_v9 = vadd.f32 %v3615_v28, %v2609_v42  ;;  %v2666_v13 = vpop.f32.mrb[35].mxu0  ;;  %v2889_v4 = vpop.f32.mrb[35].mxu1  ;;  %v3276_v5 = vmul.f32 %v2895_v41, %v2895_v41  ;;  %v2630_v28 = vadd.f32 %v5255_v60, %v5220_v33 }
 0x15d   : > { %3141 = vst [vmem:[%s5267_s28] sm:$0xff] %v2887_v36  ;;  %v2890_v1 = vadd.f32 %v2889_v4, %v2601_v59  ;;  %v3274_v27 = vmul.f32 %v2887_v36, %v2887_v36 }
 0x15e   : > { %3144 = vst [vmem:[%s5267_s28 + $0x18] sm:$0xff] %v2898_v9  ;;  %v3277_v12 = vmul.f32 %v2898_v9, %v2898_v9 }
 0x15f   : > { %3142 = vst [vmem:[%s5267_s28 + $0x8] sm:$0xff] %v2890_v1  ;;  %v3205_v61 = vadd.f32 %v2890_v1, %v2887_v36  ;;  %v3275_v8 = vmul.f32 %v2890_v1, %v2890_v1  ;;  %v2638_v36 = vadd.f32 %v5255_v60, %v5228_v38 }
 0x161   : > { %v3206_v2 = vadd.f32 %v3205_v61, %v2895_v41  ;;  %v3338_v22 = vadd.f32 %v3275_v8, %v3274_v27  ;;  %v5282_v17 = vpop.f32.mrb[36].mxu0  ;;  %v3618_v47 = vpop.f32.mrb[36].mxu1  ;;  %v2633_v61 = vadd.f32 %v5255_v60, %v5224_v11  ;;  %v2641_v8 = vadd.f32 %v5255_v60, %v5232_v31 }
 0x162   : > { %v2911_v56 = vadd.f32 %v3618_v47, %v2622_v10  ;;  %v2671_v62 = vpop.f32.mrb[37].mxu0  ;;  %v2902_v6 = vpop.f32.mrb[37].mxu1 }
 0x163   : > { %v3339_v51 = vadd.f32 %v3338_v22, %v3276_v5  ;;  %v2903_v54 = vadd.f32 %v2902_v6, %v2614_v23  ;;  %v3207_v53 = vadd.f32 %v3206_v2, %v2898_v9  ;;  %v5288_v58 = vpop.f32.mrb[38].mxu0  ;;  %v3619_v48 = vpop.f32.mrb[38].mxu1 }
 0x164   : > { %3147 = vst [vmem:[%s5267_s28 + $0x30] sm:$0xff] %v2911_v56  ;;  %v2914_v18 = vadd.f32 %v3619_v48, %v2625_v3  ;;  %v2674_v26 = vpop.f32.mrb[39].mxu0  ;;  %v2905_v16 = vpop.f32.mrb[39].mxu1  ;;  %v3280_v9 = vmul.f32 %v2911_v56, %v2911_v56  ;;  %v2654_v48 = vadd.f32 %v5255_v60, %v5244_v15 }
 0x165   : > { %3145 = vst [vmem:[%s5267_s28 + $0x20] sm:$0xff] %v2903_v54  ;;  %v3208_v35 = vadd.f32 %v3207_v53, %v2903_v54  ;;  %v3278_v42 = vmul.f32 %v2903_v54, %v2903_v54  ;;  %v3340_v29 = vadd.f32 %v3339_v51, %v3277_v12  ;;  %v2906_v41 = vadd.f32 %v2905_v16, %v2617_v39 }
 0x166   : > { %3148 = vst [vmem:[%s5267_s28 + $0x38] sm:$0xff] %v2914_v18  ;;  %v3281_v5 = vmul.f32 %v2914_v18, %v2914_v18 }
 0x167   : > { %v3341_v37 = vadd.f32 %v3340_v29, %v3278_v42  ;;  %3146 = vst [vmem:[%s5267_s28 + $0x28] sm:$0xff] %v2906_v41  ;;  %v3209_v20 = vadd.f32 %v3208_v35, %v2906_v41  ;;  %v3279_v59 = vmul.f32 %v2906_v41, %v2906_v41  ;;  %v2649_v41 = vadd.f32 %v5255_v60, %v5240_v7 }
 0x169   : > { %v3210_v13 = vadd.f32 %v3209_v20, %v2911_v56  ;;  %v3342_v4 = vadd.f32 %v3341_v37, %v3279_v59  ;;  %v5298_v1 = vpop.f32.mrb[40].mxu0  ;;  %v3622_v27 = vpop.f32.mrb[40].mxu1  ;;  %v2657_v37 = vadd.f32 %v5255_v60, %v5248_v57 }
 0x16a   : > { %v2927_v10 = vadd.f32 %v3622_v27, %v2638_v36  ;;  %v2679_v23 = vpop.f32.mrb[41].mxu0  ;;  %v2918_v38 = vpop.f32.mrb[41].mxu1 }
 0x16b   : > { %v3343_v33 = vadd.f32 %v3342_v4, %v3280_v9  ;;  %v2919_v2 = vadd.f32 %v2918_v38, %v2630_v28  ;;  %v3211_v22 = vadd.f32 %v3210_v13, %v2914_v18  ;;  %v5304_v47 = vpop.f32.mrb[42].mxu0  ;;  %v3623_v39 = vpop.f32.mrb[42].mxu1  ;;  %v2646_v18 = vadd.f32 %v5255_v60, %v5236_v49 }
 0x16c   : > { %3151 = vst [vmem:[%s5267_s28 + $0x50] sm:$0xff] %v2927_v10  ;;  %v2930_v3 = vadd.f32 %v3623_v39, %v2641_v8  ;;  %v2682_v56 = vpop.f32.mrb[43].mxu0  ;;  %v2921_v62 = vpop.f32.mrb[43].mxu1  ;;  %v3284_v26 = vmul.f32 %v2927_v10, %v2927_v10 }
 0x16d   : > { %3149 = vst [vmem:[%s5267_s28 + $0x40] sm:$0xff] %v2919_v2  ;;  %v3212_v11 = vadd.f32 %v3211_v22, %v2919_v2  ;;  %v3282_v6 = vmul.f32 %v2919_v2, %v2919_v2  ;;  %v3344_v31 = vadd.f32 %v3343_v33, %v3281_v5  ;;  %v2922_v12 = vadd.f32 %v2921_v62, %v2633_v61 }
 0x16e   : > { %3152 = vst [vmem:[%s5267_s28 + $0x58] sm:$0xff] %v2930_v3  ;;  %v3285_v15 = vmul.f32 %v2930_v3, %v2930_v3  ;;  %v2670_v2 = vadd.f32 %v5255_v60, %v5282_v17  ;;  %v2662_v22 = vadd.f32 %v5255_v60, %v5260_v50 }
 0x16f   : > { %v3345_v51 = vadd.f32 %v3344_v31, %v3282_v6  ;;  %3150 = vst [vmem:[%s5267_s28 + $0x48] sm:$0xff] %v2922_v12  ;;  %v3213_v54 = vadd.f32 %v3212_v11, %v2922_v12  ;;  %v3283_v53 = vmul.f32 %v2922_v12, %v2922_v12  ;;  %v2665_v6 = vadd.f32 %v5255_v60, %v5272_v52 }
 0x170   : > { %v2673_v31 = vadd.f32 %v5255_v60, %v5288_v58 }
 0x171   : > { %v3214_v16 = vadd.f32 %v3213_v54, %v2927_v10  ;;  %v3346_v35 = vadd.f32 %v3345_v51, %v3283_v53  ;;  %v2685_v42 = vpop.f32.mrb[44].mxu0  ;;  %v3626_v29 = vpop.f32.mrb[44].mxu1 }
 0x172   : > { %v2943_v20 = vadd.f32 %v3626_v29, %v2654_v48  ;;  %v2687_v59 = vpop.f32.mrb[45].mxu0  ;;  %v2934_v36 = vpop.f32.mrb[45].mxu1 }
 0x173   : > { %v3347_v28 = vadd.f32 %v3346_v35, %v3284_v26  ;;  %v2935_v49 = vadd.f32 %v2934_v36, %v2646_v18  ;;  %v3215_v9 = vadd.f32 %v3214_v16, %v2930_v3  ;;  %v2688_v13 = vpop.f32.mrb[46].mxu0  ;;  %v3627_v4 = vpop.f32.mrb[46].mxu1 }
 0x174   : > { %3155 = vst [vmem:[%s5267_s28 + $0x70] sm:$0xff] %v2943_v20  ;;  %v2946_v27 = vadd.f32 %v3627_v4, %v2657_v37  ;;  %v2690_v61 = vpop.f32.mrb[47].mxu0  ;;  %v2937_v8 = vpop.f32.mrb[47].mxu1  ;;  %v3288_v39 = vmul.f32 %v2943_v20, %v2943_v20 }
 0x175   : > { %3153 = vst [vmem:[%s5267_s28 + $0x60] sm:$0xff] %v2935_v49  ;;  %v3216_v7 = vadd.f32 %v3215_v9, %v2935_v49  ;;  %v3286_v10 = vmul.f32 %v2935_v49, %v2935_v49  ;;  %v3348_v23 = vadd.f32 %v3347_v28, %v3285_v15  ;;  %v2938_v57 = vadd.f32 %v2937_v8, %v2649_v41 }
 0x176   : > { %3156 = vst [vmem:[%s5267_s28 + $0x78] sm:$0xff] %v2946_v27  ;;  %v3289_v17 = vmul.f32 %v2946_v27, %v2946_v27  ;;  %v2686_v15 = vadd.f32 %v5255_v60, %v2685_v42  ;;  %v2678_v28 = vadd.f32 %v5255_v60, %v5298_v1  ;;  %v2681_v8 = vadd.f32 %v5255_v60, %v5304_v47 }
 0x177   : > { %v3349_v38 = vadd.f32 %v3348_v23, %v3286_v10  ;;  %3154 = vst [vmem:[%s5267_s28 + $0x68] sm:$0xff] %v2938_v57  ;;  %v3217_v5 = vadd.f32 %v3216_v7, %v2938_v57  ;;  %v3287_v33 = vmul.f32 %v2938_v57, %v2938_v57  ;;  %v2689_v7 = vadd.f32 %v5255_v60, %v2688_v13 }
 0x179   : > { %v3218_v3 = vadd.f32 %v3217_v5, %v2943_v20  ;;  %v3350_v56 = vadd.f32 %v3349_v38, %v3287_v33  ;;  %v2693_v62 = vpop.f32.mrb[48].mxu0  ;;  %v3630_v11 = vpop.f32.mrb[48].mxu1 }
 0x17a   : > { %v2959_v12 = vadd.f32 %v3630_v11, %v2670_v2  ;;  %v2695_v51 = vpop.f32.mrb[49].mxu0  ;;  %v2950_v54 = vpop.f32.mrb[49].mxu1 }
 0x17b   : > { %v3351_v53 = vadd.f32 %v3350_v56, %v3288_v39  ;;  %v2951_v50 = vadd.f32 %v2950_v54, %v2662_v22  ;;  %v3219_v48 = vadd.f32 %v3218_v3, %v2946_v27  ;;  %v2696_v18 = vpop.f32.mrb[50].mxu0  ;;  %v3631_v26 = vpop.f32.mrb[50].mxu1  ;;  %v2694_v54 = vadd.f32 %v5255_v60, %v2693_v62 }
 0x17c   : > { %3159 = vst [vmem:[%s5267_s28 + $0x90] sm:$0xff] %v2959_v12  ;;  %v2962_v16 = vadd.f32 %v3631_v26, %v2673_v31  ;;  %v2698_v35 = vpop.f32.mrb[51].mxu0  ;;  %v2953_v29 = vpop.f32.mrb[51].mxu1  ;;  %v3292_v49 = vmul.f32 %v2959_v12, %v2959_v12 }
 0x17d   : > { %3157 = vst [vmem:[%s5267_s28 + $0x80] sm:$0xff] %v2951_v50  ;;  %v3220_v52 = vadd.f32 %v3219_v48, %v2951_v50  ;;  %v3290_v41 = vmul.f32 %v2951_v50, %v2951_v50  ;;  %v3352_v37 = vadd.f32 %v3351_v53, %v3289_v17  ;;  %v2954_v58 = vadd.f32 %v2953_v29, %v2665_v6 }
 0x17e   : > { %3160 = vst [vmem:[%s5267_s28 + $0x98] sm:$0xff] %v2962_v16  ;;  %v3293_v42 = vmul.f32 %v2962_v16, %v2962_v16 }
 0x17f   : > { %v3353_v20 = vadd.f32 %v3352_v37, %v3290_v41  ;;  %3158 = vst [vmem:[%s5267_s28 + $0x88] sm:$0xff] %v2954_v58  ;;  %v3221_v59 = vadd.f32 %v3220_v52, %v2954_v58  ;;  %v3291_v36 = vmul.f32 %v2954_v58, %v2954_v58 }
 0x181   : > { %v3222_v9 = vadd.f32 %v3221_v59, %v2959_v12  ;;  %v3354_v4 = vadd.f32 %v3353_v20, %v3291_v36  ;;  %v2701_v27 = vpop.f32.mrb[52].mxu0  ;;  %v3634_v61 = vpop.f32.mrb[52].mxu1 }
 0x182   : > { %v2975_v10 = vadd.f32 %v3634_v61, %v2686_v15  ;;  %v2703_v23 = vpop.f32.mrb[53].mxu0  ;;  %v2966_v57 = vpop.f32.mrb[53].mxu1  ;;  %v2702_v51 = vadd.f32 %v5255_v60, %v2701_v27 }
 0x183   : > { %v3355_v38 = vadd.f32 %v3354_v4, %v3292_v49  ;;  %v2967_v1 = vadd.f32 %v2966_v57, %v2678_v28  ;;  %v3223_v5 = vadd.f32 %v3222_v9, %v2962_v16  ;;  %v2704_v33 = vpop.f32.mrb[54].mxu0  ;;  %v3635_v2 = vpop.f32.mrb[54].mxu1  ;;  %v2697_v16 = vadd.f32 %v5255_v60, %v2696_v18 }
 0x184   : > { %3163 = vst [vmem:[%s5267_s28 + $0xb0] sm:$0xff] %v2975_v10  ;;  %v2978_v22 = vadd.f32 %v3635_v2, %v2689_v7  ;;  %v2706_v39 = vpop.f32.mrb[55].mxu0  ;;  %v2969_v3 = vpop.f32.mrb[55].mxu1  ;;  %v3296_v17 = vmul.f32 %v2975_v10, %v2975_v10  ;;  %v2705_v35 = vadd.f32 %v5255_v60, %v2704_v33 }
 0x185   : > { %3161 = vst [vmem:[%s5267_s28 + $0xa0] sm:$0xff] %v2967_v1  ;;  %v3224_v56 = vadd.f32 %v3223_v5, %v2967_v1  ;;  %v3294_v47 = vmul.f32 %v2967_v1, %v2967_v1  ;;  %v3356_v11 = vadd.f32 %v3355_v38, %v3293_v42  ;;  %v2970_v13 = vadd.f32 %v2969_v3, %v2681_v8 }
 0x186   : > { %3164 = vst [vmem:[%s5267_s28 + $0xb8] sm:$0xff] %v2978_v22  ;;  %v3297_v37 = vmul.f32 %v2978_v22, %v2978_v22 }
 0x187   : > { %v3357_v6 = vadd.f32 %v3356_v11, %v3294_v47  ;;  %3162 = vst [vmem:[%s5267_s28 + $0xa8] sm:$0xff] %v2970_v13  ;;  %v3225_v31 = vadd.f32 %v3224_v56, %v2970_v13  ;;  %v3295_v12 = vmul.f32 %v2970_v13, %v2970_v13 }
 0x189   : > { %v3226_v53 = vadd.f32 %v3225_v31, %v2975_v10  ;;  %v3358_v50 = vadd.f32 %v3357_v6, %v3295_v12 }
 0x18b   : > { %v2709_v48 = vpop.f32.mrb[56].mxu0  ;;  %v3638_v26 = vpop.f32.mrb[56].mxu1  ;;  %v3359_v58 = vadd.f32 %v3358_v50, %v3296_v17  ;;  %v3227_v62 = vadd.f32 %v3226_v53, %v2978_v22 }
 0x18c   : > { %v2991_v29 = vadd.f32 %v3638_v26, %v2702_v51  ;;  %v2711_v52 = vpop.f32.mrb[57].mxu0  ;;  %v2982_v41 = vpop.f32.mrb[57].mxu1  ;;  %v2710_v10 = vadd.f32 %v5255_v60, %v2709_v48 }
 0x18d   : > { %v2983_v20 = vadd.f32 %v2982_v41, %v2694_v54  ;;  %v2712_v59 = vpop.f32.mrb[58].mxu0  ;;  %v3639_v36 = vpop.f32.mrb[58].mxu1  ;;  %v3360_v4 = vadd.f32 %v3359_v58, %v3297_v37 }
 0x18e   : > { %3167 = vst [vmem:[%s5267_s28 + $0xd0] sm:$0xff] %v2991_v29  ;;  %v2994_v15 = vadd.f32 %v3639_v36, %v2705_v35  ;;  %v2714_v28 = vpop.f32.mrb[59].mxu0  ;;  %v2985_v49 = vpop.f32.mrb[59].mxu1  ;;  %v3300_v23 = vmul.f32 %v2991_v29, %v2991_v29  ;;  %v2713_v5 = vadd.f32 %v5255_v60, %v2712_v59 }
 0x18f   : > { %3165 = vst [vmem:[%s5267_s28 + $0xc0] sm:$0xff] %v2983_v20  ;;  %v3228_v9 = vadd.f32 %v3227_v62, %v2983_v20  ;;  %v3298_v18 = vmul.f32 %v2983_v20, %v2983_v20  ;;  %v2986_v27 = vadd.f32 %v2985_v49, %v2697_v16 }
 0x190   : > { %3168 = vst [vmem:[%s5267_s28 + $0xd8] sm:$0xff] %v2994_v15  ;;  %v3301_v39 = vmul.f32 %v2994_v15, %v2994_v15 }
 0x191   : > { %v3361_v61 = vadd.f32 %v3360_v4, %v3298_v18  ;;  %3166 = vst [vmem:[%s5267_s28 + $0xc8] sm:$0xff] %v2986_v27  ;;  %v3229_v8 = vadd.f32 %v3228_v9, %v2986_v27  ;;  %v3299_v7 = vmul.f32 %v2986_v27, %v2986_v27 }
 0x193   : > { %v3230_v57 = vadd.f32 %v3229_v8, %v2991_v29  ;;  %v3362_v42 = vadd.f32 %v3361_v61, %v3299_v7  ;;  %v2717_v38 = vpop.f32.mrb[60].mxu0  ;;  %v3642_v1 = vpop.f32.mrb[60].mxu1 }
 0x194   : > { %v2718_v33 = vadd.f32 %v5255_v60, %v2717_v38  ;;  %v2719_v2 = vpop.f32.mrb[61].mxu0  ;;  %v2998_v22 = vpop.f32.mrb[61].mxu1 }
 0x195   : > { %v3363_v3 = vadd.f32 %v3362_v42, %v3300_v23  ;;  %v2999_v56 = vadd.f32 %v2998_v22, %v2710_v10  ;;  %v3231_v47 = vadd.f32 %v3230_v57, %v2994_v15  ;;  %v2720_v11 = vpop.f32.mrb[62].mxu0  ;;  %v3643_v13 = vpop.f32.mrb[62].mxu1 }
 0x196   : > { %v3007_v6 = vadd.f32 %v3642_v1, %v2718_v33  ;;  %v2721_v31 = vadd.f32 %v5255_v60, %v2720_v11  ;;  %v2722_v12 = vpop.f32.mrb[63].mxu0  ;;  %v3001_v51 = vpop.f32.mrb[63].mxu1 }
 0x197   : > { %3169 = vst [vmem:[%s5267_s28 + $0xe0] sm:$0xff] %v2999_v56  ;;  %v3232_v54 = vadd.f32 %v3231_v47, %v2999_v56  ;;  %v3302_v17 = vmul.f32 %v2999_v56, %v2999_v56  ;;  %v3364_v53 = vadd.f32 %v3363_v3, %v3301_v39  ;;  %v3002_v50 = vadd.f32 %v3001_v51, %v2713_v5 }
 0x198   : > { %3171 = vst [vmem:[%s5267_s28 + $0xf0] sm:$0xff] %v3007_v6  ;;  %v3010_v48 = vadd.f32 %v3643_v13, %v2721_v31  ;;  %v3304_v29 = vmul.f32 %v3007_v6, %v3007_v6 }
 0x199   : > { %v3365_v26 = vadd.f32 %v3364_v53, %v3302_v17  ;;  %3170 = vst [vmem:[%s5267_s28 + $0xe8] sm:$0xff] %v3002_v50  ;;  %v3233_v16 = vadd.f32 %v3232_v54, %v3002_v50  ;;  %v3303_v35 = vmul.f32 %v3002_v50, %v3002_v50 }
 0x19a   : > { %3172 = vst [vmem:[%s5267_s28 + $0xf8] sm:$0xff] %v3010_v48  ;;  %v3305_v36 = vmul.f32 %v3010_v48, %v3010_v48 }
 0x19b   : > { %v3234_v52 = vadd.f32 %v3233_v16, %v3007_v6  ;;  %v3366_v41 = vadd.f32 %v3365_v26, %v3303_v35  ;;  %v2725_v37 = vpop.f32.mrb[64].mxu0 }
 0x19c   : > { %v2726_v20 = vadd.f32 %v5255_v60, %v2725_v37  ;;  %v2727_v62 = vpop.f32.mrb[65].mxu0 }
 0x19d   : > { %v3367_v15 = vadd.f32 %v3366_v41, %v3304_v29  ;;  %v2728_v28 = vpop.f32.mrb[66].mxu0  ;;  %v3235_v49 = vadd.f32 %v3234_v52, %v3010_v48 }
 0x19e   : > { %v3646_v58 = vpop.f32.mrb[64].mxu1  ;;  %v2729_v18 = vadd.f32 %v5255_v60, %v2728_v28  ;;  %v2730_v27 = vpop.f32.mrb[67].mxu0 }
 0x19f   : > { %v3014_v59 = vpop.f32.mrb[65].mxu1  ;;  %v3368_v8 = vadd.f32 %v3367_v15, %v3305_v36 }
 0x1a0   : > { %v3647_v9 = vpop.f32.mrb[66].mxu1  ;;  %v3015_v4 = vadd.f32 %v3014_v59, %v2726_v20 }
 0x1a1   : > { %v3017_v61 = vpop.f32.mrb[67].mxu1 }
 0x1a2   : > { %3173 = vst [vmem:[%s5267_s28 + $0x100] sm:$0xff] %v3015_v4  ;;  %v3236_v7 = vadd.f32 %v3235_v49, %v3015_v4  ;;  %v3306_v10 = vmul.f32 %v3015_v4, %v3015_v4  ;;  %v3018_v23 = vadd.f32 %v3017_v61, %v2729_v18 }
 0x1a4   : > { %v3369_v57 = vadd.f32 %v3368_v8, %v3306_v10  ;;  %3174 = vst [vmem:[%s5267_s28 + $0x108] sm:$0xff] %v3018_v23  ;;  %v3237_v42 = vadd.f32 %v3236_v7, %v3018_v23  ;;  %v3307_v38 = vmul.f32 %v3018_v23, %v3018_v23 }
 0x1a5   : > { %v2733_v1 = vpop.f32.mrb[68].mxu0 }
 0x1a6   : > { %v3650_v5 = vpop.f32.mrb[68].mxu1  ;;  %v3370_v33 = vadd.f32 %v3369_v57, %v3307_v38  ;;  %v2734_v2 = vadd.f32 %v5255_v60, %v2733_v1  ;;  %v2735_v22 = vpop.f32.mrb[69].mxu0 }
 0x1a7   : > { %v3030_v39 = vpop.f32.mrb[69].mxu1  ;;  %v2736_v3 = vpop.f32.mrb[70].mxu0 }
 0x1a8   : > { %v3651_v56 = vpop.f32.mrb[70].mxu1  ;;  %v3023_v47 = vadd.f32 %v3646_v58, %v2734_v2  ;;  %v2737_v11 = vadd.f32 %v5255_v60, %v2736_v3  ;;  %v2738_v13 = vpop.f32.mrb[71].mxu0 }
 0x1a9   : > { %v3033_v6 = vpop.f32.mrb[71].mxu1 }
 0x1aa   : > { %3175 = vst [vmem:[%s5267_s28 + $0x110] sm:$0xff] %v3023_v47  ;;  %v3238_v31 = vadd.f32 %v3237_v42, %v3023_v47  ;;  %v3308_v12 = vmul.f32 %v3023_v47, %v3023_v47  ;;  %v3026_v51 = vadd.f32 %v3647_v9, %v2737_v11 }
 0x1ac   : > { %v3371_v54 = vadd.f32 %v3370_v33, %v3308_v12  ;;  %3176 = vst [vmem:[%s5267_s28 + $0x118] sm:$0xff] %v3026_v51  ;;  %v3309_v17 = vmul.f32 %v3026_v51, %v3026_v51  ;;  %v3239_v53 = vadd.f32 %v3238_v31, %v3026_v51  ;;  %v2801_v31 = vadd.f32 %v5255_v60, %v5202_v55 }
 0x1ad   : > { %v2741_v50 = vpop.f32.mrb[72].mxu0 }
 0x1ae   : > { %v5368_v48 = vpop.f32.mrb[72].mxu1  ;;  %v2742_v26 = vadd.f32 %v5255_v60, %v2741_v50  ;;  %v2743_v16 = vpop.f32.mrb[73].mxu0  ;;  %v3372_v35 = vadd.f32 %v3371_v54, %v3309_v17  ;;  %v2793_v17 = vadd.f32 %v5255_v60, %v5198_v24 }
 0x1af   : > { %v3046_v29 = vpop.f32.mrb[73].mxu1  ;;  %v2744_v52 = vpop.f32.mrb[74].mxu0 }
 0x1b0   : > { %v5371_v41 = vpop.f32.mrb[74].mxu1  ;;  %v2745_v37 = vadd.f32 %v5255_v60, %v2744_v52  ;;  %v3031_v58 = vadd.f32 %v3030_v39, %v2742_v26  ;;  %v2746_v20 = vpop.f32.mrb[75].mxu0  ;;  %v2798_v39 = vadd.f32 %v5255_v60, %v5200_v34 }
 0x1b1   : > { %v3049_v62 = vpop.f32.mrb[75].mxu1 }
 0x1b2   : > { %3177 = vst [vmem:[%s5267_s28 + $0x120] sm:$0xff] %v3031_v58  ;;  %v3240_v59 = vadd.f32 %v3239_v53, %v3031_v58  ;;  %v3310_v36 = vmul.f32 %v3031_v58, %v3031_v58  ;;  %v3034_v15 = vadd.f32 %v3033_v6, %v2745_v37 }
 0x1b4   : > { %v3373_v28 = vadd.f32 %v3372_v35, %v3310_v36  ;;  %3178 = vst [vmem:[%s5267_s28 + $0x128] sm:$0xff] %v3034_v15  ;;  %v3241_v49 = vadd.f32 %v3240_v59, %v3034_v15  ;;  %v3311_v9 = vmul.f32 %v3034_v15, %v3034_v15 }
 0x1b5   : > { %v2749_v18 = vpop.f32.mrb[76].mxu0 }
 0x1b6   : > { %v5376_v4 = vpop.f32.mrb[76].mxu1  ;;  %v3374_v27 = vadd.f32 %v3373_v28, %v3311_v9  ;;  %v2750_v61 = vadd.f32 %v5255_v60, %v2749_v18  ;;  %v2751_v8 = vpop.f32.mrb[77].mxu0  ;;  %v2806_v28 = vadd.f32 %v5255_v60, %v5206_v14 }
 0x1b7   : > { %v5379_v7 = vpop.f32.mrb[77].mxu1  ;;  %v2752_v10 = vpop.f32.mrb[78].mxu0 }
 0x1b8   : > { %v5381_v23 = vpop.f32.mrb[78].mxu1  ;;  %v3039_v57 = vadd.f32 %v3650_v5, %v2750_v61  ;;  %v2753_v42 = vadd.f32 %v5255_v60, %v2752_v10  ;;  %v2754_v38 = vpop.f32.mrb[79].mxu0  ;;  %v2790_v5 = vadd.f32 %v5255_v60, %v5194_v32  ;;  %v2809_v10 = vadd.f32 %v5255_v60, %v5210_v21 }
 0x1b9   : > { %v5384_v1 = vpop.f32.mrb[79].mxu1 }
 0x1ba   : > { %3179 = vst [vmem:[%s5267_s28 + $0x130] sm:$0xff] %v3039_v57  ;;  %v3242_v33 = vadd.f32 %v3241_v49, %v3039_v57  ;;  %v3312_v2 = vmul.f32 %v3039_v57, %v3039_v57  ;;  %v3042_v22 = vadd.f32 %v3651_v56, %v2753_v42 }
 0x1bc   : > { %v3375_v3 = vadd.f32 %v3374_v27, %v3312_v2  ;;  %3180 = vst [vmem:[%s5267_s28 + $0x138] sm:$0xff] %v3042_v22  ;;  %v3243_v47 = vadd.f32 %v3242_v33, %v3042_v22  ;;  %v3313_v11 = vmul.f32 %v3042_v22, %v3042_v22 }
 0x1bd   : > { %v2757_v13 = vpop.f32.mrb[80].mxu0 }
 0x1be   : > { %v3662_v6 = vpop.f32.mrb[80].mxu1  ;;  %v3376_v12 = vadd.f32 %v3375_v3, %v3313_v11  ;;  %v2758_v56 = vadd.f32 %v5255_v60, %v2757_v13  ;;  %v2759_v34 = vpop.f32.mrb[81].mxu0 }
 0x1bf   : > { %v5395_v51 = vadd.f32 %v3662_v6, %v2798_v39  ;;  %v3078_v54 = vpop.f32.mrb[81].mxu1  ;;  %v2760_v32 = vpop.f32.mrb[82].mxu0  ;;  %v2822_v6 = vadd.f32 %v5255_v60, %v5222_v43 }
 0x1c0   : > { %v5399_v53 = vadd.f32 %v3078_v54, %v2790_v5  ;;  %v3663_v50 = vpop.f32.mrb[82].mxu1  ;;  %v3047_v26 = vadd.f32 %v3046_v29, %v2758_v56  ;;  %v2761_v55 = vadd.f32 %v5255_v60, %v2760_v32  ;;  %v2762_v35 = vpop.f32.mrb[83].mxu0  ;;  %v2814_v29 = vadd.f32 %v5255_v60, %v5214_v30 }
 0x1c1   : > { %3191 = vst [vmem:[%s5267_s28 + $0x190] sm:$0xff] %v5395_v51  ;;  %v5404_v16 = vadd.f32 %v3663_v50, %v2801_v31  ;;  %v3081_v52 = vpop.f32.mrb[83].mxu1  ;;  %v2825_v32 = vadd.f32 %v5255_v60, %v5226_v46 }
 0x1c2   : > { %3189 = vst [vmem:[%s5267_s28 + $0x180] sm:$0xff] %v5399_v53  ;;  %v5408_v37 = vadd.f32 %v3081_v52, %v2793_v17  ;;  %3181 = vst [vmem:[%s5267_s28 + $0x140] sm:$0xff] %v3047_v26  ;;  %v3244_v24 = vadd.f32 %v3243_v47, %v3047_v26  ;;  %v3314_v58 = vmul.f32 %v3047_v26, %v3047_v26 }
 0x1c3   : > { %v3050_v20 = vadd.f32 %v3049_v62, %v2761_v55  ;;  %3192 = vst [vmem:[%s5267_s28 + $0x198] sm:$0xff] %v5404_v16  ;;  %v2817_v62 = vadd.f32 %v5255_v60, %v5218_v25 }
 0x1c4   : > { %3190 = vst [vmem:[%s5267_s28 + $0x188] sm:$0xff] %v5408_v37  ;;  %v3377_v59 = vadd.f32 %v3376_v12, %v3314_v58 }
 0x1c5   : > { %3182 = vst [vmem:[%s5267_s28 + $0x148] sm:$0xff] %v3050_v20  ;;  %v3245_v36 = vadd.f32 %v3244_v24, %v3050_v20  ;;  %v3315_v15 = vmul.f32 %v3050_v20, %v3050_v20  ;;  %v2765_v49 = vpop.f32.mrb[84].mxu0 }
 0x1c6   : > { %v3666_v9 = vpop.f32.mrb[84].mxu1  ;;  %v2766_v27 = vadd.f32 %v5255_v60, %v2765_v49  ;;  %v2767_v30 = vpop.f32.mrb[85].mxu0 }
 0x1c7   : > { %v3378_v18 = vadd.f32 %v3377_v59, %v3315_v15  ;;  %v5423_v61 = vadd.f32 %v3666_v9, %v2814_v29  ;;  %v3094_v8 = vpop.f32.mrb[85].mxu1  ;;  %v2768_v14 = vpop.f32.mrb[86].mxu0 }
 0x1c8   : > { %v5427_v57 = vadd.f32 %v3094_v8, %v2806_v28  ;;  %v3667_v42 = vpop.f32.mrb[86].mxu1  ;;  %v3055_v25 = vadd.f32 %v5368_v48, %v2766_v27  ;;  %v2769_v38 = vadd.f32 %v5255_v60, %v2768_v14  ;;  %v2770_v2 = vpop.f32.mrb[87].mxu0  ;;  %v2830_v48 = vadd.f32 %v5255_v60, %v5230_v0 }
 0x1c9   : > { %3195 = vst [vmem:[%s5267_s28 + $0x1b0] sm:$0xff] %v5423_v61  ;;  %v5433_v33 = vadd.f32 %v3667_v42, %v2817_v62  ;;  %v3097_v22 = vpop.f32.mrb[87].mxu1  ;;  %v2838_v28 = vadd.f32 %v5255_v60, %v5238_v44  ;;  %v2841_v8 = vadd.f32 %v5255_v60, %v5242_v40 }
 0x1ca   : > { %3193 = vst [vmem:[%s5267_s28 + $0x1a0] sm:$0xff] %v5427_v57  ;;  %v5437_v21 = vadd.f32 %v3097_v22, %v2809_v10  ;;  %3183 = vst [vmem:[%s5267_s28 + $0x150] sm:$0xff] %v3055_v25  ;;  %v3246_v39 = vadd.f32 %v3245_v36, %v3055_v25  ;;  %v3316_v3 = vmul.f32 %v3055_v25, %v3055_v25 }
 0x1cb   : > { %v3058_v47 = vadd.f32 %v5371_v41, %v2769_v38  ;;  %3196 = vst [vmem:[%s5267_s28 + $0x1b8] sm:$0xff] %v5433_v33  ;;  %v2833_v41 = vadd.f32 %v5255_v60, %v5234_v19 }
 0x1cc   : > { %3194 = vst [vmem:[%s5267_s28 + $0x1a8] sm:$0xff] %v5437_v21  ;;  %v3379_v11 = vadd.f32 %v3378_v18, %v3316_v3 }
 0x1cd   : > { %3184 = vst [vmem:[%s5267_s28 + $0x158] sm:$0xff] %v3058_v47  ;;  %v3247_v5 = vadd.f32 %v3246_v39, %v3058_v47  ;;  %v3317_v13 = vmul.f32 %v3058_v47, %v3058_v47  ;;  %v2773_v31 = vpop.f32.mrb[88].mxu0 }
 0x1ce   : > { %v3670_v12 = vpop.f32.mrb[88].mxu1  ;;  %v2774_v34 = vadd.f32 %v5255_v60, %v2773_v31  ;;  %v2775_v0 = vpop.f32.mrb[89].mxu0 }
 0x1cf   : > { %v3380_v56 = vadd.f32 %v3379_v11, %v3317_v13  ;;  %v5453_v54 = vadd.f32 %v3670_v12, %v2830_v48  ;;  %v3110_v17 = vpop.f32.mrb[89].mxu1  ;;  %v2776_v43 = vpop.f32.mrb[90].mxu0  ;;  %v3322_v11 = vmul.f32 %v5399_v53, %v5399_v53  ;;  %v3323_v13 = vmul.f32 %v5408_v37, %v5408_v37 }
 0x1d0   : > { %v5457_v50 = vadd.f32 %v3110_v17, %v2822_v6  ;;  %v3671_v26 = vpop.f32.mrb[90].mxu1  ;;  %v3063_v19 = vadd.f32 %v5379_v7, %v2774_v34  ;;  %v2777_v55 = vadd.f32 %v5255_v60, %v2776_v43  ;;  %v2778_v52 = vpop.f32.mrb[91].mxu0  ;;  %v2846_v7 = vadd.f32 %v5255_v60, %v5246_v45 }
 0x1d1   : > { %3199 = vst [vmem:[%s5267_s28 + $0x1d0] sm:$0xff] %v5453_v54  ;;  %v5463_v35 = vadd.f32 %v3671_v26, %v2833_v41  ;;  %v3113_v24 = vpop.f32.mrb[91].mxu1 }
 0x1d2   : > { %3197 = vst [vmem:[%s5267_s28 + $0x1c0] sm:$0xff] %v5457_v50  ;;  %v5467_v46 = vadd.f32 %v3113_v24, %v2825_v32  ;;  %3185 = vst [vmem:[%s5267_s28 + $0x160] sm:$0xff] %v3063_v19  ;;  %v3248_v58 = vadd.f32 %v3247_v5, %v3063_v19  ;;  %v3318_v20 = vmul.f32 %v3063_v19, %v3063_v19 }
 0x1d3   : > { %v3066_v29 = vadd.f32 %v5384_v1, %v2777_v55  ;;  %3200 = vst [vmem:[%s5267_s28 + $0x1d8] sm:$0xff] %v5463_v35  ;;  %v2849_v1 = vadd.f32 %v5255_v60, %v5250_v63 }
 0x1d4   : > { %3198 = vst [vmem:[%s5267_s28 + $0x1c8] sm:$0xff] %v5467_v46  ;;  %v3381_v59 = vadd.f32 %v3380_v56, %v3318_v20  ;;  %v3325_v56 = vmul.f32 %v5404_v16, %v5404_v16 }
 0x1d5   : > { %3186 = vst [vmem:[%s5267_s28 + $0x168] sm:$0xff] %v3066_v29  ;;  %v3249_v36 = vadd.f32 %v3248_v58, %v3066_v29  ;;  %v3319_v15 = vmul.f32 %v3066_v29, %v3066_v29  ;;  %v2781_v49 = vpop.f32.mrb[92].mxu0 }
 0x1d6   : > { %v3674_v9 = vpop.f32.mrb[92].mxu1  ;;  %v2782_v18 = vadd.f32 %v5255_v60, %v2781_v49  ;;  %v2783_v45 = vpop.f32.mrb[93].mxu0 }
 0x1d7   : > { %v3382_v62 = vadd.f32 %v3381_v59, %v3319_v15  ;;  %v5483_v27 = vadd.f32 %v3674_v9, %v2846_v7  ;;  %v3126_v30 = vpop.f32.mrb[93].mxu1  ;;  %v2784_v44 = vpop.f32.mrb[94].mxu0 }
 0x1d8   : > { %v3127_v10 = vadd.f32 %v3126_v30, %v2838_v28  ;;  %v3675_v14 = vpop.f32.mrb[94].mxu1  ;;  %v3071_v63 = vadd.f32 %v5376_v4, %v2782_v18  ;;  %v2785_v42 = vadd.f32 %v5255_v60, %v2784_v44  ;;  %v2786_v38 = vpop.f32.mrb[95].mxu0 }
 0x1d9   : > { %3203 = vst [vmem:[%s5267_s28 + $0x1f0] sm:$0xff] %v5483_v27  ;;  %v3138_v25 = vadd.f32 %v3675_v14, %v2849_v1  ;;  %v3129_v2 = vpop.f32.mrb[95].mxu1  ;;  %v3336_v18 = vmul.f32 %v5483_v27, %v5483_v27 }
 0x1da   : > { %3201 = vst [vmem:[%s5267_s28 + $0x1e0] sm:$0xff] %v3127_v10  ;;  %v3130_v22 = vadd.f32 %v3129_v2, %v2841_v8  ;;  %3187 = vst [vmem:[%s5267_s28 + $0x170] sm:$0xff] %v3071_v63  ;;  %v3250_v39 = vadd.f32 %v3249_v36, %v3071_v63  ;;  %v3320_v40 = vmul.f32 %v3071_v63, %v3071_v63 }
 0x1db   : > { %v3074_v3 = vadd.f32 %v5381_v23, %v2785_v42  ;;  %3204 = vst [vmem:[%s5267_s28 + $0x1f8] sm:$0xff] %v3138_v25  ;;  %v3324_v23 = vmul.f32 %v5395_v51, %v5395_v51  ;;  %v3334_v28 = vmul.f32 %v3127_v10, %v3127_v10  ;;  %v3337_v30 = vmul.f32 %v3138_v25, %v3138_v25 }
 0x1dc   : > { %3202 = vst [vmem:[%s5267_s28 + $0x1e8] sm:$0xff] %v3130_v22  ;;  %v3383_v47 = vadd.f32 %v3382_v62, %v3320_v40 }
 0x1dd   : > { %3188 = vst [vmem:[%s5267_s28 + $0x178] sm:$0xff] %v3074_v3  ;;  %v3251_v48 = vadd.f32 %v3250_v39, %v3074_v3  ;;  %v3321_v4 = vmul.f32 %v3074_v3, %v3074_v3 }
 0x1df   : > { %v3252_v60 = vadd.f32 %v3251_v48, %v5399_v53  ;;  %v3384_v5 = vadd.f32 %v3383_v47, %v3321_v4  ;;  %v3326_v53 = vmul.f32 %v5427_v57, %v5427_v57 }
 0x1e1   : > { %v3253_v6 = vadd.f32 %v3252_v60, %v5408_v37  ;;  %v3385_v31 = vadd.f32 %v3384_v5, %v3322_v11  ;;  %v3327_v37 = vmul.f32 %v5437_v21, %v5437_v21 }
 0x1e3   : > { %v3254_v12 = vadd.f32 %v3253_v6, %v5395_v51  ;;  %v3386_v41 = vadd.f32 %v3385_v31, %v3323_v13  ;;  %v3328_v51 = vmul.f32 %v5423_v61, %v5423_v61 }
 0x1e5   : > { %v3255_v34 = vadd.f32 %v3254_v12, %v5404_v16  ;;  %v3387_v0 = vadd.f32 %v3386_v41, %v3324_v23  ;;  %v3329_v16 = vmul.f32 %v5433_v33, %v5433_v33 }
 0x1e7   : > { %v3256_v17 = vadd.f32 %v3255_v34, %v5427_v57  ;;  %v3388_v32 = vadd.f32 %v3387_v0, %v3325_v56  ;;  %v3330_v57 = vmul.f32 %v5457_v50, %v5457_v50 }
 0x1e9   : > { %v3257_v43 = vadd.f32 %v3256_v17, %v5437_v21  ;;  %v3389_v26 = vadd.f32 %v3388_v32, %v3326_v53  ;;  %v3331_v21 = vmul.f32 %v5467_v46, %v5467_v46 }
 0x1eb   : > { %v3390_v19 = vadd.f32 %v3389_v26, %v3327_v37  ;;  %v3258_v55 = vadd.f32 %v3257_v43, %v5423_v61  ;;  %v3332_v61 = vmul.f32 %v5453_v54, %v5453_v54 }
 0x1ed   : > { %v3259_v52 = vadd.f32 %v3258_v55, %v5433_v33  ;;  %v3391_v24 = vadd.f32 %v3390_v19, %v3328_v51  ;;  %v3333_v33 = vmul.f32 %v5463_v35, %v5463_v35 }
 0x1ef   : > { %v3260_v58 = vadd.f32 %v3259_v52, %v5457_v50  ;;  %v3392_v20 = vadd.f32 %v3391_v24, %v3329_v16 }
 0x1f1   : > { %v3261_v29 = vadd.f32 %v3260_v58, %v5467_v46  ;;  %v3393_v7 = vadd.f32 %v3392_v20, %v3330_v57  ;;  %v3335_v46 = vmul.f32 %v3130_v22, %v3130_v22 }
 0x1f3   : > { %v3262_v59 = vadd.f32 %v3261_v29, %v5453_v54  ;;  %v3394_v36 = vadd.f32 %v3393_v7, %v3331_v21 }
 0x1f5   : > { %v3263_v15 = vadd.f32 %v3262_v59, %v5463_v35  ;;  %v3395_v50 = vadd.f32 %v3394_v36, %v3332_v61 }
 0x1f7   : > { %v3264_v49 = vadd.f32 %v3263_v15, %v3127_v10  ;;  %v3396_v9 = vadd.f32 %v3395_v50, %v3333_v33 }
 0x1f9   : > { %v3265_v1 = vadd.f32 %v3264_v49, %v3130_v22  ;;  %v3397_v62 = vadd.f32 %v3396_v9, %v3334_v28 }
 0x1fb   : > { %v3266_v54 = vadd.f32 %v3265_v1, %v5483_v27  ;;  %v3398_v45 = vadd.f32 %v3397_v62, %v3335_v46 }
 0x1fd   : > { %v3267_v8 = vadd.f32 %v3266_v54, %v3138_v25  ;;  %v3399_v44 = vadd.f32 %v3398_v45, %v3336_v18 }
 0x1ff   : > { %v3268_v14 = vrot.slane %v3267_v8, 4  ;;  %v3400_v35 = vadd.f32 %v3399_v44, %v3337_v30 }
 0x201   : > { %v3269_v63 = vadd.f32 %v3268_v14, %v3267_v8  ;;  %v3401_v42 = vrot.slane %v3400_v35, 4 }
 0x203   : > { %v3270_v10 = vrot.slane %v3269_v63, 2  ;;  %v3402_v38 = vadd.f32 %v3401_v42, %v3400_v35 }
 0x205   : > { %v3271_v2 = vadd.f32 %v3270_v10, %v3269_v63  ;;  %v3403_v22 = vrot.slane %v3402_v38, 2 }
 0x207   : > { %v3272_v39 = vrot.slane %v3271_v2, 1  ;;  %v3404_v40 = vadd.f32 %v3403_v22, %v3402_v38 }
 0x209   : > { %v3405_v3 = vrot.slane %v3404_v40, 1  ;;  %v3273_v27 = vadd.f32 %v3272_v39, %v3271_v2 }
 0x20b   : > { %v3406_v25 = vadd.f32 %v3405_v3, %v3404_v40 }
 0x20d   : > { %v3408_v47 = vsel %vm3407_vm6, %v3273_v27, %v3406_v25 }
 0x20e   : > { %3409 = vst [vmem:[%s265_s30] sm:$0x3] %v3408_v47 }
 0x20f PF: > { %s17_s21 = sadd.s32 1, %s3750_s21  }
 0x210   : > { %p14_p5 = scmp.ge.s32.totalorder %s17_s21, 6  }
 0x212   :  { %16 = sbr.rel (!%p14_p5) target bundleno = 1 (0x1), region = 82 }

// kernel: upblock_forward.3
= control target key start
LH: loop header
LB: loop body
LE: loop exit
PB: predicated region body
PF: predicated region fallthrough
CT: control target
= control target key end

     0   :  { %s3389_s15 = smov 0   ;;  %s4546_s0 = inlined_call_operand.vmem [shape: f32[2048,128], index: 0, kind: input, shape index: {}]   ;;  %s4547_s1 = inlined_call_operand.vmem [shape: bf16[384,128], index: 1, kind: input, shape index: {}]   ;;  %s4548_s2 = inlined_call_operand.vmem [shape: f32[1,128], index: 2, kind: input, shape index: {}]   ;;  %s4549_s3 = inlined_call_operand.vmem [shape: f32[2048,128], index: 3, kind: output, shape index: {0}]   ;;  %s4550_s4 = inlined_call_operand.vmem [shape: f32[4,2,128], index: 4, kind: output, shape index: {1}]  }
   0x1 LB: > { %s3395_s16 = sadd.s32 4294967295, %s3360_s15   ;;  %p3113_p0 = scmp.ge.s32.totalorder %s3360_s15, 1  ;;  %s3360_s15 = sphi %s3389_s15, %s15_s15  }
   0x2   : > { %p166_p1 = scmp.lt.s32.totalorder %s3360_s15, 5 }
   0x4   : > { %p167_p2 = pnand %p3113_p0, %p166_p1 }
   0x5   : > { %v3328_v0 = vld [vmem:[%s4547_s1] sm:$0xff] (!%p167_p2)   ;;  %v3362_v1 = vmov (!%p167_p2), 0   ;;  %s3114_s19 = sshll.u32 (!%p167_p2), %s3395_s16, 6  ;;  %v3329_v2 = vld [vmem:[%s4547_s1 + $0x8] sm:$0xff] (!%p167_p2)   ;;  %v3330_v3 = vld [vmem:[%s4547_s1 + $0x10] sm:$0xff] (!%p167_p2)   ;;  %v277_v19 = vlaneseq (!%p167_p2)  ;;  %vm3363_vm2 = vmmov (!%p167_p2), 1  }
   0x6   : > { %170 = sbr.rel (%p167_p2) target bundleno = 522 (0x20a), region = 32  ;;  %2175 = vmatprep.subr.bf16.mxu0 (!%p167_p2), %v3362_v1  ;;  %3286 = vmatprep.subr.bf16.mxu1 (!%p167_p2), %v3362_v1  ;;  %p197_p3 = scmp.lt.s32.totalorder (!%p167_p2), %s3114_s19, 255  ;;  %v3331_v4 = vld [vmem:[%s4547_s1 + $0x18] sm:$0xff] (!%p167_p2)   ;;  %v3332_v5 = vld [vmem:[%s4547_s1 + $0x20] sm:$0xff] (!%p167_p2)   ;;  %v3333_v8 = vld [vmem:[%s4547_s1 + $0x28] sm:$0xff] (!%p167_p2)   ;;  %vm3019_vm11 = vcmask (!%p167_p2), 1040384  }
   0x7   : > { %2176 = vmatpush1.bf16.msra.mxu0 (!%p167_p2), %v3328_v0  ;;  %3302 = vmatpush1.bf16.msra.mxu1 (!%p167_p2), %v3328_v0  ;;  %v3334_v13 = vld [vmem:[%s4547_s1 + $0x30] sm:$0xff] (!%p167_p2)   ;;  %v3335_v14 = vld [vmem:[%s4547_s1 + $0x38] sm:$0xff] (!%p167_p2)   ;;  %v3336_v15 = vld [vmem:[%s4547_s1 + $0x40] sm:$0xff] (!%p167_p2)   ;;  %v3491_v21 = vshrl.u32 (!%p167_p2), %v277_v19, 7  ;;  %p208_p4 = scmp.lt.s32.totalorder (!%p167_p2), %s3395_s16, 3 }
   0x8   : > { %2177 = vmatprep.subr.bf16.mxu0 (!%p167_p2), %v3362_v1  ;;  %3287 = vmatprep.subr.bf16.mxu1 (!%p167_p2), %v3362_v1  ;;  %v3337_v16 = vld [vmem:[%s4547_s1 + $0x48] sm:$0xff] (!%p167_p2)   ;;  %v3338_v17 = vld [vmem:[%s4547_s1 + $0x50] sm:$0xff] (!%p167_p2)   ;;  %v3339_v18 = vld [vmem:[%s4547_s1 + $0x58] sm:$0xff] (!%p167_p2)  }
   0x9   : > { %v3340_v20 = vld [vmem:[%s4547_s1 + $0x60] sm:$0xff] (!%p167_p2)   ;;  %v3341_v22 = vld [vmem:[%s4547_s1 + $0x68] sm:$0xff] (!%p167_p2)   ;;  %vm1238_vm0 = vcmp.lt.s32.totalorder (!%p167_p2), %v3491_v21, 1  ;;  %v3342_v27 = vld [vmem:[%s4547_s1 + $0x70] sm:$0xff] (!%p167_p2)   ;;  %v346_v32 = vand.u32 (!%p167_p2), 255, %v3491_v21  ;;  %vm1623_vm4 = vcmp.lt.s32.totalorder (!%p167_p2), %v3491_v21, 7 }
   0xa   : > { %v3343_v34 = vld [vmem:[%s4547_s1 + $0x78] sm:$0xff] (!%p167_p2)   ;;  %v3344_v42 = vld [vmem:[%s4547_s1 + $0x80] sm:$0xff] (!%p167_p2)   ;;  %v3345_v51 = vld [vmem:[%s4547_s1 + $0x88] sm:$0xff] (!%p167_p2)  }
   0xb   : > { %2178 = vmatpush1.bf16.msra.mxu0 (!%p167_p2), %v3329_v2  ;;  %3303 = vmatpush1.bf16.msra.mxu1 (!%p167_p2), %v3329_v2  ;;  %vm3162_vm1 = vcmp.ne.s32.totalorder (!%p167_p2), %v346_v32, 0  ;;  %v3346_v60 = vld [vmem:[%s4547_s1 + $0x90] sm:$0xff] (!%p167_p2)   ;;  %v3349_v32 = vld [vmem:[%s4547_s1 + $0xa8] sm:$0xff] (!%p167_p2)  }
   0xc   : > { %2179 = vmatprep.subr.bf16.mxu0 (!%p167_p2), %v3362_v1  ;;  %3288 = vmatprep.subr.bf16.mxu1 (!%p167_p2), %v3362_v1  ;;  %vm3145_vm3 = vmpackc.low (!%p167_p2), %vm3363_vm2, %vm3162_vm1 }
   0xd   : > { %s4552_s19 = smov (!%p197_p3, %s3114_s19), 255  ;;  %s4554_s16 = smov (!%p208_p4, %s3395_s16), 3 }
   0xe   : > { %s3115_s26 = sshll.u32 %s4552_s19, 3  ;;  %s3118_s19 = sshll.u32 %s4554_s16, 1 }
   0xf   : > { %2180 = vmatpush1.bf16.msra.mxu0 %v3330_v3  ;;  %3304 = vmatpush1.bf16.msra.mxu1 %v3330_v3  ;;  %s3431_s5 = scalar_lea.vmem %s4546_s0, %s3115_s26  ;;  %s4265_s30 = scalar_lea.vmem %s4549_s3, %s3115_s26 }
  0x10   : > { %2181 = vmatprep.subr.bf16.mxu0 %v3362_v1  ;;  %3289 = vmatprep.subr.bf16.mxu1 %v3362_v1  ;;  %v3436_v6 = vld [vmem:[%s3431_s5] sm:$0xff]  ;;  %v3439_v7 = vld [vmem:[%s3431_s5 + $0x8] sm:$0xff]  ;;  %v3499_v23 = vld [vmem:[%s3431_s5 + $0x1f8] sm:$0xff]  ;;  %s211_s7 = scalar_lea.vmem %s4550_s4, %s3118_s19 }
  0x11   : > { %v1881_v9 = vpack.c.bf16 %v3439_v7, %v3436_v6  ;;  %v3447_v10 = vld [vmem:[%s3431_s5 + $0x180] sm:$0xff]  ;;  %v3450_v11 = vld [vmem:[%s3431_s5 + $0x188] sm:$0xff]  ;;  %v3502_v24 = vld [vmem:[%s3431_s5 + $0x178] sm:$0xff]  ;;  %v1174_v25 = vrot.slane %v3436_v6, 7  ;;  %v1175_v26 = vrot.slane %v3439_v7, 7  ;;  %v1237_v30 = vrot.slane %v3499_v23, 7 }
  0x12   : > { %v1953_v12 = vpack.c.bf16 %v3450_v11, %v3447_v10  ;;  %v1222_v28 = vrot.slane %v3447_v10, 7  ;;  %v1223_v29 = vrot.slane %v3450_v11, 7  ;;  %v1221_v31 = vrot.slane %v3502_v24, 7  ;;  %v3533_v38 = vld [vmem:[%s3431_s5 + $0x10] sm:$0xff]  ;;  %v3536_v39 = vld [vmem:[%s3431_s5 + $0x18] sm:$0xff]  ;;  %v3570_v56 = vld [vmem:[%s3431_s5 + $0x20] sm:$0xff] }
  0x13   : > { %2182 = vmatpush1.bf16.msra.mxu0 %v3331_v4  ;;  %3305 = vmatpush1.bf16.msra.mxu1 %v3331_v4  ;;  %v1301_v33 = vsel %vm1238_vm0, %v1174_v25, %v1175_v26  ;;  %v1302_v35 = vsel %vm1238_vm0, %v1237_v30, %v1174_v25  ;;  %v3541_v40 = vld [vmem:[%s3431_s5 + $0x190] sm:$0xff]  ;;  %v3544_v41 = vld [vmem:[%s3431_s5 + $0x198] sm:$0xff]  ;;  %v1176_v45 = vrot.slane %v3533_v38, 7  ;;  %v1177_v46 = vrot.slane %v3536_v39, 7  ;;  %v3573_v57 = vld [vmem:[%s3431_s5 + $0x28] sm:$0xff] }
  0x14   : > { %2183 = vmatprep.subr.bf16.mxu0 %v3362_v1  ;;  %3290 = vmatprep.subr.bf16.mxu1 %v3362_v1  ;;  %v1253_v36 = vsel %vm1238_vm0, %v1222_v28, %v1223_v29  ;;  %v1254_v37 = vsel %vm1238_vm0, %v1221_v31, %v1222_v28  ;;  %v3146_v43 = vpack.c.bf16 %v1301_v33, %v1302_v35  ;;  %v1224_v48 = vrot.slane %v3541_v40, 7  ;;  %v3576_v58 = vld [vmem:[%s3431_s5 + $0x1a0] sm:$0xff]  ;;  %v3579_v59 = vld [vmem:[%s3431_s5 + $0x1a8] sm:$0xff] }
  0x15   : > { %2207 = vmatprep.mubr.bf16.mxu0 %v1881_v9  ;;  %2399 = vmatprep.mubr.bf16.mxu1 %v1953_v12  ;;  %v1952_v44 = vpack.c.bf16 %v1253_v36, %v1254_v37  ;;  %v1884_v47 = vpack.c.bf16 %v3536_v39, %v3533_v38  ;;  %v1225_v49 = vrot.slane %v3544_v41, 7  ;;  %v1956_v50 = vpack.c.bf16 %v3544_v41, %v3541_v40  ;;  %v3638_v37 = vld [vmem:[%s3431_s5 + $0x40] sm:$0xff] }
  0x16   : > { %v1299_v52 = vsel %vm1238_vm0, %v1176_v45, %v1177_v46  ;;  %v1300_v53 = vsel %vm1238_vm0, %v1175_v26, %v1176_v45  ;;  %v1252_v55 = vsel %vm1238_vm0, %v1223_v29, %v1224_v48  ;;  %v1178_v63 = vrot.slane %v3570_v56, 7  ;;  %v3350_v45 = vld [vmem:[%s4547_s1 + $0xb0] sm:$0xff]  }
  0x17   : > { %2184 = vmatpush1.bf16.msra.mxu0 %v3332_v5  ;;  %3306 = vmatpush1.bf16.msra.mxu1 %v3332_v5  ;;  %v1251_v54 = vsel %vm1238_vm0, %v1224_v48, %v1225_v49  ;;  %v1883_v61 = vpack.c.bf16 %v1299_v52, %v1300_v53  ;;  %v1179_v0 = vrot.slane %v3573_v57, 7  ;;  %v1226_v2 = vrot.slane %v3576_v58, 7  ;;  %v3347_v5 = vld [vmem:[%s4547_s1 + $0x98] sm:$0xff]  }
  0x18   : > { %2185 = vmatprep.subr.bf16.mxu0 %v3362_v1  ;;  %3291 = vmatprep.subr.bf16.mxu1 %v3362_v1  ;;  %v1955_v62 = vpack.c.bf16 %v1251_v54, %v1252_v55  ;;  %v1227_v3 = vrot.slane %v3579_v59, 7  ;;  %v1959_v4 = vpack.c.bf16 %v3579_v59, %v3576_v58  ;;  %v1298_v9 = vsel %vm1238_vm0, %v1177_v46, %v1178_v63  ;;  %v3351_v54 = vld [vmem:[%s4547_s1 + $0xb8] sm:$0xff]  }
  0x19   : > { %v1182_v48 = vrot.slane %v3638_v37, 7  ;;  %v1608_v55 = vrot.slane %v3450_v11, 1 }
  0x1a   : > { %v1249_v12 = vsel %vm1238_vm0, %v1226_v2, %v1227_v3 }
  0x1b   : > { %2186 = vmatpush1.bf16.msra.mxu0 %v3333_v8  ;;  %3307 = vmatpush1.bf16.msra.mxu1 %v3333_v8  ;;  %v1297_v8 = vsel %vm1238_vm0, %v1178_v63, %v1179_v0  ;;  %v3670_v63 = vld [vmem:[%s3431_s5 + $0x50] sm:$0xff] }
  0x1c   : > { %2187 = vmatprep.subr.bf16.mxu0 %v3362_v1  ;;  %3292 = vmatprep.subr.bf16.mxu1 %v3362_v1  ;;  %v1886_v19 = vpack.c.bf16 %v1297_v8, %v1298_v9  ;;  %v3688_v8 = vld [vmem:[%s3431_s5 + $0x1d8] sm:$0xff] }
  0x1f   : > { %2188 = vmatpush1.bf16.msra.mxu0 %v3334_v13  ;;  %3308 = vmatpush1.bf16.msra.mxu1 %v3334_v13  ;;  %v1250_v13 = vsel %vm1238_vm0, %v1225_v49, %v1226_v2  ;;  %v1607_v2 = vrot.slane %v3447_v10, 1 }
  0x20   : > { %2189 = vmatprep.subr.bf16.mxu0 %v3362_v1  ;;  %3293 = vmatprep.subr.bf16.mxu1 %v3362_v1 }
  0x23   : > { %2190 = vmatpush1.bf16.msra.mxu0 %v3335_v14  ;;  %3309 = vmatpush1.bf16.msra.mxu1 %v3335_v14  ;;  %v3604_v14 = vld [vmem:[%s3431_s5 + $0x30] sm:$0xff] }
  0x24   : > { %2191 = vmatprep.subr.bf16.mxu0 %v3362_v1  ;;  %3294 = vmatprep.subr.bf16.mxu1 %v3362_v1 }
  0x27   : > { %2192 = vmatpush1.bf16.msra.mxu0 %v3336_v15  ;;  %3310 = vmatpush1.bf16.msra.mxu1 %v3336_v15  ;;  %v3607_v15 = vld [vmem:[%s3431_s5 + $0x38] sm:$0xff] }
  0x28   : > { %2193 = vmatprep.subr.bf16.mxu0 %v3362_v1  ;;  %3295 = vmatprep.subr.bf16.mxu1 %v3362_v1  ;;  %v1181_v25 = vrot.slane %v3607_v15, 7  ;;  %v1890_v26 = vpack.c.bf16 %v3607_v15, %v3604_v14 }
  0x2b   : > { %2194 = vmatpush1.bf16.msra.mxu0 %v3337_v16  ;;  %3311 = vmatpush1.bf16.msra.mxu1 %v3337_v16  ;;  %v3610_v16 = vld [vmem:[%s3431_s5 + $0x1b0] sm:$0xff] }
  0x2c   : > { %2195 = vmatprep.subr.bf16.mxu0 %v3362_v1  ;;  %3296 = vmatprep.subr.bf16.mxu1 %v3362_v1  ;;  %v1613_v9 = vrot.slane %v3610_v16, 1 }
  0x2f   : > { %2196 = vmatpush1.bf16.msra.mxu0 %v3338_v17  ;;  %3312 = vmatpush1.bf16.msra.mxu1 %v3338_v17  ;;  %v3613_v17 = vld [vmem:[%s3431_s5 + $0x1b8] sm:$0xff] }
  0x30   : > { %2197 = vmatprep.subr.bf16.mxu0 %v3362_v1  ;;  %3297 = vmatprep.subr.bf16.mxu1 %v3362_v1  ;;  %v1229_v28 = vrot.slane %v3613_v17, 7  ;;  %v1962_v29 = vpack.c.bf16 %v3613_v17, %v3610_v16 }
  0x33   : > { %2198 = vmatpush1.bf16.msra.mxu0 %v3339_v18  ;;  %3313 = vmatpush1.bf16.msra.mxu1 %v3339_v18  ;;  %v3348_v18 = vld [vmem:[%s4547_s1 + $0xa0] sm:$0xff]  }
  0x34   : > { %2199 = vmatprep.subr.bf16.mxu0 %v3362_v1  ;;  %3298 = vmatprep.subr.bf16.mxu1 %v3362_v1 }
  0x37   : > { %2200 = vmatpush1.bf16.msra.mxu0 %v3340_v20  ;;  %3314 = vmatpush1.bf16.msra.mxu1 %v3340_v20  ;;  %v1958_v20 = vpack.c.bf16 %v1249_v12, %v1250_v13  ;;  %v1184_v13 = vrot.slane %v3670_v63, 7 }
  0x38   : > { %2201 = vmatprep.subr.bf16.mxu0 %v3362_v1  ;;  %3299 = vmatprep.subr.bf16.mxu1 %v3362_v1 }
  0x3b   : > { %2202 = vmatpush1.bf16.msra.mxu0 %v3341_v22  ;;  %3315 = vmatpush1.bf16.msra.mxu1 %v3341_v22  ;;  %v1180_v22 = vrot.slane %v3604_v14, 7 }
  0x3c   : > { %2203 = vmatprep.subr.bf16.mxu0 %v3362_v1  ;;  %3300 = vmatprep.subr.bf16.mxu1 %v3362_v1 }
  0x3d   : > { %v1295_v33 = vsel %vm1238_vm0, %v1180_v22, %v1181_v25 }
  0x3f   : > { %2204 = vmatpush1.bf16.msra.mxu0 %v3342_v27  ;;  %3316 = vmatpush1.bf16.msra.mxu1 %v3342_v27  ;;  %v1228_v27 = vrot.slane %v3610_v16, 7  ;;  %v1233_v16 = vrot.slane %v3688_v8, 7 }
  0x40   : > { %2205 = vmatprep.subr.bf16.mxu0 %v3362_v1  ;;  %3301 = vmatprep.subr.bf16.mxu1 %v3362_v1  ;;  %v1887_v1 = vpack.c.bf16 %v3573_v57, %v3570_v56 }
  0x41   : > { %v1247_v35 = vsel %vm1238_vm0, %v1228_v27, %v1229_v28  ;;  %v1248_v36 = vsel %vm1238_vm0, %v1227_v3, %v1228_v27  ;;  %v1610_v3 = vrot.slane %v3544_v41, 1 }
  0x43   : > { %2206 = vmatpush1.bf16.msra.mxu0 %v3343_v34  ;;  %3317 = vmatpush1.bf16.msra.mxu1 %v3343_v34  ;;  %v1296_v34 = vsel %vm1238_vm0, %v1179_v0, %v1180_v22  ;;  %v3673_v0 = vld [vmem:[%s3431_s5 + $0x58] sm:$0xff] }
  0x44   : > { %3206 = vmatprep.subr.bf16.mxu1 %v3344_v42  ;;  %v1889_v46 = vpack.c.bf16 %v1295_v33, %v1296_v34  ;;  %v3727_v34 = vld [vmem:[%s3431_s5 + $0x60] sm:$0xff] }
  0x46   : > { %3147 = vmatmul.mubr.msk.bf16.vlgmr.msra.gmra.mrb[0].mxu0 %vm3145_vm3, %v3146_v43  ;;  %2400 = vmatmul.mubr.bf16.vlgmr.msra.gmra.mrb[0].mxu1 %v1952_v44  ;;  %v3644_v43 = vld [vmem:[%s3431_s5 + $0x1c0] sm:$0xff]  ;;  %v3647_v44 = vld [vmem:[%s3431_s5 + $0x1c8] sm:$0xff] }
  0x47   : > { %2215 = vmatprep.mubr.bf16.mxu0 %v1884_v47  ;;  %2407 = vmatprep.mubr.bf16.mxu1 %v1956_v50  ;;  %v1961_v47 = vpack.c.bf16 %v1247_v35, %v1248_v36  ;;  %v1231_v52 = vrot.slane %v3647_v44, 7  ;;  %v1965_v53 = vpack.c.bf16 %v3647_v44, %v3644_v43  ;;  %v1615_v36 = vrot.slane %v3644_v43, 1 }
  0x48   : > { %3207 = vmatpush3.bf16.msra.mxu1 %v3344_v42  ;;  %v3641_v42 = vld [vmem:[%s3431_s5 + $0x48] sm:$0xff] }
  0x49   : > { %3208 = vmatprep.subr.bf16.mxu1 %v3345_v51  ;;  %v1183_v49 = vrot.slane %v3641_v42, 7  ;;  %v1893_v50 = vpack.c.bf16 %v3641_v42, %v3638_v37 }
  0x4c   : > { %3209 = vmatpush3.bf16.msra.mxu1 %v3345_v51  ;;  %v1230_v51 = vrot.slane %v3644_v43, 7 }
  0x4d   : > { %3210 = vmatprep.subr.bf16.mxu1 %v3346_v60 }
  0x4e   : > { %2216 = vmatmul.mubr.bf16.gmra.mrb[4].mxu0 %v1883_v61  ;;  %2408 = vmatmul.mubr.bf16.gmra.mrb[4].mxu1 %v1955_v62  ;;  %v1293_v61 = vsel %vm1238_vm0, %v1182_v48, %v1183_v49  ;;  %v1294_v62 = vsel %vm1238_vm0, %v1181_v25, %v1182_v48  ;;  %v1245_v11 = vsel %vm1238_vm0, %v1230_v51, %v1231_v52 }
  0x4f   : > { %2223 = vmatprep.mubr.bf16.mxu0 %v1887_v1  ;;  %2415 = vmatprep.mubr.bf16.mxu1 %v1959_v4  ;;  %v3681_v1 = vld [vmem:[%s3431_s5 + $0x1d0] sm:$0xff]  ;;  %v1611_v4 = vrot.slane %v3576_v58, 1  ;;  %v1892_v12 = vpack.c.bf16 %v1293_v61, %v1294_v62  ;;  %v3702_v58 = vsel %vm1623_vm4, %v1607_v2, %v1608_v55 }
  0x50   : > { %3211 = vmatpush3.bf16.msra.mxu1 %v3346_v60  ;;  %v1609_v60 = vrot.slane %v3541_v40, 1  ;;  %v1246_v40 = vsel %vm1238_vm0, %v1229_v28, %v1230_v51  ;;  %v1968_v22 = vpack.c.bf16 %v3688_v8, %v3681_v1  ;;  %v1617_v51 = vrot.slane %v3681_v1, 1 }
  0x51   : > { %3212 = vmatprep.subr.bf16.mxu1 %v3347_v5 }
  0x52   : > { %v3696_v41 = vsel %vm1623_vm4, %v1608_v55, %v1609_v60  ;;  %v3719_v28 = vsel %vm1623_vm4, %v1609_v60, %v1610_v3 }
  0x53   : > { %v1954_v25 = vpack.c.bf16 %v3696_v41, %v3702_v58 }
  0x54   : > { %3213 = vmatpush3.bf16.msra.mxu1 %v3347_v5  ;;  %v1612_v5 = vrot.slane %v3579_v59, 1  ;;  %v1896_v59 = vpack.c.bf16 %v3673_v0, %v3670_v63 }
  0x55   : > { %3214 = vmatprep.subr.bf16.mxu1 %v3348_v18 }
  0x56   : > { %2224 = vmatmul.mubr.bf16.gmra.mrb[8].mxu0 %v1886_v19  ;;  %2416 = vmatmul.mubr.bf16.gmra.mrb[8].mxu1 %v1958_v20  ;;  %v1964_v19 = vpack.c.bf16 %v1245_v11, %v1246_v40  ;;  %v1232_v20 = vrot.slane %v3681_v1, 7  ;;  %v3744_v48 = vsel %vm1623_vm4, %v1611_v4, %v1612_v5 }
  0x57   : > { %2231 = vmatprep.mubr.bf16.mxu0 %v1890_v26  ;;  %2423 = vmatprep.mubr.bf16.mxu1 %v1962_v29  ;;  %v3713_v26 = vsel %vm1623_vm4, %v1610_v3, %v1611_v4  ;;  %v1614_v29 = vrot.slane %v3613_v17, 1  ;;  %v1618_v3 = vrot.slane %v3688_v8, 1  ;;  %v3778_v8 = vld [vmem:[%s3431_s5 + $0x78] sm:$0xff] }
  0x58   : > { %3215 = vmatpush3.bf16.msra.mxu1 %v3348_v18  ;;  %v1185_v18 = vrot.slane %v3673_v0, 7  ;;  %v1244_v33 = vsel %vm1238_vm0, %v1231_v52, %v1232_v20  ;;  %v1957_v35 = vpack.c.bf16 %v3713_v26, %v3719_v28  ;;  %v1243_v17 = vsel %vm1238_vm0, %v1232_v20, %v1233_v16  ;;  %v3781_v20 = vld [vmem:[%s3431_s5 + $0x1f0] sm:$0xff] }
  0x59   : > { %3216 = vmatprep.subr.bf16.mxu1 %v3349_v32  ;;  %v3761_v40 = vsel %vm1623_vm4, %v1613_v9, %v1614_v29 }
  0x5a   : > { %v1291_v27 = vsel %vm1238_vm0, %v1184_v13, %v1185_v18 }
  0x5c   : > { %3217 = vmatpush3.bf16.msra.mxu1 %v3349_v32  ;;  %v1292_v32 = vsel %vm1238_vm0, %v1183_v49, %v1184_v13  ;;  %v274_v49 = vld [vmem:[%s3431_s5 + $0x1e8] sm:$0xff]  ;;  %v3773_v13 = vld [vmem:[%s3431_s5 + $0x70] sm:$0xff] }
  0x5d   : > { %3218 = vmatprep.subr.bf16.mxu1 %v3350_v45  ;;  %v1895_v52 = vpack.c.bf16 %v1291_v27, %v1292_v32  ;;  %v1235_v62 = vrot.slane %v274_v49, 7 }
  0x5e   : > { %2232 = vmatmul.mubr.bf16.gmra.mrb[12].mxu0 %v1889_v46  ;;  %2424 = vmatmul.mubr.bf16.gmra.mrb[12].mxu1 %v1961_v47  ;;  %v273_v46 = vld [vmem:[%s3431_s5 + $0x1e0] sm:$0xff]  ;;  %v3740_v47 = vsel %vm1623_vm4, %v1612_v5, %v1613_v9 }
  0x5f   : > { %2239 = vmatprep.mubr.bf16.mxu0 %v1893_v50  ;;  %2431 = vmatprep.mubr.bf16.mxu1 %v1965_v53  ;;  %v1960_v43 = vpack.c.bf16 %v3740_v47, %v3744_v48  ;;  %v1616_v50 = vrot.slane %v3647_v44, 1  ;;  %v1186_v53 = vrot.slane %v3727_v34, 7  ;;  %v1234_v61 = vrot.slane %v273_v46, 7 }
  0x60   : > { %3219 = vmatpush3.bf16.msra.mxu1 %v3350_v45  ;;  %v3735_v45 = vld [vmem:[%s3431_s5 + $0x68] sm:$0xff]  ;;  %v1971_v11 = vpack.c.bf16 %v274_v49, %v273_v46  ;;  %v3757_v44 = vsel %vm1623_vm4, %v1614_v29, %v1615_v36  ;;  %v1619_v9 = vrot.slane %v273_v46, 1  ;;  %v1188_v29 = vrot.slane %v3773_v13, 7 }
  0x61   : > { %3220 = vmatprep.subr.bf16.mxu1 %v3351_v54  ;;  %v1187_v55 = vrot.slane %v3735_v45, 7  ;;  %v1899_v60 = vpack.c.bf16 %v3735_v45, %v3727_v34  ;;  %v1963_v1 = vpack.c.bf16 %v3757_v44, %v3761_v40  ;;  %v1290_v5 = vsel %vm1238_vm0, %v1185_v18, %v1186_v53  ;;  %v3353_v40 = vld [vmem:[%s3431_s5 + $0x1f8] sm:$0xff] }
  0x62   : > { %v3789_v18 = vsel %vm1623_vm4, %v1615_v36, %v1616_v50  ;;  %v1236_v46 = vrot.slane %v3781_v20, 7  ;;  %v1974_v36 = vpack.c.bf16 %v3499_v23, %v3781_v20  ;;  %v341_v48 = vadd.s32 504, %v3491_v21 }
  0x63   : > { %v1289_v4 = vsel %vm1238_vm0, %v1186_v53, %v1187_v55  ;;  %v1559_v53 = vrot.slane %v3436_v6, 1 }
  0x64   : > { %3221 = vmatpush3.bf16.msra.mxu1 %v3351_v54  ;;  %v1967_v54 = vpack.c.bf16 %v1243_v17, %v1244_v33  ;;  %v1898_v27 = vpack.c.bf16 %v1289_v4, %v1290_v5  ;;  %v1189_v33 = vrot.slane %v3778_v8, 7  ;;  %v1902_v17 = vpack.c.bf16 %v3778_v8, %v3773_v13 }
  0x65   : > { %v1288_v4 = vsel %vm1238_vm0, %v1187_v55, %v1188_v29 }
  0x66   : > { %2240 = vmatmul.mubr.bf16.gmra.mrb[16].mxu0 %v1892_v12  ;;  %2432 = vmatmul.mubr.bf16.gmra.mrb[16].mxu1 %v1964_v19  ;;  %v1242_v12 = vsel %vm1238_vm0, %v1233_v16, %v1234_v61  ;;  %v1241_v19 = vsel %vm1238_vm0, %v1234_v61, %v1235_v62 }
  0x67   : > { %2247 = vmatprep.mubr.bf16.mxu0 %v1896_v59  ;;  %2439 = vmatprep.mubr.bf16.mxu1 %v1968_v22  ;;  %v3785_v59 = vsel %vm1623_vm4, %v1616_v50, %v1617_v51  ;;  %v1620_v22 = vrot.slane %v274_v49, 1  ;;  %v1970_v32 = vpack.c.bf16 %v1241_v19, %v1242_v12  ;;  %v3803_v49 = vsel %vm1623_vm4, %v1618_v3, %v1619_v9 }
  0x68   : > { %v1966_v16 = vpack.c.bf16 %v3785_v59, %v3789_v18  ;;  %v3807_v50 = vsel %vm1623_vm4, %v1617_v51, %v1618_v3  ;;  %v1239_v51 = vsel %vm1238_vm0, %v1236_v46, %v1237_v30  ;;  %v3828_v3 = vld [vmem:[%s3431_s5 + $0x88] sm:$0xff] }
  0x69   : > { %v1969_v61 = vpack.c.bf16 %v3803_v49, %v3807_v50  ;;  %v3838_v23 = vsel %vm1623_vm4, %v1619_v9, %v1620_v22  ;;  %v1562_v9 = vrot.slane %v3536_v39, 1 }
  0x6e   : > { %2248 = vmatmul.mubr.bf16.gmra.mrb[20].mxu0 %v1895_v52  ;;  %2440 = vmatmul.mubr.bf16.gmra.mrb[20].mxu1 %v1967_v54  ;;  %v1621_v52 = vrot.slane %v3781_v20, 1  ;;  %v1560_v54 = vrot.slane %v3439_v7, 1  ;;  %v1240_v7 = vsel %vm1238_vm0, %v1235_v62, %v1236_v46  ;;  %v1564_v46 = vrot.slane %v3573_v57, 1  ;;  %v3868_v57 = vld [vmem:[%s3431_s5 + $0x98] sm:$0xff] }
  0x6f   : > { %2255 = vmatprep.mubr.bf16.mxu0 %v1899_v60  ;;  %2447 = vmatprep.mubr.bf16.mxu1 %v1971_v11  ;;  %v1561_v60 = vrot.slane %v3533_v38, 1  ;;  %v1287_v11 = vsel %vm1238_vm0, %v1188_v29, %v1189_v33  ;;  %v3825_v38 = vld [vmem:[%s3431_s5 + $0x80] sm:$0xff]  ;;  %v1973_v19 = vpack.c.bf16 %v1239_v51, %v1240_v7  ;;  %v1191_v29 = vrot.slane %v3828_v3, 7 }
  0x70   : > { %v3834_v5 = vsel %vm1623_vm4, %v1620_v22, %v1621_v52  ;;  %v1686_v55 = vsel %vm1623_vm4, %v1559_v53, %v1560_v54  ;;  %v1901_v12 = vpack.c.bf16 %v1287_v11, %v1288_v4  ;;  %v1563_v22 = vrot.slane %v3570_v56, 1  ;;  %v3865_v4 = vld [vmem:[%s3431_s5 + $0x90] sm:$0xff] }
  0x71   : > { %v1685_v30 = vsel %vm1623_vm4, %v1560_v54, %v1561_v60  ;;  %v1972_v62 = vpack.c.bf16 %v3834_v5, %v3838_v23  ;;  %v1684_v11 = vsel %vm1623_vm4, %v1561_v60, %v1562_v9  ;;  %v1566_v60 = vrot.slane %v3607_v15, 1 }
  0x72   : > { %v1683_v56 = vsel %vm1623_vm4, %v1562_v9, %v1563_v22  ;;  %v1682_v51 = vsel %vm1623_vm4, %v1563_v22, %v1564_v46  ;;  %v1568_v9 = vrot.slane %v3641_v42, 1  ;;  %v1569_v22 = vrot.slane %v3670_v63, 1  ;;  %v3894_v42 = vld [vmem:[%s3431_s5 + $0xa8] sm:$0xff] }
  0x74   : > { %v1677_v63 = vsel %vm1623_vm4, %v1568_v9, %v1569_v22 }
  0x76   : > { %2256 = vmatmul.mubr.bf16.gmra.mrb[24].mxu0 %v1898_v27  ;;  %2448 = vmatmul.mubr.bf16.gmra.mrb[24].mxu1 %v1970_v32  ;;  %v1190_v27 = vrot.slane %v3825_v38, 7  ;;  %v1905_v32 = vpack.c.bf16 %v3828_v3, %v3825_v38 }
  0x77   : > { %2263 = vmatprep.mubr.bf16.mxu0 %v1902_v17  ;;  %2455 = vmatprep.mubr.bf16.mxu1 %v1974_v36  ;;  %v1882_v17 = vpack.c.bf16 %v1685_v30, %v1686_v55  ;;  %v1565_v36 = vrot.slane %v3604_v14, 1  ;;  %v1885_v30 = vpack.c.bf16 %v1683_v56, %v1684_v11  ;;  %v1193_v55 = vrot.slane %v3868_v57, 7 }
  0x78   : > { %v1285_v54 = vsel %vm1238_vm0, %v1190_v27, %v1191_v29  ;;  %v1286_v39 = vsel %vm1238_vm0, %v1189_v33, %v1190_v27  ;;  %v1192_v33 = vrot.slane %v3865_v4, 7  ;;  %v1195_v11 = vrot.slane %v3894_v42, 7 }
  0x79   : > { %v1681_v14 = vsel %vm1623_vm4, %v1564_v46, %v1565_v36  ;;  %v1904_v7 = vpack.c.bf16 %v1285_v54, %v1286_v39  ;;  %v3891_v46 = vld [vmem:[%s3431_s5 + $0xa0] sm:$0xff] }
  0x7a   : > { %v1888_v27 = vpack.c.bf16 %v1681_v14, %v1682_v51  ;;  %v1284_v15 = vsel %vm1238_vm0, %v1191_v29, %v1192_v33  ;;  %v1194_v29 = vrot.slane %v3891_v46, 7  ;;  %v1571_v14 = vrot.slane %v3727_v34, 1 }
  0x7b   : > { %v1911_v51 = vpack.c.bf16 %v3894_v42, %v3891_v46 }
  0x7e   : > { %2264 = vmatmul.mubr.bf16.gmra.mrb[28].mxu0 %v1901_v12  ;;  %2456 = vmatmul.mubr.bf16.gmra.mrb[28].mxu1 %v1973_v19  ;;  %v1567_v12 = vrot.slane %v3638_v37, 1  ;;  %v1908_v19 = vpack.c.bf16 %v3868_v57, %v3865_v4 }
  0x7f   : > { %2271 = vmatprep.mubr.bf16.mxu0 %v1905_v32  ;;  %3222 = vmatprep.mubr.bf16.mxu1 %v1882_v17  ;;  %v1283_v32 = vsel %vm1238_vm0, %v1192_v33, %v1193_v55  ;;  %v1680_v17 = vsel %vm1623_vm4, %v1565_v36, %v1566_v60  ;;  %v1570_v36 = vrot.slane %v3673_v0, 1  ;;  %v1573_v33 = vrot.slane %v3773_v13, 1 }
  0x80   : > { %v1679_v37 = vsel %vm1623_vm4, %v1566_v60, %v1567_v12  ;;  %v1678_v54 = vsel %vm1623_vm4, %v1567_v12, %v1568_v9  ;;  %v1907_v39 = vpack.c.bf16 %v1283_v32, %v1284_v15  ;;  %v1281_v60 = vsel %vm1238_vm0, %v1194_v29, %v1195_v11 }
  0x81   : > { %v1891_v56 = vpack.c.bf16 %v1679_v37, %v1680_v17  ;;  %v1282_v0 = vsel %vm1238_vm0, %v1193_v55, %v1194_v29  ;;  %v1675_v34 = vsel %vm1623_vm4, %v1570_v36, %v1571_v14  ;;  %v1676_v12 = vsel %vm1623_vm4, %v1569_v22, %v1570_v36  ;;  %v237_v36 = vld [vmem:[%s3431_s5 + $0xc0] sm:$0xff] }
  0x82   : > { %v1910_v9 = vpack.c.bf16 %v1281_v60, %v1282_v0  ;;  %v1897_v32 = vpack.c.bf16 %v1675_v34, %v1676_v12  ;;  %v1574_v22 = vrot.slane %v3778_v8, 1  ;;  %v1575_v37 = vrot.slane %v3825_v38, 1 }
  0x83   : > { %v1579_v60 = vrot.slane %v3891_v46, 1  ;;  %v1580_v12 = vrot.slane %v3894_v42, 1  ;;  %v240_v42 = vld [vmem:[%s3431_s5 + $0xd8] sm:$0xff] }
  0x84   : > { %v1671_v38 = vsel %vm1623_vm4, %v1574_v22, %v1575_v37  ;;  %v1672_v29 = vsel %vm1623_vm4, %v1573_v33, %v1574_v22 }
  0x86   : > { %2272 = vmatmul.mubr.bf16.gmra.mrb[32].mxu0 %v1904_v7  ;;  %3223 = vmatmul.mubr.bf16.vlgmr.msra.gmra.mrb[32].mxu1 %v1885_v30  ;;  %v1894_v7 = vpack.c.bf16 %v1677_v63, %v1678_v54  ;;  %v1572_v30 = vrot.slane %v3735_v45, 1  ;;  %v3920_v45 = vld [vmem:[%s3431_s5 + $0xb8] sm:$0xff]  ;;  %v1576_v54 = vrot.slane %v3828_v3, 1  ;;  %v238_v3 = vld [vmem:[%s3431_s5 + $0xc8] sm:$0xff] }
  0x87   : > { %2279 = vmatprep.mubr.bf16.mxu0 %v1908_v19  ;;  %3226 = vmatprep.mubr.bf16.mxu1 %v1888_v27  ;;  %v3917_v19 = vld [vmem:[%s3431_s5 + $0xb0] sm:$0xff]  ;;  %v1197_v15 = vrot.slane %v3920_v45, 7  ;;  %v1199_v0 = vrot.slane %v238_v3, 7  ;;  %v1917_v34 = vpack.c.bf16 %v238_v3, %v237_v36 }
  0x88   : > { %v1673_v13 = vsel %vm1623_vm4, %v1572_v30, %v1573_v33  ;;  %v1674_v27 = vsel %vm1623_vm4, %v1571_v14, %v1572_v30  ;;  %v1196_v55 = vrot.slane %v3917_v19, 7  ;;  %v1914_v17 = vpack.c.bf16 %v3920_v45, %v3917_v19 }
  0x89   : > { %v1900_v63 = vpack.c.bf16 %v1673_v13, %v1674_v27  ;;  %v1670_v14 = vsel %vm1623_vm4, %v1575_v37, %v1576_v54  ;;  %v1903_v30 = vpack.c.bf16 %v1671_v38, %v1672_v29  ;;  %v1581_v13 = vrot.slane %v3917_v19, 1 }
  0x8a   : > { %v1280_v8 = vsel %vm1238_vm0, %v1195_v11, %v1196_v55  ;;  %v1198_v11 = vrot.slane %v237_v36, 7 }
  0x8b   : > { %v1665_v19 = vsel %vm1623_vm4, %v1580_v12, %v1581_v13 }
  0x8c   : > { %v1278_v27 = vsel %vm1238_vm0, %v1197_v15, %v1198_v11 }
  0x8e   : > { %2280 = vmatmul.mubr.bf16.gmra.mrb[36].mxu0 %v1907_v39  ;;  %3227 = vmatmul.mubr.bf16.gmra.mrb[36].mxu1 %v1891_v56  ;;  %v1577_v39 = vrot.slane %v3865_v4, 1  ;;  %v1279_v56 = vsel %vm1238_vm0, %v1196_v55, %v1197_v15  ;;  %v1666_v55 = vsel %vm1623_vm4, %v1579_v60, %v1580_v12 }
  0x8f   : > { %2287 = vmatprep.mubr.bf16.mxu0 %v1911_v51  ;;  %3230 = vmatprep.mubr.bf16.mxu1 %v1894_v7  ;;  %v1578_v51 = vrot.slane %v3868_v57, 1  ;;  %v1913_v7 = vpack.c.bf16 %v1279_v56, %v1280_v8  ;;  %v1277_v57 = vsel %vm1238_vm0, %v1198_v11, %v1199_v0  ;;  %v1584_v8 = vrot.slane %v238_v3, 1 }
  0x90   : > { %v1669_v4 = vsel %vm1623_vm4, %v1576_v54, %v1577_v39  ;;  %v1916_v15 = vpack.c.bf16 %v1277_v57, %v1278_v27  ;;  %v1583_v54 = vrot.slane %v237_v36, 1  ;;  %v241_v36 = vld [vmem:[%s3431_s5 + $0xe0] sm:$0xff]  ;;  %v1586_v11 = vrot.slane %v240_v42, 1 }
  0x91   : > { %v1906_v33 = vpack.c.bf16 %v1669_v4, %v1670_v14  ;;  %v1667_v46 = vsel %vm1623_vm4, %v1578_v51, %v1579_v60  ;;  %v1587_v12 = vrot.slane %v241_v36, 1 }
  0x96   : > { %2288 = vmatmul.mubr.bf16.gmra.mrb[40].mxu0 %v1910_v9  ;;  %3231 = vmatmul.mubr.bf16.gmra.mrb[40].mxu1 %v1897_v32  ;;  %v1668_v9 = vsel %vm1623_vm4, %v1577_v39, %v1578_v51  ;;  %v239_v32 = vld [vmem:[%s3431_s5 + $0xd0] sm:$0xff]  ;;  %v1912_v39 = vpack.c.bf16 %v1665_v19, %v1666_v55  ;;  %v242_v51 = vld [vmem:[%s3431_s5 + $0xe8] sm:$0xff]  ;;  %v244_v55 = vld [vmem:[%s3431_s5 + $0xf8] sm:$0xff] }
  0x97   : > { %2295 = vmatprep.mubr.bf16.mxu0 %v1914_v17  ;;  %3234 = vmatprep.mubr.bf16.mxu1 %v1900_v63  ;;  %v1909_v22 = vpack.c.bf16 %v1667_v46, %v1668_v9  ;;  %v1200_v37 = vrot.slane %v239_v32, 7  ;;  %v1201_v17 = vrot.slane %v240_v42, 7  ;;  %v1582_v63 = vrot.slane %v3920_v45, 1 }
  0x98   : > { %v1920_v56 = vpack.c.bf16 %v240_v42, %v239_v32  ;;  %v1585_v38 = vrot.slane %v239_v32, 1  ;;  %v1923_v27 = vpack.c.bf16 %v242_v51, %v241_v36  ;;  %v1659_v42 = vsel %vm1623_vm4, %v1586_v11, %v1587_v12 }
  0x99   : > { %v1275_v29 = vsel %vm1238_vm0, %v1200_v37, %v1201_v17  ;;  %v1276_v4 = vsel %vm1238_vm0, %v1199_v0, %v1200_v37  ;;  %v1663_v14 = vsel %vm1623_vm4, %v1582_v63, %v1583_v54  ;;  %v1664_v45 = vsel %vm1623_vm4, %v1581_v13, %v1582_v63  ;;  %v245_v37 = vld [vmem:[%s3431_s5 + $0x100] sm:$0xff]  ;;  %v3998_v63 = vld [vmem:[%s3431_s5 + $0x108] sm:$0xff] }
  0x9a   : > { %v1661_v3 = vsel %vm1623_vm4, %v1584_v8, %v1585_v38  ;;  %v1919_v60 = vpack.c.bf16 %v1275_v29, %v1276_v4  ;;  %v1202_v0 = vrot.slane %v241_v36, 7  ;;  %v1588_v13 = vrot.slane %v242_v51, 1 }
  0x9b   : > { %v1660_v19 = vsel %vm1623_vm4, %v1585_v38, %v1586_v11  ;;  %v1205_v29 = vrot.slane %v244_v55, 7  ;;  %v1590_v4 = vrot.slane %v244_v55, 1 }
  0x9c   : > { %v1274_v9 = vsel %vm1238_vm0, %v1201_v17, %v1202_v0  ;;  %v309_v17 = vadd.s32 248, %v3491_v21 }
  0x9e   : > { %2296 = vmatmul.mubr.bf16.gmra.mrb[44].mxu0 %v1913_v7  ;;  %3235 = vmatmul.mubr.bf16.gmra.mrb[44].mxu1 %v1903_v30  ;;  %v1662_v7 = vsel %vm1623_vm4, %v1583_v54, %v1584_v8  ;;  %v243_v30 = vld [vmem:[%s3431_s5 + $0xf0] sm:$0xff]  ;;  %v563_v36 = vand.u32 255, %v309_v17 }
  0x9f   : > { %2303 = vmatprep.mubr.bf16.mxu0 %v1917_v34  ;;  %3238 = vmatprep.mubr.bf16.mxu1 %v1906_v33  ;;  %v1915_v34 = vpack.c.bf16 %v1663_v14, %v1664_v45  ;;  %v1203_v33 = vrot.slane %v242_v51, 7  ;;  %v1918_v57 = vpack.c.bf16 %v1661_v3, %v1662_v7  ;;  %v1589_v46 = vrot.slane %v243_v30, 1  ;;  %v4001_v54 = vld [vmem:[%s3431_s5 + $0x110] sm:$0xff] }
  0xa0   : > { %v1204_v8 = vrot.slane %v243_v30, 7  ;;  %v1926_v38 = vpack.c.bf16 %v244_v55, %v243_v30  ;;  %v1591_v45 = vrot.slane %v245_v37, 1  ;;  %v1592_v51 = vrot.slane %v3998_v63, 1 }
  0xa1   : > { %v1273_v32 = vsel %vm1238_vm0, %v1202_v0, %v1203_v33  ;;  %v1593_v3 = vrot.slane %v4001_v54, 1  ;;  %vm3164_vm5 = vcmp.ne.s32.totalorder %v563_v36, 255  ;;  %v4053_v36 = vld [vmem:[%s3431_s5 + $0x140] sm:$0xff] }
  0xa2   : > { %v1271_v7 = vsel %vm1238_vm0, %v1204_v8, %v1205_v29  ;;  %v1272_v30 = vsel %vm1238_vm0, %v1203_v33, %v1204_v8  ;;  %v1655_v11 = vsel %vm1623_vm4, %v1590_v4, %v1591_v45  ;;  %v1654_v0 = vsel %vm1623_vm4, %v1591_v45, %v1592_v51  ;;  %v4025_v33 = vld [vmem:[%s3431_s5 + $0x128] sm:$0xff]  ;;  %vm3153_vm6 = vmpackc.low %vm3164_vm5, %vm3363_vm2  ;;  %v4050_v45 = vld [vmem:[%s3431_s5 + $0x138] sm:$0xff] }
  0xa6   : > { %2304 = vmatmul.mubr.bf16.gmra.mrb[48].mxu0 %v1916_v15  ;;  %3239 = vmatmul.mubr.bf16.gmra.mrb[48].mxu1 %v1909_v22  ;;  %v1657_v15 = vsel %vm1623_vm4, %v1588_v13, %v1589_v46  ;;  %v1658_v22 = vsel %vm1623_vm4, %v1587_v12, %v1588_v13  ;;  %v310_v12 = vadd.s32 256, %v3491_v21  ;;  %v4028_v13 = vld [vmem:[%s3431_s5 + $0x130] sm:$0xff] }
  0xa7   : > { %2311 = vmatprep.mubr.bf16.mxu0 %v1920_v56  ;;  %3242 = vmatprep.mubr.bf16.mxu1 %v1912_v39  ;;  %v1922_v56 = vpack.c.bf16 %v1273_v32, %v1274_v9  ;;  %v1921_v39 = vpack.c.bf16 %v1659_v42, %v1660_v19  ;;  %v1924_v14 = vpack.c.bf16 %v1657_v15, %v1658_v22  ;;  %v1206_v42 = vrot.slane %v245_v37, 7 }
  0xa8   : > { %v1925_v9 = vpack.c.bf16 %v1271_v7, %v1272_v30  ;;  %v1929_v19 = vpack.c.bf16 %v3998_v63, %v245_v37  ;;  %v570_v17 = vand.u32 255, %v310_v12  ;;  %v1599_v12 = vrot.slane %v4053_v36, 1 }
  0xa9   : > { %v1270_v37 = vsel %vm1238_vm0, %v1205_v29, %v1206_v42  ;;  %v4059_v29 = vld [vmem:[%s3431_s5 + $0x150] sm:$0xff] }
  0xaa   : > { %vm3163_vm7 = vcmp.ne.s32.totalorder %v570_v17, 0  ;;  %v4089_v17 = vld [vmem:[%s3431_s5 + $0x168] sm:$0xff] }
  0xab   : > { %vm3149_vm8 = vmpackc.low %vm3363_vm2, %vm3163_vm7  ;;  %v1219_v28 = vrot.slane %v4089_v17, 7 }
  0xae   : > { %2312 = vmatmul.mubr.bf16.gmra.mrb[52].mxu0 %v1919_v60  ;;  %3243 = vmatmul.mubr.bf16.gmra.mrb[52].mxu1 %v1915_v34  ;;  %v1656_v60 = vsel %vm1623_vm4, %v1589_v46, %v1590_v4  ;;  %v1653_v34 = vsel %vm1623_vm4, %v1592_v51, %v1593_v3  ;;  %v1207_v46 = vrot.slane %v3998_v63, 7  ;;  %v4056_v51 = vld [vmem:[%s3431_s5 + $0x148] sm:$0xff] }
  0xaf   : > { %2319 = vmatprep.mubr.bf16.mxu0 %v1923_v27  ;;  %3246 = vmatprep.mubr.bf16.mxu1 %v1918_v57  ;;  %v4019_v27 = vld [vmem:[%s3431_s5 + $0x118] sm:$0xff]  ;;  %v4022_v57 = vld [vmem:[%s3431_s5 + $0x120] sm:$0xff]  ;;  %v3154_v32 = vpack.c.bf16 %v1655_v11, %v1656_v60  ;;  %v1930_v55 = vpack.c.bf16 %v1653_v34, %v1654_v0  ;;  %v1208_v11 = vrot.slane %v4001_v54, 7  ;;  %v1598_v0 = vrot.slane %v4050_v45, 1 }
  0xb0   : > { %v1594_v15 = vrot.slane %v4019_v27, 1  ;;  %v1595_v22 = vrot.slane %v4022_v57, 1  ;;  %v1269_v8 = vsel %vm1238_vm0, %v1206_v42, %v1207_v46  ;;  %v1209_v34 = vrot.slane %v4019_v27, 7 }
  0xb1   : > { %v3150_v7 = vpack.c.bf16 %v1269_v8, %v1270_v37  ;;  %v1647_v42 = vsel %vm1623_vm4, %v1598_v0, %v1599_v12 }
  0xb2   : > { %v1651_v63 = vsel %vm1623_vm4, %v1594_v15, %v1595_v22  ;;  %v1652_v4 = vsel %vm1623_vm4, %v1593_v3, %v1594_v15  ;;  %v1932_v3 = vpack.c.bf16 %v4019_v27, %v4001_v54  ;;  %v1268_v54 = vsel %vm1238_vm0, %v1207_v46, %v1208_v11  ;;  %v4086_v46 = vld [vmem:[%s3431_s5 + $0x160] sm:$0xff] }
  0xb3   : > { %v1933_v30 = vpack.c.bf16 %v1651_v63, %v1652_v4  ;;  %v1267_v27 = vsel %vm1238_vm0, %v1208_v11, %v1209_v34  ;;  %v1210_v63 = vrot.slane %v4022_v57, 7  ;;  %v1935_v4 = vpack.c.bf16 %v4025_v33, %v4022_v57 }
  0xb4   : > { %v1931_v8 = vpack.c.bf16 %v1267_v27, %v1268_v54  ;;  %v1212_v27 = vrot.slane %v4028_v13, 7  ;;  %v1218_v26 = vrot.slane %v4086_v46, 7 }
  0xb6   : > { %2320 = vmatmul.mubr.bf16.gmra.mrb[56].mxu0 %v1922_v56  ;;  %3247 = vmatmul.mubr.bf16.gmra.mrb[56].mxu1 %v1921_v39  ;;  %v1596_v56 = vrot.slane %v4025_v33, 1  ;;  %v1597_v39 = vrot.slane %v4028_v13, 1 }
  0xb7   : > { %2327 = vmatprep.mubr.bf16.mxu0 %v1926_v38  ;;  %3250 = vmatprep.mubr.bf16.mxu1 %v1924_v14 }
  0xb8   : > { %v1649_v38 = vsel %vm1623_vm4, %v1596_v56, %v1597_v39  ;;  %v1650_v14 = vsel %vm1623_vm4, %v1595_v22, %v1596_v56  ;;  %v4083_v22 = vld [vmem:[%s3431_s5 + $0x158] sm:$0xff]  ;;  %v4092_v56 = vld [vmem:[%s3431_s5 + $0x170] sm:$0xff] }
  0xb9   : > { %v1936_v60 = vpack.c.bf16 %v1649_v38, %v1650_v14  ;;  %v1602_v14 = vrot.slane %v4083_v22, 1 }
  0xbe   : > { %2328 = vmatmul.mubr.bf16.gmra.mrb[60].mxu0 %v1925_v9  ;;  %3251 = vmatmul.mubr.msk.bf16.gmra.mrb[60].mxu1 %vm3153_vm6, %v3154_v32  ;;  %v1600_v9 = vrot.slane %v4056_v51, 1  ;;  %v1601_v32 = vrot.slane %v4059_v29, 1 }
  0xbf   : > { %2335 = vmatprep.mubr.bf16.mxu0 %v1929_v19  ;;  %3254 = vmatprep.mubr.bf16.mxu1 %v1930_v55  ;;  %v1648_v19 = vsel %vm1623_vm4, %v1597_v39, %v1598_v0  ;;  %v1211_v39 = vrot.slane %v4025_v33, 7 }
  0xc0   : > { %v1645_v55 = vsel %vm1623_vm4, %v1600_v9, %v1601_v32  ;;  %v1646_v15 = vsel %vm1623_vm4, %v1599_v12, %v1600_v9  ;;  %v1939_v37 = vpack.c.bf16 %v1647_v42, %v1648_v19  ;;  %v1644_v33 = vsel %vm1623_vm4, %v1601_v32, %v1602_v14 }
  0xc1   : > { %v1942_v38 = vpack.c.bf16 %v1645_v55, %v1646_v15  ;;  %v1265_v11 = vsel %vm1238_vm0, %v1210_v63, %v1211_v39  ;;  %v1938_v42 = vpack.c.bf16 %v4050_v45, %v4028_v13  ;;  %v1213_v19 = vrot.slane %v4050_v45, 7 }
  0xc2   : > { %v1606_v55 = vrot.slane %v3502_v24, 1  ;;  %v1264_v32 = vsel %vm1238_vm0, %v1211_v39, %v1212_v27  ;;  %v1214_v39 = vrot.slane %v4053_v36, 7 }
  0xc3   : > { %v1263_v15 = vsel %vm1238_vm0, %v1212_v27, %v1213_v19 }
  0xc4   : > { %v1639_v13 = vsel %vm1623_vm4, %v1606_v55, %v1607_v2  ;;  %v1262_v2 = vsel %vm1238_vm0, %v1213_v19, %v1214_v39 }
  0xc6   : > { %3151 = vmatmul.mubr.msk.bf16.gmra.mrb[64].mxu0 %vm3149_vm8, %v3150_v7  ;;  %3255 = vmatmul.mubr.bf16.gmra.mrb[64].mxu1 %v1933_v30  ;;  %v1603_v7 = vrot.slane %v4086_v46, 1  ;;  %v1604_v30 = vrot.slane %v4089_v17, 1 }
  0xc7   : > { %2343 = vmatprep.mubr.bf16.mxu0 %v1932_v3  ;;  %3258 = vmatprep.mubr.bf16.mxu1 %v1936_v60  ;;  %v1605_v3 = vrot.slane %v4092_v56, 1  ;;  %v1266_v60 = vsel %vm1238_vm0, %v1209_v34, %v1210_v63  ;;  %v1941_v63 = vpack.c.bf16 %v4056_v51, %v4053_v36  ;;  %v1216_v36 = vrot.slane %v4059_v29, 7 }
  0xc8   : > { %v1643_v57 = vsel %vm1623_vm4, %v1602_v14, %v1603_v7  ;;  %v1642_v12 = vsel %vm1623_vm4, %v1603_v7, %v1604_v30  ;;  %v1934_v9 = vpack.c.bf16 %v1265_v11, %v1266_v60  ;;  %v1944_v14 = vpack.c.bf16 %v4083_v22, %v4059_v29 }
  0xc9   : > { %v1641_v0 = vsel %vm1623_vm4, %v1604_v30, %v1605_v3  ;;  %v1945_v54 = vpack.c.bf16 %v1643_v57, %v1644_v33  ;;  %v1640_v45 = vsel %vm1623_vm4, %v1605_v3, %v1606_v55  ;;  %v1947_v29 = vpack.c.bf16 %v4089_v17, %v4086_v46  ;;  %v3352_v46 = vld [vmem:[%s3431_s5 + $0x178] sm:$0xff] }
  0xca   : > { %v1948_v34 = vpack.c.bf16 %v1641_v0, %v1642_v12  ;;  %v1950_v44 = vpack.c.bf16 %v3352_v46, %v4092_v56  ;;  %v787_v17 = vand.u32 255, %v341_v48 }
  0xcc   : > { %vm3165_vm9 = vcmp.ne.s32.totalorder %v787_v17, 255 }
  0xcd   : > { %vm3157_vm10 = vmpackc.low %vm3165_vm9, %vm3363_vm2 }
  0xce   : > { %2344 = vmatmul.mubr.bf16.gmra.mrb[68].mxu0 %v1931_v8  ;;  %3259 = vmatmul.mubr.bf16.gmra.mrb[68].mxu1 %v1939_v37  ;;  %v1937_v8 = vpack.c.bf16 %v1263_v15, %v1264_v32  ;;  %v1951_v37 = vpack.c.bf16 %v1639_v13, %v1640_v45 }
  0xcf   : > { %2351 = vmatprep.mubr.bf16.mxu0 %v1935_v4  ;;  %3262 = vmatprep.mubr.bf16.mxu1 %v1942_v38  ;;  %v1215_v4 = vrot.slane %v4056_v51, 7  ;;  %v1217_v51 = vrot.slane %v4083_v22, 7  ;;  %v1220_v22 = vrot.slane %v4092_v56, 7 }
  0xd1   : > { %v1261_v10 = vsel %vm1238_vm0, %v1214_v39, %v1215_v4  ;;  %v1259_v41 = vsel %vm1238_vm0, %v1216_v36, %v1217_v51  ;;  %v1260_v58 = vsel %vm1238_vm0, %v1215_v4, %v1216_v36  ;;  %v1258_v47 = vsel %vm1238_vm0, %v1217_v51, %v1218_v26 }
  0xd2   : > { %v1940_v38 = vpack.c.bf16 %v1261_v10, %v1262_v2  ;;  %v1255_v59 = vsel %vm1238_vm0, %v1220_v22, %v1221_v31  ;;  %v1256_v18 = vsel %vm1238_vm0, %v1219_v28, %v1220_v22 }
  0xd3   : > { %v1949_v31 = vpack.c.bf16 %v1255_v59, %v1256_v18 }
  0xd6   : > { %2352 = vmatmul.mubr.bf16.gmra.mrb[72].mxu0 %v1934_v9  ;;  %3263 = vmatmul.mubr.bf16.gmra.mrb[72].mxu1 %v1945_v54 }
  0xd7   : > { %2359 = vmatprep.mubr.bf16.mxu0 %v1938_v42  ;;  %3266 = vmatprep.mubr.bf16.mxu1 %v1948_v34 }
  0xde   : > { %2360 = vmatmul.mubr.bf16.gmra.mrb[76].mxu0 %v1937_v8  ;;  %3267 = vmatmul.mubr.bf16.gmra.mrb[76].mxu1 %v1951_v37 }
  0xdf   : > { %2367 = vmatprep.mubr.bf16.mxu0 %v1941_v63  ;;  %3270 = vmatprep.mubr.bf16.mxu1 %v1954_v25  ;;  %v1943_v25 = vpack.c.bf16 %v1259_v41, %v1260_v58 }
  0xe6   : > { %2368 = vmatmul.mubr.bf16.gmra.mrb[80].mxu0 %v1940_v38  ;;  %3271 = vmatmul.mubr.bf16.gmra.mrb[80].mxu1 %v1957_v35  ;;  %v1257_v35 = vsel %vm1238_vm0, %v1218_v26, %v1219_v28 }
  0xe7   : > { %2375 = vmatprep.mubr.bf16.mxu0 %v1944_v14  ;;  %3274 = vmatprep.mubr.bf16.mxu1 %v1960_v43  ;;  %v1946_v43 = vpack.c.bf16 %v1257_v35, %v1258_v47 }
  0xee   : > { %2376 = vmatmul.mubr.bf16.gmra.mrb[84].mxu0 %v1943_v25  ;;  %3275 = vmatmul.mubr.bf16.gmra.mrb[84].mxu1 %v1963_v1  ;;  %v1622_v1 = vrot.slane %v3353_v40, 1 }
  0xef   : > { %2383 = vmatprep.mubr.bf16.mxu0 %v1947_v29  ;;  %3278 = vmatprep.mubr.bf16.mxu1 %v1966_v16 }
  0xf0   : > { %v1624_v16 = vsel %vm1623_vm4, %v1621_v52, %v1622_v1  ;;  %v1687_v24 = vsel %vm1623_vm4, %v1622_v1, %v1559_v53 }
  0xf1   : > { %v3158_v49 = vpack.c.bf16 %v1687_v24, %v1624_v16 }
  0xf6   : > { %2384 = vmatmul.mubr.bf16.gmra.mrb[88].mxu0 %v1946_v43  ;;  %3279 = vmatmul.mubr.bf16.gmra.mrb[88].mxu1 %v1969_v61 }
  0xf7   : > { %2391 = vmatprep.mubr.bf16.mxu0 %v1950_v44  ;;  %3282 = vmatprep.mubr.bf16.mxu1 %v1972_v62 }
  0xfe   : > { %2392 = vmatmul.mubr.bf16.gmra.mrb[92].mxu0 %v1949_v31  ;;  %3283 = vmatmul.mubr.msk.bf16.gmra.mrb[92].mxu1 %vm3157_vm10, %v3158_v49 }
 0x119   : > { %v4194_v50 = vpop.f32.mrb[0].mxu0  ;;  %v4196_v61 = vpop.f32.mrb[0].mxu1 }
 0x11a   : > { %v2211_v20 = vpop.f32.mrb[1].mxu0  ;;  %v2403_v5 = vpop.f32.mrb[1].mxu1 }
 0x11b   : > { %v4198_v23 = vpop.f32.mrb[2].mxu0  ;;  %v4200_v52 = vpop.f32.mrb[2].mxu1  ;;  %v4257_v20 = vld [vmem:[%s4548_s2] ss:$0 sm:$0xff] }
 0x11c   : > { %v2214_v6 = vpop.f32.mrb[3].mxu0  ;;  %v2406_v21 = vpop.f32.mrb[3].mxu1 }
 0x11d   : > { %v2210_v6 = vadd.f32 %v4257_v20, %v4194_v50 }
 0x121   : > { %v2217_v53 = vpop.f32.mrb[4].mxu0  ;;  %v4202_v62 = vpop.f32.mrb[4].mxu1 }
 0x122   : > { %v2219_v56 = vpop.f32.mrb[5].mxu0  ;;  %v2411_v7 = vpop.f32.mrb[5].mxu1  ;;  %v2218_v5 = vadd.f32 %v4257_v20, %v2217_v53 }
 0x123   : > { %v2220_v30 = vpop.f32.mrb[6].mxu0  ;;  %v4204_v3 = vpop.f32.mrb[6].mxu1 }
 0x124   : > { %v2222_v11 = vpop.f32.mrb[7].mxu0  ;;  %v2414_v60 = vpop.f32.mrb[7].mxu1  ;;  %v2221_v7 = vadd.f32 %v4257_v20, %v2220_v30 }
 0x129   : > { %v4206_v57 = vpop.f32.mrb[8].mxu0  ;;  %v4208_v33 = vpop.f32.mrb[8].mxu1 }
 0x12a   : > { %v2227_v0 = vpop.f32.mrb[9].mxu0  ;;  %v2419_v12 = vpop.f32.mrb[9].mxu1 }
 0x12b   : > { %v4210_v9 = vpop.f32.mrb[10].mxu0  ;;  %v4212_v54 = vpop.f32.mrb[10].mxu1  ;;  %v2213_v0 = vadd.f32 %v4257_v20, %v4198_v23  ;;  %v2226_v23 = vadd.f32 %v4257_v20, %v4206_v57 }
 0x12c   : > { %v2230_v27 = vpop.f32.mrb[11].mxu0  ;;  %v2422_v42 = vpop.f32.mrb[11].mxu1 }
 0x131   : > { %v4214_v34 = vpop.f32.mrb[12].mxu0  ;;  %v4216_v19 = vpop.f32.mrb[12].mxu1 }
 0x132   : > { %v2235_v55 = vpop.f32.mrb[13].mxu0  ;;  %v2427_v32 = vpop.f32.mrb[13].mxu1 }
 0x133   : > { %v4218_v15 = vpop.f32.mrb[14].mxu0  ;;  %v4220_v13 = vpop.f32.mrb[14].mxu1 }
 0x134   : > { %v2238_v45 = vpop.f32.mrb[15].mxu0  ;;  %v2430_v8 = vpop.f32.mrb[15].mxu1 }
 0x139   : > { %v4222_v37 = vpop.f32.mrb[16].mxu0  ;;  %v4224_v63 = vpop.f32.mrb[16].mxu1 }
 0x13a   : > { %v2243_v39 = vpop.f32.mrb[17].mxu0  ;;  %v2435_v4 = vpop.f32.mrb[17].mxu1 }
 0x13b   : > { %v4226_v10 = vpop.f32.mrb[18].mxu0  ;;  %v4228_v2 = vpop.f32.mrb[18].mxu1  ;;  %v2234_v4 = vadd.f32 %v4257_v20, %v4214_v34 }
 0x13c   : > { %v2246_v38 = vpop.f32.mrb[19].mxu0  ;;  %v2438_v14 = vpop.f32.mrb[19].mxu1 }
 0x141   : > { %v4230_v36 = vpop.f32.mrb[20].mxu0  ;;  %v4232_v51 = vpop.f32.mrb[20].mxu1 }
 0x142   : > { %v2251_v41 = vpop.f32.mrb[21].mxu0  ;;  %v2443_v58 = vpop.f32.mrb[21].mxu1 }
 0x143   : > { %v4234_v25 = vpop.f32.mrb[22].mxu0  ;;  %v4236_v29 = vpop.f32.mrb[22].mxu1 }
 0x144   : > { %v2254_v26 = vpop.f32.mrb[23].mxu0  ;;  %v2446_v28 = vpop.f32.mrb[23].mxu1 }
 0x145   : > { %v2229_v28 = vadd.f32 %v4257_v20, %v4210_v9 }
 0x149   : > { %v4238_v35 = vpop.f32.mrb[24].mxu0  ;;  %v4240_v47 = vpop.f32.mrb[24].mxu1 }
 0x14a   : > { %v2259_v48 = vpop.f32.mrb[25].mxu0  ;;  %v2451_v43 = vpop.f32.mrb[25].mxu1 }
 0x14b   : > { %v4242_v22 = vpop.f32.mrb[26].mxu0  ;;  %v4244_v46 = vpop.f32.mrb[26].mxu1  ;;  %v2237_v48 = vadd.f32 %v4257_v20, %v4218_v15 }
 0x14c   : > { %v2262_v44 = vpop.f32.mrb[27].mxu0  ;;  %v2454_v40 = vpop.f32.mrb[27].mxu1 }
 0x151   : > { %v4246_v1 = vpop.f32.mrb[28].mxu0  ;;  %v4248_v17 = vpop.f32.mrb[28].mxu1 }
 0x152   : > { %v2267_v59 = vpop.f32.mrb[29].mxu0  ;;  %v2459_v18 = vpop.f32.mrb[29].mxu1 }
 0x153   : > { %v4250_v16 = vpop.f32.mrb[30].mxu0  ;;  %v4252_v24 = vpop.f32.mrb[30].mxu1 }
 0x154   : > { %v2270_v31 = vpop.f32.mrb[31].mxu0  ;;  %v2462_v49 = vpop.f32.mrb[31].mxu1 }
 0x159   : > { %v4269_v21 = vpop.f32.mrb[32].mxu0  ;;  %v3224_v56 = vpop.f32.mrb[32].mxu1 }
 0x15a   : > { %v2507_v11 = vadd.f32 %v3224_v56, %v2218_v5  ;;  %v2275_v53 = vpop.f32.mrb[33].mxu0  ;;  %v2498_v60 = vpop.f32.mrb[33].mxu1 }
 0x15b   : > { %v2499_v12 = vadd.f32 %v2498_v60, %v2210_v6  ;;  %v4274_v27 = vpop.f32.mrb[34].mxu0  ;;  %v3225_v42 = vpop.f32.mrb[34].mxu1 }
 0x15c   : > { %2755 = vst [vmem:[%s4265_s30 + $0x10] sm:$0xff] %v2507_v11  ;;  %v2510_v55 = vadd.f32 %v3225_v42, %v2221_v7  ;;  %v2278_v50 = vpop.f32.mrb[35].mxu0  ;;  %v2501_v32 = vpop.f32.mrb[35].mxu1  ;;  %v2888_v38 = vmul.f32 %v2507_v11, %v2507_v11  ;;  %v2242_v42 = vadd.f32 %v4257_v20, %v4222_v37 }
 0x15d   : > { %2753 = vst [vmem:[%s4265_s30] sm:$0xff] %v2499_v12  ;;  %v2502_v45 = vadd.f32 %v2501_v32, %v2213_v0  ;;  %v2886_v8 = vmul.f32 %v2499_v12, %v2499_v12 }
 0x15e   : > { %2756 = vst [vmem:[%s4265_s30 + $0x18] sm:$0xff] %v2510_v55  ;;  %v2889_v40 = vmul.f32 %v2510_v55, %v2510_v55 }
 0x15f   : > { %2754 = vst [vmem:[%s4265_s30 + $0x8] sm:$0xff] %v2502_v45  ;;  %v2817_v30 = vadd.f32 %v2502_v45, %v2499_v12  ;;  %v2887_v39 = vmul.f32 %v2502_v45, %v2502_v45  ;;  %v2250_v12 = vadd.f32 %v4257_v20, %v4230_v36 }
 0x161   : > { %v2818_v14 = vadd.f32 %v2817_v30, %v2507_v11  ;;  %v2950_v41 = vadd.f32 %v2887_v39, %v2886_v8  ;;  %v4284_v58 = vpop.f32.mrb[36].mxu0  ;;  %v3228_v26 = vpop.f32.mrb[36].mxu1  ;;  %v2245_v30 = vadd.f32 %v4257_v20, %v4226_v10  ;;  %v2253_v39 = vadd.f32 %v4257_v20, %v4234_v25 }
 0x162   : > { %v2523_v43 = vadd.f32 %v3228_v26, %v2234_v4  ;;  %v2283_v44 = vpop.f32.mrb[37].mxu0  ;;  %v2514_v34 = vpop.f32.mrb[37].mxu1 }
 0x163   : > { %v2951_v57 = vadd.f32 %v2950_v41, %v2888_v38  ;;  %v2515_v59 = vadd.f32 %v2514_v34, %v2226_v23  ;;  %v2819_v18 = vadd.f32 %v2818_v14, %v2510_v55  ;;  %v4290_v31 = vpop.f32.mrb[38].mxu0  ;;  %v3229_v49 = vpop.f32.mrb[38].mxu1 }
 0x164   : > { %2759 = vst [vmem:[%s4265_s30 + $0x30] sm:$0xff] %v2523_v43  ;;  %v2526_v5 = vadd.f32 %v3229_v49, %v2237_v48  ;;  %v2286_v6 = vpop.f32.mrb[39].mxu0  ;;  %v2517_v56 = vpop.f32.mrb[39].mxu1  ;;  %v2892_v55 = vmul.f32 %v2523_v43, %v2523_v43  ;;  %v2266_v49 = vadd.f32 %v4257_v20, %v4246_v1 }
 0x165   : > { %2757 = vst [vmem:[%s4265_s30 + $0x20] sm:$0xff] %v2515_v59  ;;  %v2820_v9 = vadd.f32 %v2819_v18, %v2515_v59  ;;  %v2890_v7 = vmul.f32 %v2515_v59, %v2515_v59  ;;  %v2952_v15 = vadd.f32 %v2951_v57, %v2889_v40  ;;  %v2518_v11 = vadd.f32 %v2517_v56, %v2229_v28 }
 0x166   : > { %2760 = vst [vmem:[%s4265_s30 + $0x38] sm:$0xff] %v2526_v5  ;;  %v2893_v38 = vmul.f32 %v2526_v5, %v2526_v5 }
 0x167   : > { %v2953_v53 = vadd.f32 %v2952_v15, %v2890_v7  ;;  %2758 = vst [vmem:[%s4265_s30 + $0x28] sm:$0xff] %v2518_v11  ;;  %v2821_v60 = vadd.f32 %v2820_v9, %v2518_v11  ;;  %v2891_v0 = vmul.f32 %v2518_v11, %v2518_v11  ;;  %v2261_v11 = vadd.f32 %v4257_v20, %v4242_v22 }
 0x169   : > { %v2822_v50 = vadd.f32 %v2821_v60, %v2523_v43  ;;  %v2954_v32 = vadd.f32 %v2953_v53, %v2891_v0  ;;  %v4300_v45 = vpop.f32.mrb[40].mxu0  ;;  %v3232_v8 = vpop.f32.mrb[40].mxu1  ;;  %v2269_v53 = vadd.f32 %v4257_v20, %v4250_v16 }
 0x16a   : > { %v2539_v4 = vadd.f32 %v3232_v8, %v2250_v12  ;;  %v2291_v23 = vpop.f32.mrb[41].mxu0  ;;  %v2530_v36 = vpop.f32.mrb[41].mxu1 }
 0x16b   : > { %v2955_v37 = vadd.f32 %v2954_v32, %v2892_v55  ;;  %v2531_v14 = vadd.f32 %v2530_v36, %v2242_v42  ;;  %v2823_v41 = vadd.f32 %v2822_v50, %v2526_v5  ;;  %v4306_v26 = vpop.f32.mrb[42].mxu0  ;;  %v3233_v28 = vpop.f32.mrb[42].mxu1  ;;  %v2258_v5 = vadd.f32 %v4257_v20, %v4238_v35 }
 0x16c   : > { %2763 = vst [vmem:[%s4265_s30 + $0x50] sm:$0xff] %v2539_v4  ;;  %v2542_v48 = vadd.f32 %v3233_v28, %v2253_v39  ;;  %v2294_v43 = vpop.f32.mrb[43].mxu0  ;;  %v2533_v44 = vpop.f32.mrb[43].mxu1  ;;  %v2896_v6 = vmul.f32 %v2539_v4, %v2539_v4 }
 0x16d   : > { %2761 = vst [vmem:[%s4265_s30 + $0x40] sm:$0xff] %v2531_v14  ;;  %v2824_v10 = vadd.f32 %v2823_v41, %v2531_v14  ;;  %v2894_v34 = vmul.f32 %v2531_v14, %v2531_v14  ;;  %v2956_v25 = vadd.f32 %v2955_v37, %v2893_v38  ;;  %v2534_v40 = vadd.f32 %v2533_v44, %v2245_v30 }
 0x16e   : > { %2764 = vst [vmem:[%s4265_s30 + $0x58] sm:$0xff] %v2542_v48  ;;  %v2897_v1 = vmul.f32 %v2542_v48, %v2542_v48  ;;  %v2282_v14 = vadd.f32 %v4257_v20, %v4284_v58  ;;  %v2274_v41 = vadd.f32 %v4257_v20, %v4269_v21 }
 0x16f   : > { %v2957_v57 = vadd.f32 %v2956_v25, %v2894_v34  ;;  %2762 = vst [vmem:[%s4265_s30 + $0x48] sm:$0xff] %v2534_v40  ;;  %v2825_v59 = vadd.f32 %v2824_v10, %v2534_v40  ;;  %v2895_v18 = vmul.f32 %v2534_v40, %v2534_v40  ;;  %v2277_v34 = vadd.f32 %v4257_v20, %v4274_v27 }
 0x170   : > { %v2285_v25 = vadd.f32 %v4257_v20, %v4290_v31 }
 0x171   : > { %v2826_v56 = vadd.f32 %v2825_v59, %v2539_v4  ;;  %v2958_v9 = vadd.f32 %v2957_v57, %v2895_v18  ;;  %v2297_v7 = vpop.f32.mrb[44].mxu0  ;;  %v3236_v15 = vpop.f32.mrb[44].mxu1 }
 0x172   : > { %v2555_v60 = vadd.f32 %v3236_v15, %v2266_v49  ;;  %v2299_v0 = vpop.f32.mrb[45].mxu0  ;;  %v2546_v12 = vpop.f32.mrb[45].mxu1 }
 0x173   : > { %v2959_v42 = vadd.f32 %v2958_v9, %v2896_v6  ;;  %v2547_v35 = vadd.f32 %v2546_v12, %v2258_v5  ;;  %v2827_v55 = vadd.f32 %v2826_v56, %v2542_v48  ;;  %v2300_v50 = vpop.f32.mrb[46].mxu0  ;;  %v3237_v32 = vpop.f32.mrb[46].mxu1 }
 0x174   : > { %2767 = vst [vmem:[%s4265_s30 + $0x70] sm:$0xff] %v2555_v60  ;;  %v2558_v8 = vadd.f32 %v3237_v32, %v2269_v53  ;;  %v2302_v30 = vpop.f32.mrb[47].mxu0  ;;  %v2549_v39 = vpop.f32.mrb[47].mxu1  ;;  %v2900_v28 = vmul.f32 %v2555_v60, %v2555_v60 }
 0x175   : > { %2765 = vst [vmem:[%s4265_s30 + $0x60] sm:$0xff] %v2547_v35  ;;  %v2828_v22 = vadd.f32 %v2827_v55, %v2547_v35  ;;  %v2898_v4 = vmul.f32 %v2547_v35, %v2547_v35  ;;  %v2960_v23 = vadd.f32 %v2959_v42, %v2897_v1  ;;  %v2550_v16 = vadd.f32 %v2549_v39, %v2261_v11 }
 0x176   : > { %2768 = vst [vmem:[%s4265_s30 + $0x78] sm:$0xff] %v2558_v8  ;;  %v2901_v58 = vmul.f32 %v2558_v8, %v2558_v8  ;;  %v2298_v1 = vadd.f32 %v4257_v20, %v2297_v7  ;;  %v2290_v42 = vadd.f32 %v4257_v20, %v4300_v45  ;;  %v2293_v39 = vadd.f32 %v4257_v20, %v4306_v26 }
 0x177   : > { %v2961_v36 = vadd.f32 %v2960_v23, %v2898_v4  ;;  %2766 = vst [vmem:[%s4265_s30 + $0x68] sm:$0xff] %v2550_v16  ;;  %v2829_v38 = vadd.f32 %v2828_v22, %v2550_v16  ;;  %v2899_v37 = vmul.f32 %v2550_v16, %v2550_v16  ;;  %v2301_v22 = vadd.f32 %v4257_v20, %v2300_v50 }
 0x179   : > { %v2830_v48 = vadd.f32 %v2829_v38, %v2555_v60  ;;  %v2962_v43 = vadd.f32 %v2961_v36, %v2899_v37  ;;  %v2305_v44 = vpop.f32.mrb[48].mxu0  ;;  %v3240_v10 = vpop.f32.mrb[48].mxu1 }
 0x17a   : > { %v2571_v40 = vadd.f32 %v3240_v10, %v2282_v14  ;;  %v2307_v57 = vpop.f32.mrb[49].mxu0  ;;  %v2562_v59 = vpop.f32.mrb[49].mxu1 }
 0x17b   : > { %v2963_v18 = vadd.f32 %v2962_v43, %v2900_v28  ;;  %v2563_v21 = vadd.f32 %v2562_v59, %v2274_v41  ;;  %v2831_v49 = vadd.f32 %v2830_v48, %v2558_v8  ;;  %v2308_v5 = vpop.f32.mrb[50].mxu0  ;;  %v3241_v6 = vpop.f32.mrb[50].mxu1  ;;  %v2306_v59 = vadd.f32 %v4257_v20, %v2305_v44 }
 0x17c   : > { %2771 = vst [vmem:[%s4265_s30 + $0x90] sm:$0xff] %v2571_v40  ;;  %v2574_v56 = vadd.f32 %v3241_v6, %v2285_v25  ;;  %v2310_v9 = vpop.f32.mrb[51].mxu0  ;;  %v2565_v15 = vpop.f32.mrb[51].mxu1  ;;  %v2904_v35 = vmul.f32 %v2571_v40, %v2571_v40 }
 0x17d   : > { %2769 = vst [vmem:[%s4265_s30 + $0x80] sm:$0xff] %v2563_v21  ;;  %v2832_v27 = vadd.f32 %v2831_v49, %v2563_v21  ;;  %v2902_v11 = vmul.f32 %v2563_v21, %v2563_v21  ;;  %v2964_v53 = vadd.f32 %v2963_v18, %v2901_v58  ;;  %v2566_v31 = vadd.f32 %v2565_v15, %v2277_v34 }
 0x17e   : > { %2772 = vst [vmem:[%s4265_s30 + $0x98] sm:$0xff] %v2574_v56  ;;  %v2905_v7 = vmul.f32 %v2574_v56, %v2574_v56 }
 0x17f   : > { %v2965_v60 = vadd.f32 %v2964_v53, %v2902_v11  ;;  %2770 = vst [vmem:[%s4265_s30 + $0x88] sm:$0xff] %v2566_v31  ;;  %v2833_v0 = vadd.f32 %v2832_v27, %v2566_v31  ;;  %v2903_v12 = vmul.f32 %v2566_v31, %v2566_v31 }
 0x181   : > { %v2834_v55 = vadd.f32 %v2833_v0, %v2571_v40  ;;  %v2966_v32 = vadd.f32 %v2965_v60, %v2903_v12  ;;  %v2313_v8 = vpop.f32.mrb[52].mxu0  ;;  %v3244_v30 = vpop.f32.mrb[52].mxu1 }
 0x182   : > { %v2587_v4 = vadd.f32 %v3244_v30, %v2298_v1  ;;  %v2315_v23 = vpop.f32.mrb[53].mxu0  ;;  %v2578_v16 = vpop.f32.mrb[53].mxu1  ;;  %v2314_v57 = vadd.f32 %v4257_v20, %v2313_v8 }
 0x183   : > { %v2967_v36 = vadd.f32 %v2966_v32, %v2904_v35  ;;  %v2579_v45 = vadd.f32 %v2578_v16, %v2290_v42  ;;  %v2835_v38 = vadd.f32 %v2834_v55, %v2574_v56  ;;  %v2316_v37 = vpop.f32.mrb[54].mxu0  ;;  %v3245_v14 = vpop.f32.mrb[54].mxu1  ;;  %v2309_v56 = vadd.f32 %v4257_v20, %v2308_v5 }
 0x184   : > { %2775 = vst [vmem:[%s4265_s30 + $0xb0] sm:$0xff] %v2587_v4  ;;  %v2590_v41 = vadd.f32 %v3245_v14, %v2301_v22  ;;  %v2318_v28 = vpop.f32.mrb[55].mxu0  ;;  %v2581_v48 = vpop.f32.mrb[55].mxu1  ;;  %v2908_v58 = vmul.f32 %v2587_v4, %v2587_v4  ;;  %v2317_v9 = vadd.f32 %v4257_v20, %v2316_v37 }
 0x185   : > { %2773 = vst [vmem:[%s4265_s30 + $0xa0] sm:$0xff] %v2579_v45  ;;  %v2836_v43 = vadd.f32 %v2835_v38, %v2579_v45  ;;  %v2906_v26 = vmul.f32 %v2579_v45, %v2579_v45  ;;  %v2968_v10 = vadd.f32 %v2967_v36, %v2905_v7  ;;  %v2582_v50 = vadd.f32 %v2581_v48, %v2293_v39 }
 0x186   : > { %2776 = vst [vmem:[%s4265_s30 + $0xb8] sm:$0xff] %v2590_v41  ;;  %v2909_v53 = vmul.f32 %v2590_v41, %v2590_v41 }
 0x187   : > { %v2969_v34 = vadd.f32 %v2968_v10, %v2906_v26  ;;  %2774 = vst [vmem:[%s4265_s30 + $0xa8] sm:$0xff] %v2582_v50  ;;  %v2837_v25 = vadd.f32 %v2836_v43, %v2582_v50  ;;  %v2907_v40 = vmul.f32 %v2582_v50, %v2582_v50 }
 0x189   : > { %v2838_v18 = vadd.f32 %v2837_v25, %v2587_v4  ;;  %v2970_v21 = vadd.f32 %v2969_v34, %v2907_v40  ;;  %v2321_v49 = vpop.f32.mrb[56].mxu0  ;;  %v3248_v6 = vpop.f32.mrb[56].mxu1 }
 0x18a   : > { %v2603_v15 = vadd.f32 %v3248_v6, %v2314_v57  ;;  %v2323_v27 = vpop.f32.mrb[57].mxu0  ;;  %v2594_v11 = vpop.f32.mrb[57].mxu1  ;;  %v2322_v4 = vadd.f32 %v4257_v20, %v2321_v49 }
 0x18b   : > { %v2971_v31 = vadd.f32 %v2970_v21, %v2908_v58  ;;  %v2595_v60 = vadd.f32 %v2594_v11, %v2306_v59  ;;  %v2839_v44 = vadd.f32 %v2838_v18, %v2590_v41  ;;  %v2324_v0 = vpop.f32.mrb[58].mxu0  ;;  %v3249_v12 = vpop.f32.mrb[58].mxu1 }
 0x18c   : > { %2779 = vst [vmem:[%s4265_s30 + $0xd0] sm:$0xff] %v2603_v15  ;;  %v2606_v1 = vadd.f32 %v3249_v12, %v2317_v9  ;;  %v2326_v42 = vpop.f32.mrb[59].mxu0  ;;  %v2597_v35 = vpop.f32.mrb[59].mxu1  ;;  %v2912_v23 = vmul.f32 %v2603_v15, %v2603_v15  ;;  %v2325_v38 = vadd.f32 %v4257_v20, %v2324_v0 }
 0x18d   : > { %2777 = vst [vmem:[%s4265_s30 + $0xc0] sm:$0xff] %v2595_v60  ;;  %v2840_v55 = vadd.f32 %v2839_v44, %v2595_v60  ;;  %v2910_v5 = vmul.f32 %v2595_v60, %v2595_v60  ;;  %v2972_v32 = vadd.f32 %v2971_v31, %v2909_v53  ;;  %v2598_v8 = vadd.f32 %v2597_v35, %v2309_v56 }
 0x18e   : > { %2780 = vst [vmem:[%s4265_s30 + $0xd8] sm:$0xff] %v2606_v1  ;;  %v2913_v28 = vmul.f32 %v2606_v1, %v2606_v1 }
 0x18f   : > { %v2973_v30 = vadd.f32 %v2972_v32, %v2910_v5  ;;  %2778 = vst [vmem:[%s4265_s30 + $0xc8] sm:$0xff] %v2598_v8  ;;  %v2841_v39 = vadd.f32 %v2840_v55, %v2598_v8  ;;  %v2911_v22 = vmul.f32 %v2598_v8, %v2598_v8 }
 0x191   : > { %v2842_v16 = vadd.f32 %v2841_v39, %v2603_v15  ;;  %v2974_v7 = vadd.f32 %v2973_v30, %v2911_v22  ;;  %v2329_v36 = vpop.f32.mrb[60].mxu0  ;;  %v3252_v45 = vpop.f32.mrb[60].mxu1 }
 0x192   : > { %v2330_v37 = vadd.f32 %v4257_v20, %v2329_v36  ;;  %v2331_v14 = vpop.f32.mrb[61].mxu0  ;;  %v2610_v41 = vpop.f32.mrb[61].mxu1 }
 0x193   : > { %v2975_v48 = vadd.f32 %v2974_v7, %v2912_v23  ;;  %v2611_v43 = vadd.f32 %v2610_v41, %v2322_v4  ;;  %v2843_v26 = vadd.f32 %v2842_v16, %v2606_v1  ;;  %v2332_v10 = vpop.f32.mrb[62].mxu0  ;;  %v3253_v50 = vpop.f32.mrb[62].mxu1 }
 0x194   : > { %v2619_v34 = vadd.f32 %v3252_v45, %v2330_v37  ;;  %v2333_v25 = vadd.f32 %v4257_v20, %v2332_v10  ;;  %v2334_v40 = vpop.f32.mrb[63].mxu0  ;;  %v2613_v57 = vpop.f32.mrb[63].mxu1 }
 0x195   : > { %2781 = vst [vmem:[%s4265_s30 + $0xe0] sm:$0xff] %v2611_v43  ;;  %v2844_v59 = vadd.f32 %v2843_v26, %v2611_v43  ;;  %v2914_v58 = vmul.f32 %v2611_v43, %v2611_v43  ;;  %v2976_v18 = vadd.f32 %v2975_v48, %v2913_v28  ;;  %v2614_v21 = vadd.f32 %v2613_v57, %v2325_v38 }
 0x196   : > { %2783 = vst [vmem:[%s4265_s30 + $0xf0] sm:$0xff] %v2619_v34  ;;  %v2622_v49 = vadd.f32 %v3253_v50, %v2333_v25  ;;  %v2916_v15 = vmul.f32 %v2619_v34, %v2619_v34 }
 0x197   : > { %v2977_v6 = vadd.f32 %v2976_v18, %v2914_v58  ;;  %2782 = vst [vmem:[%s4265_s30 + $0xe8] sm:$0xff] %v2614_v21  ;;  %v2845_v56 = vadd.f32 %v2844_v59, %v2614_v21  ;;  %v2915_v9 = vmul.f32 %v2614_v21, %v2614_v21 }
 0x198   : > { %2784 = vst [vmem:[%s4265_s30 + $0xf8] sm:$0xff] %v2622_v49  ;;  %v2917_v12 = vmul.f32 %v2622_v49, %v2622_v49 }
 0x199   : > { %v2846_v27 = vadd.f32 %v2845_v56, %v2619_v34  ;;  %v2978_v11 = vadd.f32 %v2977_v6, %v2915_v9  ;;  %v2337_v53 = vpop.f32.mrb[64].mxu0  ;;  %v3256_v31 = vpop.f32.mrb[64].mxu1 }
 0x19a   : > { %v2338_v60 = vadd.f32 %v4257_v20, %v2337_v53  ;;  %v2339_v44 = vpop.f32.mrb[65].mxu0  ;;  %v2626_v0 = vpop.f32.mrb[65].mxu1 }
 0x19b   : > { %v2979_v1 = vadd.f32 %v2978_v11, %v2916_v15  ;;  %v2340_v42 = vpop.f32.mrb[66].mxu0  ;;  %v2847_v35 = vadd.f32 %v2846_v27, %v2622_v49  ;;  %v3257_v55 = vpop.f32.mrb[66].mxu1 }
 0x19c   : > { %v2341_v5 = vadd.f32 %v4257_v20, %v2340_v42  ;;  %v2627_v32 = vadd.f32 %v2626_v0, %v2338_v60  ;;  %v2342_v8 = vpop.f32.mrb[67].mxu0  ;;  %v2629_v30 = vpop.f32.mrb[67].mxu1 }
 0x19d   : > { %v2980_v39 = vadd.f32 %v2979_v1, %v2917_v12 }
 0x19e   : > { %2785 = vst [vmem:[%s4265_s30 + $0x100] sm:$0xff] %v2627_v32  ;;  %v2848_v22 = vadd.f32 %v2847_v35, %v2627_v32  ;;  %v2918_v4 = vmul.f32 %v2627_v32, %v2627_v32  ;;  %v2630_v23 = vadd.f32 %v2629_v30, %v2341_v5 }
 0x1a0   : > { %v2981_v16 = vadd.f32 %v2980_v39, %v2918_v4  ;;  %2786 = vst [vmem:[%s4265_s30 + $0x108] sm:$0xff] %v2630_v23  ;;  %v2849_v7 = vadd.f32 %v2848_v22, %v2630_v23  ;;  %v2919_v36 = vmul.f32 %v2630_v23, %v2630_v23 }
 0x1a1   : > { %v2345_v45 = vpop.f32.mrb[68].mxu0  ;;  %v3260_v38 = vpop.f32.mrb[68].mxu1 }
 0x1a2   : > { %v2982_v37 = vadd.f32 %v2981_v16, %v2919_v36  ;;  %v2346_v14 = vadd.f32 %v4257_v20, %v2345_v45  ;;  %v2347_v41 = vpop.f32.mrb[69].mxu0  ;;  %v2642_v28 = vpop.f32.mrb[69].mxu1 }
 0x1a3   : > { %v2348_v48 = vpop.f32.mrb[70].mxu0  ;;  %v3261_v43 = vpop.f32.mrb[70].mxu1 }
 0x1a4   : > { %v2635_v26 = vadd.f32 %v3256_v31, %v2346_v14  ;;  %v2349_v10 = vadd.f32 %v4257_v20, %v2348_v48  ;;  %v2350_v50 = vpop.f32.mrb[71].mxu0  ;;  %v2645_v34 = vpop.f32.mrb[71].mxu1 }
 0x1a6   : > { %2787 = vst [vmem:[%s4265_s30 + $0x110] sm:$0xff] %v2635_v26  ;;  %v2850_v25 = vadd.f32 %v2849_v7, %v2635_v26  ;;  %v2920_v40 = vmul.f32 %v2635_v26, %v2635_v26  ;;  %v2638_v57 = vadd.f32 %v3257_v55, %v2349_v10 }
 0x1a8   : > { %v2983_v59 = vadd.f32 %v2982_v37, %v2920_v40  ;;  %2788 = vst [vmem:[%s4265_s30 + $0x118] sm:$0xff] %v2638_v57  ;;  %v2921_v58 = vmul.f32 %v2638_v57, %v2638_v57  ;;  %v2851_v18 = vadd.f32 %v2850_v25, %v2638_v57  ;;  %v2413_v25 = vadd.f32 %v4257_v20, %v4204_v3 }
 0x1a9   : > { %v2353_v21 = vpop.f32.mrb[72].mxu0  ;;  %v4370_v49 = vpop.f32.mrb[72].mxu1 }
 0x1aa   : > { %v2354_v6 = vadd.f32 %v4257_v20, %v2353_v21  ;;  %v2355_v56 = vpop.f32.mrb[73].mxu0  ;;  %v2984_v9 = vadd.f32 %v2983_v59, %v2921_v58  ;;  %v2658_v15 = vpop.f32.mrb[73].mxu1  ;;  %v2405_v58 = vadd.f32 %v4257_v20, %v4200_v52 }
 0x1ab   : > { %v2356_v27 = vpop.f32.mrb[74].mxu0  ;;  %v4373_v11 = vpop.f32.mrb[74].mxu1 }
 0x1ac   : > { %v2357_v53 = vadd.f32 %v4257_v20, %v2356_v27  ;;  %v2643_v31 = vadd.f32 %v2642_v28, %v2354_v6  ;;  %v2358_v60 = vpop.f32.mrb[75].mxu0  ;;  %v2661_v44 = vpop.f32.mrb[75].mxu1  ;;  %v2410_v28 = vadd.f32 %v4257_v20, %v4202_v62 }
 0x1ae   : > { %2789 = vst [vmem:[%s4265_s30 + $0x120] sm:$0xff] %v2643_v31  ;;  %v2852_v0 = vadd.f32 %v2851_v18, %v2643_v31  ;;  %v2922_v12 = vmul.f32 %v2643_v31, %v2643_v31  ;;  %v2646_v1 = vadd.f32 %v2645_v34, %v2357_v53 }
 0x1b0   : > { %v2985_v42 = vadd.f32 %v2984_v9, %v2922_v12  ;;  %2790 = vst [vmem:[%s4265_s30 + $0x128] sm:$0xff] %v2646_v1  ;;  %v2853_v35 = vadd.f32 %v2852_v0, %v2646_v1  ;;  %v2923_v55 = vmul.f32 %v2646_v1, %v2646_v1 }
 0x1b1   : > { %v2361_v5 = vpop.f32.mrb[76].mxu0  ;;  %v4378_v32 = vpop.f32.mrb[76].mxu1 }
 0x1b2   : > { %v2986_v8 = vadd.f32 %v2985_v42, %v2923_v55  ;;  %v2362_v30 = vadd.f32 %v4257_v20, %v2361_v5  ;;  %v2363_v39 = vpop.f32.mrb[77].mxu0  ;;  %v4381_v22 = vpop.f32.mrb[77].mxu1  ;;  %v2418_v42 = vadd.f32 %v4257_v20, %v4208_v33 }
 0x1b3   : > { %v2364_v4 = vpop.f32.mrb[78].mxu0  ;;  %v4383_v23 = vpop.f32.mrb[78].mxu1 }
 0x1b4   : > { %v2651_v16 = vadd.f32 %v3260_v38, %v2362_v30  ;;  %v2365_v7 = vadd.f32 %v4257_v20, %v2364_v4  ;;  %v2366_v36 = vpop.f32.mrb[79].mxu0  ;;  %v4386_v45 = vpop.f32.mrb[79].mxu1  ;;  %v2402_v38 = vadd.f32 %v4257_v20, %v4196_v61  ;;  %v2421_v4 = vadd.f32 %v4257_v20, %v4212_v54 }
 0x1b6   : > { %2791 = vst [vmem:[%s4265_s30 + $0x130] sm:$0xff] %v2651_v16  ;;  %v2854_v37 = vadd.f32 %v2853_v35, %v2651_v16  ;;  %v2924_v14 = vmul.f32 %v2651_v16, %v2651_v16  ;;  %v2654_v41 = vadd.f32 %v3261_v43, %v2365_v7 }
 0x1b8   : > { %v2987_v48 = vadd.f32 %v2986_v8, %v2924_v14  ;;  %2792 = vst [vmem:[%s4265_s30 + $0x138] sm:$0xff] %v2654_v41  ;;  %v2855_v26 = vadd.f32 %v2854_v37, %v2654_v41  ;;  %v2925_v10 = vmul.f32 %v2654_v41, %v2654_v41 }
 0x1b9   : > { %v2369_v50 = vpop.f32.mrb[80].mxu0  ;;  %v3272_v34 = vpop.f32.mrb[80].mxu1 }
 0x1ba   : > { %v2988_v40 = vadd.f32 %v2987_v48, %v2925_v10  ;;  %v2370_v43 = vadd.f32 %v4257_v20, %v2369_v50  ;;  %v4397_v57 = vadd.f32 %v3272_v34, %v2410_v28  ;;  %v2371_v62 = vpop.f32.mrb[81].mxu0  ;;  %v2690_v59 = vpop.f32.mrb[81].mxu1  ;;  %v2434_v34 = vadd.f32 %v4257_v20, %v4224_v63 }
 0x1bb   : > { %v4401_v18 = vadd.f32 %v2690_v59, %v2402_v38  ;;  %v2372_v61 = vpop.f32.mrb[82].mxu0  ;;  %v3273_v21 = vpop.f32.mrb[82].mxu1 }
 0x1bc   : > { %v2659_v6 = vadd.f32 %v2658_v15, %v2370_v43  ;;  %2803 = vst [vmem:[%s4265_s30 + $0x190] sm:$0xff] %v4397_v57  ;;  %v2373_v3 = vadd.f32 %v4257_v20, %v2372_v61  ;;  %v4406_v56 = vadd.f32 %v3273_v21, %v2413_v25  ;;  %v2374_v9 = vpop.f32.mrb[83].mxu0  ;;  %v2693_v27 = vpop.f32.mrb[83].mxu1  ;;  %v2426_v15 = vadd.f32 %v4257_v20, %v4216_v19 }
 0x1bd   : > { %2801 = vst [vmem:[%s4265_s30 + $0x180] sm:$0xff] %v4401_v18  ;;  %v4410_v53 = vadd.f32 %v2693_v27, %v2405_v58  ;;  %v2437_v61 = vadd.f32 %v4257_v20, %v4228_v2 }
 0x1be   : > { %2793 = vst [vmem:[%s4265_s30 + $0x140] sm:$0xff] %v2659_v6  ;;  %v2856_v52 = vadd.f32 %v2855_v26, %v2659_v6  ;;  %v2926_v31 = vmul.f32 %v2659_v6, %v2659_v6  ;;  %v2662_v60 = vadd.f32 %v2661_v44, %v2373_v3  ;;  %2804 = vst [vmem:[%s4265_s30 + $0x198] sm:$0xff] %v4406_v56 }
 0x1bf   : > { %2802 = vst [vmem:[%s4265_s30 + $0x188] sm:$0xff] %v4410_v53  ;;  %v2429_v44 = vadd.f32 %v4257_v20, %v4220_v13 }
 0x1c0   : > { %v2989_v0 = vadd.f32 %v2988_v40, %v2926_v31  ;;  %2794 = vst [vmem:[%s4265_s30 + $0x148] sm:$0xff] %v2662_v60  ;;  %v2857_v12 = vadd.f32 %v2856_v52, %v2662_v60  ;;  %v2927_v1 = vmul.f32 %v2662_v60, %v2662_v60 }
 0x1c1   : > { %v2377_v35 = vpop.f32.mrb[84].mxu0  ;;  %v3276_v55 = vpop.f32.mrb[84].mxu1 }
 0x1c2   : > { %v2990_v5 = vadd.f32 %v2989_v0, %v2927_v1  ;;  %v2378_v8 = vadd.f32 %v4257_v20, %v2377_v35  ;;  %v4425_v30 = vadd.f32 %v3276_v55, %v2426_v15  ;;  %v2379_v19 = vpop.f32.mrb[85].mxu0  ;;  %v2706_v39 = vpop.f32.mrb[85].mxu1 }
 0x1c3   : > { %v4429_v16 = vadd.f32 %v2706_v39, %v2418_v42  ;;  %v2380_v33 = vpop.f32.mrb[86].mxu0  ;;  %v3277_v7 = vpop.f32.mrb[86].mxu1  ;;  %v2450_v42 = vadd.f32 %v4257_v20, %v4240_v47  ;;  %v2453_v39 = vadd.f32 %v4257_v20, %v4244_v46 }
 0x1c4   : > { %v2667_v13 = vadd.f32 %v4370_v49, %v2378_v8  ;;  %2807 = vst [vmem:[%s4265_s30 + $0x1b0] sm:$0xff] %v4425_v30  ;;  %v2381_v36 = vadd.f32 %v4257_v20, %v2380_v33  ;;  %v4435_v37 = vadd.f32 %v3277_v7, %v2429_v44  ;;  %v2382_v14 = vpop.f32.mrb[87].mxu0  ;;  %v2709_v41 = vpop.f32.mrb[87].mxu1  ;;  %v2442_v49 = vadd.f32 %v4257_v20, %v4232_v51 }
 0x1c5   : > { %2805 = vst [vmem:[%s4265_s30 + $0x1a0] sm:$0xff] %v4429_v16  ;;  %v4439_v54 = vadd.f32 %v2709_v41, %v2421_v4 }
 0x1c6   : > { %2795 = vst [vmem:[%s4265_s30 + $0x150] sm:$0xff] %v2667_v13  ;;  %v2858_v28 = vadd.f32 %v2857_v12, %v2667_v13  ;;  %v2928_v48 = vmul.f32 %v2667_v13, %v2667_v13  ;;  %v2670_v26 = vadd.f32 %v4373_v11, %v2381_v36  ;;  %2808 = vst [vmem:[%s4265_s30 + $0x1b8] sm:$0xff] %v4435_v37 }
 0x1c7   : > { %2806 = vst [vmem:[%s4265_s30 + $0x1a8] sm:$0xff] %v4439_v54  ;;  %v2445_v11 = vadd.f32 %v4257_v20, %v4236_v29 }
 0x1c8   : > { %v2991_v10 = vadd.f32 %v2990_v5, %v2928_v48  ;;  %2796 = vst [vmem:[%s4265_s30 + $0x158] sm:$0xff] %v2670_v26  ;;  %v2859_v38 = vadd.f32 %v2858_v28, %v2670_v26  ;;  %v2929_v50 = vmul.f32 %v2670_v26, %v2670_v26 }
 0x1c9   : > { %v2385_v25 = vpop.f32.mrb[88].mxu0  ;;  %v3280_v40 = vpop.f32.mrb[88].mxu1 }
 0x1ca   : > { %v2992_v43 = vadd.f32 %v2991_v10, %v2929_v50  ;;  %v2386_v62 = vadd.f32 %v4257_v20, %v2385_v25  ;;  %v4455_v59 = vadd.f32 %v3280_v40, %v2442_v49  ;;  %v2387_v51 = vpop.f32.mrb[89].mxu0  ;;  %v2722_v58 = vpop.f32.mrb[89].mxu1  ;;  %v2934_v10 = vmul.f32 %v4401_v18, %v4401_v18 }
 0x1cb   : > { %v4459_v21 = vadd.f32 %v2722_v58, %v2434_v34  ;;  %v2388_v63 = vpop.f32.mrb[90].mxu0  ;;  %v3281_v6 = vpop.f32.mrb[90].mxu1  ;;  %v2935_v50 = vmul.f32 %v4410_v53, %v4410_v53 }
 0x1cc   : > { %v2675_v29 = vadd.f32 %v4381_v22, %v2386_v62  ;;  %2811 = vst [vmem:[%s4265_s30 + $0x1d0] sm:$0xff] %v4455_v59  ;;  %v2389_v3 = vadd.f32 %v4257_v20, %v2388_v63  ;;  %v4465_v9 = vadd.f32 %v3281_v6, %v2445_v11  ;;  %v2390_v27 = vpop.f32.mrb[91].mxu0  ;;  %v2725_v52 = vpop.f32.mrb[91].mxu1  ;;  %v2458_v22 = vadd.f32 %v4257_v20, %v4248_v17 }
 0x1cd   : > { %2809 = vst [vmem:[%s4265_s30 + $0x1c0] sm:$0xff] %v4459_v21  ;;  %v4469_v2 = vadd.f32 %v2725_v52, %v2437_v61 }
 0x1ce   : > { %2797 = vst [vmem:[%s4265_s30 + $0x160] sm:$0xff] %v2675_v29  ;;  %v2860_v31 = vadd.f32 %v2859_v38, %v2675_v29  ;;  %v2930_v60 = vmul.f32 %v2675_v29, %v2675_v29  ;;  %v2678_v15 = vadd.f32 %v4386_v45, %v2389_v3  ;;  %2812 = vst [vmem:[%s4265_s30 + $0x1d8] sm:$0xff] %v4465_v9 }
 0x1cf   : > { %2810 = vst [vmem:[%s4265_s30 + $0x1c8] sm:$0xff] %v4469_v2  ;;  %v2461_v45 = vadd.f32 %v4257_v20, %v4252_v24 }
 0x1d0   : > { %v2993_v0 = vadd.f32 %v2992_v43, %v2930_v60  ;;  %2798 = vst [vmem:[%s4265_s30 + $0x168] sm:$0xff] %v2678_v15  ;;  %v2861_v12 = vadd.f32 %v2860_v31, %v2678_v15  ;;  %v2931_v1 = vmul.f32 %v2678_v15, %v2678_v15  ;;  %v2937_v43 = vmul.f32 %v4406_v56, %v4406_v56 }
 0x1d1   : > { %v2393_v35 = vpop.f32.mrb[92].mxu0  ;;  %v3284_v55 = vpop.f32.mrb[92].mxu1 }
 0x1d2   : > { %v2994_v44 = vadd.f32 %v2993_v0, %v2931_v1  ;;  %v2394_v5 = vadd.f32 %v4257_v20, %v2393_v35  ;;  %v4485_v8 = vadd.f32 %v3284_v55, %v2458_v22  ;;  %v2395_v17 = vpop.f32.mrb[93].mxu0  ;;  %v2738_v19 = vpop.f32.mrb[93].mxu1 }
 0x1d3   : > { %v2739_v4 = vadd.f32 %v2738_v19, %v2450_v42  ;;  %v2396_v47 = vpop.f32.mrb[94].mxu0  ;;  %v3285_v33 = vpop.f32.mrb[94].mxu1 }
 0x1d4   : > { %v2683_v24 = vadd.f32 %v4378_v32, %v2394_v5  ;;  %2815 = vst [vmem:[%s4265_s30 + $0x1f0] sm:$0xff] %v4485_v8  ;;  %v2397_v7 = vadd.f32 %v4257_v20, %v2396_v47  ;;  %v2750_v13 = vadd.f32 %v3285_v33, %v2461_v45  ;;  %v2398_v36 = vpop.f32.mrb[95].mxu0  ;;  %v2741_v14 = vpop.f32.mrb[95].mxu1  ;;  %v2948_v5 = vmul.f32 %v4485_v8, %v4485_v8 }
 0x1d5   : > { %2813 = vst [vmem:[%s4265_s30 + $0x1e0] sm:$0xff] %v2739_v4  ;;  %v2742_v41 = vadd.f32 %v2741_v14, %v2453_v39  ;;  %v2946_v42 = vmul.f32 %v2739_v4, %v2739_v4 }
 0x1d6   : > { %2799 = vst [vmem:[%s4265_s30 + $0x170] sm:$0xff] %v2683_v24  ;;  %v2862_v28 = vadd.f32 %v2861_v12, %v2683_v24  ;;  %v2932_v46 = vmul.f32 %v2683_v24, %v2683_v24  ;;  %v2686_v48 = vadd.f32 %v4383_v23, %v2397_v7  ;;  %2816 = vst [vmem:[%s4265_s30 + $0x1f8] sm:$0xff] %v2750_v13 }
 0x1d7   : > { %2814 = vst [vmem:[%s4265_s30 + $0x1e8] sm:$0xff] %v2742_v41  ;;  %v2936_v23 = vmul.f32 %v4397_v57, %v4397_v57  ;;  %v2949_v19 = vmul.f32 %v2750_v13, %v2750_v13 }
 0x1d8   : > { %v2995_v26 = vadd.f32 %v2994_v44, %v2932_v46  ;;  %2800 = vst [vmem:[%s4265_s30 + $0x178] sm:$0xff] %v2686_v48  ;;  %v2863_v49 = vadd.f32 %v2862_v28, %v2686_v48  ;;  %v2933_v32 = vmul.f32 %v2686_v48, %v2686_v48 }
 0x1da   : > { %v2864_v20 = vadd.f32 %v2863_v49, %v4401_v18  ;;  %v2996_v38 = vadd.f32 %v2995_v26, %v2933_v32  ;;  %v2938_v18 = vmul.f32 %v4429_v16, %v4429_v16 }
 0x1dc   : > { %v2865_v34 = vadd.f32 %v2864_v20, %v4410_v53  ;;  %v2997_v25 = vadd.f32 %v2996_v38, %v2934_v10  ;;  %v2939_v53 = vmul.f32 %v4439_v54, %v4439_v54 }
 0x1de   : > { %v2866_v40 = vadd.f32 %v2865_v34, %v4397_v57  ;;  %v2998_v11 = vadd.f32 %v2997_v25, %v2935_v50  ;;  %v2940_v57 = vmul.f32 %v4425_v30, %v4425_v30 }
 0x1e0   : > { %v2867_v62 = vadd.f32 %v2866_v40, %v4406_v56  ;;  %v2999_v51 = vadd.f32 %v2998_v11, %v2936_v23  ;;  %v2941_v56 = vmul.f32 %v4435_v37, %v4435_v37 }
 0x1e2   : > { %v2868_v58 = vadd.f32 %v2867_v62, %v4429_v16  ;;  %v3000_v61 = vadd.f32 %v2999_v51, %v2937_v43  ;;  %v2942_v16 = vmul.f32 %v4459_v21, %v4459_v21 }
 0x1e4   : > { %v2869_v63 = vadd.f32 %v2868_v58, %v4439_v54  ;;  %v3001_v6 = vadd.f32 %v3000_v61, %v2938_v18  ;;  %v2943_v54 = vmul.f32 %v4469_v2, %v4469_v2 }
 0x1e6   : > { %v3002_v29 = vadd.f32 %v3001_v6, %v2939_v53  ;;  %v2870_v3 = vadd.f32 %v2869_v63, %v4425_v30  ;;  %v2944_v30 = vmul.f32 %v4455_v59, %v4455_v59 }
 0x1e8   : > { %v2871_v27 = vadd.f32 %v2870_v3, %v4435_v37  ;;  %v3003_v52 = vadd.f32 %v3002_v29, %v2940_v57  ;;  %v2945_v37 = vmul.f32 %v4465_v9, %v4465_v9 }
 0x1ea   : > { %v2872_v31 = vadd.f32 %v2871_v27, %v4459_v21  ;;  %v3004_v60 = vadd.f32 %v3003_v52, %v2941_v56 }
 0x1ec   : > { %v2873_v15 = vadd.f32 %v2872_v31, %v4469_v2  ;;  %v3005_v22 = vadd.f32 %v3004_v60, %v2942_v16  ;;  %v2947_v2 = vmul.f32 %v2742_v41, %v2742_v41 }
 0x1ee   : > { %v2874_v0 = vadd.f32 %v2873_v15, %v4455_v59  ;;  %v3006_v12 = vadd.f32 %v3005_v22, %v2943_v54 }
 0x1f0   : > { %v2875_v1 = vadd.f32 %v2874_v0, %v4465_v9  ;;  %v3007_v21 = vadd.f32 %v3006_v12, %v2944_v30 }
 0x1f2   : > { %v2876_v35 = vadd.f32 %v2875_v1, %v2739_v4  ;;  %v3008_v55 = vadd.f32 %v3007_v21, %v2945_v37 }
 0x1f4   : > { %v2877_v45 = vadd.f32 %v2876_v35, %v2742_v41  ;;  %v3009_v44 = vadd.f32 %v3008_v55, %v2946_v42 }
 0x1f6   : > { %v2878_v59 = vadd.f32 %v2877_v45, %v4485_v8  ;;  %v3010_v17 = vadd.f32 %v3009_v44, %v2947_v2 }
 0x1f8   : > { %v2879_v39 = vadd.f32 %v2878_v59, %v2750_v13  ;;  %v3011_v47 = vadd.f32 %v3010_v17, %v2948_v5 }
 0x1fa   : > { %v2880_v33 = vrot.slane %v2879_v39, 4  ;;  %v3012_v9 = vadd.f32 %v3011_v47, %v2949_v19 }
 0x1fc   : > { %v2881_v24 = vadd.f32 %v2880_v33, %v2879_v39  ;;  %v3013_v7 = vrot.slane %v3012_v9, 4 }
 0x1fe   : > { %v2882_v4 = vrot.slane %v2881_v24, 2  ;;  %v3014_v36 = vadd.f32 %v3013_v7, %v3012_v9 }
 0x200   : > { %v2883_v14 = vadd.f32 %v2882_v4, %v2881_v24  ;;  %v3015_v41 = vrot.slane %v3014_v36, 2 }
 0x202   : > { %v2884_v28 = vrot.slane %v2883_v14, 1  ;;  %v3016_v46 = vadd.f32 %v3015_v41, %v3014_v36 }
 0x204   : > { %v3017_v48 = vrot.slane %v3016_v46, 1  ;;  %v2885_v8 = vadd.f32 %v2884_v28, %v2883_v14 }
 0x206   : > { %v3018_v13 = vadd.f32 %v3017_v48, %v3016_v46 }
 0x208   : > { %v3020_v26 = vsel %vm3019_vm11, %v2885_v8, %v3018_v13 }
 0x209   : > { %3021 = vst [vmem:[%s211_s7] sm:$0x3] %v3020_v26 }
 0x20a PF: > { %s15_s15 = sadd.s32 1, %s3360_s15  }
 0x20b   : > { %p12_p5 = scmp.ge.s32.totalorder %s15_s15, 6  }
 0x20d   :  { %14 = sbr.rel (!%p12_p5) target bundleno = 1 (0x1), region = 74 }

</bundles_post_ra>
